<compile_context>
chip_gen: v6e
topology: v6e:2x2x1
jax: 0.10.0
libtpu: 0.0.40
codegen_flags: <defaults>
</compile_context>

<pallas_src>
import functools

import jax
import jax.numpy as jnp
from jax.experimental import pallas as pl
from jax.experimental.pallas import tpu as pltpu


# Network geometry (fixed by the module + 32x32 input).
_S1, _S2, _S3 = 32, 16, 8          # conv1/conv2/conv3 spatial size (square)
_C1, _C2, _C3 = 32, 64, 128        # conv1/conv2/conv3 output channels
_FC1_IN, _FC1_OUT = _C3 * 4 * 4, 256


# ----------------------------------------------------------------------------
# In-kernel helpers
# ----------------------------------------------------------------------------
def _maxpool2x2_rows(y, s):
    """2x2 max-pool of an (s*s, C) row-major feature map -> (s/2*s/2, C)."""
    c = y.shape[-1]
    y = y.reshape(s // 2, 2, s, c)
    y = jnp.max(y, axis=1)                      # pool along h (outer axis)
    y = y.reshape(s // 2, s // 2, 2, c)
    y = jnp.max(y, axis=2)                      # pool along w (sublane pairs)
    return y.reshape((s // 2) * (s // 2), c)


# ----------------------------------------------------------------------------
# Kernel 1: conv1->pool->conv2->pool->conv3->pool, one image per grid step
# ----------------------------------------------------------------------------
def _features_kernel(p1_ref, w1_ref, t1_ref, w2_ref, t2_ref, w3_ref, t3_ref,
                     out_ref, pad2_ref, pad3_ref):
    f32, bf16 = jnp.float32, jnp.bfloat16

    # --- conv1 + BN + ReLU (patches prebuilt; BN scale folded into w1) -------
    y1 = jnp.dot(p1_ref[0], w1_ref[...], preferred_element_type=f32)
    y1 = jnp.maximum(y1 + t1_ref[...], 0.0)                      # (1024, 32)
    # Fused MaxPool2d(2): the 4 pooling positions are contiguous row blocks
    # (patch rows were ordered (py, px, h2, w2) by the wrapper).
    n = _S2 * _S2
    a1 = jnp.maximum(jnp.maximum(y1[0 * n:1 * n], y1[1 * n:2 * n]),
                     jnp.maximum(y1[2 * n:3 * n], y1[3 * n:4 * n]))  # (256, 32)

    # --- conv2 + BN + ReLU + MaxPool2d(2), im2col in VMEM --------------------
    pad2_ref[...] = jnp.zeros(pad2_ref.shape, pad2_ref.dtype)
    pad2_ref[pl.ds(1, _S2), pl.ds(8, _S2), :] = a1.reshape(_S2, _S2, _C1)
    acc2 = jnp.zeros((_S2 * _S2, _C2), f32)
    for t in range(9):
        dy, dx = divmod(t, 3)
        win = pad2_ref[pl.ds(dy, _S2), pl.ds(7 + dx, _S2), :]    # (16,16,32)
        acc2 = acc2 + jnp.dot(win.reshape(_S2 * _S2, _C1).astype(bf16),
                              w2_ref[pl.ds(t * _C1, _C1), :],
                              preferred_element_type=f32)
    y2 = jnp.maximum(acc2 + t2_ref[...], 0.0)                    # (256, 64)
    a2 = _maxpool2x2_rows(y2, _S2)                               # (64, 64)

    # --- conv3 + BN + ReLU + MaxPool2d(2) ------------------------------------
    pad3_ref[...] = jnp.zeros(pad3_ref.shape, pad3_ref.dtype)
    pad3_ref[pl.ds(1, _S3), pl.ds(8, _S3), :] = a2.reshape(_S3, _S3, _C2)
    acc3 = jnp.zeros((_S3 * _S3, _C3), f32)
    for t in range(9):
        dy, dx = divmod(t, 3)
        win = pad3_ref[pl.ds(dy, _S3), pl.ds(7 + dx, _S3), :]    # (8,8,64)
        acc3 = acc3 + jnp.dot(win.reshape(_S3 * _S3, _C2).astype(bf16),
                              w3_ref[pl.ds(t * _C2, _C2), :],
                              preferred_element_type=f32)
    y3 = jnp.maximum(acc3 + t3_ref[...], 0.0)                    # (64, 128)
    a3 = _maxpool2x2_rows(y3, _S3)                               # (16, 128)

    # AdaptiveAvgPool2d((4,4)) is the identity here (spatial already 4x4).
    out_ref[0] = a3.astype(out_ref.dtype)


def _features_forward(patches1, fp):
    B = patches1.shape[0]
    return pl.pallas_call(
        _features_kernel,
        out_shape=jax.ShapeDtypeStruct((B, 16, _C3), jnp.bfloat16),
        grid=(B,),
        in_specs=[
            pl.BlockSpec((1, 4 * _S2 * _S2, 9), lambda b: (b, 0, 0)),
            pl.BlockSpec((9, _C1), lambda b: (0, 0)),
            pl.BlockSpec((1, _C1), lambda b: (0, 0)),
            pl.BlockSpec((9 * _C1, _C2), lambda b: (0, 0)),
            pl.BlockSpec((1, _C2), lambda b: (0, 0)),
            pl.BlockSpec((9 * _C2, _C3), lambda b: (0, 0)),
            pl.BlockSpec((1, _C3), lambda b: (0, 0)),
        ],
        out_specs=pl.BlockSpec((1, 16, _C3), lambda b: (b, 0, 0)),
        scratch_shapes=[
            pltpu.VMEM((_S2 + 2, _S2 + 16, _C1), jnp.float32),   # padded act 2
            pltpu.VMEM((_S3 + 2, _S3 + 16, _C2), jnp.float32),   # padded act 3
        ],
        compiler_params=pltpu.CompilerParams(dimension_semantics=("parallel",)),
    )(patches1, fp["w1"], fp["t1"], fp["w2"], fp["t2"], fp["w3"], fp["t3"])


# ----------------------------------------------------------------------------
# Kernel 2: fc1 + ReLU + (Dropout: identity) + fc2, fc2 padded to 128 lanes
# ----------------------------------------------------------------------------
def _classifier_kernel(x_ref, w1_ref, b1_ref, w2_ref, b2_ref, o_ref):
    h = jnp.dot(x_ref[...], w1_ref[...], preferred_element_type=jnp.float32)
    h = jnp.maximum(h + b1_ref[...], 0.0)
    # TODO(synk): Dropout(0.5) in inference mode == identity.
    logits = jnp.dot(h.astype(w2_ref.dtype), w2_ref[...],
                     preferred_element_type=jnp.float32)
    o_ref[...] = (logits + b2_ref[...]).astype(o_ref.dtype)


def _classifier_forward(flat, fp):
    B, K = flat.shape
    tm = 128 if (B % 128 == 0) else B
    return pl.pallas_call(
        _classifier_kernel,
        out_shape=jax.ShapeDtypeStruct((B, 128), jnp.float32),
        grid=(B // tm,),
        in_specs=[
            pl.BlockSpec((tm, K), lambda i: (i, 0)),
            pl.BlockSpec((K, _FC1_OUT), lambda i: (0, 0)),
            pl.BlockSpec((1, _FC1_OUT), lambda i: (0, 0)),
            pl.BlockSpec((_FC1_OUT, 128), lambda i: (0, 0)),
            pl.BlockSpec((1, 128), lambda i: (0, 0)),
        ],
        out_specs=pl.BlockSpec((tm, 128), lambda i: (i, 0)),
        compiler_params=pltpu.CompilerParams(dimension_semantics=("parallel",)),
    )(flat, fp["fc1_w"], fp["fc1_b"], fp["fc2_w"], fp["fc2_b"])


# ----------------------------------------------------------------------------
# Wrapper glue
# ----------------------------------------------------------------------------
def _conv1_patches(x_bhw):
    """3x3/pad=1 im2col of the single-channel input, rows ordered
    (py, px, h2, w2) so the kernel fuses MaxPool2d(2) as a block max."""
    B, H, W = x_bhw.shape
    xp = jnp.pad(x_bhw, ((0, 0), (1, 1), (1, 1)))
    taps = [xp[:, dy:dy + H, dx:dx + W] for dy in range(3) for dx in range(3)]
    pat = jnp.stack(taps, axis=-1)                      # (B, H, W, 9)
    h2, w2 = H // 2, W // 2
    pat = pat.reshape(B, h2, 2, w2, 2, 9)               # (B, h2, py, w2, px, 9)
    pat = pat.transpose(0, 2, 4, 1, 3, 5)               # (B, py, px, h2, w2, 9)
    return pat.reshape(B, 4 * h2 * w2, 9).astype(jnp.bfloat16)


def prepare_params(params, eps=1e-5):
    """One-time parameter prep (outside the step): fold conv bias + BatchNorm
    into the weight columns / a per-channel shift, reshape conv weights to
    im2col matrices, permute fc1 to (h, w, c) flatten order, pad fc2 to 128
    classes, and cast matmul operands to bfloat16."""
    f32, bf16 = jnp.float32, jnp.bfloat16

    def conv_prep(w_oihw, bias, bn):
        gamma, beta, mean, var = bn
        s = gamma / jnp.sqrt(var + eps)                 # (Cout,)
        shift = (bias - mean) * s + beta
        cout = w_oihw.shape[0]
        # (Cout, Cin, 3, 3) -> rows (dy, dx, cin), cols Cout; BN scale folded in.
        w_mat = jnp.transpose(w_oihw, (2, 3, 1, 0)).reshape(-1, cout)
        w_mat = w_mat * s.reshape(1, cout)
        return w_mat.astype(bf16), shift.reshape(1, cout).astype(f32)

    w1, t1 = conv_prep(params["conv1_w"], params["conv1_b"], params["bn1"])
    w2, t2 = conv_prep(params["conv2_w"], params["conv2_b"], params["bn2"])
    w3, t3 = conv_prep(params["conv3_w"], params["conv3_b"], params["bn3"])

    # fc1: PyTorch flattens NCHW (c, h, w); the kernel flattens (h, w, c).
    fc1 = params["fc1_w"].reshape(_FC1_OUT, _C3, 4, 4)
    fc1 = jnp.transpose(fc1, (2, 3, 1, 0)).reshape(_FC1_IN, _FC1_OUT)

    nc = params["fc2_w"].shape[0]
    fc2 = jnp.zeros((_FC1_OUT, 128), f32).at[:, :nc].set(params["fc2_w"].T)
    b2 = jnp.zeros((1, 128), f32).at[0, :nc].set(params["fc2_b"])

    return {
        "w1": w1, "t1": t1, "w2": w2, "t2": t2, "w3": w3, "t3": t3,
        "fc1_w": fc1.astype(bf16),
        "fc1_b": params["fc1_b"].reshape(1, _FC1_OUT).astype(f32),
        "fc2_w": fc2.astype(bf16),
        "fc2_b": b2,
        "num_classes": nc,
    }


def simple_audio_classifier_forward(x_nchw, fp):
    B, cin, H, W = x_nchw.shape
    if cin != 1 or (H, W) != (_S1, _S1):
        # TODO(synk): other sizes need a real AdaptiveAvgPool2d((4,4)) stage.
        raise NotImplementedError("expects (B, 1, 32, 32) input")
    patches1 = _conv1_patches(x_nchw[:, 0].astype(jnp.float32))
    feats = _features_forward(patches1, fp)             # (B, 16, 128) bf16
    flat = feats.reshape(B, _FC1_IN)                    # free reshape in HBM
    logits = _classifier_forward(flat, fp)              # (B, 128) lane-dense
    return logits[:, :fp["num_classes"]]


# ----------------------------------------------------------------------------
# Parameter init (PyTorch-default-like) and demo
# ----------------------------------------------------------------------------
def init_params(key, num_classes):
    ks = jax.random.split(key, 10)

    def winit(k, shape, fan_in):
        return jax.random.normal(k, shape, jnp.float32) / jnp.sqrt(float(fan_in))

    def bn(c):  # (gamma, beta, running_mean, running_var)
        return (jnp.ones((c,), jnp.float32), jnp.zeros((c,), jnp.float32),
                jnp.zeros((c,), jnp.float32), jnp.ones((c,), jnp.float32))

    return {
        "conv1_w": winit(ks[0], (32, 1, 3, 3), 1 * 9),
        "conv1_b": winit(ks[1], (32,), 1 * 9),
        "bn1": bn(32),
        "conv2_w": winit(ks[2], (64, 32, 3, 3), 32 * 9),
        "conv2_b": winit(ks[3], (64,), 32 * 9),
        "bn2": bn(64),
        "conv3_w": winit(ks[4], (128, 64, 3, 3), 64 * 9),
        "conv3_b": winit(ks[5], (128,), 64 * 9),
        "bn3": bn(128),
        "fc1_w": winit(ks[6], (256, 128 * 4 * 4), 128 * 4 * 4),
        "fc1_b": winit(ks[7], (256,), 128 * 4 * 4),
        "fc2_w": winit(ks[8], (num_classes, 256), 256),
        "fc2_b": winit(ks[9], (num_classes,), 256),
    }


if __name__ == "__main__":
    num_classes = 10
    key = jax.random.PRNGKey(0)
    kp, kx = jax.random.split(key)

    params = init_params(kp, num_classes)
    fp = prepare_params(params)          # one-time prep, outside the step

    # PyTorch-style NCHW input: (batch, 1 channel, 32, 32) "spectrogram".
    x = jax.random.normal(kx, (2, 1, 32, 32), jnp.float32)

    fwd = jax.jit(lambda inp: simple_audio_classifier_forward(inp, fp))
    logits = jax.block_until_ready(fwd(x))

    assert logits.shape == (2, num_classes)
    assert bool(jnp.all(jnp.isfinite(logits)))
    print("KERNEL_OK")
</pallas_src>

<mosaic_0001>
module attributes {stable_mosaic.version = 11 : i64} {
  func.func @_classifier_kernel(%arg0: i32, %arg1: memref<2x2048xbf16, #tpu.memory_space<vmem>>, %arg2: memref<2048x256xbf16, #tpu.memory_space<vmem>>, %arg3: memref<1x256xf32, #tpu.memory_space<vmem>>, %arg4: memref<256x128xbf16, #tpu.memory_space<vmem>>, %arg5: memref<1x128xf32, #tpu.memory_space<vmem>>, %arg6: memref<2x128xf32, #tpu.memory_space<vmem>>) attributes {dimension_semantics = [#tpu.dimension_semantics<parallel>], iteration_bounds = array<i64: 1>, scalar_prefetch = 0 : i64, scratch_operands = 0 : i64, tpu.core_type = #tpu.core_type<tc>, window_params = [{transform_indices = @transform_0, window_bounds = array<i64: 2, 2048>}, {pipeline_mode = #tpu.pipeline_mode<synchronous>, transform_indices = @transform_1, window_bounds = array<i64: 2048, 256>}, {pipeline_mode = #tpu.pipeline_mode<synchronous>, transform_indices = @transform_2, window_bounds = array<i64: 1, 256>}, {pipeline_mode = #tpu.pipeline_mode<synchronous>, transform_indices = @transform_3, window_bounds = array<i64: 256, 128>}, {pipeline_mode = #tpu.pipeline_mode<synchronous>, transform_indices = @transform_4, window_bounds = array<i64: 1, 128>}, {transform_indices = @transform_5, window_bounds = array<i64: 2, 128>}]} {
    %c0 = arith.constant 0 : index
    %c0_0 = arith.constant 0 : index
    %0 = vector.load %arg1[%c0, %c0_0] : memref<2x2048xbf16, #tpu.memory_space<vmem>>, vector<2x2048xbf16>
    %c0_1 = arith.constant 0 : index
    %c0_2 = arith.constant 0 : index
    %1 = vector.load %arg2[%c0_1, %c0_2] : memref<2048x256xbf16, #tpu.memory_space<vmem>>, vector<2048x256xbf16>
    %cst = arith.constant dense<0.000000e+00> : vector<2x256xf32>
    %2 = tpu.matmul %0, %1, %cst {dimension_numbers = #tpu.dot_dimension_numbers<[1], [0], [0], [1], [0, 0, 1, 1], [], []>} : vector<2x2048xbf16>, vector<2048x256xbf16>, vector<2x256xf32> -> vector<2x256xf32>
    %c0_3 = arith.constant 0 : index
    %c0_4 = arith.constant 0 : index
    %3 = vector.load %arg3[%c0_3, %c0_4] : memref<1x256xf32, #tpu.memory_space<vmem>>, vector<1x256xf32>
    %4 = vector.broadcast %3 : vector<1x256xf32> to vector<2x256xf32>
    %5 = arith.addf %2, %4 : vector<2x256xf32>
    %cst_5 = arith.constant 0.000000e+00 : f32
    %6 = vector.broadcast %cst_5 : f32 to vector<2x256xf32>
    %7 = arith.maximumf %5, %6 : vector<2x256xf32>
    %8 = arith.truncf %7 : vector<2x256xf32> to vector<2x256xbf16>
    %c0_6 = arith.constant 0 : index
    %c0_7 = arith.constant 0 : index
    %9 = vector.load %arg4[%c0_6, %c0_7] : memref<256x128xbf16, #tpu.memory_space<vmem>>, vector<256x128xbf16>
    %cst_8 = arith.constant dense<0.000000e+00> : vector<2x128xf32>
    %10 = tpu.matmul %8, %9, %cst_8 {dimension_numbers = #tpu.dot_dimension_numbers<[1], [0], [0], [1], [0, 0, 1, 1], [], []>} : vector<2x256xbf16>, vector<256x128xbf16>, vector<2x128xf32> -> vector<2x128xf32>
    %c0_9 = arith.constant 0 : index
    %c0_10 = arith.constant 0 : index
    %11 = vector.load %arg5[%c0_9, %c0_10] : memref<1x128xf32, #tpu.memory_space<vmem>>, vector<1x128xf32>
    %12 = vector.broadcast %11 : vector<1x128xf32> to vector<2x128xf32>
    %13 = arith.addf %10, %12 : vector<2x128xf32>
    %c0_11 = arith.constant 0 : index
    %c0_12 = arith.constant 0 : index
    %14 = vector.load %arg6[%c0_11, %c0_12] : memref<2x128xf32, #tpu.memory_space<vmem>>, vector<2x128xf32>
    tpu.vector_store %arg6[%c0_11, %c0_12], %13 {strides = array<i32>} : memref<2x128xf32, #tpu.memory_space<vmem>>, vector<2x128xf32>,
    return
  }
  func.func @transform_0(%arg0: i32) -> (i32, i32) {
    %c0_i32 = arith.constant 0 : i32
    %c0_i32_0 = arith.constant 0 : i32
    return %arg0, %c0_i32 : i32, i32
  }
  func.func @transform_1(%arg0: i32) -> (i32, i32) {
    %c0_i32 = arith.constant 0 : i32
    %c0_i32_0 = arith.constant 0 : i32
    %c0_i32_1 = arith.constant 0 : i32
    return %c0_i32, %c0_i32_0 : i32, i32
  }
  func.func @transform_2(%arg0: i32) -> (i32, i32) {
    %c0_i32 = arith.constant 0 : i32
    %c0_i32_0 = arith.constant 0 : i32
    %c0_i32_1 = arith.constant 0 : i32
    return %c0_i32, %c0_i32_0 : i32, i32
  }
  func.func @transform_3(%arg0: i32) -> (i32, i32) {
    %c0_i32 = arith.constant 0 : i32
    %c0_i32_0 = arith.constant 0 : i32
    %c0_i32_1 = arith.constant 0 : i32
    return %c0_i32, %c0_i32_0 : i32, i32
  }
  func.func @transform_4(%arg0: i32) -> (i32, i32) {
    %c0_i32 = arith.constant 0 : i32
    %c0_i32_0 = arith.constant 0 : i32
    %c0_i32_1 = arith.constant 0 : i32
    return %c0_i32, %c0_i32_0 : i32, i32
  }
  func.func @transform_5(%arg0: i32) -> (i32, i32) {
    %c0_i32 = arith.constant 0 : i32
    %c0_i32_0 = arith.constant 0 : i32
    return %arg0, %c0_i32 : i32, i32
  }
}

module attributes {stable_mosaic.version = 11 : i64} {
  func.func @_features_kernel(%arg0: i32, %arg1: memref<1x1024x9xbf16, #tpu.memory_space<vmem>>, %arg2: memref<9x32xbf16, #tpu.memory_space<vmem>>, %arg3: memref<1x32xf32, #tpu.memory_space<vmem>>, %arg4: memref<288x64xbf16, #tpu.memory_space<vmem>>, %arg5: memref<1x64xf32, #tpu.memory_space<vmem>>, %arg6: memref<576x128xbf16, #tpu.memory_space<vmem>>, %arg7: memref<1x128xf32, #tpu.memory_space<vmem>>, %arg8: memref<1x16x128xbf16, #tpu.memory_space<vmem>>, %arg9: memref<18x32x32xf32, #tpu.memory_space<vmem>>, %arg10: memref<10x24x64xf32, #tpu.memory_space<vmem>>) attributes {dimension_semantics = [#tpu.dimension_semantics<parallel>], iteration_bounds = array<i64: 2>, scalar_prefetch = 0 : i64, scratch_operands = 2 : i64, tpu.core_type = #tpu.core_type<tc>, window_params = [{transform_indices = @transform_0, window_bounds = array<i64: 1, 1024, 9>}, {pipeline_mode = #tpu.pipeline_mode<synchronous>, transform_indices = @transform_1, window_bounds = array<i64: 9, 32>}, {pipeline_mode = #tpu.pipeline_mode<synchronous>, transform_indices = @transform_2, window_bounds = array<i64: 1, 32>}, {pipeline_mode = #tpu.pipeline_mode<synchronous>, transform_indices = @transform_3, window_bounds = array<i64: 288, 64>}, {pipeline_mode = #tpu.pipeline_mode<synchronous>, transform_indices = @transform_4, window_bounds = array<i64: 1, 64>}, {pipeline_mode = #tpu.pipeline_mode<synchronous>, transform_indices = @transform_5, window_bounds = array<i64: 576, 128>}, {pipeline_mode = #tpu.pipeline_mode<synchronous>, transform_indices = @transform_6, window_bounds = array<i64: 1, 128>}, {transform_indices = @transform_7, window_bounds = array<i64: 1, 16, 128>}]} {
    %c0 = arith.constant 0 : index
    %c0_0 = arith.constant 0 : index
    %c0_1 = arith.constant 0 : index
    %0 = vector.load %arg1[%c0, %c0_0, %c0_1] : memref<1x1024x9xbf16, #tpu.memory_space<vmem>>, vector<1x1024x9xbf16>
    %1 = vector.shape_cast %0 : vector<1x1024x9xbf16> to vector<1024x9xbf16>
    %c0_2 = arith.constant 0 : index
    %c0_3 = arith.constant 0 : index
    %2 = vector.load %arg2[%c0_2, %c0_3] : memref<9x32xbf16, #tpu.memory_space<vmem>>, vector<9x32xbf16>
    %cst = arith.constant dense<0.000000e+00> : vector<1024x32xf32>
    %3 = tpu.matmul %1, %2, %cst {dimension_numbers = #tpu.dot_dimension_numbers<[1], [0], [0], [1], [0, 0, 1, 1], [], []>} : vector<1024x9xbf16>, vector<9x32xbf16>, vector<1024x32xf32> -> vector<1024x32xf32>
    %c0_4 = arith.constant 0 : index
    %c0_5 = arith.constant 0 : index
    %4 = vector.load %arg3[%c0_4, %c0_5] : memref<1x32xf32, #tpu.memory_space<vmem>>, vector<1x32xf32>
    %5 = vector.broadcast %4 : vector<1x32xf32> to vector<1024x32xf32>
    %6 = arith.addf %3, %5 : vector<1024x32xf32>
    %cst_6 = arith.constant 0.000000e+00 : f32
    %7 = vector.broadcast %cst_6 : f32 to vector<1024x32xf32>
    %8 = arith.maximumf %6, %7 : vector<1024x32xf32>
    %9 = vector.extract_strided_slice %8 {offsets = [0, 0], sizes = [256, 32], strides = [1, 1]} : vector<1024x32xf32> to vector<256x32xf32>
    %10 = vector.extract_strided_slice %8 {offsets = [256, 0], sizes = [256, 32], strides = [1, 1]} : vector<1024x32xf32> to vector<256x32xf32>
    %11 = arith.maximumf %9, %10 : vector<256x32xf32>
    %12 = vector.extract_strided_slice %8 {offsets = [512, 0], sizes = [256, 32], strides = [1, 1]} : vector<1024x32xf32> to vector<256x32xf32>
    %13 = vector.extract_strided_slice %8 {offsets = [768, 0], sizes = [256, 32], strides = [1, 1]} : vector<1024x32xf32> to vector<256x32xf32>
    %14 = arith.maximumf %12, %13 : vector<256x32xf32>
    %15 = arith.maximumf %11, %14 : vector<256x32xf32>
    %cst_7 = arith.constant 0.000000e+00 : f32
    %16 = vector.broadcast %cst_7 : f32 to vector<18x32x32xf32>
    %c0_8 = arith.constant 0 : index
    %c0_9 = arith.constant 0 : index
    %c0_10 = arith.constant 0 : index
    %17 = vector.load %arg9[%c0_8, %c0_9, %c0_10] : memref<18x32x32xf32, #tpu.memory_space<vmem>>, vector<18x32x32xf32>
    tpu.vector_store %arg9[%c0_8, %c0_9, %c0_10], %16 {strides = array<i32>} : memref<18x32x32xf32, #tpu.memory_space<vmem>>, vector<18x32x32xf32>,
    %18 = vector.shape_cast %15 : vector<256x32xf32> to vector<16x16x32xf32>
    %c1 = arith.constant 1 : index
    %c8 = arith.constant 8 : index
    %c0_11 = arith.constant 0 : index
    %19 = vector.load %arg9[%c1, %c8, %c0_11] : memref<18x32x32xf32, #tpu.memory_space<vmem>>, vector<16x16x32xf32>
    tpu.vector_store %arg9[%c1, %c8, %c0_11], %18 {strides = array<i32>} : memref<18x32x32xf32, #tpu.memory_space<vmem>>, vector<16x16x32xf32>,
    %cst_12 = arith.constant 0.000000e+00 : f32
    %20 = vector.broadcast %cst_12 : f32 to vector<256x64xf32>
    %c0_13 = arith.constant 0 : index
    %c7 = arith.constant 7 : index
    %c0_14 = arith.constant 0 : index
    %21 = vector.load %arg9[%c0_13, %c7, %c0_14] : memref<18x32x32xf32, #tpu.memory_space<vmem>>, vector<16x16x32xf32>
    %22 = vector.shape_cast %21 : vector<16x16x32xf32> to vector<256x32xf32>
    %23 = arith.truncf %22 : vector<256x32xf32> to vector<256x32xbf16>
    %c0_15 = arith.constant 0 : index
    %c0_16 = arith.constant 0 : index
    %24 = vector.load %arg4[%c0_15, %c0_16] : memref<288x64xbf16, #tpu.memory_space<vmem>>, vector<32x64xbf16>
    %cst_17 = arith.constant dense<0.000000e+00> : vector<256x64xf32>
    %25 = tpu.matmul %23, %24, %cst_17 {dimension_numbers = #tpu.dot_dimension_numbers<[1], [0], [0], [1], [0, 0, 1, 1], [], []>} : vector<256x32xbf16>, vector<32x64xbf16>, vector<256x64xf32> -> vector<256x64xf32>
    %26 = arith.addf %20, %25 : vector<256x64xf32>
    %c0_18 = arith.constant 0 : index
    %c8_19 = arith.constant 8 : index
    %c0_20 = arith.constant 0 : index
    %27 = vector.load %arg9[%c0_18, %c8_19, %c0_20] : memref<18x32x32xf32, #tpu.memory_space<vmem>>, vector<16x16x32xf32>
    %28 = vector.shape_cast %27 : vector<16x16x32xf32> to vector<256x32xf32>
    %29 = arith.truncf %28 : vector<256x32xf32> to vector<256x32xbf16>
    %c32 = arith.constant 32 : index
    %c0_21 = arith.constant 0 : index
    %30 = vector.load %arg4[%c32, %c0_21] : memref<288x64xbf16, #tpu.memory_space<vmem>>, vector<32x64xbf16>
    %cst_22 = arith.constant dense<0.000000e+00> : vector<256x64xf32>
    %31 = tpu.matmul %29, %30, %cst_22 {dimension_numbers = #tpu.dot_dimension_numbers<[1], [0], [0], [1], [0, 0, 1, 1], [], []>} : vector<256x32xbf16>, vector<32x64xbf16>, vector<256x64xf32> -> vector<256x64xf32>
    %32 = arith.addf %26, %31 : vector<256x64xf32>
    %c0_23 = arith.constant 0 : index
    %c9 = arith.constant 9 : index
    %c0_24 = arith.constant 0 : index
    %33 = vector.load %arg9[%c0_23, %c9, %c0_24] : memref<18x32x32xf32, #tpu.memory_space<vmem>>, vector<16x16x32xf32>
    %34 = vector.shape_cast %33 : vector<16x16x32xf32> to vector<256x32xf32>
    %35 = arith.truncf %34 : vector<256x32xf32> to vector<256x32xbf16>
    %c64 = arith.constant 64 : index
    %c0_25 = arith.constant 0 : index
    %36 = vector.load %arg4[%c64, %c0_25] : memref<288x64xbf16, #tpu.memory_space<vmem>>, vector<32x64xbf16>
    %cst_26 = arith.constant dense<0.000000e+00> : vector<256x64xf32>
    %37 = tpu.matmul %35, %36, %cst_26 {dimension_numbers = #tpu.dot_dimension_numbers<[1], [0], [0], [1], [0, 0, 1, 1], [], []>} : vector<256x32xbf16>, vector<32x64xbf16>, vector<256x64xf32> -> vector<256x64xf32>
    %38 = arith.addf %32, %37 : vector<256x64xf32>
    %c1_27 = arith.constant 1 : index
    %c7_28 = arith.constant 7 : index
    %c0_29 = arith.constant 0 : index
    %39 = vector.load %arg9[%c1_27, %c7_28, %c0_29] : memref<18x32x32xf32, #tpu.memory_space<vmem>>, vector<16x16x32xf32>
    %40 = vector.shape_cast %39 : vector<16x16x32xf32> to vector<256x32xf32>
    %41 = arith.truncf %40 : vector<256x32xf32> to vector<256x32xbf16>
    %c96 = arith.constant 96 : index
    %c0_30 = arith.constant 0 : index
    %42 = vector.load %arg4[%c96, %c0_30] : memref<288x64xbf16, #tpu.memory_space<vmem>>, vector<32x64xbf16>
    %cst_31 = arith.constant dense<0.000000e+00> : vector<256x64xf32>
    %43 = tpu.matmul %41, %42, %cst_31 {dimension_numbers = #tpu.dot_dimension_numbers<[1], [0], [0], [1], [0, 0, 1, 1], [], []>} : vector<256x32xbf16>, vector<32x64xbf16>, vector<256x64xf32> -> vector<256x64xf32>
    %44 = arith.addf %38, %43 : vector<256x64xf32>
    %c1_32 = arith.constant 1 : index
    %c8_33 = arith.constant 8 : index
    %c0_34 = arith.constant 0 : index
    %45 = vector.load %arg9[%c1_32, %c8_33, %c0_34] : memref<18x32x32xf32, #tpu.memory_space<vmem>>, vector<16x16x32xf32>
    %46 = vector.shape_cast %45 : vector<16x16x32xf32> to vector<256x32xf32>
    %47 = arith.truncf %46 : vector<256x32xf32> to vector<256x32xbf16>
    %c128 = arith.constant 128 : index
    %c0_35 = arith.constant 0 : index
    %48 = vector.load %arg4[%c128, %c0_35] : memref<288x64xbf16, #tpu.memory_space<vmem>>, vector<32x64xbf16>
    %cst_36 = arith.constant dense<0.000000e+00> : vector<256x64xf32>
    %49 = tpu.matmul %47, %48, %cst_36 {dimension_numbers = #tpu.dot_dimension_numbers<[1], [0], [0], [1], [0, 0, 1, 1], [], []>} : vector<256x32xbf16>, vector<32x64xbf16>, vector<256x64xf32> -> vector<256x64xf32>
    %50 = arith.addf %44, %49 : vector<256x64xf32>
    %c1_37 = arith.constant 1 : index
    %c9_38 = arith.constant 9 : index
    %c0_39 = arith.constant 0 : index
    %51 = vector.load %arg9[%c1_37, %c9_38, %c0_39] : memref<18x32x32xf32, #tpu.memory_space<vmem>>, vector<16x16x32xf32>
    %52 = vector.shape_cast %51 : vector<16x16x32xf32> to vector<256x32xf32>
    %53 = arith.truncf %52 : vector<256x32xf32> to vector<256x32xbf16>
    %c160 = arith.constant 160 : index
    %c0_40 = arith.constant 0 : index
    %54 = vector.load %arg4[%c160, %c0_40] : memref<288x64xbf16, #tpu.memory_space<vmem>>, vector<32x64xbf16>
    %cst_41 = arith.constant dense<0.000000e+00> : vector<256x64xf32>
    %55 = tpu.matmul %53, %54, %cst_41 {dimension_numbers = #tpu.dot_dimension_numbers<[1], [0], [0], [1], [0, 0, 1, 1], [], []>} : vector<256x32xbf16>, vector<32x64xbf16>, vector<256x64xf32> -> vector<256x64xf32>
    %56 = arith.addf %50, %55 : vector<256x64xf32>
    %c2 = arith.constant 2 : index
    %c7_42 = arith.constant 7 : index
    %c0_43 = arith.constant 0 : index
    %57 = vector.load %arg9[%c2, %c7_42, %c0_43] : memref<18x32x32xf32, #tpu.memory_space<vmem>>, vector<16x16x32xf32>
    %58 = vector.shape_cast %57 : vector<16x16x32xf32> to vector<256x32xf32>
    %59 = arith.truncf %58 : vector<256x32xf32> to vector<256x32xbf16>
    %c192 = arith.constant 192 : index
    %c0_44 = arith.constant 0 : index
    %60 = vector.load %arg4[%c192, %c0_44] : memref<288x64xbf16, #tpu.memory_space<vmem>>, vector<32x64xbf16>
    %cst_45 = arith.constant dense<0.000000e+00> : vector<256x64xf32>
    %61 = tpu.matmul %59, %60, %cst_45 {dimension_numbers = #tpu.dot_dimension_numbers<[1], [0], [0], [1], [0, 0, 1, 1], [], []>} : vector<256x32xbf16>, vector<32x64xbf16>, vector<256x64xf32> -> vector<256x64xf32>
    %62 = arith.addf %56, %61 : vector<256x64xf32>
    %c2_46 = arith.constant 2 : index
    %c8_47 = arith.constant 8 : index
    %c0_48 = arith.constant 0 : index
    %63 = vector.load %arg9[%c2_46, %c8_47, %c0_48] : memref<18x32x32xf32, #tpu.memory_space<vmem>>, vector<16x16x32xf32>
    %64 = vector.shape_cast %63 : vector<16x16x32xf32> to vector<256x32xf32>
    %65 = arith.truncf %64 : vector<256x32xf32> to vector<256x32xbf16>
    %c224 = arith.constant 224 : index
    %c0_49 = arith.constant 0 : index
    %66 = vector.load %arg4[%c224, %c0_49] : memref<288x64xbf16, #tpu.memory_space<vmem>>, vector<32x64xbf16>
    %cst_50 = arith.constant dense<0.000000e+00> : vector<256x64xf32>
    %67 = tpu.matmul %65, %66, %cst_50 {dimension_numbers = #tpu.dot_dimension_numbers<[1], [0], [0], [1], [0, 0, 1, 1], [], []>} : vector<256x32xbf16>, vector<32x64xbf16>, vector<256x64xf32> -> vector<256x64xf32>
    %68 = arith.addf %62, %67 : vector<256x64xf32>
    %c2_51 = arith.constant 2 : index
    %c9_52 = arith.constant 9 : index
    %c0_53 = arith.constant 0 : index
    %69 = vector.load %arg9[%c2_51, %c9_52, %c0_53] : memref<18x32x32xf32, #tpu.memory_space<vmem>>, vector<16x16x32xf32>
    %70 = vector.shape_cast %69 : vector<16x16x32xf32> to vector<256x32xf32>
    %71 = arith.truncf %70 : vector<256x32xf32> to vector<256x32xbf16>
    %c256 = arith.constant 256 : index
    %c0_54 = arith.constant 0 : index
    %72 = vector.load %arg4[%c256, %c0_54] : memref<288x64xbf16, #tpu.memory_space<vmem>>, vector<32x64xbf16>
    %cst_55 = arith.constant dense<0.000000e+00> : vector<256x64xf32>
    %73 = tpu.matmul %71, %72, %cst_55 {dimension_numbers = #tpu.dot_dimension_numbers<[1], [0], [0], [1], [0, 0, 1, 1], [], []>} : vector<256x32xbf16>, vector<32x64xbf16>, vector<256x64xf32> -> vector<256x64xf32>
    %74 = arith.addf %68, %73 : vector<256x64xf32>
    %c0_56 = arith.constant 0 : index
    %c0_57 = arith.constant 0 : index
    %75 = vector.load %arg5[%c0_56, %c0_57] : memref<1x64xf32, #tpu.memory_space<vmem>>, vector<1x64xf32>
    %76 = vector.broadcast %75 : vector<1x64xf32> to vector<256x64xf32>
    %77 = arith.addf %74, %76 : vector<256x64xf32>
    %cst_58 = arith.constant 0.000000e+00 : f32
    %78 = vector.broadcast %cst_58 : f32 to vector<256x64xf32>
    %79 = arith.maximumf %77, %78 : vector<256x64xf32>
    %80 = vector.shape_cast %79 : vector<256x64xf32> to vector<8x2x16x64xf32>
    %cst_59 = arith.constant dense<0xFF800000> : vector<8x16x64xf32>
    %81 = vector.multi_reduction <maximumf>, %80, %cst_59 [1] : vector<8x2x16x64xf32> to vector<8x16x64xf32>
    %82 = vector.shape_cast %81 : vector<8x16x64xf32> to vector<8x8x2x64xf32>
    %cst_60 = arith.constant dense<0xFF800000> : vector<8x8x64xf32>
    %83 = vector.multi_reduction <maximumf>, %82, %cst_60 [2] : vector<8x8x2x64xf32> to vector<8x8x64xf32>
    %84 = vector.shape_cast %83 : vector<8x8x64xf32> to vector<64x64xf32>
    %cst_61 = arith.constant 0.000000e+00 : f32
    %85 = vector.broadcast %cst_61 : f32 to vector<10x24x64xf32>
    %c0_62 = arith.constant 0 : index
    %c0_63 = arith.constant 0 : index
    %c0_64 = arith.constant 0 : index
    %86 = vector.load %arg10[%c0_62, %c0_63, %c0_64] : memref<10x24x64xf32, #tpu.memory_space<vmem>>, vector<10x24x64xf32>
    tpu.vector_store %arg10[%c0_62, %c0_63, %c0_64], %85 {strides = array<i32>} : memref<10x24x64xf32, #tpu.memory_space<vmem>>, vector<10x24x64xf32>,
    %87 = vector.shape_cast %84 : vector<64x64xf32> to vector<8x8x64xf32>
    %c1_65 = arith.constant 1 : index
    %c8_66 = arith.constant 8 : index
    %c0_67 = arith.constant 0 : index
    %88 = vector.load %arg10[%c1_65, %c8_66, %c0_67] : memref<10x24x64xf32, #tpu.memory_space<vmem>>, vector<8x8x64xf32>
    tpu.vector_store %arg10[%c1_65, %c8_66, %c0_67], %87 {strides = array<i32>} : memref<10x24x64xf32, #tpu.memory_space<vmem>>, vector<8x8x64xf32>,
    %cst_68 = arith.constant 0.000000e+00 : f32
    %89 = vector.broadcast %cst_68 : f32 to vector<64x128xf32>
    %c0_69 = arith.constant 0 : index
    %c7_70 = arith.constant 7 : index
    %c0_71 = arith.constant 0 : index
    %90 = vector.load %arg10[%c0_69, %c7_70, %c0_71] : memref<10x24x64xf32, #tpu.memory_space<vmem>>, vector<8x8x64xf32>
    %91 = vector.shape_cast %90 : vector<8x8x64xf32> to vector<64x64xf32>
    %92 = arith.truncf %91 : vector<64x64xf32> to vector<64x64xbf16>
    %c0_72 = arith.constant 0 : index
    %c0_73 = arith.constant 0 : index
    %93 = vector.load %arg6[%c0_72, %c0_73] : memref<576x128xbf16, #tpu.memory_space<vmem>>, vector<64x128xbf16>
    %cst_74 = arith.constant dense<0.000000e+00> : vector<64x128xf32>
    %94 = tpu.matmul %92, %93, %cst_74 {dimension_numbers = #tpu.dot_dimension_numbers<[1], [0], [0], [1], [0, 0, 1, 1], [], []>} : vector<64x64xbf16>, vector<64x128xbf16>, vector<64x128xf32> -> vector<64x128xf32>
    %95 = arith.addf %89, %94 : vector<64x128xf32>
    %c0_75 = arith.constant 0 : index
    %c8_76 = arith.constant 8 : index
    %c0_77 = arith.constant 0 : index
    %96 = vector.load %arg10[%c0_75, %c8_76, %c0_77] : memref<10x24x64xf32, #tpu.memory_space<vmem>>, vector<8x8x64xf32>
    %97 = vector.shape_cast %96 : vector<8x8x64xf32> to vector<64x64xf32>
    %98 = arith.truncf %97 : vector<64x64xf32> to vector<64x64xbf16>
    %c64_78 = arith.constant 64 : index
    %c0_79 = arith.constant 0 : index
    %99 = vector.load %arg6[%c64_78, %c0_79] : memref<576x128xbf16, #tpu.memory_space<vmem>>, vector<64x128xbf16>
    %cst_80 = arith.constant dense<0.000000e+00> : vector<64x128xf32>
    %100 = tpu.matmul %98, %99, %cst_80 {dimension_numbers = #tpu.dot_dimension_numbers<[1], [0], [0], [1], [0, 0, 1, 1], [], []>} : vector<64x64xbf16>, vector<64x128xbf16>, vector<64x128xf32> -> vector<64x128xf32>
    %101 = arith.addf %95, %100 : vector<64x128xf32>
    %c0_81 = arith.constant 0 : index
    %c9_82 = arith.constant 9 : index
    %c0_83 = arith.constant 0 : index
    %102 = vector.load %arg10[%c0_81, %c9_82, %c0_83] : memref<10x24x64xf32, #tpu.memory_space<vmem>>, vector<8x8x64xf32>
    %103 = vector.shape_cast %102 : vector<8x8x64xf32> to vector<64x64xf32>
    %104 = arith.truncf %103 : vector<64x64xf32> to vector<64x64xbf16>
    %c128_84 = arith.constant 128 : index
    %c0_85 = arith.constant 0 : index
    %105 = vector.load %arg6[%c128_84, %c0_85] : memref<576x128xbf16, #tpu.memory_space<vmem>>, vector<64x128xbf16>
    %cst_86 = arith.constant dense<0.000000e+00> : vector<64x128xf32>
    %106 = tpu.matmul %104, %105, %cst_86 {dimension_numbers = #tpu.dot_dimension_numbers<[1], [0], [0], [1], [0, 0, 1, 1], [], []>} : vector<64x64xbf16>, vector<64x128xbf16>, vector<64x128xf32> -> vector<64x128xf32>
    %107 = arith.addf %101, %106 : vector<64x128xf32>
    %c1_87 = arith.constant 1 : index
    %c7_88 = arith.constant 7 : index
    %c0_89 = arith.constant 0 : index
    %108 = vector.load %arg10[%c1_87, %c7_88, %c0_89] : memref<10x24x64xf32, #tpu.memory_space<vmem>>, vector<8x8x64xf32>
    %109 = vector.shape_cast %108 : vector<8x8x64xf32> to vector<64x64xf32>
    %110 = arith.truncf %109 : vector<64x64xf32> to vector<64x64xbf16>
    %c192_90 = arith.constant 192 : index
    %c0_91 = arith.constant 0 : index
    %111 = vector.load %arg6[%c192_90, %c0_91] : memref<576x128xbf16, #tpu.memory_space<vmem>>, vector<64x128xbf16>
    %cst_92 = arith.constant dense<0.000000e+00> : vector<64x128xf32>
    %112 = tpu.matmul %110, %111, %cst_92 {dimension_numbers = #tpu.dot_dimension_numbers<[1], [0], [0], [1], [0, 0, 1, 1], [], []>} : vector<64x64xbf16>, vector<64x128xbf16>, vector<64x128xf32> -> vector<64x128xf32>
    %113 = arith.addf %107, %112 : vector<64x128xf32>
    %c1_93 = arith.constant 1 : index
    %c8_94 = arith.constant 8 : index
    %c0_95 = arith.constant 0 : index
    %114 = vector.load %arg10[%c1_93, %c8_94, %c0_95] : memref<10x24x64xf32, #tpu.memory_space<vmem>>, vector<8x8x64xf32>
    %115 = vector.shape_cast %114 : vector<8x8x64xf32> to vector<64x64xf32>
    %116 = arith.truncf %115 : vector<64x64xf32> to vector<64x64xbf16>
    %c256_96 = arith.constant 256 : index
    %c0_97 = arith.constant 0 : index
    %117 = vector.load %arg6[%c256_96, %c0_97] : memref<576x128xbf16, #tpu.memory_space<vmem>>, vector<64x128xbf16>
    %cst_98 = arith.constant dense<0.000000e+00> : vector<64x128xf32>
    %118 = tpu.matmul %116, %117, %cst_98 {dimension_numbers = #tpu.dot_dimension_numbers<[1], [0], [0], [1], [0, 0, 1, 1], [], []>} : vector<64x64xbf16>, vector<64x128xbf16>, vector<64x128xf32> -> vector<64x128xf32>
    %119 = arith.addf %113, %118 : vector<64x128xf32>
    %c1_99 = arith.constant 1 : index
    %c9_100 = arith.constant 9 : index
    %c0_101 = arith.constant 0 : index
    %120 = vector.load %arg10[%c1_99, %c9_100, %c0_101] : memref<10x24x64xf32, #tpu.memory_space<vmem>>, vector<8x8x64xf32>
    %121 = vector.shape_cast %120 : vector<8x8x64xf32> to vector<64x64xf32>
    %122 = arith.truncf %121 : vector<64x64xf32> to vector<64x64xbf16>
    %c320 = arith.constant 320 : index
    %c0_102 = arith.constant 0 : index
    %123 = vector.load %arg6[%c320, %c0_102] : memref<576x128xbf16, #tpu.memory_space<vmem>>, vector<64x128xbf16>
    %cst_103 = arith.constant dense<0.000000e+00> : vector<64x128xf32>
    %124 = tpu.matmul %122, %123, %cst_103 {dimension_numbers = #tpu.dot_dimension_numbers<[1], [0], [0], [1], [0, 0, 1, 1], [], []>} : vector<64x64xbf16>, vector<64x128xbf16>, vector<64x128xf32> -> vector<64x128xf32>
    %125 = arith.addf %119, %124 : vector<64x128xf32>
    %c2_104 = arith.constant 2 : index
    %c7_105 = arith.constant 7 : index
    %c0_106 = arith.constant 0 : index
    %126 = vector.load %arg10[%c2_104, %c7_105, %c0_106] : memref<10x24x64xf32, #tpu.memory_space<vmem>>, vector<8x8x64xf32>
    %127 = vector.shape_cast %126 : vector<8x8x64xf32> to vector<64x64xf32>
    %128 = arith.truncf %127 : vector<64x64xf32> to vector<64x64xbf16>
    %c384 = arith.constant 384 : index
    %c0_107 = arith.constant 0 : index
    %129 = vector.load %arg6[%c384, %c0_107] : memref<576x128xbf16, #tpu.memory_space<vmem>>, vector<64x128xbf16>
    %cst_108 = arith.constant dense<0.000000e+00> : vector<64x128xf32>
    %130 = tpu.matmul %128, %129, %cst_108 {dimension_numbers = #tpu.dot_dimension_numbers<[1], [0], [0], [1], [0, 0, 1, 1], [], []>} : vector<64x64xbf16>, vector<64x128xbf16>, vector<64x128xf32> -> vector<64x128xf32>
    %131 = arith.addf %125, %130 : vector<64x128xf32>
    %c2_109 = arith.constant 2 : index
    %c8_110 = arith.constant 8 : index
    %c0_111 = arith.constant 0 : index
    %132 = vector.load %arg10[%c2_109, %c8_110, %c0_111] : memref<10x24x64xf32, #tpu.memory_space<vmem>>, vector<8x8x64xf32>
    %133 = vector.shape_cast %132 : vector<8x8x64xf32> to vector<64x64xf32>
    %134 = arith.truncf %133 : vector<64x64xf32> to vector<64x64xbf16>
    %c448 = arith.constant 448 : index
    %c0_112 = arith.constant 0 : index
    %135 = vector.load %arg6[%c448, %c0_112] : memref<576x128xbf16, #tpu.memory_space<vmem>>, vector<64x128xbf16>
    %cst_113 = arith.constant dense<0.000000e+00> : vector<64x128xf32>
    %136 = tpu.matmul %134, %135, %cst_113 {dimension_numbers = #tpu.dot_dimension_numbers<[1], [0], [0], [1], [0, 0, 1, 1], [], []>} : vector<64x64xbf16>, vector<64x128xbf16>, vector<64x128xf32> -> vector<64x128xf32>
    %137 = arith.addf %131, %136 : vector<64x128xf32>
    %c2_114 = arith.constant 2 : index
    %c9_115 = arith.constant 9 : index
    %c0_116 = arith.constant 0 : index
    %138 = vector.load %arg10[%c2_114, %c9_115, %c0_116] : memref<10x24x64xf32, #tpu.memory_space<vmem>>, vector<8x8x64xf32>
    %139 = vector.shape_cast %138 : vector<8x8x64xf32> to vector<64x64xf32>
    %140 = arith.truncf %139 : vector<64x64xf32> to vector<64x64xbf16>
    %c512 = arith.constant 512 : index
    %c0_117 = arith.constant 0 : index
    %141 = vector.load %arg6[%c512, %c0_117] : memref<576x128xbf16, #tpu.memory_space<vmem>>, vector<64x128xbf16>
    %cst_118 = arith.constant dense<0.000000e+00> : vector<64x128xf32>
    %142 = tpu.matmul %140, %141, %cst_118 {dimension_numbers = #tpu.dot_dimension_numbers<[1], [0], [0], [1], [0, 0, 1, 1], [], []>} : vector<64x64xbf16>, vector<64x128xbf16>, vector<64x128xf32> -> vector<64x128xf32>
    %143 = arith.addf %137, %142 : vector<64x128xf32>
    %c0_119 = arith.constant 0 : index
    %c0_120 = arith.constant 0 : index
    %144 = vector.load %arg7[%c0_119, %c0_120] : memref<1x128xf32, #tpu.memory_space<vmem>>, vector<1x128xf32>
    %145 = vector.broadcast %144 : vector<1x128xf32> to vector<64x128xf32>
    %146 = arith.addf %143, %145 : vector<64x128xf32>
    %cst_121 = arith.constant 0.000000e+00 : f32
    %147 = vector.broadcast %cst_121 : f32 to vector<64x128xf32>
    %148 = arith.maximumf %146, %147 : vector<64x128xf32>
    %149 = vector.shape_cast %148 : vector<64x128xf32> to vector<4x2x8x128xf32>
    %cst_122 = arith.constant dense<0xFF800000> : vector<4x8x128xf32>
    %150 = vector.multi_reduction <maximumf>, %149, %cst_122 [1] : vector<4x2x8x128xf32> to vector<4x8x128xf32>
    %151 = vector.shape_cast %150 : vector<4x8x128xf32> to vector<4x4x2x128xf32>
    %cst_123 = arith.constant dense<0xFF800000> : vector<4x4x128xf32>
    %152 = vector.multi_reduction <maximumf>, %151, %cst_123 [2] : vector<4x4x2x128xf32> to vector<4x4x128xf32>
    %153 = vector.shape_cast %152 : vector<4x4x128xf32> to vector<16x128xf32>
    %154 = arith.truncf %153 : vector<16x128xf32> to vector<16x128xbf16>
    %c0_124 = arith.constant 0 : index
    %c0_125 = arith.constant 0 : index
    %c0_126 = arith.constant 0 : index
    %155 = vector.load %arg8[%c0_124, %c0_125, %c0_126] : memref<1x16x128xbf16, #tpu.memory_space<vmem>>, vector<1x16x128xbf16>
    %156 = vector.shape_cast %155 : vector<1x16x128xbf16> to vector<16x128xbf16>
    %157 = vector.shape_cast %154 : vector<16x128xbf16> to vector<1x16x128xbf16>
    tpu.vector_store %arg8[%c0_124, %c0_125, %c0_126], %157 {strides = array<i32>} : memref<1x16x128xbf16, #tpu.memory_space<vmem>>, vector<1x16x128xbf16>,
    return
  }
  func.func @transform_0(%arg0: i32) -> (i32, i32, i32) {
    %c0_i32 = arith.constant 0 : i32
    %c0_i32_0 = arith.constant 0 : i32
    %c0_i32_1 = arith.constant 0 : i32
    return %arg0, %c0_i32, %c0_i32_0 : i32, i32, i32
  }
  func.func @transform_1(%arg0: i32) -> (i32, i32) {
    %c0_i32 = arith.constant 0 : i32
    %c0_i32_0 = arith.constant 0 : i32
    %c0_i32_1 = arith.constant 0 : i32
    return %c0_i32, %c0_i32_0 : i32, i32
  }
  func.func @transform_2(%arg0: i32) -> (i32, i32) {
    %c0_i32 = arith.constant 0 : i32
    %c0_i32_0 = arith.constant 0 : i32
    %c0_i32_1 = arith.constant 0 : i32
    return %c0_i32, %c0_i32_0 : i32, i32
  }
  func.func @transform_3(%arg0: i32) -> (i32, i32) {
    %c0_i32 = arith.constant 0 : i32
    %c0_i32_0 = arith.constant 0 : i32
    %c0_i32_1 = arith.constant 0 : i32
    return %c0_i32, %c0_i32_0 : i32, i32
  }
  func.func @transform_4(%arg0: i32) -> (i32, i32) {
    %c0_i32 = arith.constant 0 : i32
    %c0_i32_0 = arith.constant 0 : i32
    %c0_i32_1 = arith.constant 0 : i32
    return %c0_i32, %c0_i32_0 : i32, i32
  }
  func.func @transform_5(%arg0: i32) -> (i32, i32) {
    %c0_i32 = arith.constant 0 : i32
    %c0_i32_0 = arith.constant 0 : i32
    %c0_i32_1 = arith.constant 0 : i32
    return %c0_i32, %c0_i32_0 : i32, i32
  }
  func.func @transform_6(%arg0: i32) -> (i32, i32) {
    %c0_i32 = arith.constant 0 : i32
    %c0_i32_0 = arith.constant 0 : i32
    %c0_i32_1 = arith.constant 0 : i32
    return %c0_i32, %c0_i32_0 : i32, i32
  }
  func.func @transform_7(%arg0: i32) -> (i32, i32, i32) {
    %c0_i32 = arith.constant 0 : i32
    %c0_i32_0 = arith.constant 0 : i32
    %c0_i32_1 = arith.constant 0 : i32
    return %arg0, %c0_i32, %c0_i32_0 : i32, i32, i32
  }
}

</mosaic_0001>

<bundles_post_ra>
// kernel: _lambda_.3
= control target key start
LH: loop header
LB: loop body
LE: loop exit
PB: predicated region body
PF: predicated region fallthrough
CT: control target
= control target key end

     0   :  { %v282_v36 = vlaneseq  ;;  %v2931_v37 = vmov 1966171168   ;;  %s3833_s0 = inlined_call_operand.vmem [shape: bf16[2,2048], index: 0, kind: input, shape index: {}]   ;;  %s3834_s1 = inlined_call_operand.vmem [shape: bf16[2048,256], index: 1, kind: input, shape index: {}]   ;;  %s3835_s2 = inlined_call_operand.vmem [shape: f32[1,256], index: 2, kind: input, shape index: {}]   ;;  %s3836_s3 = inlined_call_operand.vmem [shape: bf16[256,128], index: 3, kind: input, shape index: {}]   ;;  %s3837_s4 = inlined_call_operand.vmem [shape: f32[1,128], index: 4, kind: input, shape index: {}]   ;;  %s3838_s5 = inlined_call_operand.hbm [shape: f32[2,128], index: 5, kind: output, shape index: {}]  }
   0x1   :  { %v2507_v0 = vld [vmem:[%s3834_s1 + $0x74] ss:$8 sps:$4 sm:$0xff]   ;;  %v2511_v2 = vld [vmem:[%s3834_s1 + $0x70] ss:$8 sps:$4 sm:$0xff]   ;;  %v2513_v4 = vld [vmem:[%s3834_s1 + $0x64] ss:$8 sps:$4 sm:$0xff]   ;;  %v296_v38 = vunpack.c.l.s4 %v2931_v37 }
   0x2   :  { %v2509_v1 = vld [vmem:[%s3834_s1 + $0x174] ss:$8 sps:$4 sm:$0xff]   ;;  %1688 = vmatprep.subr.bf16.mxu0 %v2507_v0  ;;  %v2512_v3 = vld [vmem:[%s3834_s1 + $0x170] ss:$8 sps:$4 sm:$0xff]   ;;  %v2515_v5 = vld [vmem:[%s3834_s1 + $0x164] ss:$8 sps:$4 sm:$0xff]  }
   0x3   :  { %1729 = vmatprep.subr.bf16.mxu1 %v2509_v1  ;;  %1689 = vmatpush1.bf16.msra.mxu0 %v2511_v2  ;;  %v2517_v6 = vld [vmem:[%s3834_s1 + $0x60] ss:$8 sps:$4 sm:$0xff]   ;;  %v2519_v8 = vld [vmem:[%s3834_s1 + $0x54] ss:$8 sps:$4 sm:$0xff]   ;;  %v2523_v10 = vld [vmem:[%s3834_s1 + $0x50] ss:$8 sps:$4 sm:$0xff]   ;;  %v297_v43 = vunpack.c.0.s8 %v296_v38 }
   0x4   :  { %1730 = vmatpush1.bf16.msra.mxu1 %v2512_v3  ;;  %1690 = vmatprep.subr.bf16.mxu0 %v2513_v4  ;;  %v2518_v7 = vld [vmem:[%s3834_s1 + $0x160] ss:$8 sps:$4 sm:$0xff]   ;;  %v2521_v9 = vld [vmem:[%s3834_s1 + $0x154] ss:$8 sps:$4 sm:$0xff]   ;;  %v2524_v11 = vld [vmem:[%s3834_s1 + $0x150] ss:$8 sps:$4 sm:$0xff]  }
   0x5   :  { %1731 = vmatprep.subr.bf16.mxu1 %v2515_v5  ;;  %v2525_v12 = vld [vmem:[%s3834_s1 + $0x44] ss:$8 sps:$4 sm:$0xff]   ;;  %v2529_v14 = vld [vmem:[%s3834_s1 + $0x40] ss:$8 sps:$4 sm:$0xff]   ;;  %v2531_v16 = vld [vmem:[%s3834_s1 + $0x34] ss:$8 sps:$4 sm:$0xff]  }
   0x6   :  { %v2527_v13 = vld [vmem:[%s3834_s1 + $0x144] ss:$8 sps:$4 sm:$0xff]   ;;  %v2530_v15 = vld [vmem:[%s3834_s1 + $0x140] ss:$8 sps:$4 sm:$0xff]   ;;  %v2533_v17 = vld [vmem:[%s3834_s1 + $0x134] ss:$8 sps:$4 sm:$0xff]  }
   0x7   :  { %1691 = vmatpush1.bf16.msra.mxu0 %v2517_v6  ;;  %v2535_v18 = vld [vmem:[%s3834_s1 + $0x30] ss:$8 sps:$4 sm:$0xff]   ;;  %v2537_v20 = vld [vmem:[%s3834_s1 + $0x24] ss:$8 sps:$4 sm:$0xff]   ;;  %v2541_v22 = vld [vmem:[%s3834_s1 + $0x20] ss:$8 sps:$4 sm:$0xff]  }
   0x8   :  { %1732 = vmatpush1.bf16.msra.mxu1 %v2518_v7  ;;  %1692 = vmatprep.subr.bf16.mxu0 %v2519_v8  ;;  %v2536_v19 = vld [vmem:[%s3834_s1 + $0x130] ss:$8 sps:$4 sm:$0xff]   ;;  %v2539_v21 = vld [vmem:[%s3834_s1 + $0x124] ss:$8 sps:$4 sm:$0xff]   ;;  %v2542_v23 = vld [vmem:[%s3834_s1 + $0x120] ss:$8 sps:$4 sm:$0xff]  }
   0x9   :  { %1733 = vmatprep.subr.bf16.mxu1 %v2521_v9  ;;  %v2543_v24 = vld [vmem:[%s3834_s1 + $0x14] ss:$8 sps:$4 sm:$0xff]   ;;  %v2547_v26 = vld [vmem:[%s3834_s1 + $0x10] ss:$8 sps:$4 sm:$0xff]   ;;  %v2549_v28 = vld [vmem:[%s3834_s1 + $0x4] ss:$8 sps:$4 sm:$0xff]  }
   0xa   :  { %v2545_v25 = vld [vmem:[%s3834_s1 + $0x114] ss:$8 sps:$4 sm:$0xff]   ;;  %v2548_v27 = vld [vmem:[%s3834_s1 + $0x110] ss:$8 sps:$4 sm:$0xff]   ;;  %v2551_v29 = vld [vmem:[%s3834_s1 + $0x104] ss:$8 sps:$4 sm:$0xff]  }
   0xb   :  { %1693 = vmatpush1.bf16.msra.mxu0 %v2523_v10  ;;  %v2553_v30 = vld [vmem:[%s3834_s1] ss:$8 sps:$4 sm:$0xff]   ;;  %v2555_v32 = vld [vmem:[%s3834_s1 + $0xf4] ss:$8 sps:$4 sm:$0xff]   ;;  %v2559_v34 = vld [vmem:[%s3834_s1 + $0xf0] ss:$8 sps:$4 sm:$0xff]  }
   0xc   :  { %1734 = vmatpush1.bf16.msra.mxu1 %v2524_v11  ;;  %1694 = vmatprep.subr.bf16.mxu0 %v2525_v12  ;;  %v2554_v31 = vld [vmem:[%s3834_s1 + $0x100] ss:$8 sps:$4 sm:$0xff]   ;;  %v2557_v33 = vld [vmem:[%s3834_s1 + $0x1f4] ss:$8 sps:$4 sm:$0xff]   ;;  %v2560_v35 = vld [vmem:[%s3834_s1 + $0x1f0] ss:$8 sps:$4 sm:$0xff]  }
   0xd   :  { %1735 = vmatprep.subr.bf16.mxu1 %v2527_v13  ;;  %v2561_v39 = vld [vmem:[%s3834_s1 + $0xe4] ss:$8 sps:$4 sm:$0xff]   ;;  %v2565_v41 = vld [vmem:[%s3834_s1 + $0xe0] ss:$8 sps:$4 sm:$0xff]   ;;  %v3080_v42 = vshrl.u32 %v282_v36, 7 }
   0xe   :  { %v2563_v40 = vld [vmem:[%s3834_s1 + $0x1e4] ss:$8 sps:$4 sm:$0xff]   ;;  %v2566_v44 = vld [vmem:[%s3834_s1 + $0x1e0] ss:$8 sps:$4 sm:$0xff]   ;;  %v2567_v45 = vld [vmem:[%s3834_s1 + $0xd4] ss:$8 sps:$4 sm:$0xff]  }
   0xf   :  { %1695 = vmatpush1.bf16.msra.mxu0 %v2529_v14  ;;  %v2569_v46 = vld [vmem:[%s3834_s1 + $0x1d4] ss:$8 sps:$4 sm:$0xff]   ;;  %v2571_v47 = vld [vmem:[%s3834_s1 + $0xd0] ss:$8 sps:$4 sm:$0xff]   ;;  %v3098_v49 = vsub.s32 %v297_v43, %v3080_v42  ;;  %v2573_v50 = vld [vmem:[%s3834_s1 + $0xc4] ss:$8 sps:$4 sm:$0xff]  }
  0x10   :  { %1736 = vmatpush1.bf16.msra.mxu1 %v2530_v15  ;;  %1696 = vmatprep.subr.bf16.mxu0 %v2531_v16  ;;  %v2572_v48 = vld [vmem:[%s3834_s1 + $0x1d0] ss:$8 sps:$4 sm:$0xff]   ;;  %v2575_v51 = vld [vmem:[%s3834_s1 + $0x1c4] ss:$8 sps:$4 sm:$0xff]   ;;  %v2577_v53 = vld [vmem:[%s3834_s1 + $0xc0] ss:$8 sps:$4 sm:$0xff]  }
  0x11   :  { %1737 = vmatprep.subr.bf16.mxu1 %v2533_v17  ;;  %v22_v52 = vld [vmem:[%s3833_s0] sm:$0xff]  ;;  %v2579_v56 = vld [vmem:[%s3834_s1 + $0xb4] ss:$8 sps:$4 sm:$0xff]   ;;  %v2583_v59 = vld [vmem:[%s3834_s1 + $0xb0] ss:$8 sps:$4 sm:$0xff]  }
  0x12   :  { %v301_v54 = vrot.slane %v22_v52, %v3098_v49  ;;  %v2578_v55 = vld [vmem:[%s3834_s1 + $0x1c0] ss:$8 sps:$4 sm:$0xff]   ;;  %v2581_v57 = vld [vmem:[%s3834_s1 + $0x1b4] ss:$8 sps:$4 sm:$0xff]   ;;  %v2584_v61 = vld [vmem:[%s3834_s1 + $0x1b0] ss:$8 sps:$4 sm:$0xff]   ;;  %v294_v1 = vcombine.high %v22_v52, %v22_v52 }
  0x13   :  { %1697 = vmatpush1.bf16.msra.mxu0 %v2535_v18  ;;  %v2585_v62 = vld [vmem:[%s3834_s1 + $0xa4] ss:$8 sps:$4 sm:$0xff]   ;;  %v2589_v2 = vld [vmem:[%s3834_s1 + $0xa0] ss:$8 sps:$4 sm:$0xff]   ;;  %v2591_v4 = vld [vmem:[%s3834_s1 + $0x94] ss:$8 sps:$4 sm:$0xff]  }
  0x14   :  { %1738 = vmatpush1.bf16.msra.mxu1 %v2536_v19  ;;  %1698 = vmatprep.subr.bf16.mxu0 %v2537_v20  ;;  %v309_v58 = vcombine.high %v301_v54, %v301_v54  ;;  %v2587_v63 = vld [vmem:[%s3834_s1 + $0x1a4] ss:$8 sps:$4 sm:$0xff]   ;;  %v2590_v3 = vld [vmem:[%s3834_s1 + $0x1a0] ss:$8 sps:$4 sm:$0xff]   ;;  %v2593_v5 = vld [vmem:[%s3834_s1 + $0x194] ss:$8 sps:$4 sm:$0xff]   ;;  %v3148_v6 = vrot.slane %v294_v1, %v3098_v49  ;;  %v317_v13 = vrot.slane %v301_v54, %v3098_v49 }
  0x15   :  { %1739 = vmatprep.subr.bf16.mxu1 %v2539_v21  ;;  %v2595_v7 = vld [vmem:[%s3834_s1 + $0x90] ss:$8 sps:$4 sm:$0xff]   ;;  %v2597_v9 = vld [vmem:[%s3834_s1 + $0x84] ss:$8 sps:$4 sm:$0xff]   ;;  %v2601_v12 = vld [vmem:[%s3834_s1 + $0x80] ss:$8 sps:$4 sm:$0xff]  }
  0x16   :  { %v331_v60 = vrot.slane %v309_v58, %v3098_v49  ;;  %v2596_v8 = vld [vmem:[%s3834_s1 + $0x190] ss:$8 sps:$4 sm:$0xff]   ;;  %v2599_v10 = vld [vmem:[%s3834_s1 + $0x184] ss:$8 sps:$4 sm:$0xff]   ;;  %v310_v11 = vcombine.high %v3148_v6, %v3148_v6  ;;  %v2602_v14 = vld [vmem:[%s3834_s1 + $0x180] ss:$8 sps:$4 sm:$0xff]   ;;  %v339_v18 = vcombine.high %v317_v13, %v317_v13 }
  0x17   :  { %1699 = vmatpush1.bf16.msra.mxu0 %v2541_v22  ;;  %v2606_v15 = vld [vmem:[%s3834_s1 + $0x274] ss:$8 sps:$4 sm:$0xff]   ;;  %v2604_v19 = vld [vmem:[%s3834_s1 + $0x270] ss:$8 sps:$4 sm:$0xff]   ;;  %v2612_v21 = vld [vmem:[%s3834_s1 + $0x264] ss:$8 sps:$4 sm:$0xff]  }
  0x18   :  { %1740 = vmatpush1.bf16.msra.mxu1 %v2542_v23  ;;  %1700 = vmatprep.subr.bf16.mxu0 %v2543_v24  ;;  %v341_v0 = vcombine.high %v331_v60, %v331_v60  ;;  %v2609_v16 = vld [vmem:[%s3834_s1 + $0x374] ss:$8 sps:$4 sm:$0xff]   ;;  %v338_v17 = vrot.slane %v310_v11, %v3098_v49  ;;  %v2607_v20 = vld [vmem:[%s3834_s1 + $0x370] ss:$8 sps:$4 sm:$0xff]   ;;  %v2615_v22 = vld [vmem:[%s3834_s1 + $0x364] ss:$8 sps:$4 sm:$0xff]  }
  0x19   :  { %1741 = vmatprep.subr.bf16.mxu1 %v2545_v25  ;;  %1720 = vmatprep.mubr.bf16.mxu0 %v331_v60  ;;  %v2610_v24 = vld [vmem:[%s3834_s1 + $0x260] ss:$8 sps:$4 sm:$0xff]   ;;  %v2628_v36 = vld [vmem:[%s3834_s1 + $0x230] ss:$8 sps:$4 sm:$0xff]   ;;  %v2636_v38 = vld [vmem:[%s3834_s1 + $0x224] ss:$8 sps:$4 sm:$0xff]  }
  0x1a   :  { %1761 = vmatprep.mubr.bf16.mxu1 %v341_v0  ;;  %v342_v23 = vcombine.high %v338_v17, %v338_v17  ;;  %v2613_v25 = vld [vmem:[%s3834_s1 + $0x360] ss:$8 sps:$4 sm:$0xff]   ;;  %v2631_v37 = vld [vmem:[%s3834_s1 + $0x330] ss:$8 sps:$4 sm:$0xff]   ;;  %v2642_v43 = vld [vmem:[%s3834_s1 + $0x214] ss:$8 sps:$4 sm:$0xff]  }
  0x1b   :  { %1701 = vmatpush1.bf16.msra.mxu0 %v2547_v26  ;;  %v2618_v26 = vld [vmem:[%s3834_s1 + $0x254] ss:$8 sps:$4 sm:$0xff]   ;;  %v2652_v54 = vld [vmem:[%s3834_s1 + $0x2f0] ss:$8 sps:$4 sm:$0xff]   ;;  %v2658_v58 = vld [vmem:[%s3834_s1 + $0x2e0] ss:$8 sps:$4 sm:$0xff]  }
  0x1c   :  { %1742 = vmatpush1.bf16.msra.mxu1 %v2548_v27  ;;  %1702 = vmatprep.subr.bf16.mxu0 %v2549_v28  ;;  %v2621_v27 = vld [vmem:[%s3834_s1 + $0x354] ss:$8 sps:$4 sm:$0xff]   ;;  %v2616_v28 = vld [vmem:[%s3834_s1 + $0x250] ss:$8 sps:$4 sm:$0xff]   ;;  %v2672_v0 = vld [vmem:[%s3834_s1 + $0x2c4] ss:$8 sps:$4 sm:$0xff]  }
  0x1d   :  { %1743 = vmatprep.subr.bf16.mxu1 %v2551_v29  ;;  %v2619_v29 = vld [vmem:[%s3834_s1 + $0x350] ss:$8 sps:$4 sm:$0xff]   ;;  %v2654_v52 = vld [vmem:[%s3834_s1 + $0x2f4] ss:$8 sps:$4 sm:$0xff]   ;;  %v2675_v1 = vld [vmem:[%s3834_s1 + $0x3c4] ss:$8 sps:$4 sm:$0xff]  }
  0x1e   :  { %v2666_v60 = vld [vmem:[%s3834_s1 + $0x2d4] ss:$8 sps:$4 sm:$0xff]   ;;  %v2682_v11 = vld [vmem:[%s3834_s1 + $0x2a0] ss:$8 sps:$4 sm:$0xff]  }
  0x1f   :  { %1703 = vmatpush1.bf16.msra.mxu0 %v2553_v30  ;;  %v2624_v30 = vld [vmem:[%s3834_s1 + $0x244] ss:$8 sps:$4 sm:$0xff]  }
  0x20   :  { %1744 = vmatpush1.bf16.msra.mxu1 %v2554_v31  ;;  %1704 = vmatprep.subr.bf16.mxu0 %v2555_v32  ;;  %v2627_v31 = vld [vmem:[%s3834_s1 + $0x344] ss:$8 sps:$4 sm:$0xff]   ;;  %v2622_v32 = vld [vmem:[%s3834_s1 + $0x240] ss:$8 sps:$4 sm:$0xff]  }
  0x21   :  { %1745 = vmatprep.subr.bf16.mxu1 %v2557_v33  ;;  %v2625_v33 = vld [vmem:[%s3834_s1 + $0x340] ss:$8 sps:$4 sm:$0xff]  }
  0x23   :  { %1705 = vmatpush2.bf16.msra.mxu0 %v2559_v34  ;;  %v2630_v34 = vld [vmem:[%s3834_s1 + $0x234] ss:$8 sps:$4 sm:$0xff]  }
  0x24   :  { %1746 = vmatpush2.bf16.msra.mxu1 %v2560_v35  ;;  %1706 = vmatprep.subr.bf16.mxu0 %v2561_v39  ;;  %v2633_v35 = vld [vmem:[%s3834_s1 + $0x334] ss:$8 sps:$4 sm:$0xff]   ;;  %v2639_v39 = vld [vmem:[%s3834_s1 + $0x324] ss:$8 sps:$4 sm:$0xff]  }
  0x25   :  { %1747 = vmatprep.subr.bf16.mxu1 %v2563_v40  ;;  %v2634_v40 = vld [vmem:[%s3834_s1 + $0x220] ss:$8 sps:$4 sm:$0xff]  }
  0x27   :  { %1707 = vmatpush2.bf16.msra.mxu0 %v2565_v41  ;;  %v2637_v41 = vld [vmem:[%s3834_s1 + $0x320] ss:$8 sps:$4 sm:$0xff]  }
  0x28   :  { %1748 = vmatpush2.bf16.msra.mxu1 %v2566_v44  ;;  %1708 = vmatprep.subr.bf16.mxu0 %v2567_v45  ;;  %v2645_v44 = vld [vmem:[%s3834_s1 + $0x314] ss:$8 sps:$4 sm:$0xff]   ;;  %v2640_v45 = vld [vmem:[%s3834_s1 + $0x210] ss:$8 sps:$4 sm:$0xff]  }
  0x29   :  { %1749 = vmatprep.subr.bf16.mxu1 %v2569_v46  ;;  %v2643_v46 = vld [vmem:[%s3834_s1 + $0x310] ss:$8 sps:$4 sm:$0xff]  }
  0x2b   :  { %1709 = vmatpush2.bf16.msra.mxu0 %v2571_v47  ;;  %v2648_v47 = vld [vmem:[%s3834_s1 + $0x204] ss:$8 sps:$4 sm:$0xff]  }
  0x2c   :  { %1750 = vmatpush2.bf16.msra.mxu1 %v2572_v48  ;;  %1710 = vmatprep.subr.bf16.mxu0 %v2573_v50  ;;  %v2651_v48 = vld [vmem:[%s3834_s1 + $0x304] ss:$8 sps:$4 sm:$0xff]   ;;  %v2646_v50 = vld [vmem:[%s3834_s1 + $0x200] ss:$8 sps:$4 sm:$0xff]  }
  0x2d   :  { %1751 = vmatprep.subr.bf16.mxu1 %v2575_v51  ;;  %v2649_v51 = vld [vmem:[%s3834_s1 + $0x300] ss:$8 sps:$4 sm:$0xff]  }
  0x2f   :  { %1711 = vmatpush2.bf16.msra.mxu0 %v2577_v53  ;;  %v2657_v53 = vld [vmem:[%s3834_s1 + $0x3f4] ss:$8 sps:$4 sm:$0xff]  }
  0x30   :  { %1752 = vmatpush2.bf16.msra.mxu1 %v2578_v55  ;;  %1712 = vmatprep.subr.bf16.mxu0 %v2579_v56  ;;  %v2655_v55 = vld [vmem:[%s3834_s1 + $0x3f0] ss:$8 sps:$4 sm:$0xff]   ;;  %v2660_v56 = vld [vmem:[%s3834_s1 + $0x2e4] ss:$8 sps:$4 sm:$0xff]  }
  0x31   :  { %1753 = vmatprep.subr.bf16.mxu1 %v2581_v57  ;;  %v2663_v57 = vld [vmem:[%s3834_s1 + $0x3e4] ss:$8 sps:$4 sm:$0xff]  }
  0x33   :  { %1713 = vmatpush2.bf16.msra.mxu0 %v2583_v59  ;;  %v2661_v59 = vld [vmem:[%s3834_s1 + $0x3e0] ss:$8 sps:$4 sm:$0xff]  }
  0x34   :  { %1754 = vmatpush2.bf16.msra.mxu1 %v2584_v61  ;;  %1714 = vmatprep.subr.bf16.mxu0 %v2585_v62  ;;  %v2669_v61 = vld [vmem:[%s3834_s1 + $0x3d4] ss:$8 sps:$4 sm:$0xff]   ;;  %v2664_v62 = vld [vmem:[%s3834_s1 + $0x2d0] ss:$8 sps:$4 sm:$0xff]  }
  0x35   :  { %1755 = vmatprep.subr.bf16.mxu1 %v2587_v63  ;;  %v2667_v63 = vld [vmem:[%s3834_s1 + $0x3d0] ss:$8 sps:$4 sm:$0xff]  }
  0x37   :  { %1715 = vmatpush2.bf16.msra.mxu0 %v2589_v2  ;;  %v2670_v2 = vld [vmem:[%s3834_s1 + $0x2c0] ss:$8 sps:$4 sm:$0xff]  }
  0x38   :  { %1756 = vmatpush2.bf16.msra.mxu1 %v2590_v3  ;;  %1716 = vmatprep.subr.bf16.mxu0 %v2591_v4  ;;  %v2673_v3 = vld [vmem:[%s3834_s1 + $0x3c0] ss:$8 sps:$4 sm:$0xff]   ;;  %v2678_v4 = vld [vmem:[%s3834_s1 + $0x2b4] ss:$8 sps:$4 sm:$0xff]  }
  0x39   :  { %1757 = vmatprep.subr.bf16.mxu1 %v2593_v5  ;;  %v2681_v5 = vld [vmem:[%s3834_s1 + $0x3b4] ss:$8 sps:$4 sm:$0xff]  }
  0x3b   :  { %1717 = vmatpush2.bf16.msra.mxu0 %v2595_v7  ;;  %v2676_v7 = vld [vmem:[%s3834_s1 + $0x2b0] ss:$8 sps:$4 sm:$0xff]  }
  0x3c   :  { %1758 = vmatpush2.bf16.msra.mxu1 %v2596_v8  ;;  %1718 = vmatprep.subr.bf16.mxu0 %v2597_v9  ;;  %v2679_v8 = vld [vmem:[%s3834_s1 + $0x3b0] ss:$8 sps:$4 sm:$0xff]   ;;  %v2684_v9 = vld [vmem:[%s3834_s1 + $0x2a4] ss:$8 sps:$4 sm:$0xff]  }
  0x3d   :  { %1759 = vmatprep.subr.bf16.mxu1 %v2599_v10  ;;  %v2687_v10 = vld [vmem:[%s3834_s1 + $0x3a4] ss:$8 sps:$4 sm:$0xff]  }
  0x3f   :  { %1719 = vmatpush2.bf16.msra.mxu0 %v2601_v12  ;;  %v2685_v12 = vld [vmem:[%s3834_s1 + $0x3a0] ss:$8 sps:$4 sm:$0xff]  }
  0x40   :  { %1760 = vmatpush2.bf16.msra.mxu1 %v2602_v14  ;;  %1770 = vmatprep.subr.bf16.mxu0 %v2606_v15  ;;  %v2693_v14 = vld [vmem:[%s3834_s1 + $0x394] ss:$8 sps:$4 sm:$0xff]   ;;  %v2688_v15 = vld [vmem:[%s3834_s1 + $0x290] ss:$8 sps:$4 sm:$0xff]  }
  0x41   :  { %1811 = vmatprep.subr.bf16.mxu1 %v2609_v16  ;;  %v2691_v16 = vld [vmem:[%s3834_s1 + $0x390] ss:$8 sps:$4 sm:$0xff]  }
  0x42   :  { %1721 = vmatmul.mubr.bf16.vlgmr.msra.gmra.mxu0 %v317_v13  ;;  %v2690_v13 = vld [vmem:[%s3834_s1 + $0x294] ss:$8 sps:$4 sm:$0xff]  }
  0x43   :  { %1762 = vmatmul.mubr.bf16.vlgmr.msra.gmra.mxu1 %v339_v18  ;;  %1771 = vmatpush1.bf16.msra.mxu0 %v2604_v19  ;;  %v2699_v18 = vld [vmem:[%s3834_s1 + $0x384] ss:$8 sps:$4 sm:$0xff]   ;;  %v2694_v19 = vld [vmem:[%s3834_s1 + $0x280] ss:$8 sps:$4 sm:$0xff]  }
  0x44   :  { %1812 = vmatpush1.bf16.msra.mxu1 %v2607_v20  ;;  %1772 = vmatprep.subr.bf16.mxu0 %v2612_v21  ;;  %v324_v20 = vrot.slane %v3148_v6, %v3098_v49  ;;  %v2697_v21 = vld [vmem:[%s3834_s1 + $0x380] ss:$8 sps:$4 sm:$0xff]   ;;  %v2700_v6 = vld [vmem:[%s3834_s1 + $0x470] ss:$8 sps:$4 sm:$0xff]  }
  0x45   :  { %1813 = vmatprep.subr.bf16.mxu1 %v2615_v22  ;;  %1802 = vmatprep.mubr.bf16.mxu0 %v338_v17  ;;  %v2696_v17 = vld [vmem:[%s3834_s1 + $0x284] ss:$8 sps:$4 sm:$0xff]   ;;  %v2702_v22 = vld [vmem:[%s3834_s1 + $0x474] ss:$8 sps:$4 sm:$0xff]  }
  0x46   :  { %1843 = vmatprep.mubr.bf16.mxu1 %v342_v23  ;;  %v2705_v23 = vld [vmem:[%s3834_s1 + $0x574] ss:$8 sps:$4 sm:$0xff]  }
  0x47   :  { %1773 = vmatpush1.bf16.msra.mxu0 %v2610_v24  ;;  %v340_v24 = vcombine.high %v324_v20, %v324_v20 }
  0x48   :  { %1814 = vmatpush1.bf16.msra.mxu1 %v2613_v25  ;;  %1774 = vmatprep.subr.bf16.mxu0 %v2618_v26  ;;  %v2703_v25 = vld [vmem:[%s3834_s1 + $0x570] ss:$8 sps:$4 sm:$0xff]   ;;  %v3381_v26 = vld [vmem:[%s3833_s0 + $0x8] sm:$0xff] }
  0x49   :  { %1815 = vmatprep.subr.bf16.mxu1 %v2621_v27  ;;  %v2708_v27 = vld [vmem:[%s3834_s1 + $0x464] ss:$8 sps:$4 sm:$0xff]  }
  0x4b   :  { %1775 = vmatpush1.bf16.msra.mxu0 %v2616_v28  ;;  %v2711_v28 = vld [vmem:[%s3834_s1 + $0x564] ss:$8 sps:$4 sm:$0xff]  }
  0x4c   :  { %1816 = vmatpush1.bf16.msra.mxu1 %v2619_v29  ;;  %1776 = vmatprep.subr.bf16.mxu0 %v2624_v30  ;;  %v3391_v29 = vrot.slane %v3381_v26, %v3098_v49 }
  0x4d   :  { %1817 = vmatprep.subr.bf16.mxu1 %v2627_v31  ;;  %v2706_v31 = vld [vmem:[%s3834_s1 + $0x460] ss:$8 sps:$4 sm:$0xff]  }
  0x4e   :  { %v358_v30 = vcombine.high %v3391_v29, %v3391_v29 }
  0x4f   :  { %1777 = vmatpush1.bf16.msra.mxu0 %v2622_v32  ;;  %v2709_v32 = vld [vmem:[%s3834_s1 + $0x560] ss:$8 sps:$4 sm:$0xff]  }
  0x50   :  { %1818 = vmatpush1.bf16.msra.mxu1 %v2625_v33  ;;  %1778 = vmatprep.subr.bf16.mxu0 %v2630_v34  ;;  %v2714_v33 = vld [vmem:[%s3834_s1 + $0x454] ss:$8 sps:$4 sm:$0xff]  }
  0x51   :  { %1819 = vmatprep.subr.bf16.mxu1 %v2633_v35  ;;  %v2717_v34 = vld [vmem:[%s3834_s1 + $0x554] ss:$8 sps:$4 sm:$0xff]   ;;  %v380_v35 = vrot.slane %v358_v30, %v3098_v49 }
  0x53   :  { %1779 = vmatpush1.bf16.msra.mxu0 %v2628_v36  ;;  %v390_v36 = vcombine.high %v380_v35, %v380_v35 }
  0x54   :  { %1820 = vmatpush1.bf16.msra.mxu1 %v2631_v37  ;;  %1780 = vmatprep.subr.bf16.mxu0 %v2636_v38  ;;  %v2712_v37 = vld [vmem:[%s3834_s1 + $0x450] ss:$8 sps:$4 sm:$0xff]  }
  0x55   :  { %1821 = vmatprep.subr.bf16.mxu1 %v2639_v39  ;;  %v2715_v38 = vld [vmem:[%s3834_s1 + $0x550] ss:$8 sps:$4 sm:$0xff]   ;;  %v2720_v39 = vld [vmem:[%s3834_s1 + $0x444] ss:$8 sps:$4 sm:$0xff]  }
  0x57   :  { %1781 = vmatpush1.bf16.msra.mxu0 %v2634_v40  ;;  %v2723_v40 = vld [vmem:[%s3834_s1 + $0x544] ss:$8 sps:$4 sm:$0xff]  }
  0x58   :  { %1822 = vmatpush1.bf16.msra.mxu1 %v2637_v41  ;;  %1782 = vmatprep.subr.bf16.mxu0 %v2642_v43  ;;  %v2718_v41 = vld [vmem:[%s3834_s1 + $0x440] ss:$8 sps:$4 sm:$0xff]  }
  0x59   :  { %1823 = vmatprep.subr.bf16.mxu1 %v2645_v44  ;;  %v2721_v43 = vld [vmem:[%s3834_s1 + $0x540] ss:$8 sps:$4 sm:$0xff]   ;;  %v2726_v44 = vld [vmem:[%s3834_s1 + $0x434] ss:$8 sps:$4 sm:$0xff]  }
  0x5b   :  { %1783 = vmatpush1.bf16.msra.mxu0 %v2640_v45  ;;  %v2729_v45 = vld [vmem:[%s3834_s1 + $0x534] ss:$8 sps:$4 sm:$0xff]  }
  0x5c   :  { %1824 = vmatpush1.bf16.msra.mxu1 %v2643_v46  ;;  %1784 = vmatprep.subr.bf16.mxu0 %v2648_v47  ;;  %v2724_v46 = vld [vmem:[%s3834_s1 + $0x430] ss:$8 sps:$4 sm:$0xff]  }
  0x5d   :  { %1825 = vmatprep.subr.bf16.mxu1 %v2651_v48  ;;  %v2727_v47 = vld [vmem:[%s3834_s1 + $0x530] ss:$8 sps:$4 sm:$0xff]   ;;  %v2732_v48 = vld [vmem:[%s3834_s1 + $0x424] ss:$8 sps:$4 sm:$0xff]  }
  0x5f   :  { %1785 = vmatpush1.bf16.msra.mxu0 %v2646_v50  ;;  %v2735_v50 = vld [vmem:[%s3834_s1 + $0x524] ss:$8 sps:$4 sm:$0xff]  }
  0x60   :  { %1826 = vmatpush1.bf16.msra.mxu1 %v2649_v51  ;;  %1786 = vmatprep.subr.bf16.mxu0 %v2654_v52  ;;  %v2730_v51 = vld [vmem:[%s3834_s1 + $0x420] ss:$8 sps:$4 sm:$0xff]  }
  0x61   :  { %1827 = vmatprep.subr.bf16.mxu1 %v2657_v53  ;;  %v2733_v52 = vld [vmem:[%s3834_s1 + $0x520] ss:$8 sps:$4 sm:$0xff]   ;;  %v2738_v53 = vld [vmem:[%s3834_s1 + $0x414] ss:$8 sps:$4 sm:$0xff]  }
  0x63   :  { %1787 = vmatpush2.bf16.msra.mxu0 %v2652_v54  ;;  %v2741_v54 = vld [vmem:[%s3834_s1 + $0x514] ss:$8 sps:$4 sm:$0xff]  }
  0x64   :  { %1828 = vmatpush2.bf16.msra.mxu1 %v2655_v55  ;;  %1788 = vmatprep.subr.bf16.mxu0 %v2660_v56  ;;  %v2736_v55 = vld [vmem:[%s3834_s1 + $0x410] ss:$8 sps:$4 sm:$0xff]  }
  0x65   :  { %1829 = vmatprep.subr.bf16.mxu1 %v2663_v57  ;;  %v2739_v56 = vld [vmem:[%s3834_s1 + $0x510] ss:$8 sps:$4 sm:$0xff]   ;;  %v2744_v57 = vld [vmem:[%s3834_s1 + $0x404] ss:$8 sps:$4 sm:$0xff]  }
  0x67   :  { %1789 = vmatpush2.bf16.msra.mxu0 %v2658_v58  ;;  %v2747_v58 = vld [vmem:[%s3834_s1 + $0x504] ss:$8 sps:$4 sm:$0xff]  }
  0x68   :  { %1830 = vmatpush2.bf16.msra.mxu1 %v2661_v59  ;;  %1790 = vmatprep.subr.bf16.mxu0 %v2666_v60  ;;  %v2742_v59 = vld [vmem:[%s3834_s1 + $0x400] ss:$8 sps:$4 sm:$0xff]  }
  0x69   :  { %1831 = vmatprep.subr.bf16.mxu1 %v2669_v61  ;;  %v2745_v60 = vld [vmem:[%s3834_s1 + $0x500] ss:$8 sps:$4 sm:$0xff]   ;;  %v2750_v61 = vld [vmem:[%s3834_s1 + $0x4f4] ss:$8 sps:$4 sm:$0xff]  }
  0x6b   :  { %1791 = vmatpush2.bf16.msra.mxu0 %v2664_v62  ;;  %v2753_v62 = vld [vmem:[%s3834_s1 + $0x5f4] ss:$8 sps:$4 sm:$0xff]  }
  0x6c   :  { %1832 = vmatpush2.bf16.msra.mxu1 %v2667_v63  ;;  %1792 = vmatprep.subr.bf16.mxu0 %v2672_v0  ;;  %v2748_v63 = vld [vmem:[%s3834_s1 + $0x4f0] ss:$8 sps:$4 sm:$0xff]  }
  0x6d   :  { %1833 = vmatprep.subr.bf16.mxu1 %v2675_v1  ;;  %v2751_v0 = vld [vmem:[%s3834_s1 + $0x5f0] ss:$8 sps:$4 sm:$0xff]   ;;  %v2756_v1 = vld [vmem:[%s3834_s1 + $0x4e4] ss:$8 sps:$4 sm:$0xff]  }
  0x6f   :  { %1793 = vmatpush2.bf16.msra.mxu0 %v2670_v2  ;;  %v2759_v2 = vld [vmem:[%s3834_s1 + $0x5e4] ss:$8 sps:$4 sm:$0xff]  }
  0x70   :  { %1834 = vmatpush2.bf16.msra.mxu1 %v2673_v3  ;;  %1794 = vmatprep.subr.bf16.mxu0 %v2678_v4  ;;  %v2754_v3 = vld [vmem:[%s3834_s1 + $0x4e0] ss:$8 sps:$4 sm:$0xff]  }
  0x71   :  { %1835 = vmatprep.subr.bf16.mxu1 %v2681_v5  ;;  %v2757_v4 = vld [vmem:[%s3834_s1 + $0x5e0] ss:$8 sps:$4 sm:$0xff]   ;;  %v2762_v5 = vld [vmem:[%s3834_s1 + $0x4d4] ss:$8 sps:$4 sm:$0xff]  }
  0x73   :  { %1795 = vmatpush2.bf16.msra.mxu0 %v2676_v7  ;;  %v2765_v7 = vld [vmem:[%s3834_s1 + $0x5d4] ss:$8 sps:$4 sm:$0xff]  }
  0x74   :  { %1836 = vmatpush2.bf16.msra.mxu1 %v2679_v8  ;;  %1796 = vmatprep.subr.bf16.mxu0 %v2684_v9  ;;  %v2760_v8 = vld [vmem:[%s3834_s1 + $0x4d0] ss:$8 sps:$4 sm:$0xff]  }
  0x75   :  { %1837 = vmatprep.subr.bf16.mxu1 %v2687_v10  ;;  %v2763_v9 = vld [vmem:[%s3834_s1 + $0x5d0] ss:$8 sps:$4 sm:$0xff]   ;;  %v2768_v10 = vld [vmem:[%s3834_s1 + $0x4c4] ss:$8 sps:$4 sm:$0xff]  }
  0x77   :  { %1797 = vmatpush2.bf16.msra.mxu0 %v2682_v11  ;;  %v2771_v11 = vld [vmem:[%s3834_s1 + $0x5c4] ss:$8 sps:$4 sm:$0xff]  }
  0x78   :  { %1838 = vmatpush2.bf16.msra.mxu1 %v2685_v12  ;;  %1798 = vmatprep.subr.bf16.mxu0 %v2690_v13  ;;  %v2766_v12 = vld [vmem:[%s3834_s1 + $0x4c0] ss:$8 sps:$4 sm:$0xff]  }
  0x79   :  { %1839 = vmatprep.subr.bf16.mxu1 %v2693_v14  ;;  %v2769_v13 = vld [vmem:[%s3834_s1 + $0x5c0] ss:$8 sps:$4 sm:$0xff]   ;;  %v2774_v14 = vld [vmem:[%s3834_s1 + $0x4b4] ss:$8 sps:$4 sm:$0xff]  }
  0x7b   :  { %1799 = vmatpush2.bf16.msra.mxu0 %v2688_v15  ;;  %v2777_v15 = vld [vmem:[%s3834_s1 + $0x5b4] ss:$8 sps:$4 sm:$0xff]  }
  0x7c   :  { %1840 = vmatpush2.bf16.msra.mxu1 %v2691_v16  ;;  %1800 = vmatprep.subr.bf16.mxu0 %v2696_v17  ;;  %v2772_v16 = vld [vmem:[%s3834_s1 + $0x4b0] ss:$8 sps:$4 sm:$0xff]  }
  0x7d   :  { %1841 = vmatprep.subr.bf16.mxu1 %v2699_v18  ;;  %v2775_v17 = vld [vmem:[%s3834_s1 + $0x5b0] ss:$8 sps:$4 sm:$0xff]   ;;  %v2780_v18 = vld [vmem:[%s3834_s1 + $0x4a4] ss:$8 sps:$4 sm:$0xff]  }
  0x7f   :  { %1801 = vmatpush2.bf16.msra.mxu0 %v2694_v19  ;;  %v2783_v19 = vld [vmem:[%s3834_s1 + $0x5a4] ss:$8 sps:$4 sm:$0xff]  }
  0x80   :  { %1842 = vmatpush2.bf16.msra.mxu1 %v2697_v21  ;;  %1852 = vmatprep.subr.bf16.mxu0 %v2702_v22  ;;  %v2781_v21 = vld [vmem:[%s3834_s1 + $0x5a0] ss:$8 sps:$4 sm:$0xff]   ;;  %v343_v22 = vcombine.high %v3381_v26, %v3381_v26 }
  0x81   :  { %1893 = vmatprep.subr.bf16.mxu1 %v2705_v23  ;;  %v2786_v23 = vld [vmem:[%s3834_s1 + $0x494] ss:$8 sps:$4 sm:$0xff]  }
  0x82   :  { %1803 = vmatmul.mubr.bf16.vlgmr.msra.gmra.mxu0 %v324_v20  ;;  %v2778_v20 = vld [vmem:[%s3834_s1 + $0x4a0] ss:$8 sps:$4 sm:$0xff]  }
  0x83   :  { %1844 = vmatmul.mubr.bf16.vlgmr.msra.gmra.mxu1 %v340_v24  ;;  %1853 = vmatpush1.bf16.msra.mxu0 %v2700_v6  ;;  %v2789_v24 = vld [vmem:[%s3834_s1 + $0x594] ss:$8 sps:$4 sm:$0xff]   ;;  %v3555_v6 = vrot.slane %v343_v22, %v3098_v49 }
  0x84   :  { %1894 = vmatpush1.bf16.msra.mxu1 %v2703_v25  ;;  %1854 = vmatprep.subr.bf16.mxu0 %v2708_v27 }
  0x85   :  { %1895 = vmatprep.subr.bf16.mxu1 %v2711_v28  ;;  %1884 = vmatprep.mubr.bf16.mxu0 %v380_v35 }
  0x86   :  { %1925 = vmatprep.mubr.bf16.mxu1 %v390_v36 }
  0x87   :  { %1855 = vmatpush1.bf16.msra.mxu0 %v2706_v31 }
  0x88   :  { %1896 = vmatpush1.bf16.msra.mxu1 %v2709_v32  ;;  %1856 = vmatprep.subr.bf16.mxu0 %v2714_v33 }
  0x89   :  { %1897 = vmatprep.subr.bf16.mxu1 %v2717_v34 }
  0x8b   :  { %1857 = vmatpush1.bf16.msra.mxu0 %v2712_v37 }
  0x8c   :  { %1898 = vmatpush1.bf16.msra.mxu1 %v2715_v38  ;;  %1858 = vmatprep.subr.bf16.mxu0 %v2720_v39 }
  0x8d   :  { %1899 = vmatprep.subr.bf16.mxu1 %v2723_v40 }
  0x8f   :  { %1859 = vmatpush1.bf16.msra.mxu0 %v2718_v41 }
  0x90   :  { %1900 = vmatpush1.bf16.msra.mxu1 %v2721_v43  ;;  %1860 = vmatprep.subr.bf16.mxu0 %v2726_v44 }
  0x91   :  { %1901 = vmatprep.subr.bf16.mxu1 %v2729_v45 }
  0x93   :  { %1861 = vmatpush1.bf16.msra.mxu0 %v2724_v46 }
  0x94   :  { %1902 = vmatpush1.bf16.msra.mxu1 %v2727_v47  ;;  %1862 = vmatprep.subr.bf16.mxu0 %v2732_v48 }
  0x95   :  { %1903 = vmatprep.subr.bf16.mxu1 %v2735_v50 }
  0x97   :  { %1863 = vmatpush1.bf16.msra.mxu0 %v2730_v51 }
  0x98   :  { %1904 = vmatpush1.bf16.msra.mxu1 %v2733_v52  ;;  %1864 = vmatprep.subr.bf16.mxu0 %v2738_v53 }
  0x99   :  { %1905 = vmatprep.subr.bf16.mxu1 %v2741_v54 }
  0x9b   :  { %1865 = vmatpush1.bf16.msra.mxu0 %v2736_v55 }
  0x9c   :  { %1906 = vmatpush1.bf16.msra.mxu1 %v2739_v56  ;;  %1866 = vmatprep.subr.bf16.mxu0 %v2744_v57 }
  0x9d   :  { %1907 = vmatprep.subr.bf16.mxu1 %v2747_v58 }
  0x9f   :  { %1867 = vmatpush1.bf16.msra.mxu0 %v2742_v59 }
  0xa0   :  { %1908 = vmatpush1.bf16.msra.mxu1 %v2745_v60  ;;  %1868 = vmatprep.subr.bf16.mxu0 %v2750_v61 }
  0xa1   :  { %1909 = vmatprep.subr.bf16.mxu1 %v2753_v62 }
  0xa3   :  { %1869 = vmatpush2.bf16.msra.mxu0 %v2748_v63 }
  0xa4   :  { %1910 = vmatpush2.bf16.msra.mxu1 %v2751_v0  ;;  %1870 = vmatprep.subr.bf16.mxu0 %v2756_v1 }
  0xa5   :  { %1911 = vmatprep.subr.bf16.mxu1 %v2759_v2 }
  0xa7   :  { %1871 = vmatpush2.bf16.msra.mxu0 %v2754_v3 }
  0xa8   :  { %1912 = vmatpush2.bf16.msra.mxu1 %v2757_v4  ;;  %1872 = vmatprep.subr.bf16.mxu0 %v2762_v5 }
  0xa9   :  { %1913 = vmatprep.subr.bf16.mxu1 %v2765_v7 }
  0xab   :  { %1873 = vmatpush2.bf16.msra.mxu0 %v2760_v8 }
  0xac   :  { %1914 = vmatpush2.bf16.msra.mxu1 %v2763_v9  ;;  %1874 = vmatprep.subr.bf16.mxu0 %v2768_v10 }
  0xad   :  { %1915 = vmatprep.subr.bf16.mxu1 %v2771_v11 }
  0xaf   :  { %1875 = vmatpush2.bf16.msra.mxu0 %v2766_v12 }
  0xb0   :  { %1916 = vmatpush2.bf16.msra.mxu1 %v2769_v13  ;;  %1876 = vmatprep.subr.bf16.mxu0 %v2774_v14 }
  0xb1   :  { %1917 = vmatprep.subr.bf16.mxu1 %v2777_v15 }
  0xb3   :  { %1877 = vmatpush2.bf16.msra.mxu0 %v2772_v16 }
  0xb4   :  { %1918 = vmatpush2.bf16.msra.mxu1 %v2775_v17  ;;  %1878 = vmatprep.subr.bf16.mxu0 %v2780_v18 }
  0xb5   :  { %1919 = vmatprep.subr.bf16.mxu1 %v2783_v19 }
  0xb6   :  { %10 = vsyncpa [#allocation3], 0  ;;  %v2784_v25 = vld [vmem:[%s3834_s1 + $0x490] ss:$8 sps:$4 sm:$0xff]   ;;  %v2792_v27 = vld [vmem:[%s3834_s1 + $0x484] ss:$8 sps:$4 sm:$0xff]   ;;  %v359_v30 = vcombine.high %v3555_v6, %v3555_v6  ;;  %v366_v31 = vrot.slane %v3391_v29, %v3098_v49 }
  0xb7   :  { %1879 = vmatpush2.bf16.msra.mxu0 %v2778_v20  ;;  %v2787_v26 = vld [vmem:[%s3834_s1 + $0x590] ss:$8 sps:$4 sm:$0xff]   ;;  %v2795_v28 = vld [vmem:[%s3834_s1 + $0x584] ss:$8 sps:$4 sm:$0xff]   ;;  %v2790_v32 = vld [vmem:[%s3834_s1 + $0x480] ss:$8 sps:$4 sm:$0xff]  }
  0xb8   :  { %1920 = vmatpush2.bf16.msra.mxu1 %v2781_v21  ;;  %1880 = vmatprep.subr.bf16.mxu0 %v2786_v23  ;;  %v2793_v33 = vld [vmem:[%s3834_s1 + $0x580] ss:$8 sps:$4 sm:$0xff]   ;;  %v2798_v34 = vld [vmem:[%s3834_s1 + $0x674] ss:$8 sps:$4 sm:$0xff]   ;;  %v387_v35 = vrot.slane %v359_v30, %v3098_v49  ;;  %v388_v36 = vcombine.high %v366_v31, %v366_v31  ;;  %v2796_v37 = vld [vmem:[%s3834_s1 + $0x670] ss:$8 sps:$4 sm:$0xff]  }
  0xb9   :  { %1921 = vmatprep.subr.bf16.mxu1 %v2789_v24  ;;  %v2801_v29 = vld [vmem:[%s3834_s1 + $0x774] ss:$8 sps:$4 sm:$0xff]   ;;  %v2799_v38 = vld [vmem:[%s3834_s1 + $0x770] ss:$8 sps:$4 sm:$0xff]   ;;  %v2804_v39 = vld [vmem:[%s3834_s1 + $0x664] ss:$8 sps:$4 sm:$0xff]  }
  0xba   :  { %v2807_v40 = vld [vmem:[%s3834_s1 + $0x764] ss:$8 sps:$4 sm:$0xff]   ;;  %v391_v41 = vcombine.high %v387_v35, %v387_v35  ;;  %v2802_v43 = vld [vmem:[%s3834_s1 + $0x660] ss:$8 sps:$4 sm:$0xff]   ;;  %v2810_v45 = vld [vmem:[%s3834_s1 + $0x654] ss:$8 sps:$4 sm:$0xff]  }
  0xbb   :  { %1881 = vmatpush2.bf16.msra.mxu0 %v2784_v25  ;;  %v2805_v44 = vld [vmem:[%s3834_s1 + $0x760] ss:$8 sps:$4 sm:$0xff]   ;;  %v2813_v46 = vld [vmem:[%s3834_s1 + $0x754] ss:$8 sps:$4 sm:$0xff]   ;;  %v2808_v47 = vld [vmem:[%s3834_s1 + $0x650] ss:$8 sps:$4 sm:$0xff]  }
  0xbc   :  { %1922 = vmatpush2.bf16.msra.mxu1 %v2787_v26  ;;  %1882 = vmatprep.subr.bf16.mxu0 %v2792_v27  ;;  %v2811_v48 = vld [vmem:[%s3834_s1 + $0x750] ss:$8 sps:$4 sm:$0xff]   ;;  %v2816_v50 = vld [vmem:[%s3834_s1 + $0x644] ss:$8 sps:$4 sm:$0xff]   ;;  %v2814_v52 = vld [vmem:[%s3834_s1 + $0x640] ss:$8 sps:$4 sm:$0xff]  }
  0xbd   :  { %1923 = vmatprep.subr.bf16.mxu1 %v2795_v28  ;;  %v2819_v51 = vld [vmem:[%s3834_s1 + $0x744] ss:$8 sps:$4 sm:$0xff]   ;;  %v2817_v53 = vld [vmem:[%s3834_s1 + $0x740] ss:$8 sps:$4 sm:$0xff]   ;;  %v2822_v54 = vld [vmem:[%s3834_s1 + $0x634] ss:$8 sps:$4 sm:$0xff]  }
  0xbe   :  { %v2825_v55 = vld [vmem:[%s3834_s1 + $0x734] ss:$8 sps:$4 sm:$0xff]   ;;  %v2820_v56 = vld [vmem:[%s3834_s1 + $0x630] ss:$8 sps:$4 sm:$0xff]   ;;  %v2828_v58 = vld [vmem:[%s3834_s1 + $0x624] ss:$8 sps:$4 sm:$0xff]  }
  0xbf   :  { %1883 = vmatpush2.bf16.msra.mxu0 %v2790_v32  ;;  %v2823_v57 = vld [vmem:[%s3834_s1 + $0x730] ss:$8 sps:$4 sm:$0xff]   ;;  %v2831_v59 = vld [vmem:[%s3834_s1 + $0x724] ss:$8 sps:$4 sm:$0xff]   ;;  %v2826_v60 = vld [vmem:[%s3834_s1 + $0x620] ss:$8 sps:$4 sm:$0xff]  }
  0xc0   :  { %1924 = vmatpush2.bf16.msra.mxu1 %v2793_v33  ;;  %1934 = vmatprep.subr.bf16.mxu0 %v2798_v34  ;;  %v2829_v61 = vld [vmem:[%s3834_s1 + $0x720] ss:$8 sps:$4 sm:$0xff]   ;;  %v2834_v62 = vld [vmem:[%s3834_s1 + $0x614] ss:$8 sps:$4 sm:$0xff]   ;;  %v2832_v0 = vld [vmem:[%s3834_s1 + $0x610] ss:$8 sps:$4 sm:$0xff]  }
  0xc1   :  { %1975 = vmatprep.subr.bf16.mxu1 %v2801_v29  ;;  %v2837_v63 = vld [vmem:[%s3834_s1 + $0x714] ss:$8 sps:$4 sm:$0xff]   ;;  %v2835_v1 = vld [vmem:[%s3834_s1 + $0x710] ss:$8 sps:$4 sm:$0xff]   ;;  %v2840_v2 = vld [vmem:[%s3834_s1 + $0x604] ss:$8 sps:$4 sm:$0xff]  }
  0xc2   :  { %1885 = vmatmul.mubr.bf16.vlgmr.msra.gmra.mxu0 %v366_v31  ;;  %v2843_v3 = vld [vmem:[%s3834_s1 + $0x704] ss:$8 sps:$4 sm:$0xff]   ;;  %v2838_v4 = vld [vmem:[%s3834_s1 + $0x600] ss:$8 sps:$4 sm:$0xff]   ;;  %v2846_v7 = vld [vmem:[%s3834_s1 + $0x6f4] ss:$8 sps:$4 sm:$0xff]  }
  0xc3   :  { %1926 = vmatmul.mubr.bf16.vlgmr.msra.gmra.mxu1 %v388_v36  ;;  %1935 = vmatpush1.bf16.msra.mxu0 %v2796_v37  ;;  %v2841_v5 = vld [vmem:[%s3834_s1 + $0x700] ss:$8 sps:$4 sm:$0xff]   ;;  %v2849_v8 = vld [vmem:[%s3834_s1 + $0x7f4] ss:$8 sps:$4 sm:$0xff]   ;;  %v2844_v9 = vld [vmem:[%s3834_s1 + $0x6f0] ss:$8 sps:$4 sm:$0xff]   ;;  %v373_v37 = vrot.slane %v3555_v6, %v3098_v49 }
  0xc4   :  { %1976 = vmatpush1.bf16.msra.mxu1 %v2799_v38  ;;  %1936 = vmatprep.subr.bf16.mxu0 %v2804_v39  ;;  %v2847_v10 = vld [vmem:[%s3834_s1 + $0x7f0] ss:$8 sps:$4 sm:$0xff]   ;;  %v2852_v11 = vld [vmem:[%s3834_s1 + $0x6e4] ss:$8 sps:$4 sm:$0xff]   ;;  %v2850_v13 = vld [vmem:[%s3834_s1 + $0x6e0] ss:$8 sps:$4 sm:$0xff]  }
  0xc5   :  { %1977 = vmatprep.subr.bf16.mxu1 %v2807_v40  ;;  %1966 = vmatprep.mubr.bf16.mxu0 %v387_v35  ;;  %v2855_v12 = vld [vmem:[%s3834_s1 + $0x7e4] ss:$8 sps:$4 sm:$0xff]   ;;  %v2853_v14 = vld [vmem:[%s3834_s1 + $0x7e0] ss:$8 sps:$4 sm:$0xff]   ;;  %v2858_v15 = vld [vmem:[%s3834_s1 + $0x6d4] ss:$8 sps:$4 sm:$0xff]   ;;  %v389_v6 = vcombine.high %v373_v37, %v373_v37 }
  0xc6   :  { %2007 = vmatprep.mubr.bf16.mxu1 %v391_v41  ;;  %v2861_v16 = vld [vmem:[%s3834_s1 + $0x7d4] ss:$8 sps:$4 sm:$0xff]   ;;  %v2856_v17 = vld [vmem:[%s3834_s1 + $0x6d0] ss:$8 sps:$4 sm:$0xff]   ;;  %v2864_v19 = vld [vmem:[%s3834_s1 + $0x6c4] ss:$8 sps:$4 sm:$0xff]  }
  0xc7   :  { %1937 = vmatpush1.bf16.msra.mxu0 %v2802_v43  ;;  %v2859_v18 = vld [vmem:[%s3834_s1 + $0x7d0] ss:$8 sps:$4 sm:$0xff]   ;;  %v2867_v20 = vld [vmem:[%s3834_s1 + $0x7c4] ss:$8 sps:$4 sm:$0xff]   ;;  %v2862_v21 = vld [vmem:[%s3834_s1 + $0x6c0] ss:$8 sps:$4 sm:$0xff]  }
  0xc8   :  { %1978 = vmatpush1.bf16.msra.mxu1 %v2805_v44  ;;  %1938 = vmatprep.subr.bf16.mxu0 %v2810_v45  ;;  %v2865_v22 = vld [vmem:[%s3834_s1 + $0x7c0] ss:$8 sps:$4 sm:$0xff]   ;;  %v2870_v23 = vld [vmem:[%s3834_s1 + $0x6b4] ss:$8 sps:$4 sm:$0xff]   ;;  %v2868_v25 = vld [vmem:[%s3834_s1 + $0x6b0] ss:$8 sps:$4 sm:$0xff]  }
  0xc9   :  { %1979 = vmatprep.subr.bf16.mxu1 %v2813_v46  ;;  %v2873_v24 = vld [vmem:[%s3834_s1 + $0x7b4] ss:$8 sps:$4 sm:$0xff]   ;;  %v2871_v26 = vld [vmem:[%s3834_s1 + $0x7b0] ss:$8 sps:$4 sm:$0xff]   ;;  %v2876_v27 = vld [vmem:[%s3834_s1 + $0x6a4] ss:$8 sps:$4 sm:$0xff]  }
  0xca   :  { %v2879_v28 = vld [vmem:[%s3834_s1 + $0x7a4] ss:$8 sps:$4 sm:$0xff]   ;;  %v2874_v30 = vld [vmem:[%s3834_s1 + $0x6a0] ss:$8 sps:$4 sm:$0xff]   ;;  %v2882_v32 = vld [vmem:[%s3834_s1 + $0x694] ss:$8 sps:$4 sm:$0xff]  }
  0xcb   :  { %1939 = vmatpush1.bf16.msra.mxu0 %v2808_v47  ;;  %v2877_v31 = vld [vmem:[%s3834_s1 + $0x7a0] ss:$8 sps:$4 sm:$0xff]   ;;  %v2885_v33 = vld [vmem:[%s3834_s1 + $0x794] ss:$8 sps:$4 sm:$0xff]   ;;  %v2880_v34 = vld [vmem:[%s3834_s1 + $0x690] ss:$8 sps:$4 sm:$0xff]  }
  0xcc   :  { %1980 = vmatpush1.bf16.msra.mxu1 %v2811_v48  ;;  %1940 = vmatprep.subr.bf16.mxu0 %v2816_v50  ;;  %v2883_v29 = vld [vmem:[%s3834_s1 + $0x790] ss:$8 sps:$4 sm:$0xff]   ;;  %v2888_v35 = vld [vmem:[%s3834_s1 + $0x684] ss:$8 sps:$4 sm:$0xff]   ;;  %v2886_v38 = vld [vmem:[%s3834_s1 + $0x680] ss:$8 sps:$4 sm:$0xff]  }
  0xcd   :  { %1981 = vmatprep.subr.bf16.mxu1 %v2819_v51  ;;  %v2891_v36 = vld [vmem:[%s3834_s1 + $0x784] ss:$8 sps:$4 sm:$0xff]   ;;  %v2889_v39 = vld [vmem:[%s3834_s1 + $0x780] ss:$8 sps:$4 sm:$0xff]   ;;  %v284_v40 = vsub.s32 0, %v3080_v42  ;;  %v288_v49 = vsub.s32 1, %v3080_v42 }
  0xce   :  { %v280_v41 = vld [vmem:[%s3835_s2] sm:$0x3]  ;;  %v2893_v42 = vld [vmem:[%s3836_s3 + $0x78] sm:$0xff]   ;;  %s2932_s29 = smov [#allocation2]  }
  0xcf   :  { %1941 = vmatpush1.bf16.msra.mxu0 %v2814_v52  ;;  %v285_v43 = vrot.slane %v280_v41, %v284_v40  ;;  %v289_v44 = vrot.slane %v280_v41, %v288_v49  ;;  %s2202_s30 = sshll.u32 %s2932_s29, 4  ;;  %s2203_s30 = int_to_ptr.vmem [resolvable:$true] %s2202_s30 }
  0xd0   :  { %1982 = vmatpush1.bf16.msra.mxu1 %v2817_v53  ;;  %1942 = vmatprep.subr.bf16.mxu0 %v2822_v54  ;;  %s2909_s6 = scalar_lea.vmem %s2203_s30, 32  ;;  %p2914_p1 = scmp.lt.s32.totalorder %s2203_s30, %s2203_s30 }
  0xd1   :  { %1983 = vmatprep.subr.bf16.mxu1 %v2825_v55  ;;  %p2910_p0 = scmp.ne.s32.totalorder %s2203_s30, %s2909_s6  ;;  %p2915_p2 = scmp.lt.s32.totalorder %s2909_s6, %s2909_s6 }
  0xd3   :  { %1943 = vmatpush1.bf16.msra.mxu0 %v2820_v56  ;;  %p2916_p3 = por %p2915_p2, %p2914_p1 }
  0xd4   :  { %1984 = vmatpush1.bf16.msra.mxu1 %v2823_v57  ;;  %1944 = vmatprep.subr.bf16.mxu0 %v2828_v58  ;;  %v2894_v58 = vld [vmem:[%s3836_s3 + $0x38] sm:$0xff]  }
  0xd5   :  { %1985 = vmatprep.subr.bf16.mxu1 %v2831_v59  ;;  %v2895_v59 = vld [vmem:[%s3836_s3 + $0x70] sm:$0xff]   ;;  %p2917_p4 = pnand %p2916_p3, %p2910_p0 }
  0xd7   :  { %1945 = vmatpush1.bf16.msra.mxu0 %v2826_v60  ;;  %v2896_v60 = vld [vmem:[%s3836_s3 + $0x30] sm:$0xff]  }
  0xd8   :  { %1986 = vmatpush1.bf16.msra.mxu1 %v2829_v61  ;;  %1946 = vmatprep.subr.bf16.mxu0 %v2834_v62  ;;  %v2897_v61 = vld [vmem:[%s3836_s3 + $0x68] sm:$0xff]  }
  0xd9   :  { %1987 = vmatprep.subr.bf16.mxu1 %v2837_v63  ;;  %v2898_v62 = vld [vmem:[%s3836_s3 + $0x28] sm:$0xff]   ;;  %v2899_v63 = vld [vmem:[%s3836_s3 + $0x60] sm:$0xff]  }
  0xdb   :  { %1947 = vmatpush1.bf16.msra.mxu0 %v2832_v0  ;;  %v2900_v0 = vld [vmem:[%s3836_s3 + $0x20] sm:$0xff]  }
  0xdc   :  { %1988 = vmatpush1.bf16.msra.mxu1 %v2835_v1  ;;  %1948 = vmatprep.subr.bf16.mxu0 %v2840_v2  ;;  %v2901_v1 = vld [vmem:[%s3836_s3 + $0x58] sm:$0xff]  }
  0xdd   :  { %1989 = vmatprep.subr.bf16.mxu1 %v2843_v3  ;;  %v2902_v2 = vld [vmem:[%s3836_s3 + $0x18] sm:$0xff]   ;;  %v2903_v3 = vld [vmem:[%s3836_s3 + $0x50] sm:$0xff]  }
  0xdf   :  { %1949 = vmatpush1.bf16.msra.mxu0 %v2838_v4  ;;  %v2904_v4 = vld [vmem:[%s3836_s3 + $0x10] sm:$0xff]  }
  0xe0   :  { %1990 = vmatpush1.bf16.msra.mxu1 %v2841_v5  ;;  %1950 = vmatprep.subr.bf16.mxu0 %v2846_v7 }
  0xe1   :  { %1991 = vmatprep.subr.bf16.mxu1 %v2849_v8 }
  0xe3   :  { %1951 = vmatpush2.bf16.msra.mxu0 %v2844_v9 }
  0xe4   :  { %1992 = vmatpush2.bf16.msra.mxu1 %v2847_v10  ;;  %1952 = vmatprep.subr.bf16.mxu0 %v2852_v11  ;;  %v2905_v11 = vld [vmem:[%s3836_s3 + $0x48] sm:$0xff]  }
  0xe5   :  { %1993 = vmatprep.subr.bf16.mxu1 %v2855_v12 }
  0xe7   :  { %1953 = vmatpush2.bf16.msra.mxu0 %v2850_v13 }
  0xe8   :  { %1994 = vmatpush2.bf16.msra.mxu1 %v2853_v14  ;;  %1954 = vmatprep.subr.bf16.mxu0 %v2858_v15  ;;  %v2906_v14 = vld [vmem:[%s3836_s3 + $0x8] sm:$0xff]  }
  0xe9   :  { %1995 = vmatprep.subr.bf16.mxu1 %v2861_v16 }
  0xeb   :  { %1955 = vmatpush2.bf16.msra.mxu0 %v2856_v17 }
  0xec   :  { %1996 = vmatpush2.bf16.msra.mxu1 %v2859_v18  ;;  %1956 = vmatprep.subr.bf16.mxu0 %v2864_v19 }
  0xed   :  { %1997 = vmatprep.subr.bf16.mxu1 %v2867_v20  ;;  %v2907_v20 = vld [vmem:[%s3836_s3 + $0x40] sm:$0xff]  }
  0xef   :  { %1957 = vmatpush2.bf16.msra.mxu0 %v2862_v21  ;;  %v2908_v21 = vld [vmem:[%s3836_s3] sm:$0xff]  }
  0xf0   :  { %1998 = vmatpush2.bf16.msra.mxu1 %v2865_v22  ;;  %1958 = vmatprep.subr.bf16.mxu0 %v2870_v23 }
  0xf1   :  { %1999 = vmatprep.subr.bf16.mxu1 %v2873_v24 }
  0xf3   :  { %1959 = vmatpush2.bf16.msra.mxu0 %v2868_v25 }
  0xf4   :  { %2000 = vmatpush2.bf16.msra.mxu1 %v2871_v26  ;;  %1960 = vmatprep.subr.bf16.mxu0 %v2876_v27 }
  0xf5   :  { %2001 = vmatprep.subr.bf16.mxu1 %v2879_v28 }
  0xf7   :  { %1961 = vmatpush2.bf16.msra.mxu0 %v2874_v30 }
  0xf8   :  { %2002 = vmatpush2.bf16.msra.mxu1 %v2877_v31  ;;  %1962 = vmatprep.subr.bf16.mxu0 %v2882_v32 }
  0xf9   :  { %2003 = vmatprep.subr.bf16.mxu1 %v2885_v33 }
  0xfb   :  { %1963 = vmatpush2.bf16.msra.mxu0 %v2880_v34 }
  0xfc   :  { %2004 = vmatpush2.bf16.msra.mxu1 %v2883_v29  ;;  %1964 = vmatprep.subr.bf16.mxu0 %v2888_v35 }
  0xfd   :  { %2005 = vmatprep.subr.bf16.mxu1 %v2891_v36 }
  0xff   :  { %1965 = vmatpush2.bf16.msra.mxu0 %v2886_v38 }
 0x100   :  { %2006 = vmatpush2.bf16.msra.mxu1 %v2889_v39  ;;  %2483 = vmatprep.subr.bf16.mxu0 %v2893_v42 }
 0x102   :  { %v1722_v45 = vpop.f32.mrf.mxu0  ;;  %1967 = vmatmul.mubr.bf16.vlgmr.msra.gmra.mxu0 %v373_v37 }
 0x103   :  { %v1763_v46 = vpop.f32.mrf.mxu1  ;;  %2008 = vmatmul.mubr.bf16.vlgmr.msra.gmra.mxu1 %v389_v6  ;;  %v1723_v47 = vadd.f32 %v1722_v45, %v285_v43  ;;  %2484 = vmatpush3.bf16.msra.mxu0 %v2894_v58 }
 0x104   :  { %v1724_v48 = vpop.f32.mrf.mxu0  ;;  %2485 = vmatprep.subr.bf16.mxu0 %v2895_v59 }
 0x105   :  { %v1765_v50 = vpop.f32.mrf.mxu1  ;;  %v1764_v51 = vadd.f32 %v1763_v46, %v1723_v47  ;;  %v1725_v52 = vadd.f32 %v1724_v48, %v289_v44 }
 0x106   :  { %v1726_v53 = vpop.f32.mrf.mxu0 }
 0x107   :  { %v1767_v54 = vpop.f32.mrf.mxu1  ;;  %v1766_v55 = vadd.f32 %v1765_v50, %v1725_v52  ;;  %2486 = vmatpush3.bf16.msra.mxu0 %v2896_v60  ;;  %v2466_v52 = vld [vmem:[%s3837_s4] ss:$0 sm:$0xff] }
 0x108   :  { %v1727_v56 = vpop.f32.mrf.mxu0  ;;  %2487 = vmatprep.subr.bf16.mxu0 %v2897_v61 }
 0x109   :  { %v1768_v57 = vpop.f32.mrf.mxu1 }
 0x10b   :  { %2488 = vmatpush3.bf16.msra.mxu0 %v2898_v62 }
 0x10c   :  { %2489 = vmatprep.subr.bf16.mxu0 %v2899_v63 }
 0x10f   :  { %2490 = vmatpush3.bf16.msra.mxu0 %v2900_v0 }
 0x110   :  { %2491 = vmatprep.subr.bf16.mxu0 %v2901_v1 }
 0x113   :  { %2492 = vmatpush3.bf16.msra.mxu0 %v2902_v2 }
 0x114   :  { %2493 = vmatprep.subr.bf16.mxu0 %v2903_v3 }
 0x117   :  { %2494 = vmatpush3.bf16.msra.mxu0 %v2904_v4 }
 0x118   :  { %2495 = vmatprep.subr.bf16.mxu0 %v2905_v11 }
 0x11b   :  { %2496 = vmatpush3.bf16.msra.mxu0 %v2906_v14 }
 0x11c   :  { %2497 = vmatprep.subr.bf16.mxu0 %v2907_v20 }
 0x11f   :  { %2498 = vmatpush3.bf16.msra.mxu0 %v2908_v21 }
 0x142   :  { %v1804_v5 = vpop.f32.mrf.mxu0 }
 0x143   :  { %v1845_v7 = vpop.f32.mrf.mxu1  ;;  %v1805_v8 = vadd.f32 %v1804_v5, %v1764_v51 }
 0x144   :  { %v1806_v9 = vpop.f32.mrf.mxu0 }
 0x145   :  { %v1847_v10 = vpop.f32.mrf.mxu1  ;;  %v1846_v12 = vadd.f32 %v1845_v7, %v1805_v8  ;;  %v1807_v13 = vadd.f32 %v1806_v9, %v1766_v55 }
 0x146   :  { %v1808_v15 = vpop.f32.mrf.mxu0 }
 0x147   :  { %v1849_v16 = vpop.f32.mrf.mxu1  ;;  %v1848_v17 = vadd.f32 %v1847_v10, %v1807_v13 }
 0x148   :  { %v1809_v18 = vpop.f32.mrf.mxu0 }
 0x149   :  { %v1850_v19 = vpop.f32.mrf.mxu1 }
 0x182   :  { %v1886_v22 = vpop.f32.mrf.mxu0 }
 0x183   :  { %v1927_v23 = vpop.f32.mrf.mxu1  ;;  %v1887_v24 = vadd.f32 %v1886_v22, %v1846_v12 }
 0x184   :  { %v1888_v25 = vpop.f32.mrf.mxu0 }
 0x185   :  { %v1929_v26 = vpop.f32.mrf.mxu1  ;;  %v1928_v27 = vadd.f32 %v1927_v23, %v1887_v24  ;;  %v1889_v33 = vadd.f32 %v1888_v25, %v1848_v17 }
 0x186   :  { %v1890_v28 = vpop.f32.mrf.mxu0 }
 0x187   :  { %v1931_v30 = vpop.f32.mrf.mxu1  ;;  %v1930_v35 = vadd.f32 %v1929_v26, %v1889_v33 }
 0x188   :  { %v1891_v31 = vpop.f32.mrf.mxu0 }
 0x189   :  { %v1932_v32 = vpop.f32.mrf.mxu1 }
 0x1c2   :  { %v1968_v34 = vpop.f32.mrf.mxu0 }
 0x1c3   :  { %v2009_v29 = vpop.f32.mrf.mxu1  ;;  %v1969_v36 = vadd.f32 %v1968_v34, %v1928_v27 }
 0x1c4   :  { %v1970_v37 = vpop.f32.mrf.mxu0 }
 0x1c5   :  { %v2011_v38 = vpop.f32.mrf.mxu1  ;;  %v2010_v39 = vadd.f32 %v2009_v29, %v1969_v36  ;;  %v1971_v40 = vadd.f32 %v1970_v37, %v1930_v35 }
 0x1c6   :  { %v1972_v41 = vpop.f32.mrf.mxu0 }
 0x1c7   :  { %v2013_v49 = vpop.f32.mrf.mxu1  ;;  %v2012_v6 = vadd.f32 %v2011_v38, %v1971_v40  ;;  %v2016_v43 = vmax.f32 %v2010_v39, 0.0 }
 0x1c8   :  { %v1973_v44 = vpop.f32.mrf.mxu0 }
 0x1c9   :  { %v2014_v45 = vpop.f32.mrf.mxu1  ;;  %v2017_v46 = vmax.f32 %v2012_v6, 0.0  ;;  %v2018_v48 = vpack.c.bf16 %v2016_v43, %v2016_v43 }
 0x1cb   :  { %v2019_v47 = vpack.c.bf16 %v2017_v46, %v2017_v46 }
 0x1cd   :  { %2187 = vmatprep.mubr.bf16.mxu0 %v2019_v47 }
 0x1ce   :  { %2188 = vmatmul.mubr.bf16.vlgmr.msra.gmra.mxu0 %v2018_v48 }
 0x28e   :  { %v2499_v50 = vpop.f32.mrf.mxu0 }
 0x290   :  { %v2500_v51 = vpop.f32.mrf.mxu0 }
 0x291   :  { %v2501_v53 = vadd.f32 %v2500_v51, %v2499_v50 }
 0x292   :  { %v2502_v54 = vpop.f32.mrf.mxu0 }
 0x293   :  { %v2190_v55 = vadd.f32 %v2501_v53, %v2466_v52 }
 0x294   :  { %v2503_v56 = vpop.f32.mrf.mxu0 }
 0x295   :  { %2195 = vst [vmem:[#allocation2] sm:$0x3] %v2190_v55 }
 0x296   :  { %2920 = shalt.err (!%p2917_p4)
}
 0x297   :  { %2205 = dma.vmem_to_hbm [thread:$0]  %s2203_s30, 32, %s3838_s5, [#allocation3]  }
 0x298   :  { %2929 = dma.done.wait [#allocation3], 32  }
 0x299   :  { %2930 = vsyncadd [#allocation3], 4294967264 }
 0x29a   :  { %2209 = vsyncpa [#allocation3], 1 }

// kernel: _lambda_.2
= control target key start
LH: loop header
LB: loop body
LE: loop exit
PB: predicated region body
PF: predicated region fallthrough
CT: control target
= control target key end

     0   :  { %s8616_s24 = smov 0   ;;  %s11142_s0 = inlined_call_operand.vmem [shape: bf16[2,1024,9], index: 0, kind: input, shape index: {}]   ;;  %s11143_s1 = inlined_call_operand.vmem [shape: bf16[9,32], index: 1, kind: input, shape index: {}]   ;;  %s11144_s2 = inlined_call_operand.vmem [shape: f32[1,32], index: 2, kind: input, shape index: {}]   ;;  %s11145_s3 = inlined_call_operand.vmem [shape: bf16[288,64], index: 3, kind: input, shape index: {}]   ;;  %s11146_s4 = inlined_call_operand.vmem [shape: f32[1,64], index: 4, kind: input, shape index: {}]   ;;  %s11147_s5 = inlined_call_operand.vmem [shape: bf16[576,128], index: 5, kind: input, shape index: {}]   ;;  %s11148_s6 = inlined_call_operand.vmem [shape: f32[1,128], index: 6, kind: input, shape index: {}]   ;;  %s11149_s7 = inlined_call_operand.vmem [shape: bf16[2,16,128], index: 7, kind: output, shape index: {}]  }
   0x1 LB: > { %s7123_s25 = sadd.s32 4294967295, %s8571_s24   ;;  %p7127_p0 = scmp.ge.s32.totalorder %s8571_s24, 1  ;;  %s8571_s24 = sphi %s8616_s24, %s17_s24  }
   0x2   : > { %p237_p1 = scmp.lt.s32.totalorder %s8571_s24, 3 }
   0x4   : > { %p238_p2 = pnand %p7127_p0, %p237_p1 }
   0x6   : > { %241 = sbr.rel (%p238_p2) target bundleno = 1476 (0x5c4), region = 48 }
   0xb   : > { %v8444_v0 = vld [vmem:[%s11143_s1] sm:$0x1f]   ;;  %vm935_vm0 = vcmask 1043456   ;;  %vm936_vm1 = vcmask 1044480   ;;  %p269_p3 = scmp.lt.s32.totalorder %s7123_s25, 1  ;;  %v8573_v1 = vmov 65535  }
   0xc   : > { %v937_v2 = vsel %vm935_vm0, 4294967295, %v8573_v1  ;;  %vm742_vm2 = vcmask 72704   ;;  %vm1711_vm3 = vcmask 261120   ;;  %vm4570_vm4 = vcmask 523264  }
   0xd   : > { %v938_v3 = vsel %vm936_vm1, %v937_v2, 0  ;;  %s11312_s25 = smov (!%p269_p3, %s7123_s25), 1  ;;  %vm4971_vm5 = vcmask 517120   ;;  %vm5514_vm6 = vcmask 1041409   ;;  %vm5516_vm7 = vcmask 1042434  }
   0xe   : > { %v940_v4 = vand.u32 %v8444_v0, %v938_v3  ;;  %s7516_s28 = sshll.u32 %s11312_s25, 9  ;;  %vm5518_vm8 = vcmask 1043459   ;;  %vm5520_vm9 = vcmask 1044484   ;;  %vm5522_vm10 = vcmask 1045509   ;;  %s7517_s22 = sshll.u32 %s11312_s25, 3 }
   0xf   : > { %s8633_s8 = scalar_lea.vmem %s11142_s0, %s7516_s28  ;;  %vm5524_vm11 = vcmask 1046534   ;;  %vm5526_vm12 = vcmask 1047559   ;;  %vm6855_vm13 = vcmask 1041408   ;;  %s11122_s25 = scalar_lea.vmem %s11149_s7, %s7517_s22 }
  0x10   : > { %7833 = vmatprep.subr.bf16.mxu0 %v940_v4  ;;  %8431 = vmatprep.subr.bf16.mxu1 %v940_v4  ;;  %v8445_v5 = vld [vmem:[%s8633_s8] sm:$0xff]   ;;  %v8446_v6 = vld [vmem:[%s8633_s8 + $0x8] sm:$0xff]   ;;  %v8447_v7 = vld [vmem:[%s8633_s8 + $0x10] sm:$0xff]  }
  0x11   : > { %7834 = vmatpush3.bf16.msra.mxu0 %v940_v4  ;;  %8432 = vmatpush3.bf16.msra.mxu1 %v940_v4  ;;  %v8448_v8 = vld [vmem:[%s8633_s8 + $0x18] sm:$0xff]   ;;  %v8449_v9 = vld [vmem:[%s8633_s8 + $0x20] sm:$0xff]   ;;  %v8450_v10 = vld [vmem:[%s8633_s8 + $0x28] sm:$0xff]  }
  0x12   : > { %7835 = vmatprep.mubr.msk.bf16.mxu0 %vm742_vm2, %v8445_v5  ;;  %v8451_v11 = vld [vmem:[%s8633_s8 + $0x30] sm:$0xff]   ;;  %v8452_v12 = vld [vmem:[%s8633_s8 + $0x38] sm:$0xff]   ;;  %v8453_v13 = vld [vmem:[%s8633_s8 + $0x40] sm:$0xff]  }
  0x13   : > { %v8454_v14 = vld [vmem:[%s8633_s8 + $0x48] sm:$0xff]   ;;  %v8455_v15 = vld [vmem:[%s8633_s8 + $0x50] sm:$0xff]   ;;  %v8456_v16 = vld [vmem:[%s8633_s8 + $0x58] sm:$0xff]  }
  0x14   : > { %7836 = vmatmul.mubr.msk.bf16.vlgmr.msra.gmra.mxu0 %vm742_vm2, %v8446_v6  ;;  %v8457_v17 = vld [vmem:[%s8633_s8 + $0x60] sm:$0xff]   ;;  %v8458_v18 = vld [vmem:[%s8633_s8 + $0x68] sm:$0xff]   ;;  %v8459_v19 = vld [vmem:[%s8633_s8 + $0x70] sm:$0xff]  }
  0x15   : > { %7839 = vmatprep.mubr.msk.bf16.mxu0 %vm742_vm2, %v8447_v7  ;;  %v8492_v20 = vld [vmem:[%s8633_s8 + $0x1f0] sm:$0xff]   ;;  %v8460_v21 = vld [vmem:[%s8633_s8 + $0x78] sm:$0xff]   ;;  %v8461_v22 = vld [vmem:[%s8633_s8 + $0x80] sm:$0xff]  }
  0x16   : > { %7959 = vmatprep.mubr.msk.bf16.mxu1 %vm742_vm2, %v8492_v20  ;;  %v8494_v23 = vld [vmem:[%s8633_s8 + $0x1f8] sm:$0xff]   ;;  %v8462_v24 = vld [vmem:[%s8633_s8 + $0x88] sm:$0xff]   ;;  %v8463_v25 = vld [vmem:[%s8633_s8 + $0x90] sm:$0xff]  }
  0x17   : > { %7960 = vmatmul.mubr.msk.bf16.vlgmr.msra.gmra.mxu1 %vm742_vm2, %v8494_v23  ;;  %v8464_v26 = vld [vmem:[%s8633_s8 + $0x98] sm:$0xff]   ;;  %v8465_v27 = vld [vmem:[%s8633_s8 + $0xa0] sm:$0xff]   ;;  %v8466_v28 = vld [vmem:[%s8633_s8 + $0xa8] sm:$0xff]  }
  0x18   : > { %v8467_v29 = vld [vmem:[%s8633_s8 + $0xb0] sm:$0xff]   ;;  %v8468_v30 = vld [vmem:[%s8633_s8 + $0xb8] sm:$0xff]   ;;  %v8469_v31 = vld [vmem:[%s8633_s8 + $0xc0] sm:$0xff]  }
  0x19   : > { %v8470_v32 = vld [vmem:[%s8633_s8 + $0xc8] sm:$0xff]   ;;  %v8471_v33 = vld [vmem:[%s8633_s8 + $0xd0] sm:$0xff]   ;;  %v8472_v34 = vld [vmem:[%s8633_s8 + $0xd8] sm:$0xff]  }
  0x1a   : > { %v8473_v35 = vld [vmem:[%s8633_s8 + $0xe0] sm:$0xff]   ;;  %v8474_v36 = vld [vmem:[%s8633_s8 + $0xe8] sm:$0xff]   ;;  %v8475_v37 = vld [vmem:[%s8633_s8 + $0xf0] sm:$0xff]  }
  0x1b   : > { %v8476_v38 = vld [vmem:[%s8633_s8 + $0xf8] sm:$0xff]   ;;  %v8477_v39 = vld [vmem:[%s8633_s8 + $0x100] sm:$0xff]   ;;  %v8478_v40 = vld [vmem:[%s8633_s8 + $0x108] sm:$0xff]  }
  0x1c   : > { %7840 = vmatmul.mubr.msk.bf16.gmra.mxu0 %vm742_vm2, %v8448_v8  ;;  %v8479_v41 = vld [vmem:[%s8633_s8 + $0x110] sm:$0xff]   ;;  %v8480_v42 = vld [vmem:[%s8633_s8 + $0x118] sm:$0xff]   ;;  %v8481_v43 = vld [vmem:[%s8633_s8 + $0x120] sm:$0xff]  }
  0x1d   : > { %7843 = vmatprep.mubr.msk.bf16.mxu0 %vm742_vm2, %v8449_v9  ;;  %v8482_v44 = vld [vmem:[%s8633_s8 + $0x128] sm:$0xff]   ;;  %v8483_v45 = vld [vmem:[%s8633_s8 + $0x130] sm:$0xff]   ;;  %v8484_v46 = vld [vmem:[%s8633_s8 + $0x138] sm:$0xff]  }
  0x1e   : > { %v8485_v47 = vld [vmem:[%s8633_s8 + $0x140] sm:$0xff]   ;;  %v8486_v48 = vld [vmem:[%s8633_s8 + $0x148] sm:$0xff]   ;;  %v8487_v49 = vld [vmem:[%s8633_s8 + $0x150] sm:$0xff]  }
  0x1f   : > { %v8488_v50 = vld [vmem:[%s8633_s8 + $0x158] sm:$0xff]   ;;  %v8489_v51 = vld [vmem:[%s8633_s8 + $0x160] sm:$0xff]   ;;  %v8490_v52 = vld [vmem:[%s8633_s8 + $0x168] sm:$0xff]  }
  0x20   : > { %v8491_v53 = vld [vmem:[%s8633_s8 + $0x170] sm:$0xff]   ;;  %v8493_v54 = vld [vmem:[%s8633_s8 + $0x178] sm:$0xff]   ;;  %v8495_v55 = vld [vmem:[%s8633_s8 + $0x180] sm:$0xff]  }
  0x21   : > { %v8496_v56 = vld [vmem:[%s8633_s8 + $0x188] sm:$0xff]   ;;  %v8497_v57 = vld [vmem:[%s8633_s8 + $0x190] sm:$0xff]   ;;  %v8498_v61 = vld [vmem:[%s8633_s8 + $0x198] sm:$0xff]  }
  0x22   : > { %v8499_v62 = vld [vmem:[%s8633_s8 + $0x1a0] sm:$0xff]   ;;  %v8500_v3 = vld [vmem:[%s8633_s8 + $0x1a8] sm:$0xff]   ;;  %v8501_v4 = vld [vmem:[%s8633_s8 + $0x1b0] sm:$0xff]  }
  0x23   : > { %v8502_v9 = vld [vmem:[%s8633_s8 + $0x1b8] sm:$0xff]   ;;  %v8509_v23 = vld [vmem:[%s11145_s3 + $0x48] sm:$0xff]  }
  0x24   : > { %7844 = vmatmul.mubr.msk.bf16.gmra.mxu0 %vm742_vm2, %v8450_v10  ;;  %v8503_v10 = vld [vmem:[%s8633_s8 + $0x1c0] sm:$0xff]   ;;  %8107 = vmatprep.subr.bf16.mxu0 %v8509_v23 }
  0x25   : > { %7847 = vmatprep.mubr.msk.bf16.mxu0 %vm742_vm2, %v8451_v11  ;;  %8108 = vmatpush3.bf16.msra.mxu0 %v8509_v23 }
  0x2c   : > { %7848 = vmatmul.mubr.msk.bf16.gmra.mxu0 %vm742_vm2, %v8452_v12 }
  0x2d   : > { %7851 = vmatprep.mubr.msk.bf16.mxu0 %vm742_vm2, %v8453_v13 }
  0x34   : > { %7852 = vmatmul.mubr.msk.bf16.gmra.mxu0 %vm742_vm2, %v8454_v14 }
  0x35   : > { %7855 = vmatprep.mubr.msk.bf16.mxu0 %vm742_vm2, %v8455_v15  ;;  %v8504_v15 = vld [vmem:[%s8633_s8 + $0x1c8] sm:$0xff]  }
  0x3c   : > { %7856 = vmatmul.mubr.msk.bf16.gmra.mxu0 %vm742_vm2, %v8456_v16  ;;  %v8505_v16 = vld [vmem:[%s8633_s8 + $0x1d0] sm:$0xff]  }
  0x3d   : > { %7859 = vmatprep.mubr.msk.bf16.mxu0 %vm742_vm2, %v8457_v17 }
  0x44   : > { %7860 = vmatmul.mubr.msk.bf16.gmra.mxu0 %vm742_vm2, %v8458_v18 }
  0x45   : > { %7863 = vmatprep.mubr.msk.bf16.mxu0 %vm742_vm2, %v8459_v19 }
  0x4c   : > { %7864 = vmatmul.mubr.msk.bf16.gmra.mxu0 %vm742_vm2, %v8460_v21  ;;  %v8506_v21 = vld [vmem:[%s8633_s8 + $0x1d8] sm:$0xff]  }
  0x4d   : > { %7867 = vmatprep.mubr.msk.bf16.mxu0 %vm742_vm2, %v8461_v22  ;;  %v8507_v22 = vld [vmem:[%s8633_s8 + $0x1e0] sm:$0xff]  }
  0x54   : > { %7868 = vmatmul.mubr.msk.bf16.gmra.mxu0 %vm742_vm2, %v8462_v24 }
  0x55   : > { %7871 = vmatprep.mubr.msk.bf16.mxu0 %vm742_vm2, %v8463_v25 }
  0x5c   : > { %7872 = vmatmul.mubr.msk.bf16.gmra.mxu0 %vm742_vm2, %v8464_v26 }
  0x5d   : > { %7875 = vmatprep.mubr.msk.bf16.mxu0 %vm742_vm2, %v8465_v27 }
  0x64   : > { %7876 = vmatmul.mubr.msk.bf16.gmra.mxu0 %vm742_vm2, %v8466_v28  ;;  %v8508_v28 = vld [vmem:[%s8633_s8 + $0x1e8] sm:$0xff]  }
  0x65   : > { %7879 = vmatprep.mubr.msk.bf16.mxu0 %vm742_vm2, %v8467_v29 }
  0x6c   : > { %7880 = vmatmul.mubr.msk.bf16.gmra.mxu0 %vm742_vm2, %v8468_v30 }
  0x6d   : > { %7883 = vmatprep.mubr.msk.bf16.mxu0 %vm742_vm2, %v8469_v31 }
  0x74   : > { %7884 = vmatmul.mubr.msk.bf16.gmra.mxu0 %vm742_vm2, %v8470_v32 }
  0x75   : > { %7887 = vmatprep.mubr.msk.bf16.mxu0 %vm742_vm2, %v8471_v33 }
  0x7c   : > { %7888 = vmatmul.mubr.msk.bf16.gmra.mxu0 %vm742_vm2, %v8472_v34 }
  0x7d   : > { %7891 = vmatprep.mubr.msk.bf16.mxu0 %vm742_vm2, %v8473_v35 }
  0x84   : > { %7892 = vmatmul.mubr.msk.bf16.gmra.mxu0 %vm742_vm2, %v8474_v36  ;;  %v8827_v36 = vld [vmem:[%s11144_s2] ss:$0 sm:$0xff] }
  0x85   : > { %7895 = vmatprep.mubr.msk.bf16.mxu0 %vm742_vm2, %v8475_v37 }
  0x8c   : > { %7896 = vmatmul.mubr.msk.bf16.gmra.mxu0 %vm742_vm2, %v8476_v38 }
  0x8d   : > { %7899 = vmatprep.mubr.msk.bf16.mxu0 %vm742_vm2, %v8477_v39 }
  0x94   : > { %7900 = vmatmul.mubr.msk.bf16.gmra.mxu0 %vm742_vm2, %v8478_v40 }
  0x95   : > { %7903 = vmatprep.mubr.msk.bf16.mxu0 %vm742_vm2, %v8479_v41  ;;  %v11150_v41 = vmov 0.0  }
  0x96   : > { %1777 = vst.msk [vmem:[#allocation2 + $0x208] sm:$0xff] %vm1711_vm3, %v11150_v41  ;;  %1712 = vst.msk [vmem:[#allocation2] sm:$0xff] %vm1711_vm3, %v11150_v41 }
  0x97   : > { %1713 = vst.msk [vmem:[#allocation2 + $0x8] sm:$0xff] %vm1711_vm3, %v11150_v41  ;;  %1714 = vst.msk [vmem:[#allocation2 + $0x10] sm:$0xff] %vm1711_vm3, %v11150_v41 }
  0x98   : > { %1715 = vst.msk [vmem:[#allocation2 + $0x18] sm:$0xff] %vm1711_vm3, %v11150_v41  ;;  %1716 = vst.msk [vmem:[#allocation2 + $0x20] sm:$0xff] %vm1711_vm3, %v11150_v41 }
  0x99   : > { %1717 = vst.msk [vmem:[#allocation2 + $0x28] sm:$0xff] %vm1711_vm3, %v11150_v41  ;;  %1718 = vst.msk [vmem:[#allocation2 + $0x30] sm:$0xff] %vm1711_vm3, %v11150_v41 }
  0x9a   : > { %1719 = vst.msk [vmem:[#allocation2 + $0x38] sm:$0xff] %vm1711_vm3, %v11150_v41  ;;  %1720 = vst.msk [vmem:[#allocation2 + $0x40] sm:$0xff] %vm1711_vm3, %v11150_v41 }
  0x9b   : > { %1721 = vst.msk [vmem:[#allocation2 + $0x48] sm:$0xff] %vm1711_vm3, %v11150_v41  ;;  %1722 = vst.msk [vmem:[#allocation2 + $0x50] sm:$0xff] %vm1711_vm3, %v11150_v41 }
  0x9c   : > { %7904 = vmatmul.mubr.msk.bf16.gmra.mxu0 %vm742_vm2, %v8480_v42  ;;  %1723 = vst.msk [vmem:[#allocation2 + $0x58] sm:$0xff] %vm1711_vm3, %v11150_v41  ;;  %1724 = vst.msk [vmem:[#allocation2 + $0x60] sm:$0xff] %vm1711_vm3, %v11150_v41 }
  0x9d   : > { %7907 = vmatprep.mubr.msk.bf16.mxu0 %vm742_vm2, %v8481_v43  ;;  %1725 = vst.msk [vmem:[#allocation2 + $0x68] sm:$0xff] %vm1711_vm3, %v11150_v41  ;;  %1726 = vst.msk [vmem:[#allocation2 + $0x70] sm:$0xff] %vm1711_vm3, %v11150_v41 }
  0x9e   : > { %1727 = vst.msk [vmem:[#allocation2 + $0x78] sm:$0xff] %vm1711_vm3, %v11150_v41  ;;  %1728 = vst.msk [vmem:[#allocation2 + $0x80] sm:$0xff] %vm1711_vm3, %v11150_v41 }
  0x9f   : > { %1729 = vst.msk [vmem:[#allocation2 + $0x88] sm:$0xff] %vm1711_vm3, %v11150_v41  ;;  %1730 = vst.msk [vmem:[#allocation2 + $0x90] sm:$0xff] %vm1711_vm3, %v11150_v41 }
  0xa0   : > { %1731 = vst.msk [vmem:[#allocation2 + $0x98] sm:$0xff] %vm1711_vm3, %v11150_v41  ;;  %1732 = vst.msk [vmem:[#allocation2 + $0xa0] sm:$0xff] %vm1711_vm3, %v11150_v41 }
  0xa1   : > { %1733 = vst.msk [vmem:[#allocation2 + $0xa8] sm:$0xff] %vm1711_vm3, %v11150_v41  ;;  %1734 = vst.msk [vmem:[#allocation2 + $0xb0] sm:$0xff] %vm1711_vm3, %v11150_v41 }
  0xa2   : > { %1735 = vst.msk [vmem:[#allocation2 + $0xb8] sm:$0xff] %vm1711_vm3, %v11150_v41  ;;  %1736 = vst.msk [vmem:[#allocation2 + $0xc0] sm:$0xff] %vm1711_vm3, %v11150_v41 }
  0xa3   : > { %1737 = vst.msk [vmem:[#allocation2 + $0xc8] sm:$0xff] %vm1711_vm3, %v11150_v41  ;;  %1738 = vst.msk [vmem:[#allocation2 + $0xd0] sm:$0xff] %vm1711_vm3, %v11150_v41 }
  0xa4   : > { %7908 = vmatmul.mubr.msk.bf16.gmra.mxu0 %vm742_vm2, %v8482_v44  ;;  %1739 = vst.msk [vmem:[#allocation2 + $0xd8] sm:$0xff] %vm1711_vm3, %v11150_v41  ;;  %1740 = vst.msk [vmem:[#allocation2 + $0xe0] sm:$0xff] %vm1711_vm3, %v11150_v41 }
  0xa5   : > { %7911 = vmatprep.mubr.msk.bf16.mxu0 %vm742_vm2, %v8483_v45  ;;  %1741 = vst.msk [vmem:[#allocation2 + $0xe8] sm:$0xff] %vm1711_vm3, %v11150_v41  ;;  %1742 = vst.msk [vmem:[#allocation2 + $0xf0] sm:$0xff] %vm1711_vm3, %v11150_v41 }
  0xa6   : > { %1743 = vst.msk [vmem:[#allocation2 + $0xf8] sm:$0xff] %vm1711_vm3, %v11150_v41  ;;  %1744 = vst.msk [vmem:[#allocation2 + $0x100] sm:$0xff] %vm1711_vm3, %v11150_v41 }
  0xa7   : > { %1745 = vst.msk [vmem:[#allocation2 + $0x108] sm:$0xff] %vm1711_vm3, %v11150_v41  ;;  %1746 = vst.msk [vmem:[#allocation2 + $0x110] sm:$0xff] %vm1711_vm3, %v11150_v41 }
  0xa8   : > { %1747 = vst.msk [vmem:[#allocation2 + $0x118] sm:$0xff] %vm1711_vm3, %v11150_v41  ;;  %1748 = vst.msk [vmem:[#allocation2 + $0x120] sm:$0xff] %vm1711_vm3, %v11150_v41 }
  0xa9   : > { %1749 = vst.msk [vmem:[#allocation2 + $0x128] sm:$0xff] %vm1711_vm3, %v11150_v41  ;;  %1750 = vst.msk [vmem:[#allocation2 + $0x130] sm:$0xff] %vm1711_vm3, %v11150_v41 }
  0xaa   : > { %1751 = vst.msk [vmem:[#allocation2 + $0x138] sm:$0xff] %vm1711_vm3, %v11150_v41  ;;  %1752 = vst.msk [vmem:[#allocation2 + $0x140] sm:$0xff] %vm1711_vm3, %v11150_v41 }
  0xab   : > { %1753 = vst.msk [vmem:[#allocation2 + $0x148] sm:$0xff] %vm1711_vm3, %v11150_v41  ;;  %1754 = vst.msk [vmem:[#allocation2 + $0x150] sm:$0xff] %vm1711_vm3, %v11150_v41 }
  0xac   : > { %7912 = vmatmul.mubr.msk.bf16.gmra.mxu0 %vm742_vm2, %v8484_v46  ;;  %1755 = vst.msk [vmem:[#allocation2 + $0x158] sm:$0xff] %vm1711_vm3, %v11150_v41  ;;  %1756 = vst.msk [vmem:[#allocation2 + $0x160] sm:$0xff] %vm1711_vm3, %v11150_v41 }
  0xad   : > { %7915 = vmatprep.mubr.msk.bf16.mxu0 %vm742_vm2, %v8485_v47  ;;  %1757 = vst.msk [vmem:[#allocation2 + $0x168] sm:$0xff] %vm1711_vm3, %v11150_v41  ;;  %1758 = vst.msk [vmem:[#allocation2 + $0x170] sm:$0xff] %vm1711_vm3, %v11150_v41 }
  0xae   : > { %1759 = vst.msk [vmem:[#allocation2 + $0x178] sm:$0xff] %vm1711_vm3, %v11150_v41  ;;  %1760 = vst.msk [vmem:[#allocation2 + $0x180] sm:$0xff] %vm1711_vm3, %v11150_v41 }
  0xaf   : > { %1761 = vst.msk [vmem:[#allocation2 + $0x188] sm:$0xff] %vm1711_vm3, %v11150_v41  ;;  %1762 = vst.msk [vmem:[#allocation2 + $0x190] sm:$0xff] %vm1711_vm3, %v11150_v41 }
  0xb0   : > { %1763 = vst.msk [vmem:[#allocation2 + $0x198] sm:$0xff] %vm1711_vm3, %v11150_v41  ;;  %1764 = vst.msk [vmem:[#allocation2 + $0x1a0] sm:$0xff] %vm1711_vm3, %v11150_v41 }
  0xb1   : > { %1765 = vst.msk [vmem:[#allocation2 + $0x1a8] sm:$0xff] %vm1711_vm3, %v11150_v41  ;;  %1766 = vst.msk [vmem:[#allocation2 + $0x1b0] sm:$0xff] %vm1711_vm3, %v11150_v41 }
  0xb2   : > { %1767 = vst.msk [vmem:[#allocation2 + $0x1b8] sm:$0xff] %vm1711_vm3, %v11150_v41  ;;  %1768 = vst.msk [vmem:[#allocation2 + $0x1c0] sm:$0xff] %vm1711_vm3, %v11150_v41 }
  0xb3   : > { %1769 = vst.msk [vmem:[#allocation2 + $0x1c8] sm:$0xff] %vm1711_vm3, %v11150_v41  ;;  %1770 = vst.msk [vmem:[#allocation2 + $0x1d0] sm:$0xff] %vm1711_vm3, %v11150_v41 }
  0xb4   : > { %7916 = vmatmul.mubr.msk.bf16.gmra.mxu0 %vm742_vm2, %v8486_v48  ;;  %1771 = vst.msk [vmem:[#allocation2 + $0x1d8] sm:$0xff] %vm1711_vm3, %v11150_v41  ;;  %1772 = vst.msk [vmem:[#allocation2 + $0x1e0] sm:$0xff] %vm1711_vm3, %v11150_v41 }
  0xb5   : > { %7919 = vmatprep.mubr.msk.bf16.mxu0 %vm742_vm2, %v8487_v49  ;;  %1773 = vst.msk [vmem:[#allocation2 + $0x1e8] sm:$0xff] %vm1711_vm3, %v11150_v41  ;;  %1774 = vst.msk [vmem:[#allocation2 + $0x1f0] sm:$0xff] %vm1711_vm3, %v11150_v41 }
  0xb6   : > { %1775 = vst.msk [vmem:[#allocation2 + $0x1f8] sm:$0xff] %vm1711_vm3, %v11150_v41  ;;  %1776 = vst.msk [vmem:[#allocation2 + $0x200] sm:$0xff] %vm1711_vm3, %v11150_v41 }
  0xb7   : > { %1778 = vst.msk [vmem:[#allocation2 + $0x210] sm:$0xff] %vm1711_vm3, %v11150_v41  ;;  %1779 = vst.msk [vmem:[#allocation2 + $0x218] sm:$0xff] %vm1711_vm3, %v11150_v41 }
  0xb8   : > { %1780 = vst.msk [vmem:[#allocation2 + $0x220] sm:$0xff] %vm1711_vm3, %v11150_v41  ;;  %1781 = vst.msk [vmem:[#allocation2 + $0x228] sm:$0xff] %vm1711_vm3, %v11150_v41 }
  0xb9   : > { %1782 = vst.msk [vmem:[#allocation2 + $0x230] sm:$0xff] %vm1711_vm3, %v11150_v41  ;;  %1783 = vst.msk [vmem:[#allocation2 + $0x238] sm:$0xff] %vm1711_vm3, %v11150_v41 }
  0xbc   : > { %7920 = vmatmul.mubr.msk.bf16.gmra.mxu0 %vm742_vm2, %v8488_v50 }
  0xbd   : > { %7923 = vmatprep.mubr.msk.bf16.mxu0 %vm742_vm2, %v8489_v51 }
  0xc4   : > { %7924 = vmatmul.mubr.msk.bf16.gmra.mxu0 %vm742_vm2, %v8490_v52 }
  0xc5   : > { %7927 = vmatprep.mubr.msk.bf16.mxu0 %vm742_vm2, %v8491_v53 }
  0xcc   : > { %7928 = vmatmul.mubr.msk.bf16.gmra.mxu0 %vm742_vm2, %v8493_v54 }
  0xcd   : > { %7931 = vmatprep.mubr.msk.bf16.mxu0 %vm742_vm2, %v8495_v55 }
  0xd4   : > { %v7837_v58 = vpop.f32.mrf.mxu0  ;;  %7932 = vmatmul.mubr.msk.bf16.gmra.mxu0 %vm742_vm2, %v8496_v56 }
  0xd5   : > { %7935 = vmatprep.mubr.msk.bf16.mxu0 %vm742_vm2, %v8497_v57  ;;  %v8834_v39 = vadd.f32 %v7837_v58, %v8827_v36 }
  0xd6   : > { %v8741_v59 = vpop.f32.mrf.mxu0 }
  0xd7   : > { %v977_v42 = vadd.f32 %v8827_v36, %v8741_v59  ;;  %v1489_v45 = vmax.f32 %v8834_v39, 0.0 }
  0xd8   : > { %v8743_v60 = vpop.f32.mrf.mxu0 }
  0xd9   : > { %v988_v46 = vadd.f32 %v8743_v60, %v8827_v36  ;;  %v1487_v50 = vmax.f32 %v977_v42, 0.0 }
  0xda   : > { %v8747_v63 = vpop.f32.mrf.mxu0 }
  0xdb   : > { %v1490_v55 = vmax.f32 %v988_v46, 0.0 }
  0xdc   : > { %v8749_v0 = vpop.f32.mrf.mxu0  ;;  %7936 = vmatmul.mubr.msk.bf16.gmra.mxu0 %vm742_vm2, %v8498_v61 }
  0xdd   : > { %7939 = vmatprep.mubr.msk.bf16.mxu0 %vm742_vm2, %v8499_v62  ;;  %v1001_v56 = vadd.f32 %v8749_v0, %v8827_v36 }
  0xde   : > { %v8753_v1 = vpop.f32.mrf.mxu0 }
  0xdf   : > { %v993_v60 = vadd.f32 %v8827_v36, %v8753_v1 }
  0xe0   : > { %v8755_v2 = vpop.f32.mrf.mxu0 }
  0xe2   : > { %v8759_v5 = vpop.f32.mrf.mxu0 }
  0xe4   : > { %v8761_v6 = vpop.f32.mrf.mxu0  ;;  %7940 = vmatmul.mubr.msk.bf16.gmra.mxu0 %vm742_vm2, %v8500_v3 }
  0xe5   : > { %7943 = vmatprep.mubr.msk.bf16.mxu0 %vm742_vm2, %v8501_v4  ;;  %v1493_v4 = vmax.f32 %v1001_v56, 0.0  ;;  %v1017_v39 = vadd.f32 %v8761_v6, %v8827_v36 }
  0xe6   : > { %v8765_v7 = vpop.f32.mrf.mxu0 }
  0xe8   : > { %v8767_v8 = vpop.f32.mrf.mxu0 }
  0xe9   : > { %v1020_v6 = vadd.f32 %v8767_v8, %v8827_v36  ;;  %v1869_v8 = vld [vmem:[#allocation2 + $0x8] sm:$0xff] }
  0xea   : > { %v8771_v11 = vpop.f32.mrf.mxu0 }
  0xec   : > { %v8773_v12 = vpop.f32.mrf.mxu0  ;;  %7944 = vmatmul.mubr.msk.bf16.gmra.mxu0 %vm742_vm2, %v8502_v9  ;;  %v1004_v9 = vadd.f32 %v8755_v2, %v8827_v36  ;;  %v8510_v2 = vld [vmem:[%s11145_s3 + $0x18] sm:$0xff]  }
  0xed   : > { %7947 = vmatprep.mubr.msk.bf16.mxu0 %vm742_vm2, %v8503_v10  ;;  %7963 = vmatprep.subr.bf16.mxu1 %v8510_v2 }
  0xee   : > { %v8777_v13 = vpop.f32.mrf.mxu0  ;;  %7964 = vmatpush3.bf16.msra.mxu1 %v8510_v2 }
  0xf0   : > { %v8779_v14 = vpop.f32.mrf.mxu0 }
  0xf2   : > { %v8783_v17 = vpop.f32.mrf.mxu0 }
  0xf4   : > { %v8785_v18 = vpop.f32.mrf.mxu0  ;;  %7948 = vmatmul.mubr.msk.bf16.gmra.mxu0 %vm742_vm2, %v8504_v15 }
  0xf5   : > { %7951 = vmatprep.mubr.msk.bf16.mxu0 %vm742_vm2, %v8505_v16  ;;  %v1491_v16 = vmax.f32 %v993_v60, 0.0  ;;  %v1870_v60 = vld [vmem:[#allocation2 + $0x10] sm:$0xff] }
  0xf6   : > { %v8789_v19 = vpop.f32.mrf.mxu0 }
  0xf8   : > { %v8791_v20 = vpop.f32.mrf.mxu0 }
  0xfa   : > { %v8798_v24 = vpop.f32.mrf.mxu0 }
  0xfc   : > { %v8800_v25 = vpop.f32.mrf.mxu0  ;;  %7952 = vmatmul.mubr.msk.bf16.gmra.mxu0 %vm742_vm2, %v8506_v21 }
  0xfd   : > { %7955 = vmatprep.mubr.msk.bf16.mxu0 %vm742_vm2, %v8507_v22 }
  0xfe   : > { %v8804_v26 = vpop.f32.mrf.mxu0 }
 0x100   : > { %v8806_v27 = vpop.f32.mrf.mxu0 }
 0x102   : > { %v8809_v29 = vpop.f32.mrf.mxu0 }
 0x103   : > { %11152 = vst [vmem:[#allocation4_spill] sm:$0xff] %v8809_v29 }
 0x104   : > { %v8811_v30 = vpop.f32.mrf.mxu0  ;;  %7956 = vmatmul.mubr.msk.bf16.gmra.mxu0 %vm742_vm2, %v8508_v28  ;;  %v1494_v28 = vmax.f32 %v1004_v9, 0.0  ;;  %v1033_v9 = vadd.f32 %v8773_v12, %v8827_v36 }
 0x106   : > { %v8814_v31 = vpop.f32.mrf.mxu0 }
 0x108   : > { %v8816_v32 = vpop.f32.mrf.mxu0 }
 0x10a   : > { %v8818_v33 = vpop.f32.mrf.mxu0 }
 0x10b   : > { %11153 = vst [vmem:[#allocation5_spill] sm:$0xff] %v8818_v33 }
 0x10c   : > { %v8820_v34 = vpop.f32.mrf.mxu0 }
 0x10e   : > { %v8822_v35 = vpop.f32.mrf.mxu0 }
 0x110   : > { %v8829_v37 = vpop.f32.mrf.mxu0 }
 0x112   : > { %v8831_v38 = vpop.f32.mrf.mxu0 }
 0x114   : > { %v8836_v40 = vpop.f32.mrf.mxu0 }
 0x115   : > { %v1113_v43 = vadd.f32 %v8836_v40, %v8827_v36 }
 0x116   : > { %v1104_v44 = vpop.f32.mrf.mxu0 }
 0x117   : > { %v1521_v47 = vmax.f32 %v1113_v43, 0.0  ;;  %v1105_v48 = vadd.f32 %v8827_v36, %v1104_v44  ;;  %v1009_v44 = vadd.f32 %v8827_v36, %v8765_v7  ;;  %v8512_v7 = vld [vmem:[%s11145_s3 + $0x40] sm:$0xff]  }
 0x118   : > { %v7870_v49 = vpop.f32.mrf.mxu0  ;;  %8109 = vmatprep.subr.bf16.mxu0 %v8512_v7 }
 0x119   : > { %v8990_v51 = vmax.f32 %v1489_v45, %v1521_v47  ;;  %v1519_v52 = vmax.f32 %v1105_v48, 0.0  ;;  %v1116_v53 = vadd.f32 %v7870_v49, %v8827_v36  ;;  %v1497_v48 = vmax.f32 %v1017_v39, 0.0  ;;  %8110 = vmatpush3.bf16.msra.mxu0 %v8512_v7 }
 0x11a   : > { %v8993_v54 = vpop.f32.mrf.mxu0  ;;  %v1501_v39 = vmax.f32 %v1033_v9, 0.0 }
 0x11b   : > { %v8997_v57 = vmax.f32 %v1487_v50, %v1519_v52  ;;  %v1522_v58 = vmax.f32 %v1116_v53, 0.0  ;;  %v8511_v52 = vld [vmem:[%s11145_s3 + $0x10] sm:$0xff]  }
 0x11c   : > { %v7873_v59 = vpop.f32.mrf.mxu0  ;;  %7965 = vmatprep.subr.bf16.mxu1 %v8511_v52 }
 0x11d   : > { %v9001_v61 = vmax.f32 %v1490_v55, %v1522_v58  ;;  %v1129_v62 = vadd.f32 %v7873_v59, %v8827_v36  ;;  %v1495_v55 = vmax.f32 %v1009_v44, 0.0  ;;  %7966 = vmatpush3.bf16.msra.mxu1 %v8511_v52 }
 0x11e   : > { %v1120_v3 = vpop.f32.mrf.mxu0 }
 0x11f   : > { %v1525_v10 = vmax.f32 %v1129_v62, 0.0  ;;  %v1121_v15 = vadd.f32 %v8827_v36, %v1120_v3  ;;  %v1901_v3 = vpack.c.bf16 %v1870_v60, %v1869_v8 }
 0x120   : > { %v7874_v0 = vpop.f32.mrf.mxu0 }
 0x121   : > { %v9007_v21 = vmax.f32 %v1493_v4, %v1525_v10  ;;  %v1523_v22 = vmax.f32 %v1121_v15, 0.0  ;;  %v1132_v23 = vadd.f32 %v7874_v0, %v8827_v36  ;;  %v1498_v4 = vmax.f32 %v1020_v6, 0.0  ;;  %7967 = vmatprep.mubr.msk.bf16.mxu1 %vm1711_vm3, %v1901_v3 }
 0x122   : > { %v9010_v1 = vpop.f32.mrf.mxu0 }
 0x123   : > { %v9014_v40 = vmax.f32 %v1491_v16, %v1523_v22  ;;  %v1526_v42 = vmax.f32 %v1132_v23, 0.0  ;;  %v1025_v16 = vadd.f32 %v8827_v36, %v8777_v13 }
 0x124   : > { %v7877_v43 = vpop.f32.mrf.mxu0 }
 0x125   : > { %v9021_v45 = vmax.f32 %v1494_v28, %v1526_v42  ;;  %v1145_v46 = vadd.f32 %v7877_v43, %v8827_v36  ;;  %v1036_v42 = vadd.f32 %v8779_v14, %v8827_v36  ;;  %v1499_v44 = vmax.f32 %v1025_v16, 0.0 }
 0x126   : > { %v1136_v47 = vpop.f32.mrf.mxu0 }
 0x127   : > { %v1529_v49 = vmax.f32 %v1145_v46, 0.0  ;;  %v1137_v50 = vadd.f32 %v8827_v36, %v1136_v47  ;;  %v1502_v6 = vmax.f32 %v1036_v42, 0.0 }
 0x128   : > { %v7878_v53 = vpop.f32.mrf.mxu0 }
 0x129   : > { %v9033_v56 = vmax.f32 %v1497_v48, %v1529_v49  ;;  %v1527_v58 = vmax.f32 %v1137_v50, 0.0  ;;  %v1148_v59 = vadd.f32 %v7878_v53, %v8827_v36  ;;  %v1049_v49 = vadd.f32 %v8785_v18, %v8827_v36 }
 0x12a   : > { %v9036_v62 = vpop.f32.mrf.mxu0  ;;  %v1041_v53 = vadd.f32 %v8827_v36, %v8789_v19  ;;  %v1052_v18 = vadd.f32 %v8791_v20, %v8827_v36 }
 0x12b   : > { %v9040_v10 = vmax.f32 %v1495_v55, %v1527_v58  ;;  %v1530_v15 = vmax.f32 %v1148_v59, 0.0  ;;  %v9068_v58 = vld [vmem:[%s11145_s3 + $0x8] sm:$0xff]   ;;  %v1505_v8 = vmax.f32 %v1049_v49, 0.0 }
 0x12c   : > { %v7881_v0 = vpop.f32.mrf.mxu0  ;;  %7999 = vmatprep.subr.bf16.mxu1 %v9068_v58 }
 0x12d   : > { %v9045_v22 = vmax.f32 %v1498_v4, %v1530_v15  ;;  %v1161_v23 = vadd.f32 %v7881_v0, %v8827_v36  ;;  %v1503_v4 = vmax.f32 %v1041_v53, 0.0 }
 0x12e   : > { %v1152_v28 = vpop.f32.mrf.mxu0 }
 0x12f   : > { %v1533_v12 = vmax.f32 %v1161_v23, 0.0  ;;  %v1153_v2 = vadd.f32 %v8827_v36, %v1152_v28  ;;  %v1506_v23 = vmax.f32 %v1052_v18, 0.0  ;;  %v1065_v28 = vadd.f32 %v8800_v25, %v8827_v36 }
 0x130   : > { %v7882_v43 = vpop.f32.mrf.mxu0 }
 0x131   : > { %v9051_v46 = vmax.f32 %v1501_v39, %v1533_v12  ;;  %v1531_v47 = vmax.f32 %v1153_v2, 0.0  ;;  %v1164_v48 = vadd.f32 %v7882_v43, %v8827_v36  ;;  %v1057_v12 = vadd.f32 %v8827_v36, %v8804_v26 }
 0x132   : > { %v9054_v13 = vpop.f32.mrf.mxu0 }
 0x133   : > { %11154 = vst [vmem:[#allocation6_spill] sm:$0xff] %v9051_v46  ;;  %v9058_v50 = vmax.f32 %v1499_v44, %v1531_v47  ;;  %v1534_v52 = vmax.f32 %v1164_v48, 0.0  ;;  %v1509_v47 = vmax.f32 %v1065_v28, 0.0  ;;  %v1068_v48 = vadd.f32 %v8806_v27, %v8827_v36 }
 0x134   : > { %v7885_v14 = vpop.f32.mrf.mxu0 }
 0x135   : > { %11155 = vst [vmem:[#allocation7_spill] sm:$0xff] %v9058_v50  ;;  %v9062_v7 = vmax.f32 %v1502_v6, %v1534_v52  ;;  %v1177_v55 = vadd.f32 %v7885_v14, %v8827_v36  ;;  %v1507_v52 = vmax.f32 %v1057_v12, 0.0 }
 0x136   : > { %v1168_v59 = vpop.f32.mrf.mxu0 }
 0x137   : > { %11156 = vst [vmem:[#allocation8_spill] sm:$0xff] %v9062_v7  ;;  %v1537_v60 = vmax.f32 %v1177_v55, 0.0  ;;  %v1169_v3 = vadd.f32 %v8827_v36, %v1168_v59  ;;  %v1510_v59 = vmax.f32 %v1068_v48, 0.0  ;;  %v1097_v48 = vadd.f32 %v8820_v34, %v8827_v36 }
 0x138   : > { %v7886_v19 = vpop.f32.mrf.mxu0 }
 0x139   : > { %v9074_v9 = vmax.f32 %v1505_v8, %v1537_v60  ;;  %v1535_v15 = vmax.f32 %v1169_v3, 0.0  ;;  %v1180_v0 = vadd.f32 %v7886_v19, %v8827_v36  ;;  %v1081_v8 = vadd.f32 %v8811_v30, %v8827_v36 }
 0x13a   : > { %v9077_v16 = vpop.f32.mrf.mxu0  ;;  %v1073_v3 = vadd.f32 %v8827_v36, %v8814_v31 }
 0x13b   : > { %11157 = vst [vmem:[#allocation9_spill] sm:$0xff] %v9074_v9  ;;  %11158 = vst [vmem:[#allocation10_spill] sm:$0xff] %v9077_v16  ;;  %v9081_v39 = vmax.f32 %v1503_v4, %v1535_v15  ;;  %v1538_v20 = vmax.f32 %v1180_v0, 0.0  ;;  %v1513_v0 = vmax.f32 %v1081_v8, 0.0  ;;  %v1100_v8 = vadd.f32 %v8829_v37, %v8827_v36 }
 0x13c   : > { %v7889_v42 = vpop.f32.mrf.mxu0 }
 0x13d   : > { %11159 = vst [vmem:[#allocation11_spill] sm:$0xff] %v9081_v39  ;;  %v9085_v2 = vmax.f32 %v1506_v23, %v1538_v20  ;;  %v1193_v43 = vadd.f32 %v7889_v42, %v8827_v36  ;;  %v1084_v23 = vadd.f32 %v8816_v32, %v8827_v36  ;;  %v1511_v42 = vmax.f32 %v1073_v3, 0.0 }
 0x13e   : > { %v1184_v44 = vpop.f32.mrf.mxu0 }
 0x13f   : > { %11160 = vst [vmem:[#allocation12_spill] sm:$0xff] %v9085_v2  ;;  %v1541_v6 = vmax.f32 %v1193_v43, 0.0  ;;  %v1185_v49 = vadd.f32 %v8827_v36, %v1184_v44 }
 0x140   : > { %v7890_v25 = vpop.f32.mrf.mxu0 }
 0x141   : > { %v9091_v14 = vmax.f32 %v1509_v47, %v1541_v6  ;;  %v1539_v53 = vmax.f32 %v1185_v49, 0.0  ;;  %v1196_v55 = vadd.f32 %v7890_v25, %v8827_v36  ;;  %v1514_v47 = vmax.f32 %v1084_v23, 0.0 }
 0x142   : > { %v9094_v26 = vpop.f32.mrf.mxu0  ;;  %v1089_v25 = vadd.f32 %v8827_v36, %v8822_v35  ;;  %v1518_v23 = vmax.f32 %v1100_v8, 0.0 }
 0x143   : > { %11161 = vst [vmem:[#allocation13_spill] sm:$0xff] %v9091_v14  ;;  %11162 = vst [vmem:[#allocation14_spill] sm:$0xff] %v9094_v26  ;;  %v9098_v18 = vmax.f32 %v1507_v52, %v1539_v53  ;;  %v1542_v60 = vmax.f32 %v1196_v55, 0.0 }
 0x144   : > { %v7893_v27 = vpop.f32.mrf.mxu0  ;;  %v1515_v3 = vmax.f32 %v1089_v25, 0.0 }
 0x145   : > { %11163 = vst [vmem:[#allocation15_spill] sm:$0xff] %v9098_v18  ;;  %v9102_v19 = vmax.f32 %v1510_v59, %v1542_v60  ;;  %v1209_v4 = vadd.f32 %v7893_v27, %v8827_v36  ;;  %v1517_v59 = vmax.f32 %v1097_v48, 0.0 }
 0x146   : > { %v1200_v15 = vpop.f32.mrf.mxu0 }
 0x147   : > { %11164 = vst [vmem:[#allocation16_spill] sm:$0xff] %v9102_v19  ;;  %v1545_v28 = vmax.f32 %v1209_v4, 0.0  ;;  %v1201_v20 = vadd.f32 %v8827_v36, %v1200_v15 }
 0x148   : > { %v7894_v30 = vpop.f32.mrf.mxu0 }
 0x149   : > { %v9108_v12 = vmax.f32 %v1513_v0, %v1545_v28  ;;  %v1543_v43 = vmax.f32 %v1201_v20, 0.0  ;;  %v1212_v44 = vadd.f32 %v7894_v30, %v8827_v36 }
 0x14a   : > { %v9111_v31 = vpop.f32.mrf.mxu0 }
 0x14b   : > { %11165 = vst [vmem:[#allocation17_spill] sm:$0xff] %v9108_v12  ;;  %11166 = vst [vmem:[#allocation18_spill] sm:$0xff] %v9111_v31  ;;  %v9115_v6 = vmax.f32 %v1511_v42, %v1543_v43  ;;  %v1546_v49 = vmax.f32 %v1212_v44, 0.0 }
 0x14c   : > { %v7897_v32 = vpop.f32.mrf.mxu0 }
 0x14d   : > { %11167 = vst [vmem:[#allocation19_spill] sm:$0xff] %v9115_v6  ;;  %v9119_v52 = vmax.f32 %v1514_v47, %v1546_v49  ;;  %v1225_v53 = vadd.f32 %v7897_v32, %v8827_v36  ;;  %v7961_v6 = vpop.f32.mrf.mxu1 }
 0x14e   : > { %v1216_v55 = vpop.f32.mrf.mxu0  ;;  %v1481_v26 = vadd.f32 %v7961_v6, %v8827_v36 }
 0x14f   : > { %11168 = vst [vmem:[#allocation20_spill] sm:$0xff] %v9119_v52  ;;  %v1549_v60 = vmax.f32 %v1225_v53, 0.0  ;;  %v1217_v27 = vadd.f32 %v8827_v36, %v1216_v55  ;;  %v9151_v55 = vld [vmem:[%s11145_s3 + $0x68] sm:$0xff]   ;;  %v1472_v19 = vpop.f32.mrf.mxu1 }
 0x150   : > { %v7898_v34 = vpop.f32.mrf.mxu0  ;;  %8179 = vmatprep.subr.bf16.mxu0 %v9151_v55  ;;  %v1473_v9 = vadd.f32 %v8827_v36, %v1472_v19  ;;  %v1613_v29 = vmax.f32 %v1481_v26, 0.0 }
 0x151   : > { %v9125_v4 = vmax.f32 %v1517_v59, %v1549_v60  ;;  %v1547_v15 = vmax.f32 %v1217_v27, 0.0  ;;  %v1228_v0 = vadd.f32 %v7898_v34, %v8827_v36  ;;  %v7962_v14 = vpop.f32.mrf.mxu1 }
 0x152   : > { %v1219_v35 = vpop.f32.mrf.mxu0  ;;  %v1611_v6 = vmax.f32 %v1473_v9, 0.0 }
 0x153   : > { %v9128_v28 = vmax.f32 %v1515_v3, %v1547_v15  ;;  %v1550_v20 = vmax.f32 %v1228_v0, 0.0 }
 0x154   : > { %v7901_v30 = vpop.f32.mrf.mxu0 }
 0x155   : > { %v9130_v42 = vmax.f32 %v1518_v23, %v1550_v20 }
 0x156   : > { %v1232_v43 = vpop.f32.mrf.mxu0 }
 0x158   : > { %v9132_v37 = vpop.f32.mrf.mxu0 }
 0x15a   : > { %v9134_v44 = vpop.f32.mrf.mxu0 }
 0x15c   : > { %v9136_v47 = vpop.f32.mrf.mxu0 }
 0x15e   : > { %v9138_v48 = vpop.f32.mrf.mxu0 }
 0x160   : > { %v9140_v49 = vpop.f32.mrf.mxu0 }
 0x162   : > { %v9142_v32 = vpop.f32.mrf.mxu0 }
 0x164   : > { %v9144_v25 = vpop.f32.mrf.mxu0 }
 0x166   : > { %v9146_v53 = vpop.f32.mrf.mxu0 }
 0x168   : > { %v9153_v59 = vpop.f32.mrf.mxu0 }
 0x16a   : > { %v9156_v8 = vpop.f32.mrf.mxu0 }
 0x16c   : > { %v9158_v60 = vpop.f32.mrf.mxu0 }
 0x16e   : > { %v9160_v27 = vpop.f32.mrf.mxu0 }
 0x170   : > { %v9162_v34 = vpop.f32.mrf.mxu0 }
 0x172   : > { %v9164_v3 = vpop.f32.mrf.mxu0 }
 0x174   : > { %v9166_v15 = vpop.f32.mrf.mxu0 }
 0x175   : > { %11169 = vst [vmem:[#allocation21_spill] sm:$0xff] %v9166_v15 }
 0x176   : > { %v9168_v0 = vpop.f32.mrf.mxu0 }
 0x177   : > { %11170 = vst [vmem:[#allocation22_spill] sm:$0xff] %v9168_v0 }
 0x178   : > { %v9170_v23 = vpop.f32.mrf.mxu0 }
 0x179   : > { %11171 = vst [vmem:[#allocation23_spill] sm:$0xff] %v9170_v23 }
 0x17a   : > { %v9172_v20 = vpop.f32.mrf.mxu0 }
 0x17b   : > { %11172 = vst [vmem:[#allocation24_spill] sm:$0xff] %v9172_v20 }
 0x17c   : > { %v9174_v41 = vpop.f32.mrf.mxu0 }
 0x17d   : > { %11173 = vst [vmem:[#allocation25_spill] sm:$0xff] %v9174_v41 }
 0x17e   : > { %v9176_v52 = vpop.f32.mrf.mxu0 }
 0x17f   : > { %11174 = vst [vmem:[#allocation26_spill] sm:$0xff] %v9176_v52  ;;  %v1475_v52 = vpop.f32.mrf.mxu1 }
 0x180   : > { %v9178_v12 = vpop.f32.mrf.mxu0 }
 0x181   : > { %11175 = vst [vmem:[#allocation27_spill] sm:$0xff] %v9178_v12 }
 0x182   : > { %v9180_v33 = vpop.f32.mrf.mxu0 }
 0x183   : > { %11176 = vst [vmem:[#allocation28_spill] sm:$0xff] %v9180_v33  ;;  %v1484_v33 = vadd.f32 %v7962_v14, %v8827_v36  ;;  %v1241_v14 = vadd.f32 %v7901_v30, %v8827_v36 }
 0x184   : > { %v9182_v31 = vpop.f32.mrf.mxu0 }
 0x185   : > { %11177 = vst [vmem:[#allocation29_spill] sm:$0xff] %v9182_v31  ;;  %v1220_v31 = vadd.f32 %v8827_v36, %v1219_v35  ;;  %v1614_v26 = vmax.f32 %v1484_v33, 0.0 }
 0x186   : > { %v9184_v18 = vpop.f32.mrf.mxu0 }
 0x187   : > { %11178 = vst [vmem:[#allocation30_spill] sm:$0xff] %v9184_v18  ;;  %v1476_v18 = vadd.f32 %v8827_v36, %v1475_v52  ;;  %v1548_v50 = vmax.f32 %v1220_v31, 0.0 }
 0x188   : > { %v9186_v2 = vpop.f32.mrf.mxu0 }
 0x189   : > { %11179 = vst [vmem:[#allocation31_spill] sm:$0xff] %v9186_v2  ;;  %v1612_v0 = vmax.f32 %v1476_v18, 0.0  ;;  %v1108_v18 = vadd.f32 %v8827_v36, %v8993_v54  ;;  %v1236_v54 = vadd.f32 %v8827_v36, %v9134_v44 }
 0x18a   : > { %v9189_v39 = vpop.f32.mrf.mxu0 }
 0x18b   : > { %11180 = vst [vmem:[#allocation32_spill] sm:$0xff] %v9189_v39  ;;  %v1092_v39 = vadd.f32 %v8827_v36, %v8831_v38  ;;  %v1233_v38 = vadd.f32 %v8827_v36, %v1232_v43 }
 0x18c   : > { %v7929_v41 = vpop.f32.mrf.mxu0 }
 0x18d   : > { %v1353_v12 = vadd.f32 %v7929_v41, %v8827_v36 }
 0x18e   : > { %v1344_v20 = vpop.f32.mrf.mxu0 }
 0x18f   : > { %v1581_v7 = vmax.f32 %v1353_v12, 0.0  ;;  %v1345_v2 = vadd.f32 %v8827_v36, %v1344_v20  ;;  %v1516_v20 = vmax.f32 %v1092_v39, 0.0 }
 0x190   : > { %v7930_v19 = vpop.f32.mrf.mxu0 }
 0x191   : > { %v1677_v23 = vmax.f32 %v1581_v7, %v1613_v29  ;;  %v1579_v16 = vmax.f32 %v1345_v2, 0.0  ;;  %v1356_v41 = vadd.f32 %v7930_v19, %v8827_v36  ;;  %v1644_v31 = vmax.f32 %v1516_v20, %v1548_v50 }
 0x192   : > { %v1347_v35 = vpop.f32.mrf.mxu0  ;;  %v1249_v20 = vadd.f32 %v8827_v36, %v9138_v48 }
 0x193   : > { %v1709_v52 = vmax.f32 %v9125_v4, %v1677_v23  ;;  %v1675_v12 = vmax.f32 %v1579_v16, %v1611_v6  ;;  %v1582_v46 = vmax.f32 %v1356_v41, 0.0  ;;  %v1348_v9 = vadd.f32 %v8827_v36, %v1347_v35 }
 0x194   : > { %v7933_v15 = vpop.f32.mrf.mxu0  ;;  %v1553_v16 = vmax.f32 %v1241_v14, 0.0  ;;  %v1244_v4 = vadd.f32 %v9132_v37, %v8827_v36 }
 0x195   : > { %1815 = vst.msk [vmem:[#allocation2 + $0x208] sm:$0xff] %vm1711_vm3, %v1709_v52  ;;  %v1707_v29 = vmax.f32 %v9128_v28, %v1675_v12  ;;  %v1678_v33 = vmax.f32 %v1582_v46, %v1614_v26  ;;  %v1580_v7 = vmax.f32 %v1348_v9, 0.0  ;;  %v1369_v2 = vadd.f32 %v7933_v15, %v8827_v36 }
 0x196   : > { %v1360_v39 = vpop.f32.mrf.mxu0  ;;  %v980_v28 = vadd.f32 %v8827_v36, %v8747_v63  ;;  %v1551_v15 = vmax.f32 %v1233_v38, 0.0  ;;  %v1257_v26 = vadd.f32 %v9136_v47, %v8827_v36  ;;  %v1552_v9 = vmax.f32 %v1236_v54, 0.0 }
 0x197   : > { %1813 = vst.msk [vmem:[#allocation2 + $0x1e8] sm:$0xff] %vm1711_vm3, %v1707_v29  ;;  %v1710_v30 = vmax.f32 %v9130_v42, %v1678_v33  ;;  %v1676_v43 = vmax.f32 %v1580_v7, %v1612_v0  ;;  %v1585_v23 = vmax.f32 %v1369_v2, 0.0  ;;  %v1361_v46 = vadd.f32 %v8827_v36, %v1360_v39 }
 0x198   : > { %v7934_v50 = vpop.f32.mrf.mxu0  ;;  %v1520_v42 = vmax.f32 %v1108_v18, 0.0  ;;  %v1554_v0 = vmax.f32 %v1244_v4, 0.0  ;;  %v1488_v12 = vmax.f32 %v980_v28, 0.0  ;;  %v1557_v18 = vmax.f32 %v1257_v26, 0.0 }
 0x199   : > { %1816 = vst.msk [vmem:[#allocation2 + $0x210] sm:$0xff] %vm1711_vm3, %v1710_v30  ;;  %v1708_v37 = vmax.f32 %v1644_v31, %v1676_v43  ;;  %v1649_v6 = vmax.f32 %v1553_v16, %v1585_v23  ;;  %v1583_v19 = vmax.f32 %v1361_v46, 0.0  ;;  %v1372_v41 = vadd.f32 %v7934_v50, %v8827_v36 }
 0x19a   : > { %v1363_v14 = vpop.f32.mrf.mxu0  ;;  %v1616_v2 = vmax.f32 %v1488_v12, %v1520_v42  ;;  %v1260_v31 = vadd.f32 %v9140_v49, %v8827_v36  ;;  %v996_v30 = vadd.f32 %v8827_v36, %v8759_v5  ;;  %v1555_v43 = vmax.f32 %v1249_v20, 0.0 }
 0x19b   : > { %1814 = vst.msk [vmem:[#allocation2 + $0x1f0] sm:$0xff] %vm1711_vm3, %v1708_v37  ;;  %v1681_v63 = vmax.f32 %v8990_v51, %v1649_v6  ;;  %v1647_v35 = vmax.f32 %v1551_v15, %v1583_v19  ;;  %v1586_v44 = vmax.f32 %v1372_v41, 0.0  ;;  %v1364_v52 = vadd.f32 %v8827_v36, %v1363_v14 }
 0x19c   : > { %v7937_v38 = vpop.f32.mrf.mxu0  ;;  %v1124_v51 = vadd.f32 %v8827_v36, %v9010_v1  ;;  %v1252_v1 = vadd.f32 %v8827_v36, %v9142_v32  ;;  %v1558_v54 = vmax.f32 %v1260_v31, 0.0  ;;  %v1273_v50 = vadd.f32 %v9144_v25, %v8827_v36 }
 0x19d   : > { %1787 = vst.msk [vmem:[#allocation2 + $0x48] sm:$0xff] %vm1711_vm3, %v1681_v63  ;;  %v1679_v29 = vmax.f32 %v8997_v57, %v1647_v35  ;;  %v1650_v47 = vmax.f32 %v1554_v0, %v1586_v44  ;;  %v1584_v33 = vmax.f32 %v1364_v52, 0.0  ;;  %v1385_v7 = vadd.f32 %v7937_v38, %v8827_v36 }
 0x19e   : > { %v1376_v16 = vpop.f32.mrf.mxu0  ;;  %v1492_v41 = vmax.f32 %v996_v30, 0.0  ;;  %v1012_v42 = vadd.f32 %v8827_v36, %v8771_v11  ;;  %v1556_v0 = vmax.f32 %v1252_v1, 0.0  ;;  %v1265_v26 = vadd.f32 %v8827_v36, %v9146_v53 }
 0x19f   : > { %1785 = vst.msk [vmem:[#allocation2 + $0x28] sm:$0xff] %vm1711_vm3, %v1679_v29  ;;  %v1682_v48 = vmax.f32 %v9001_v61, %v1650_v47  ;;  %v1648_v4 = vmax.f32 %v1552_v9, %v1584_v33  ;;  %v1589_v39 = vmax.f32 %v1385_v7, 0.0  ;;  %v1377_v57 = vadd.f32 %v8827_v36, %v1376_v16 }
 0x1a0   : > { %v7938_v23 = vpop.f32.mrf.mxu0  ;;  %v1524_v61 = vmax.f32 %v1124_v51, 0.0  ;;  %v1140_v52 = vadd.f32 %v8827_v36, %v9036_v62  ;;  %v1561_v12 = vmax.f32 %v1273_v50, 0.0  ;;  %v1276_v11 = vadd.f32 %v9153_v59, %v8827_v36 }
 0x1a1   : > { %1788 = vst.msk [vmem:[#allocation2 + $0x50] sm:$0xff] %vm1711_vm3, %v1682_v48  ;;  %v1680_v49 = vmax.f32 %v1616_v2, %v1648_v4  ;;  %v1653_v46 = vmax.f32 %v1557_v18, %v1589_v39  ;;  %v1587_v28 = vmax.f32 %v1377_v57, 0.0  ;;  %v1388_v15 = vadd.f32 %v7938_v23, %v8827_v36 }
 0x1a2   : > { %v1379_v37 = vpop.f32.mrf.mxu0  ;;  %v1620_v44 = vmax.f32 %v1492_v41, %v1524_v61  ;;  %v1496_v29 = vmax.f32 %v1012_v42, 0.0  ;;  %v1559_v47 = vmax.f32 %v1265_v26, 0.0  ;;  %v1268_v33 = vadd.f32 %v8827_v36, %v9156_v8 }
 0x1a3   : > { %1786 = vst.msk [vmem:[#allocation2 + $0x30] sm:$0xff] %vm1711_vm3, %v1680_v49  ;;  %v1685_v5 = vmax.f32 %v9007_v21, %v1653_v46  ;;  %v1651_v6 = vmax.f32 %v1555_v43, %v1587_v28  ;;  %v1590_v32 = vmax.f32 %v1388_v15, 0.0  ;;  %v1380_v19 = vadd.f32 %v8827_v36, %v1379_v37 }
 0x1a4   : > { %v7941_v14 = vpop.f32.mrf.mxu0  ;;  %v1528_v31 = vmax.f32 %v1140_v52, 0.0  ;;  %v1562_v16 = vmax.f32 %v1276_v11, 0.0  ;;  %v1289_v48 = vadd.f32 %v9158_v60, %v8827_v36  ;;  %v1873_v23 = vld [vmem:[#allocation2 + $0x48] sm:$0xff]  ;;  %v1560_v49 = vmax.f32 %v1268_v33, 0.0  ;;  %v8514_v60 = vld [vmem:[%s11145_s3] sm:$0xff]  }
 0x1a5   : > { %1791 = vst.msk [vmem:[#allocation2 + $0x88] sm:$0xff] %vm1711_vm3, %v1685_v5  ;;  %v1683_v25 = vmax.f32 %v9014_v40, %v1651_v6  ;;  %v1654_v63 = vmax.f32 %v1558_v54, %v1590_v32  ;;  %v1588_v35 = vmax.f32 %v1380_v19, 0.0  ;;  %v1401_v21 = vadd.f32 %v7941_v14, %v8827_v36 }
 0x1a6   : > { %v1392_v9 = vpop.f32.mrf.mxu0  ;;  %v1871_v1 = vld [vmem:[#allocation2 + $0x28] sm:$0xff]  ;;  %v1624_v37 = vmax.f32 %v1496_v29, %v1528_v31  ;;  %v1156_v5 = vadd.f32 %v8827_v36, %v9054_v13  ;;  %v1292_v6 = vadd.f32 %v9162_v34, %v8827_v36  ;;  %v1284_v26 = vadd.f32 %v8827_v36, %v9164_v3 }
 0x1a7   : > { %1789 = vst.msk [vmem:[#allocation2 + $0x68] sm:$0xff] %vm1711_vm3, %v1683_v25  ;;  %v1686_v53 = vmax.f32 %v9021_v45, %v1654_v63  ;;  %v1652_v20 = vmax.f32 %v1556_v0, %v1588_v35  ;;  %v1593_v38 = vmax.f32 %v1401_v21, 0.0  ;;  %v1393_v40 = vadd.f32 %v8827_v36, %v1392_v9 }
 0x1a8   : > { %v7942_v7 = vpop.f32.mrf.mxu0  ;;  %v1874_v18 = vld [vmem:[#allocation2 + $0x50] sm:$0xff]  ;;  %v9268_v45 = vadd.f32 %v8827_v36, %v8783_v17  ;;  %v1281_v17 = vadd.f32 %v8827_v36, %v9160_v27  ;;  %v1565_v27 = vmax.f32 %v1289_v48, 0.0  ;;  %v9311_v3 = vadd.f32 %v8827_v36, %v8798_v24  ;;  %v9321_v24 = vld [vmem:[%s11145_s3 + $0x88] sm:$0xff]  }
 0x1a9   : > { %1792 = vst.msk [vmem:[#allocation2 + $0x90] sm:$0xff] %vm1711_vm3, %v1686_v53  ;;  %v1684_v62 = vmax.f32 %v1620_v44, %v1652_v20  ;;  %v1657_v2 = vmax.f32 %v1561_v12, %v1593_v38  ;;  %v1591_v59 = vmax.f32 %v1393_v40, 0.0  ;;  %v1404_v51 = vadd.f32 %v7942_v7, %v8827_v36  ;;  %v11181_v12 = vld [vmem:[#allocation21_spill] sm:$0xff]  ;;  %v11182_v20 = vld [vmem:[#allocation6_spill] sm:$0xff] }
 0x1aa   : > { %v1395_v4 = vpop.f32.mrf.mxu0  ;;  %v1872_v8 = vld [vmem:[#allocation2 + $0x30] sm:$0xff]  ;;  %v1903_v15 = vpack.c.bf16 %v1874_v18, %v1873_v23  ;;  %v1500_v34 = vmax.f32 %v9268_v45, 0.0  ;;  %v1563_v0 = vmax.f32 %v1281_v17, 0.0  ;;  %v1532_v44 = vmax.f32 %v1156_v5, 0.0  ;;  %v11184_v45 = vld [vmem:[#allocation7_spill] sm:$0xff] }
 0x1ab   : > { %1790 = vst.msk [vmem:[#allocation2 + $0x70] sm:$0xff] %vm1711_vm3, %v1684_v62  ;;  %v1689_v39 = vmax.f32 %v9033_v56, %v1657_v2  ;;  %v1655_v57 = vmax.f32 %v1559_v47, %v1591_v59  ;;  %v1594_v30 = vmax.f32 %v1404_v51, 0.0  ;;  %v1396_v43 = vadd.f32 %v8827_v36, %v1395_v4  ;;  %v11183_v62 = vld [vmem:[#allocation22_spill] sm:$0xff] }
 0x1ac   : > { %v7945_v46 = vpop.f32.mrf.mxu0  ;;  %v1902_v28 = vpack.c.bf16 %v1872_v8, %v1871_v1  ;;  %v1566_v52 = vmax.f32 %v1292_v6, 0.0  ;;  %v1305_v11 = vadd.f32 %v11181_v12, %v8827_v36  ;;  %v1877_v33 = vld [vmem:[#allocation2 + $0x88] sm:$0xff]  ;;  %v1564_v7 = vmax.f32 %v1284_v26, 0.0 }
 0x1ad   : > { %1795 = vst.msk [vmem:[#allocation2 + $0xc8] sm:$0xff] %vm1711_vm3, %v1689_v39  ;;  %v1687_v56 = vmax.f32 %v9040_v10, %v1655_v57  ;;  %v1658_v61 = vmax.f32 %v1562_v16, %v1594_v30  ;;  %v1592_v54 = vmax.f32 %v1396_v43, 0.0  ;;  %v1417_v50 = vadd.f32 %v7945_v46, %v8827_v36  ;;  %v8516_v10 = vld [vmem:[%s11145_s3 + $0x60] sm:$0xff]   ;;  %v11186_v43 = vld [vmem:[#allocation23_spill] sm:$0xff] }
 0x1ae   : > { %7968 = vmatmul.mubr.msk.bf16.vlgmr.msra.gmra.mxu1 %vm1711_vm3, %v1902_v28  ;;  %8111 = vmatprep.mubr.msk.bf16.mxu0 %vm1711_vm3, %v1902_v28  ;;  %v1408_v32 = vpop.f32.mrf.mxu0  ;;  %v1875_v47 = vld [vmem:[#allocation2 + $0x68] sm:$0xff]  ;;  %v1297_v2 = vadd.f32 %v8827_v36, %v11183_v62  ;;  %v1628_v8 = vmax.f32 %v1500_v34, %v1532_v44  ;;  %v11185_v39 = vld [vmem:[#allocation10_spill] sm:$0xff]  ;;  %v1569_v30 = vmax.f32 %v1305_v11, 0.0  ;;  %v1308_v1 = vadd.f32 %v11186_v43, %v8827_v36  ;;  %v11190_v34 = vld [vmem:[#allocation25_spill] sm:$0xff] }
 0x1af   : > { %1793 = vst.msk [vmem:[#allocation2 + $0xa8] sm:$0xff] %vm1711_vm3, %v1687_v56  ;;  %v1690_v19 = vmax.f32 %v9045_v22, %v1658_v61  ;;  %v1656_v41 = vmax.f32 %v1560_v49, %v1592_v54  ;;  %v1597_v42 = vmax.f32 %v1417_v50, 0.0  ;;  %8000 = vmatpush3.bf16.msra.mxu1 %v9068_v58  ;;  %v1409_v13 = vadd.f32 %v8827_v36, %v1408_v32  ;;  %v9304_v22 = vld [vmem:[%s11145_s3 + $0x28] sm:$0xff]   ;;  %v11187_v49 = vld [vmem:[#allocation8_spill] sm:$0xff] }
 0x1b0   : > { %7971 = vmatprep.mubr.msk.bf16.mxu1 %vm1711_vm3, %v1903_v15  ;;  %8112 = vmatmul.mubr.msk.bf16.vlgmr.msra.gmra.mxu0 %vm1711_vm3, %v1903_v15  ;;  %v7946_v14 = vpop.f32.mrf.mxu0  ;;  %v1878_v21 = vld [vmem:[#allocation2 + $0x90] sm:$0xff]  ;;  %v1172_v57 = vadd.f32 %v8827_v36, %v11185_v39  ;;  %v1567_v56 = vmax.f32 %v1297_v2, 0.0  ;;  %v11195_v2 = vld [vmem:[#allocation27_spill] sm:$0xff] }
 0x1b1   : > { %8001 = vmatprep.subr.bf16.mxu1 %v8514_v60  ;;  %1796 = vst.msk [vmem:[#allocation2 + $0xd0] sm:$0xff] %vm1711_vm3, %v1690_v19  ;;  %v1688_v58 = vmax.f32 %v1624_v37, %v1656_v41  ;;  %v1661_v25 = vmax.f32 %v1565_v27, %v1597_v42  ;;  %v1595_v63 = vmax.f32 %v1409_v13, 0.0  ;;  %v1420_v35 = vadd.f32 %v7946_v14, %v8827_v36  ;;  %v11188_v61 = vld [vmem:[#allocation24_spill] sm:$0xff] }
 0x1b2   : > { %8180 = vmatpush3.bf16.msra.mxu0 %v9151_v55  ;;  %v1411_v9 = vpop.f32.mrf.mxu0  ;;  %v1876_v53 = vld [vmem:[#allocation2 + $0x70] sm:$0xff]  ;;  %v1905_v18 = vpack.c.bf16 %v1878_v21, %v1877_v33  ;;  %v1300_v54 = vadd.f32 %v8827_v36, %v11188_v61  ;;  %v1536_v42 = vmax.f32 %v1172_v57, 0.0  ;;  %v1570_v13 = vmax.f32 %v1308_v1, 0.0  ;;  %v11194_v33 = vld [vmem:[#allocation14_spill] sm:$0xff] }
 0x1b3   : > { %8181 = vmatprep.subr.bf16.mxu0 %v8516_v10  ;;  %1794 = vst.msk [vmem:[#allocation2 + $0xb0] sm:$0xff] %vm1711_vm3, %v1688_v58  ;;  %v1693_v38 = vmax.f32 %v11182_v20, %v1661_v25  ;;  %v1659_v40 = vmax.f32 %v1563_v0, %v1595_v63  ;;  %v1598_v29 = vmax.f32 %v1420_v35, 0.0  ;;  %v1412_v55 = vadd.f32 %v8827_v36, %v1411_v9  ;;  %v11189_v19 = vld [vmem:[#allocation4_spill] sm:$0xff]  ;;  %v11193_v20 = vld [vmem:[#allocation11_spill] sm:$0xff] }
 0x1b4   : > { %8002 = vmatpush3.bf16.msra.mxu1 %v8514_v60  ;;  %v7949_v59 = vpop.f32.mrf.mxu0  ;;  %v1904_v51 = vpack.c.bf16 %v1876_v53, %v1875_v47  ;;  %v1504_v60 = vmax.f32 %v9311_v3, 0.0  ;;  %v1881_v3 = vld [vmem:[#allocation2 + $0xc8] sm:$0xff]  ;;  %v1568_v44 = vmax.f32 %v1300_v54, 0.0  ;;  %v11199_v54 = vld [vmem:[#allocation13_spill] sm:$0xff] }
 0x1b5   : > { %8035 = vmatprep.subr.bf16.mxu1 %v9304_v22  ;;  %1799 = vst.msk [vmem:[#allocation2 + $0x108] sm:$0xff] %vm1711_vm3, %v1693_v38  ;;  %v1691_v31 = vmax.f32 %v11184_v45, %v1659_v40  ;;  %v1662_v16 = vmax.f32 %v1566_v52, %v1598_v29  ;;  %v1596_v48 = vmax.f32 %v1412_v55, 0.0  ;;  %v1433_v4 = vadd.f32 %v7949_v59, %v8827_v36  ;;  %v11192_v52 = vld [vmem:[#allocation26_spill] sm:$0xff] }
 0x1b6   : > { %8182 = vmatpush3.bf16.msra.mxu0 %v8516_v10  ;;  %7972 = vmatmul.mubr.msk.bf16.gmra.mxu1 %vm1711_vm3, %v1904_v51  ;;  %v1424_v23 = vpop.f32.mrf.mxu0  ;;  %v9349_v10 = vld [vmem:[%s11144_s2] ss:$0 sm:$0xff]  ;;  %v1879_v21 = vld [vmem:[#allocation2 + $0xa8] sm:$0xff]  ;;  %v1632_v47 = vmax.f32 %v1504_v60, %v1536_v42 }
 0x1b7   : > { %8115 = vmatprep.mubr.msk.bf16.mxu0 %vm1711_vm3, %v1904_v51  ;;  %1797 = vst.msk [vmem:[#allocation2 + $0xe8] sm:$0xff] %vm1711_vm3, %v1691_v31  ;;  %v1694_v17 = vmax.f32 %v11187_v49, %v1662_v16  ;;  %v1660_v46 = vmax.f32 %v1564_v7, %v1596_v48  ;;  %v1601_v28 = vmax.f32 %v1433_v4, 0.0  ;;  %v1425_v15 = vadd.f32 %v8827_v36, %v1424_v23  ;;  %v11200_v42 = vld [vmem:[#allocation30_spill] sm:$0xff] }
 0x1b8   : > { %7975 = vmatprep.mubr.msk.bf16.mxu1 %vm1711_vm3, %v1905_v18  ;;  %8251 = vmatprep.subr.bf16.mxu0 %v9321_v24  ;;  %v7950_v50 = vpop.f32.mrf.mxu0  ;;  %v1882_v32 = vld [vmem:[#allocation2 + $0xd0] sm:$0xff]  ;;  %v9353_v41 = vadd.f32 %v9349_v10, %v11189_v19  ;;  %v1321_v0 = vadd.f32 %v9349_v10, %v11190_v34  ;;  %v1313_v12 = vadd.f32 %v9349_v10, %v11192_v52 }
 0x1b9   : > { %8116 = vmatmul.mubr.msk.bf16.gmra.mxu0 %vm1711_vm3, %v1905_v18  ;;  %1800 = vst.msk [vmem:[#allocation2 + $0x110] sm:$0xff] %vm1711_vm3, %v1694_v17  ;;  %v1692_v37 = vmax.f32 %v1628_v8, %v1660_v46  ;;  %v1665_v5 = vmax.f32 %v1569_v30, %v1601_v28  ;;  %v1599_v27 = vmax.f32 %v1425_v15, 0.0  ;;  %v1436_v6 = vadd.f32 %v7950_v50, %v8827_v36  ;;  %v11191_v36 = vld [vmem:[#allocation9_spill] sm:$0xff]  ;;  %v11196_v18 = vld [vmem:[#allocation12_spill] sm:$0xff] }
 0x1ba   : > { %v1427_v26 = vpop.f32.mrf.mxu0  ;;  %v1880_v14 = vld [vmem:[#allocation2 + $0xb0] sm:$0xff]  ;;  %v1907_v53 = vpack.c.bf16 %v1882_v32, %v1881_v3  ;;  %v1188_v7 = vadd.f32 %v9349_v10, %v11194_v33  ;;  %v1573_v62 = vmax.f32 %v1321_v0, 0.0  ;;  %v1324_v59 = vadd.f32 %v9349_v10, %v11195_v2  ;;  %v11198_v15 = vld [vmem:[#allocation29_spill] sm:$0xff] }
 0x1bb   : > { %1798 = vst.msk [vmem:[#allocation2 + $0xf0] sm:$0xff] %vm1711_vm3, %v1692_v37  ;;  %v1697_v58 = vmax.f32 %v11191_v36, %v1665_v5  ;;  %v1663_v25 = vmax.f32 %v1567_v56, %v1599_v27  ;;  %v1602_v63 = vmax.f32 %v1436_v6, 0.0  ;;  %v1428_v35 = vadd.f32 %v9349_v10, %v1427_v26  ;;  %v11197_v8 = vld [vmem:[#allocation28_spill] sm:$0xff]  ;;  %v11201_v26 = vld [vmem:[#allocation15_spill] sm:$0xff] }
 0x1bc   : > { %v7953_v11 = vpop.f32.mrf.mxu0  ;;  %v1906_v9 = vpack.c.bf16 %v1880_v14, %v1879_v21  ;;  %v1571_v4 = vmax.f32 %v1313_v12, 0.0  ;;  %v1316_v39 = vadd.f32 %v9349_v10, %v11197_v8  ;;  %v1508_v17 = vmax.f32 %v9353_v41, 0.0  ;;  %v1885_v32 = vld [vmem:[#allocation2 + $0x108] sm:$0xff] }
 0x1bd   : > { %1803 = vst.msk [vmem:[#allocation2 + $0x148] sm:$0xff] %vm1711_vm3, %v1697_v58  ;;  %v1695_v38 = vmax.f32 %v11193_v20, %v1663_v25  ;;  %v1666_v40 = vmax.f32 %v1570_v13, %v1602_v63  ;;  %v1600_v29 = vmax.f32 %v1428_v35, 0.0  ;;  %v1449_v55 = vadd.f32 %v9349_v10, %v7953_v11  ;;  %v11202_v35 = vld [vmem:[#allocation18_spill] sm:$0xff]  ;;  %v11204_v11 = vld [vmem:[#allocation16_spill] sm:$0xff] }
 0x1be   : > { %7976 = vmatmul.mubr.msk.bf16.gmra.mxu1 %vm1711_vm3, %v1906_v9  ;;  %8119 = vmatprep.mubr.msk.bf16.mxu0 %vm1711_vm3, %v1906_v9  ;;  %v1440_v51 = vpop.f32.mrf.mxu0  ;;  %v1540_v46 = vmax.f32 %v1188_v7, 0.0  ;;  %v1574_v28 = vmax.f32 %v1324_v59, 0.0  ;;  %v1337_v60 = vadd.f32 %v9349_v10, %v11198_v15  ;;  %v1883_v6 = vld [vmem:[#allocation2 + $0xe8] sm:$0xff]  ;;  %v1572_v19 = vmax.f32 %v1316_v39, 0.0 }
 0x1bf   : > { %1801 = vst.msk [vmem:[#allocation2 + $0x128] sm:$0xff] %vm1711_vm3, %v1695_v38  ;;  %v1698_v45 = vmax.f32 %v11196_v18, %v1666_v40  ;;  %v1664_v31 = vmax.f32 %v1568_v44, %v1600_v29  ;;  %v1605_v16 = vmax.f32 %v1449_v55, 0.0  ;;  %v1441_v48 = vadd.f32 %v9349_v10, %v1440_v51  ;;  %7979 = vmatprep.mubr.msk.bf16.mxu1 %vm1711_vm3, %v1907_v53  ;;  %v11203_v44 = vld [vmem:[#allocation31_spill] sm:$0xff]  ;;  %v11205_v40 = vld [vmem:[#allocation5_spill] sm:$0xff] }
 0x1c0   : > { %v7954_v57 = vpop.f32.mrf.mxu0  ;;  %v1886_v49 = vld [vmem:[#allocation2 + $0x110] sm:$0xff]  ;;  %v1329_v41 = vadd.f32 %v9349_v10, %v11200_v42  ;;  %v1636_v63 = vmax.f32 %v1508_v17, %v1540_v46  ;;  %v1204_v21 = vadd.f32 %v9349_v10, %v11202_v35  ;;  %v1577_v3 = vmax.f32 %v1337_v60, 0.0  ;;  %v11208_v46 = vld [vmem:[#allocation19_spill] sm:$0xff] }
 0x1c1   : > { %8120 = vmatmul.mubr.msk.bf16.gmra.mxu0 %vm1711_vm3, %v1907_v53  ;;  %1804 = vst.msk [vmem:[#allocation2 + $0x150] sm:$0xff] %vm1711_vm3, %v1698_v45  ;;  %v1696_v30 = vmax.f32 %v1632_v47, %v1664_v31  ;;  %v1669_v43 = vmax.f32 %v1573_v62, %v1605_v16  ;;  %v1603_v1 = vmax.f32 %v1441_v48, 0.0  ;;  %v1452_v23 = vadd.f32 %v9349_v10, %v7954_v57  ;;  %v11206_v47 = vld [vmem:[#allocation32_spill] sm:$0xff] }
 0x1c2   : > { %v1443_v56 = vpop.f32.mrf.mxu0  ;;  %v1884_v61 = vld [vmem:[#allocation2 + $0xf0] sm:$0xff]  ;;  %v1909_v0 = vpack.c.bf16 %v1886_v49, %v1885_v32  ;;  %v1340_v52 = vadd.f32 %v9349_v10, %v11203_v44  ;;  %v1076_v29 = vadd.f32 %v9349_v10, %v11205_v40  ;;  %v1575_v55 = vmax.f32 %v1329_v41, 0.0 }
 0x1c3   : > { %1802 = vst.msk [vmem:[#allocation2 + $0x130] sm:$0xff] %vm1711_vm3, %v1696_v30  ;;  %v1701_v50 = vmax.f32 %v11199_v54, %v1669_v43  ;;  %v1667_v37 = vmax.f32 %v1571_v4, %v1603_v1  ;;  %v1606_v5 = vmax.f32 %v1452_v23, 0.0  ;;  %v1444_v27 = vadd.f32 %v9349_v10, %v1443_v56  ;;  %v11207_v4 = vld [vmem:[#allocation17_spill] sm:$0xff]  ;;  %v1818_v35 = vld [vmem:[#allocation2 + $0xf] sm:$0xff] }
 0x1c4   : > { %v7957_v13 = vpop.f32.mrf.mxu0  ;;  %v1908_v34 = vpack.c.bf16 %v1884_v61, %v1883_v6  ;;  %v1332_v33 = vadd.f32 %v9349_v10, %v11206_v47  ;;  %v1544_v18 = vmax.f32 %v1204_v21, 0.0  ;;  %v1578_v45 = vmax.f32 %v1340_v52, 0.0  ;;  %v1889_v17 = vld [vmem:[#allocation2 + $0x148] sm:$0xff]  ;;  %v3004_v21 = vld [vmem:[#allocation2 + $0x210] sm:$0xff] }
 0x1c5   : > { %1807 = vst.msk [vmem:[#allocation2 + $0x188] sm:$0xff] %vm1711_vm3, %v1701_v50  ;;  %v1699_v14 = vmax.f32 %v11201_v26, %v1667_v37  ;;  %v1670_v36 = vmax.f32 %v1574_v28, %v1606_v5  ;;  %v1604_v58 = vmax.f32 %v1444_v27, 0.0  ;;  %v1465_v25 = vadd.f32 %v9349_v10, %v7957_v13  ;;  %v3585_v44 = vld [vmem:[#allocation2 + $0x4f] sm:$0xff]  ;;  %v3586_v47 = vld [vmem:[#allocation2 + $0x67] sm:$0xff] }
 0x1c6   : > { %7980 = vmatmul.mubr.msk.bf16.gmra.mxu1 %vm1711_vm3, %v1908_v34  ;;  %8123 = vmatprep.mubr.msk.bf16.mxu0 %vm1711_vm3, %v1908_v34  ;;  %v1456_v12 = vpop.f32.mrf.mxu0  ;;  %v1887_v43 = vld [vmem:[#allocation2 + $0x128] sm:$0xff]  ;;  %v1512_v1 = vmax.f32 %v1076_v29, 0.0  ;;  %v1576_v23 = vmax.f32 %v1332_v33, 0.0 }
 0x1c7   : > { %1805 = vst.msk [vmem:[#allocation2 + $0x168] sm:$0xff] %vm1711_vm3, %v1699_v14  ;;  %v1702_v9 = vmax.f32 %v11204_v11, %v1670_v36  ;;  %v1668_v53 = vmax.f32 %v1572_v19, %v1604_v58  ;;  %v1609_v20 = vmax.f32 %v1465_v25, 0.0  ;;  %v1457_v38 = vadd.f32 %v9349_v10, %v1456_v12  ;;  %7983 = vmatprep.mubr.msk.bf16.mxu1 %vm1711_vm3, %v1909_v0  ;;  %v3002_v14 = vld [vmem:[#allocation2 + $0x1f0] sm:$0xff]  ;;  %v3001_v58 = vld [vmem:[#allocation2 + $0x1e8] sm:$0xff] }
 0x1c8   : > { %v7958_v7 = vpop.f32.mrf.mxu0  ;;  %v1890_v48 = vld [vmem:[#allocation2 + $0x150] sm:$0xff]  ;;  %v1640_v61 = vmax.f32 %v1512_v1, %v1544_v18  ;;  %v3019_v25 = vpack.c.bf16 %v3002_v14, %v3001_v58  ;;  %v3003_v52 = vld [vmem:[#allocation2 + $0x208] sm:$0xff] }
 0x1c9   : > { %8124 = vmatmul.mubr.msk.bf16.gmra.mxu0 %vm1711_vm3, %v1909_v0  ;;  %1808 = vst.msk [vmem:[#allocation2 + $0x190] sm:$0xff] %vm1711_vm3, %v1702_v9  ;;  %v1700_v62 = vmax.f32 %v1636_v63, %v1668_v53  ;;  %v1673_v2 = vmax.f32 %v1577_v3, %v1609_v20  ;;  %v1607_v59 = vmax.f32 %v1457_v38, 0.0  ;;  %v1468_v51 = vadd.f32 %v9349_v10, %v7958_v7  ;;  %v1817_v63 = vld [vmem:[#allocation2 + $0x7] sm:$0xff]  ;;  %v1820_v53 = vld [vmem:[#allocation2 + $0x2f] sm:$0xff] }
 0x1ca   : > { %v1459_v31 = vpop.f32.mrf.mxu0  ;;  %v1888_v16 = vld [vmem:[#allocation2 + $0x130] sm:$0xff]  ;;  %v1911_v56 = vpack.c.bf16 %v1890_v48, %v1889_v17  ;;  %v1849_v3 = vpack.c.bf16 %v1818_v35, %v1817_v63  ;;  %v3020_v12 = vpack.c.bf16 %v3004_v21, %v3003_v52  ;;  %v3584_v11 = vld [vmem:[#allocation2 + $0x47] sm:$0xff] }
 0x1cb   : > { %1806 = vst.msk [vmem:[#allocation2 + $0x170] sm:$0xff] %vm1711_vm3, %v1700_v62  ;;  %v1705_v8 = vmax.f32 %v11207_v4, %v1673_v2  ;;  %v1671_v39 = vmax.f32 %v1575_v55, %v1607_v59  ;;  %v1610_v57 = vmax.f32 %v1468_v51, 0.0  ;;  %v1460_v30 = vadd.f32 %v9349_v10, %v1459_v31  ;;  %v11209_v10 = vld [vmem:[#allocation20_spill] sm:$0xff]  ;;  %v1819_v20 = vld [vmem:[#allocation2 + $0x27] sm:$0xff]  ;;  %v9459_v59 = vld [vmem:[%s11145_s3 + $0x38] sm:$0xff]  }
 0x1cc   : > { %v1910_v49 = vpack.c.bf16 %v1888_v16, %v1887_v43  ;;  %v1893_v19 = vld [vmem:[#allocation2 + $0x188] sm:$0xff]  ;;  %v9431_v9 = vpack.c.bf16 %v3585_v44, %v3584_v11  ;;  %v9437_v40 = vpack.c.bf16 %v1820_v53, %v1819_v20  ;;  %v8518_v55 = vld [vmem:[%s11145_s3 + $0x20] sm:$0xff]   ;;  %v4195_v63 = vld [vmem:[#allocation2 + $0x51] sm:$0xff] }
 0x1cd   : > { %1811 = vst.msk [vmem:[#allocation2 + $0x1c8] sm:$0xff] %vm1711_vm3, %v1705_v8  ;;  %v1703_v28 = vmax.f32 %v11208_v46, %v1671_v39  ;;  %v1674_v15 = vmax.f32 %v1578_v45, %v1610_v57  ;;  %v1608_v60 = vmax.f32 %v1460_v30, 0.0  ;;  %v3587_v38 = vld [vmem:[#allocation2 + $0x6f] sm:$0xff]  ;;  %v3588_v7 = vld [vmem:[#allocation2 + $0x87] sm:$0xff] }
 0x1ce   : > { %7984 = vmatmul.mubr.msk.bf16.gmra.mxu1 %vm1711_vm3, %v1910_v49  ;;  %8127 = vmatprep.mubr.msk.bf16.mxu0 %vm1711_vm3, %v1910_v49  ;;  %v1891_v5 = vld [vmem:[#allocation2 + $0x168] sm:$0xff]  ;;  %v9444_v33 = vpack.c.bf16 %v3587_v38, %v3586_v47  ;;  %v8520_v62 = vld [vmem:[%s11145_s3 + $0x80] sm:$0xff]   ;;  %v4197_v52 = vld [vmem:[#allocation2 + $0x71] sm:$0xff] }
 0x1cf   : > { %1809 = vst.msk [vmem:[#allocation2 + $0x1a8] sm:$0xff] %vm1711_vm3, %v1703_v28  ;;  %v1706_v54 = vmax.f32 %v11209_v10, %v1674_v15  ;;  %v1672_v50 = vmax.f32 %v1576_v23, %v1608_v60  ;;  %7987 = vmatprep.mubr.msk.bf16.mxu1 %vm1711_vm3, %v1911_v56  ;;  %v3589_v29 = vld [vmem:[#allocation2 + $0x8f] sm:$0xff]  ;;  %v3590_v18 = vld [vmem:[#allocation2 + $0xa7] sm:$0xff] }
 0x1d0   : > { %v1894_v6 = vld [vmem:[#allocation2 + $0x190] sm:$0xff]  ;;  %v9452_v2 = vpack.c.bf16 %v3589_v29, %v3588_v7  ;;  %v3592_v31 = vld [vmem:[#allocation2 + $0xc7] sm:$0xff] }
 0x1d1   : > { %8128 = vmatmul.mubr.msk.bf16.gmra.mxu0 %vm1711_vm3, %v1911_v56  ;;  %1812 = vst.msk [vmem:[#allocation2 + $0x1d0] sm:$0xff] %vm1711_vm3, %v1706_v54  ;;  %v1704_v37 = vmax.f32 %v1640_v61, %v1672_v50  ;;  %v1913_v42 = vpack.c.bf16 %v1894_v6, %v1893_v19  ;;  %v3593_v51 = vld [vmem:[#allocation2 + $0xcf] sm:$0xff]  ;;  %v3594_v4 = vld [vmem:[#allocation2 + $0xe7] sm:$0xff] }
 0x1d2   : > { %v1892_v27 = vld [vmem:[#allocation2 + $0x170] sm:$0xff]  ;;  %v9471_v16 = vpack.c.bf16 %v3593_v51, %v3592_v31  ;;  %v3596_v39 = vld [vmem:[#allocation2 + $0x107] sm:$0xff] }
 0x1d3   : > { %1810 = vst.msk [vmem:[#allocation2 + $0x1b0] sm:$0xff] %vm1711_vm3, %v1704_v37  ;;  %v1912_v32 = vpack.c.bf16 %v1892_v27, %v1891_v5  ;;  %v3597_v48 = vld [vmem:[#allocation2 + $0x10f] sm:$0xff]  ;;  %v3598_v1 = vld [vmem:[#allocation2 + $0x127] sm:$0xff] }
 0x1d4   : > { %v1897_v26 = vld [vmem:[#allocation2 + $0x1c8] sm:$0xff]  ;;  %v9483_v57 = vpack.c.bf16 %v3597_v48, %v3596_v39  ;;  %v4199_v53 = vld [vmem:[#allocation2 + $0x91] sm:$0xff] }
 0x1d5   : > { %8131 = vmatprep.mubr.msk.bf16.mxu0 %vm1711_vm3, %v1912_v32  ;;  %v3599_v30 = vld [vmem:[#allocation2 + $0x12f] sm:$0xff]  ;;  %v3600_v49 = vld [vmem:[#allocation2 + $0x147] sm:$0xff] }
 0x1d6   : > { %7988 = vmatmul.mubr.msk.bf16.gmra.mxu1 %vm1711_vm3, %v1912_v32  ;;  %v1895_v41 = vld [vmem:[#allocation2 + $0x1a8] sm:$0xff]  ;;  %v9491_v23 = vpack.c.bf16 %v3599_v30, %v3598_v1  ;;  %v8522_v20 = vld [vmem:[%s11145_s3 + $0x30] sm:$0xff]  }
 0x1d7   : > { %7991 = vmatprep.mubr.msk.bf16.mxu1 %vm1711_vm3, %v1913_v42  ;;  %v3601_v43 = vld [vmem:[#allocation2 + $0x14f] sm:$0xff]  ;;  %v3602_v15 = vld [vmem:[#allocation2 + $0x167] sm:$0xff] }
 0x1d8   : > { %v1898_v34 = vld [vmem:[#allocation2 + $0x1d0] sm:$0xff]  ;;  %v9495_v17 = vpack.c.bf16 %v3601_v43, %v3600_v49  ;;  %v3604_v56 = vld [vmem:[#allocation2 + $0x187] sm:$0xff] }
 0x1d9   : > { %8132 = vmatmul.mubr.msk.bf16.gmra.mxu0 %vm1711_vm3, %v1913_v42  ;;  %v1915_v36 = vpack.c.bf16 %v1898_v34, %v1897_v26  ;;  %v3603_v46 = vld [vmem:[#allocation2 + $0x16f] sm:$0xff]  ;;  %v3606_v50 = vld [vmem:[#allocation2 + $0x1a7] sm:$0xff] }
 0x1da   : > { %v1896_v13 = vld [vmem:[#allocation2 + $0x1b0] sm:$0xff]  ;;  %v9503_v60 = vpack.c.bf16 %v3603_v46, %v3602_v15  ;;  %v3608_v5 = vld [vmem:[#allocation2 + $0x1c7] sm:$0xff] }
 0x1db   : > { %v1914_v0 = vpack.c.bf16 %v1896_v13, %v1895_v41  ;;  %v3605_v28 = vld [vmem:[#allocation2 + $0x18f] sm:$0xff]  ;;  %v3610_v19 = vld [vmem:[#allocation2 + $0x1e7] sm:$0xff] }
 0x1dc   : > { %v9507_v61 = vpack.c.bf16 %v3605_v28, %v3604_v56  ;;  %v3607_v10 = vld [vmem:[#allocation2 + $0x1af] sm:$0xff]  ;;  %v3612_v41 = vld [vmem:[#allocation2 + $0x207] sm:$0xff] }
 0x1dd   : > { %8135 = vmatprep.mubr.msk.bf16.mxu0 %vm1711_vm3, %v1914_v0  ;;  %v3609_v54 = vld [vmem:[#allocation2 + $0x1cf] sm:$0xff]  ;;  %v9515_v37 = vpack.c.bf16 %v3607_v10, %v3606_v50  ;;  %v3614_v26 = vld [vmem:[#allocation2 + $0x227] sm:$0xff] }
 0x1de   : > { %7992 = vmatmul.mubr.msk.bf16.gmra.mxu1 %vm1711_vm3, %v1914_v0  ;;  %v9519_v27 = vpack.c.bf16 %v3609_v54, %v3608_v5  ;;  %v3611_v6 = vld [vmem:[#allocation2 + $0x1ef] sm:$0xff] }
 0x1df   : > { %7995 = vmatprep.mubr.msk.bf16.mxu1 %vm1711_vm3, %v1915_v36  ;;  %v3613_v32 = vld [vmem:[#allocation2 + $0x20f] sm:$0xff]  ;;  %v9527_v42 = vpack.c.bf16 %v3611_v6, %v3610_v19 }
 0x1e0   : > { %v9531_v13 = vpack.c.bf16 %v3613_v32, %v3612_v41  ;;  %v2363_v34 = vld [vmem:[#allocation2 + $0x9] sm:$0xff]  ;;  %v2364_v0 = vld [vmem:[#allocation2 + $0x11] sm:$0xff] }
 0x1e1   : > { %8136 = vmatmul.mubr.msk.bf16.gmra.mxu0 %vm1711_vm3, %v1915_v36  ;;  %v3615_v14 = vld [vmem:[#allocation2 + $0x22f] sm:$0xff]  ;;  %v2395_v36 = vpack.c.bf16 %v2364_v0, %v2363_v34 }
 0x1e2   : > { %8139 = vmatprep.mubr.msk.bf16.mxu0 %vm1711_vm3, %v3019_v25  ;;  %v3631_v58 = vpack.c.bf16 %v3615_v14, %v3614_v26  ;;  %v2365_v21 = vld [vmem:[#allocation2 + $0x29] sm:$0xff]  ;;  %v4201_v7 = vld [vmem:[#allocation2 + $0xb1] sm:$0xff] }
 0x1e3   : > { %v4196_v44 = vld [vmem:[#allocation2 + $0x69] sm:$0xff]  ;;  %v4205_v31 = vld [vmem:[#allocation2 + $0xf1] sm:$0xff] }
 0x1e4   : > { %v4198_v11 = vld [vmem:[#allocation2 + $0x89] sm:$0xff]  ;;  %v9552_v38 = vpack.c.bf16 %v4197_v52, %v4196_v44  ;;  %v4207_v48 = vld [vmem:[#allocation2 + $0x111] sm:$0xff] }
 0x1e5   : > { %v9557_v29 = vpack.c.bf16 %v4199_v53, %v4198_v11  ;;  %v4200_v47 = vld [vmem:[#allocation2 + $0xa9] sm:$0xff]  ;;  %v4209_v43 = vld [vmem:[#allocation2 + $0x131] sm:$0xff] }
 0x1e6   : > { %7996 = vmatmul.mubr.msk.bf16.gmra.mxu1 %vm1711_vm3, %v3019_v25  ;;  %v4194_v25 = vld [vmem:[#allocation2 + $0x49] sm:$0xff]  ;;  %v4211_v49 = vld [vmem:[#allocation2 + $0x151] sm:$0xff] }
 0x1e7   : > { %8003 = vmatprep.mubr.msk.bf16.mxu1 %vm1711_vm3, %v1849_v3  ;;  %v9539_v35 = vpack.c.bf16 %v4195_v63, %v4194_v25  ;;  %v2366_v3 = vld [vmem:[#allocation2 + $0x31] sm:$0xff]  ;;  %v4208_v30 = vld [vmem:[#allocation2 + $0x129] sm:$0xff] }
 0x1e8   : > { %v4210_v1 = vld [vmem:[#allocation2 + $0x149] sm:$0xff]  ;;  %v9595_v46 = vpack.c.bf16 %v4209_v43, %v4208_v30  ;;  %v4213_v56 = vld [vmem:[#allocation2 + $0x171] sm:$0xff] }
 0x1e9   : > { %8140 = vmatmul.mubr.msk.bf16.gmra.mxu0 %vm1711_vm3, %v3020_v12  ;;  %v9545_v12 = vpack.c.bf16 %v2366_v3, %v2365_v21  ;;  %v9599_v28 = vpack.c.bf16 %v4211_v49, %v4210_v1  ;;  %v4212_v15 = vld [vmem:[#allocation2 + $0x169] sm:$0xff]  ;;  %v4215_v54 = vld [vmem:[#allocation2 + $0x191] sm:$0xff] }
 0x1ea   : > { %8183 = vmatprep.mubr.msk.bf16.mxu0 %vm1711_vm3, %v9431_v9  ;;  %v4214_v10 = vld [vmem:[#allocation2 + $0x189] sm:$0xff]  ;;  %v9607_v50 = vpack.c.bf16 %v4213_v56, %v4212_v15  ;;  %v4217_v32 = vld [vmem:[#allocation2 + $0x1b1] sm:$0xff] }
 0x1eb   : > { %v9611_v5 = vpack.c.bf16 %v4215_v54, %v4214_v10  ;;  %v4216_v6 = vld [vmem:[#allocation2 + $0x1a9] sm:$0xff]  ;;  %v4219_v41 = vld [vmem:[#allocation2 + $0x1d1] sm:$0xff] }
 0x1ec   : > { %v4218_v19 = vld [vmem:[#allocation2 + $0x1c9] sm:$0xff]  ;;  %v9619_v34 = vpack.c.bf16 %v4217_v32, %v4216_v6  ;;  %v4221_v14 = vld [vmem:[#allocation2 + $0x1f1] sm:$0xff] }
 0x1ed   : > { %v9623_v0 = vpack.c.bf16 %v4219_v41, %v4218_v19  ;;  %v4220_v26 = vld [vmem:[#allocation2 + $0x1e9] sm:$0xff]  ;;  %v4225_v15 = vld [vmem:[#allocation2 + $0x231] sm:$0xff] }
 0x1ee   : > { %8004 = vmatmul.mubr.msk.bf16.vlgmr.msra.gmra.mxu1 %vm1711_vm3, %v9437_v40  ;;  %v9631_v25 = vpack.c.bf16 %v4221_v14, %v4220_v26  ;;  %v8524_v21 = vld [vmem:[%s11145_s3 + $0x50] sm:$0xff]  }
 0x1ef   : > { %8036 = vmatpush3.bf16.msra.mxu1 %v9304_v22  ;;  %8007 = vmatprep.mubr.msk.bf16.mxu1 %vm1711_vm3, %v9431_v9  ;;  %v3591_v22 = vld [vmem:[#allocation2 + $0xaf] sm:$0xff] }
 0x1f0   : > { %8037 = vmatprep.subr.bf16.mxu1 %v8518_v55  ;;  %v9467_v45 = vpack.c.bf16 %v3591_v22, %v3590_v18  ;;  %v9571_v22 = vpack.c.bf16 %v4201_v7, %v4200_v47  ;;  %v4204_v18 = vld [vmem:[#allocation2 + $0xe9] sm:$0xff] }
 0x1f1   : > { %8184 = vmatmul.mubr.msk.bf16.vlgmr.msra.gmra.mxu0 %vm1711_vm3, %v9444_v33 }
 0x1f2   : > { %8187 = vmatprep.mubr.msk.bf16.mxu0 %vm1711_vm3, %v9452_v2  ;;  %8252 = vmatpush3.bf16.msra.mxu0 %v9321_v24  ;;  %v3595_v24 = vld [vmem:[#allocation2 + $0xef] sm:$0xff] }
 0x1f3   : > { %8253 = vmatprep.subr.bf16.mxu0 %v8520_v62  ;;  %8038 = vmatpush3.bf16.msra.mxu1 %v8518_v55  ;;  %v9479_v8 = vpack.c.bf16 %v3595_v24, %v3594_v4  ;;  %v9564_v55 = vld [vmem:[%s11145_s3 + $0x58] sm:$0xff]   ;;  %v4206_v24 = vld [vmem:[#allocation2 + $0x109] sm:$0xff]  ;;  %v9583_v4 = vpack.c.bf16 %v4205_v31, %v4204_v18 }
 0x1f4   : > { %8071 = vmatprep.subr.bf16.mxu1 %v9459_v59  ;;  %v9587_v39 = vpack.c.bf16 %v4207_v48, %v4206_v24 }
 0x1f6   : > { %8254 = vmatpush3.bf16.msra.mxu0 %v8520_v62  ;;  %8008 = vmatmul.mubr.msk.bf16.gmra.mxu1 %vm1711_vm3, %v9444_v33  ;;  %v4202_v62 = vld [vmem:[#allocation2 + $0xc9] sm:$0xff] }
 0x1f7   : > { %8011 = vmatprep.mubr.msk.bf16.mxu1 %vm1711_vm3, %v9452_v2 }
 0x1f9   : > { %8188 = vmatmul.mubr.msk.bf16.gmra.mxu0 %vm1711_vm3, %v9467_v45 }
 0x1fa   : > { %8191 = vmatprep.mubr.msk.bf16.mxu0 %vm1711_vm3, %v9471_v16 }
 0x1fe   : > { %8012 = vmatmul.mubr.msk.bf16.gmra.mxu1 %vm1711_vm3, %v9467_v45 }
 0x1ff   : > { %8015 = vmatprep.mubr.msk.bf16.mxu1 %vm1711_vm3, %v9471_v16 }
 0x201   : > { %8192 = vmatmul.mubr.msk.bf16.gmra.mxu0 %vm1711_vm3, %v9479_v8 }
 0x202   : > { %8195 = vmatprep.mubr.msk.bf16.mxu0 %vm1711_vm3, %v9483_v57 }
 0x206   : > { %8016 = vmatmul.mubr.msk.bf16.gmra.mxu1 %vm1711_vm3, %v9479_v8 }
 0x207   : > { %8019 = vmatprep.mubr.msk.bf16.mxu1 %vm1711_vm3, %v9483_v57 }
 0x209   : > { %8196 = vmatmul.mubr.msk.bf16.gmra.mxu0 %vm1711_vm3, %v9491_v23 }
 0x20a   : > { %8199 = vmatprep.mubr.msk.bf16.mxu0 %vm1711_vm3, %v9495_v17 }
 0x20e   : > { %8020 = vmatmul.mubr.msk.bf16.gmra.mxu1 %vm1711_vm3, %v9491_v23 }
 0x20f   : > { %8023 = vmatprep.mubr.msk.bf16.mxu1 %vm1711_vm3, %v9495_v17 }
 0x211   : > { %8200 = vmatmul.mubr.msk.bf16.gmra.mxu0 %vm1711_vm3, %v9503_v60 }
 0x212   : > { %8203 = vmatprep.mubr.msk.bf16.mxu0 %vm1711_vm3, %v9507_v61 }
 0x216   : > { %8024 = vmatmul.mubr.msk.bf16.gmra.mxu1 %vm1711_vm3, %v9503_v60 }
 0x217   : > { %8027 = vmatprep.mubr.msk.bf16.mxu1 %vm1711_vm3, %v9507_v61 }
 0x219   : > { %8204 = vmatmul.mubr.msk.bf16.gmra.mxu0 %vm1711_vm3, %v9515_v37 }
 0x21a   : > { %8207 = vmatprep.mubr.msk.bf16.mxu0 %vm1711_vm3, %v9519_v27 }
 0x21e   : > { %8028 = vmatmul.mubr.msk.bf16.gmra.mxu1 %vm1711_vm3, %v9515_v37 }
 0x21f   : > { %8031 = vmatprep.mubr.msk.bf16.mxu1 %vm1711_vm3, %v9519_v27 }
 0x221   : > { %8208 = vmatmul.mubr.msk.bf16.gmra.mxu0 %vm1711_vm3, %v9527_v42 }
 0x222   : > { %8211 = vmatprep.mubr.msk.bf16.mxu0 %vm1711_vm3, %v9531_v13 }
 0x226   : > { %8032 = vmatmul.mubr.msk.bf16.gmra.mxu1 %vm1711_vm3, %v9527_v42 }
 0x227   : > { %8039 = vmatprep.mubr.msk.bf16.mxu1 %vm1711_vm3, %v2395_v36  ;;  %v4222_v36 = vld [vmem:[#allocation2 + $0x209] sm:$0xff] }
 0x229   : > { %8212 = vmatmul.mubr.msk.bf16.gmra.mxu0 %vm1711_vm3, %v3631_v58  ;;  %v4223_v58 = vld [vmem:[#allocation2 + $0x211] sm:$0xff] }
 0x22a   : > { %8255 = vmatprep.mubr.msk.bf16.mxu0 %vm1711_vm3, %v9539_v35  ;;  %v9635_v63 = vpack.c.bf16 %v4223_v58, %v4222_v36 }
 0x22e   : > { %8040 = vmatmul.mubr.msk.bf16.vlgmr.msra.gmra.mxu1 %vm1711_vm3, %v9545_v12 }
 0x22f   : > { %8072 = vmatpush3.bf16.msra.mxu1 %v9459_v59  ;;  %8043 = vmatprep.mubr.msk.bf16.mxu1 %vm1711_vm3, %v9539_v35  ;;  %v4203_v59 = vld [vmem:[#allocation2 + $0xd1] sm:$0xff] }
 0x230   : > { %8073 = vmatprep.subr.bf16.mxu1 %v8522_v20  ;;  %v9575_v51 = vpack.c.bf16 %v4203_v59, %v4202_v62 }
 0x231   : > { %8256 = vmatmul.mubr.msk.bf16.vlgmr.msra.gmra.mxu0 %vm1711_vm3, %v9552_v38 }
 0x232   : > { %8259 = vmatprep.mubr.msk.bf16.mxu0 %vm1711_vm3, %v9557_v29 }
 0x233   : > { %8074 = vmatpush3.bf16.msra.mxu1 %v8522_v20 }
 0x234   : > { %8143 = vmatprep.subr.bf16.mxu1 %v9564_v55 }
 0x236   : > { %8044 = vmatmul.mubr.msk.bf16.gmra.mxu1 %vm1711_vm3, %v9552_v38 }
 0x237   : > { %8047 = vmatprep.mubr.msk.bf16.mxu1 %vm1711_vm3, %v9557_v29 }
 0x239   : > { %8260 = vmatmul.mubr.msk.bf16.gmra.mxu0 %vm1711_vm3, %v9571_v22 }
 0x23a   : > { %8263 = vmatprep.mubr.msk.bf16.mxu0 %vm1711_vm3, %v9575_v51 }
 0x23e   : > { %8048 = vmatmul.mubr.msk.bf16.gmra.mxu1 %vm1711_vm3, %v9571_v22 }
 0x23f   : > { %8051 = vmatprep.mubr.msk.bf16.mxu1 %vm1711_vm3, %v9575_v51 }
 0x241   : > { %8264 = vmatmul.mubr.msk.bf16.gmra.mxu0 %vm1711_vm3, %v9583_v4 }
 0x242   : > { %8267 = vmatprep.mubr.msk.bf16.mxu0 %vm1711_vm3, %v9587_v39 }
 0x246   : > { %8052 = vmatmul.mubr.msk.bf16.gmra.mxu1 %vm1711_vm3, %v9583_v4 }
 0x247   : > { %8055 = vmatprep.mubr.msk.bf16.mxu1 %vm1711_vm3, %v9587_v39 }
 0x249   : > { %8268 = vmatmul.mubr.msk.bf16.gmra.mxu0 %vm1711_vm3, %v9595_v46 }
 0x24a   : > { %8271 = vmatprep.mubr.msk.bf16.mxu0 %vm1711_vm3, %v9599_v28 }
 0x24e   : > { %8056 = vmatmul.mubr.msk.bf16.gmra.mxu1 %vm1711_vm3, %v9595_v46 }
 0x24f   : > { %8059 = vmatprep.mubr.msk.bf16.mxu1 %vm1711_vm3, %v9599_v28 }
 0x251   : > { %8272 = vmatmul.mubr.msk.bf16.gmra.mxu0 %vm1711_vm3, %v9607_v50 }
 0x252   : > { %8275 = vmatprep.mubr.msk.bf16.mxu0 %vm1711_vm3, %v9611_v5 }
 0x256   : > { %8060 = vmatmul.mubr.msk.bf16.gmra.mxu1 %vm1711_vm3, %v9607_v50 }
 0x257   : > { %8063 = vmatprep.mubr.msk.bf16.mxu1 %vm1711_vm3, %v9611_v5 }
 0x259   : > { %8276 = vmatmul.mubr.msk.bf16.gmra.mxu0 %vm1711_vm3, %v9619_v34 }
 0x25a   : > { %8279 = vmatprep.mubr.msk.bf16.mxu0 %vm1711_vm3, %v9623_v0 }
 0x25e   : > { %8064 = vmatmul.mubr.msk.bf16.gmra.mxu1 %vm1711_vm3, %v9619_v34 }
 0x25f   : > { %8067 = vmatprep.mubr.msk.bf16.mxu1 %vm1711_vm3, %v9623_v0 }
 0x261   : > { %8280 = vmatmul.mubr.msk.bf16.gmra.mxu0 %vm1711_vm3, %v9631_v25 }
 0x262   : > { %8283 = vmatprep.mubr.msk.bf16.mxu0 %vm1711_vm3, %v9635_v63 }
 0x266   : > { %8068 = vmatmul.mubr.msk.bf16.gmra.mxu1 %vm1711_vm3, %v9631_v25 }
 0x267   : > { %8075 = vmatprep.mubr.msk.bf16.mxu1 %vm1711_vm3, %v9437_v40  ;;  %v8525_v40 = vld [vmem:[%s11145_s3 + $0x78] sm:$0xff]  }
 0x26e   : > { %v9648_v3 = vpop.f32.mrf.mxu1  ;;  %8076 = vmatmul.mubr.msk.bf16.vlgmr.msra.gmra.mxu1 %vm1711_vm3, %v9431_v9 }
 0x26f   : > { %8144 = vmatpush3.bf16.msra.mxu1 %v9564_v55  ;;  %8079 = vmatprep.mubr.msk.bf16.mxu1 %vm1711_vm3, %v9444_v33 }
 0x270   : > { %v9655_v44 = vpop.f32.mrf.mxu1  ;;  %8145 = vmatprep.subr.bf16.mxu1 %v8524_v21  ;;  %v9734_v43 = vpop.f32.mrf.mxu0 }
 0x271   : > { %11210 = vst [vmem:[#allocation21_spill] sm:$0xff] %v9734_v43 }
 0x272   : > { %v9660_v52 = vpop.f32.mrf.mxu1 }
 0x273   : > { %8146 = vmatpush3.bf16.msra.mxu1 %v8524_v21 }
 0x274   : > { %v9662_v11 = vpop.f32.mrf.mxu1  ;;  %8215 = vmatprep.subr.bf16.mxu1 %v8525_v40 }
 0x276   : > { %v9664_v53 = vpop.f32.mrf.mxu1  ;;  %8080 = vmatmul.mubr.msk.bf16.gmra.mxu1 %vm1711_vm3, %v9452_v2 }
 0x277   : > { %8083 = vmatprep.mubr.msk.bf16.mxu1 %vm1711_vm3, %v9467_v45 }
 0x278   : > { %v9670_v9 = vpop.f32.mrf.mxu1 }
 0x27a   : > { %v9672_v33 = vpop.f32.mrf.mxu1 }
 0x27c   : > { %v9674_v20 = vpop.f32.mrf.mxu1 }
 0x27e   : > { %v9676_v55 = vpop.f32.mrf.mxu1  ;;  %8084 = vmatmul.mubr.msk.bf16.gmra.mxu1 %vm1711_vm3, %v9471_v16 }
 0x27f   : > { %8087 = vmatprep.mubr.msk.bf16.mxu1 %vm1711_vm3, %v9479_v8 }
 0x280   : > { %v9682_v47 = vpop.f32.mrf.mxu1 }
 0x282   : > { %v9684_v2 = vpop.f32.mrf.mxu1 }
 0x284   : > { %v9686_v7 = vpop.f32.mrf.mxu1 }
 0x286   : > { %v9688_v45 = vpop.f32.mrf.mxu1  ;;  %8088 = vmatmul.mubr.msk.bf16.gmra.mxu1 %vm1711_vm3, %v9483_v57 }
 0x287   : > { %8091 = vmatprep.mubr.msk.bf16.mxu1 %vm1711_vm3, %v9491_v23 }
 0x288   : > { %v9694_v62 = vpop.f32.mrf.mxu1 }
 0x28a   : > { %v9696_v16 = vpop.f32.mrf.mxu1 }
 0x28c   : > { %v9698_v59 = vpop.f32.mrf.mxu1 }
 0x28e   : > { %v9700_v8 = vpop.f32.mrf.mxu1  ;;  %8092 = vmatmul.mubr.msk.bf16.gmra.mxu1 %vm1711_vm3, %v9495_v17 }
 0x28f   : > { %8095 = vmatprep.mubr.msk.bf16.mxu1 %vm1711_vm3, %v9503_v60 }
 0x290   : > { %v9706_v18 = vpop.f32.mrf.mxu1 }
 0x292   : > { %v9708_v57 = vpop.f32.mrf.mxu1 }
 0x294   : > { %v9710_v31 = vpop.f32.mrf.mxu1 }
 0x296   : > { %v9712_v23 = vpop.f32.mrf.mxu1  ;;  %8096 = vmatmul.mubr.msk.bf16.gmra.mxu1 %vm1711_vm3, %v9507_v61 }
 0x297   : > { %8099 = vmatprep.mubr.msk.bf16.mxu1 %vm1711_vm3, %v9515_v37 }
 0x298   : > { %v9718_v24 = vpop.f32.mrf.mxu1 }
 0x29a   : > { %v9720_v17 = vpop.f32.mrf.mxu1 }
 0x29c   : > { %v9722_v48 = vpop.f32.mrf.mxu1 }
 0x29e   : > { %v9724_v60 = vpop.f32.mrf.mxu1  ;;  %8100 = vmatmul.mubr.msk.bf16.gmra.mxu1 %vm1711_vm3, %v9519_v27  ;;  %v9744_v27 = vpop.f32.mrf.mxu0 }
 0x29f   : > { %8103 = vmatprep.mubr.msk.bf16.mxu1 %vm1711_vm3, %v9527_v42  ;;  %11211 = vst [vmem:[#allocation6_spill] sm:$0xff] %v9744_v27  ;;  %v4224_v42 = vld [vmem:[#allocation2 + $0x229] sm:$0xff] }
 0x2a0   : > { %v9730_v30 = vpop.f32.mrf.mxu1  ;;  %v4241_v10 = vpack.c.bf16 %v4225_v15, %v4224_v42  ;;  %v9750_v54 = vpop.f32.mrf.mxu0  ;;  %v3902_v27 = vld [vmem:[#allocation2 + $0x110] sm:$0xff] }
 0x2a1   : > { %11212 = vst [vmem:[#allocation22_spill] sm:$0xff] %v9750_v54 }
 0x2a2   : > { %v9732_v61 = vpop.f32.mrf.mxu1  ;;  %8284 = vmatmul.mubr.msk.bf16.gmra.mxu0 %vm1711_vm3, %v4241_v10  ;;  %v9765_v19 = vpop.f32.mrf.mxu0 }
 0x2a3   : > { %11213 = vst [vmem:[#allocation7_spill] sm:$0xff] %v9765_v19  ;;  %v3898_v19 = vld [vmem:[#allocation2 + $0xd0] sm:$0xff] }
 0x2a4   : > { %v9736_v37 = vpop.f32.mrf.mxu1 }
 0x2a6   : > { %v9738_v1 = vpop.f32.mrf.mxu1  ;;  %8104 = vmatmul.mubr.msk.bf16.gmra.mxu1 %vm1711_vm3, %v9531_v13  ;;  %v8526_v13 = vld [vmem:[%s11145_s3 + $0x70] sm:$0xff]  }
 0x2a7   : > { %8147 = vmatprep.mubr.msk.bf16.mxu1 %vm1711_vm3, %v9545_v12 }
 0x2a8   : > { %v9746_v49 = vpop.f32.mrf.mxu1 }
 0x2aa   : > { %v9748_v56 = vpop.f32.mrf.mxu1 }
 0x2ac   : > { %v9752_v6 = vpop.f32.mrf.mxu1 }
 0x2ae   : > { %v8005_v12 = vpop.f32.mrf.mxu1  ;;  %8148 = vmatmul.mubr.msk.bf16.vlgmr.msra.gmra.mxu1 %vm1711_vm3, %v9539_v35  ;;  %v9773_v35 = vpop.f32.mrf.mxu0 }
 0x2af   : > { %v9761_v32 = vadd.f32 %v8005_v12, %v9648_v3  ;;  %8216 = vmatpush3.bf16.msra.mxu1 %v8525_v40  ;;  %8151 = vmatprep.mubr.msk.bf16.mxu1 %vm1711_vm3, %v9552_v38 }
 0x2b0   : > { %v2236_v41 = vpop.f32.mrf.mxu1  ;;  %8217 = vmatprep.subr.bf16.mxu1 %v8526_v13 }
 0x2b1   : > { %v9768_v26 = vadd.f32 %v2236_v41, %v9655_v44  ;;  %v9785_v44 = vpop.f32.mrf.mxu0 }
 0x2b2   : > { %v8006_v14 = vpop.f32.mrf.mxu1 }
 0x2b3   : > { %v9771_v36 = vadd.f32 %v8006_v14, %v9660_v52  ;;  %8218 = vmatpush3.bf16.msra.mxu1 %v8526_v13  ;;  %v9793_v15 = vpop.f32.mrf.mxu0 }
 0x2b4   : > { %v2239_v58 = vpop.f32.mrf.mxu1 }
 0x2b5   : > { %v9776_v21 = vadd.f32 %v2239_v58, %v9662_v11 }
 0x2b6   : > { %v8009_v3 = vpop.f32.mrf.mxu1  ;;  %8152 = vmatmul.mubr.msk.bf16.gmra.mxu1 %vm1711_vm3, %v9557_v29 }
 0x2b7   : > { %v9781_v38 = vadd.f32 %v8009_v3, %v9664_v53  ;;  %8155 = vmatprep.mubr.msk.bf16.mxu1 %vm1711_vm3, %v9571_v22 }
 0x2b8   : > { %v2252_v40 = vpop.f32.mrf.mxu1 }
 0x2b9   : > { %v9788_v52 = vadd.f32 %v2252_v40, %v9670_v9  ;;  %v9805_v9 = vpop.f32.mrf.mxu0 }
 0x2ba   : > { %v8010_v42 = vpop.f32.mrf.mxu1 }
 0x2bb   : > { %v9791_v11 = vadd.f32 %v8010_v42, %v9672_v33  ;;  %v9813_v41 = vpop.f32.mrf.mxu0 }
 0x2bc   : > { %v2255_v10 = vpop.f32.mrf.mxu1 }
 0x2bd   : > { %v9796_v29 = vadd.f32 %v2255_v10, %v9674_v20 }
 0x2be   : > { %v8013_v53 = vpop.f32.mrf.mxu1  ;;  %8156 = vmatmul.mubr.msk.bf16.gmra.mxu1 %vm1711_vm3, %v9575_v51 }
 0x2bf   : > { %v9801_v22 = vadd.f32 %v8013_v53, %v9676_v55  ;;  %8159 = vmatprep.mubr.msk.bf16.mxu1 %vm1711_vm3, %v9583_v4 }
 0x2c0   : > { %v2268_v33 = vpop.f32.mrf.mxu1 }
 0x2c1   : > { %v9808_v13 = vadd.f32 %v2268_v33, %v9682_v47  ;;  %v9825_v47 = vpop.f32.mrf.mxu0 }
 0x2c2   : > { %v8014_v12 = vpop.f32.mrf.mxu1 }
 0x2c3   : > { %v9811_v20 = vadd.f32 %v8014_v12, %v9684_v2  ;;  %v9833_v40 = vpop.f32.mrf.mxu0 }
 0x2c4   : > { %v2271_v14 = vpop.f32.mrf.mxu1 }
 0x2c5   : > { %v9816_v51 = vadd.f32 %v2271_v14, %v9686_v7 }
 0x2c6   : > { %v8017_v55 = vpop.f32.mrf.mxu1  ;;  %8160 = vmatmul.mubr.msk.bf16.gmra.mxu1 %vm1711_vm3, %v9587_v39 }
 0x2c7   : > { %v9821_v4 = vadd.f32 %v8017_v55, %v9688_v45  ;;  %8163 = vmatprep.mubr.msk.bf16.mxu1 %vm1711_vm3, %v9595_v46 }
 0x2c8   : > { %v2284_v2 = vpop.f32.mrf.mxu1 }
 0x2c9   : > { %v9828_v58 = vadd.f32 %v2284_v2, %v9694_v62  ;;  %v9845_v62 = vpop.f32.mrf.mxu0 }
 0x2ca   : > { %v8018_v3 = vpop.f32.mrf.mxu1 }
 0x2cb   : > { %v9831_v7 = vadd.f32 %v8018_v3, %v9696_v16  ;;  %v9853_v33 = vpop.f32.mrf.mxu0 }
 0x2cc   : > { %v2287_v42 = vpop.f32.mrf.mxu1 }
 0x2cd   : > { %v9836_v39 = vadd.f32 %v2287_v42, %v9698_v59 }
 0x2ce   : > { %v8021_v45 = vpop.f32.mrf.mxu1  ;;  %8164 = vmatmul.mubr.msk.bf16.gmra.mxu1 %vm1711_vm3, %v9599_v28 }
 0x2cf   : > { %v9841_v46 = vadd.f32 %v8021_v45, %v9700_v8  ;;  %8167 = vmatprep.mubr.msk.bf16.mxu1 %vm1711_vm3, %v9607_v50 }
 0x2d0   : > { %v2300_v16 = vpop.f32.mrf.mxu1 }
 0x2d1   : > { %v9848_v10 = vadd.f32 %v2300_v16, %v9706_v18  ;;  %v9865_v18 = vpop.f32.mrf.mxu0  ;;  %v3890_v16 = vld [vmem:[#allocation2 + $0x50] sm:$0xff] }
 0x2d2   : > { %v8022_v53 = vpop.f32.mrf.mxu1 }
 0x2d3   : > { %v9851_v59 = vadd.f32 %v8022_v53, %v9708_v57  ;;  %v9873_v2 = vpop.f32.mrf.mxu0 }
 0x2d4   : > { %v2303_v12 = vpop.f32.mrf.mxu1 }
 0x2d5   : > { %v9856_v28 = vadd.f32 %v2303_v12, %v9710_v31  ;;  %v3889_v12 = vld [vmem:[#allocation2 + $0x48] sm:$0xff] }
 0x2d6   : > { %v8025_v8 = vpop.f32.mrf.mxu1  ;;  %8168 = vmatmul.mubr.msk.bf16.gmra.mxu1 %vm1711_vm3, %v9611_v5 }
 0x2d7   : > { %v9861_v50 = vadd.f32 %v8025_v8, %v9712_v23  ;;  %8171 = vmatprep.mubr.msk.bf16.mxu1 %vm1711_vm3, %v9619_v34  ;;  %v3921_v8 = vpack.c.bf16 %v3890_v16, %v3889_v12 }
 0x2d8   : > { %v2316_v57 = vpop.f32.mrf.mxu1 }
 0x2d9   : > { %v9868_v14 = vadd.f32 %v2316_v57, %v9718_v24  ;;  %v9885_v24 = vpop.f32.mrf.mxu0 }
 0x2da   : > { %v8026_v55 = vpop.f32.mrf.mxu1 }
 0x2db   : > { %v9871_v31 = vadd.f32 %v8026_v55, %v9720_v17  ;;  %v9893_v53 = vpop.f32.mrf.mxu0 }
 0x2dc   : > { %v2319_v3 = vpop.f32.mrf.mxu1 }
 0x2dd   : > { %v9876_v5 = vadd.f32 %v2319_v3, %v9722_v48  ;;  %v9904_v57 = vpop.f32.mrf.mxu0  ;;  %v3892_v3 = vld [vmem:[#allocation2 + $0x70] sm:$0xff] }
 0x2de   : > { %v8029_v23 = vpop.f32.mrf.mxu1  ;;  %8172 = vmatmul.mubr.msk.bf16.gmra.mxu1 %vm1711_vm3, %v9623_v0 }
 0x2df   : > { %v9881_v34 = vadd.f32 %v8029_v23, %v9724_v60  ;;  %8175 = vmatprep.mubr.msk.bf16.mxu1 %vm1711_vm3, %v9631_v25  ;;  %v9912_v16 = vpop.f32.mrf.mxu0 }
 0x2e0   : > { %v2332_v17 = vpop.f32.mrf.mxu1 }
 0x2e1   : > { %v9888_v42 = vadd.f32 %v2332_v17, %v9730_v30 }
 0x2e2   : > { %v8030_v45 = vpop.f32.mrf.mxu1 }
 0x2e3   : > { %v9891_v48 = vadd.f32 %v8030_v45, %v9732_v61  ;;  %v3891_v45 = vld [vmem:[#allocation2 + $0x68] sm:$0xff] }
 0x2e4   : > { %v2335_v0 = vpop.f32.mrf.mxu1 }
 0x2e5   : > { %v9896_v60 = vadd.f32 %v2335_v0, %v9736_v37  ;;  %v3894_v37 = vld [vmem:[#allocation2 + $0x90] sm:$0xff]  ;;  %v3893_v0 = vld [vmem:[#allocation2 + $0x88] sm:$0xff] }
 0x2e6   : > { %v8033_v25 = vpop.f32.mrf.mxu1  ;;  %8176 = vmatmul.mubr.msk.bf16.gmra.mxu1 %vm1711_vm3, %v9635_v63 }
 0x2e7   : > { %11214 = vst [vmem:[#allocation10_spill] sm:$0xff] %v9896_v60  ;;  %v9901_v30 = vadd.f32 %v8033_v25, %v9738_v1  ;;  %8219 = vmatprep.mubr.msk.bf16.mxu1 %vm1711_vm3, %v3921_v8  ;;  %v3922_v1 = vpack.c.bf16 %v3892_v3, %v3891_v45  ;;  %v3923_v8 = vpack.c.bf16 %v3894_v37, %v3893_v0  ;;  %v3896_v3 = vld [vmem:[#allocation2 + $0xb0] sm:$0xff]  ;;  %v3895_v37 = vld [vmem:[#allocation2 + $0xa8] sm:$0xff] }
 0x2e8   : > { %v2348_v61 = vpop.f32.mrf.mxu1  ;;  %v3897_v0 = vld [vmem:[#allocation2 + $0xc8] sm:$0xff]  ;;  %v3918_v60 = vld [vmem:[#allocation2 + $0x210] sm:$0xff] }
 0x2e9   : > { %v9907_v55 = vadd.f32 %v2348_v61, %v9746_v49 }
 0x2ea   : > { %v8034_v23 = vpop.f32.mrf.mxu1 }
 0x2eb   : > { %v9910_v17 = vadd.f32 %v8034_v23, %v9748_v56  ;;  %v9922_v56 = vpop.f32.mrf.mxu0 }
 0x2ec   : > { %v2351_v63 = vpop.f32.mrf.mxu1 }
 0x2ed   : > { %v9915_v12 = vadd.f32 %v2351_v63, %v9752_v6  ;;  %v9930_v63 = vpop.f32.mrf.mxu0 }
 0x2ee   : > { %v8041_v25 = vpop.f32.mrf.mxu1  ;;  %8220 = vmatmul.mubr.msk.bf16.vlgmr.msra.gmra.mxu1 %vm1711_vm3, %v3922_v1 }
 0x2ef   : > { %11215 = vst [vmem:[#allocation23_spill] sm:$0xff] %v9915_v12  ;;  %v9919_v49 = vadd.f32 %v8041_v25, %v9761_v32  ;;  %8223 = vmatprep.mubr.msk.bf16.mxu1 %vm1711_vm3, %v3923_v8  ;;  %v3924_v32 = vpack.c.bf16 %v3896_v3, %v3895_v37  ;;  %v3925_v25 = vpack.c.bf16 %v3898_v19, %v3897_v0  ;;  %v3900_v3 = vld [vmem:[#allocation2 + $0xf0] sm:$0xff]  ;;  %v3899_v19 = vld [vmem:[#allocation2 + $0xe8] sm:$0xff] }
 0x2f0   : > { %v2509_v61 = vpop.f32.mrf.mxu1  ;;  %v3906_v12 = vld [vmem:[#allocation2 + $0x150] sm:$0xff] }
 0x2f1   : > { %v9925_v23 = vadd.f32 %v2509_v61, %v9768_v26 }
 0x2f2   : > { %v8042_v45 = vpop.f32.mrf.mxu1 }
 0x2f3   : > { %v9928_v6 = vadd.f32 %v8042_v45, %v9771_v36  ;;  %v9940_v36 = vpop.f32.mrf.mxu0 }
 0x2f4   : > { %v2512_v1 = vpop.f32.mrf.mxu1 }
 0x2f5   : > { %v9933_v8 = vadd.f32 %v2512_v1, %v9776_v21  ;;  %v9948_v1 = vpop.f32.mrf.mxu0 }
 0x2f6   : > { %v8045_v54 = vpop.f32.mrf.mxu1  ;;  %8224 = vmatmul.mubr.msk.bf16.gmra.mxu1 %vm1711_vm3, %v3924_v32 }
 0x2f7   : > { %11216 = vst [vmem:[#allocation8_spill] sm:$0xff] %v9933_v8  ;;  %v9937_v26 = vadd.f32 %v8045_v54, %v9781_v38  ;;  %8227 = vmatprep.mubr.msk.bf16.mxu1 %vm1711_vm3, %v3925_v25  ;;  %v3926_v54 = vpack.c.bf16 %v3900_v3, %v3899_v19  ;;  %v3901_v38 = vld [vmem:[#allocation2 + $0x108] sm:$0xff]  ;;  %v3904_v3 = vld [vmem:[#allocation2 + $0x130] sm:$0xff] }
 0x2f8   : > { %v2525_v61 = vpop.f32.mrf.mxu1  ;;  %v3927_v25 = vpack.c.bf16 %v3902_v27, %v3901_v38  ;;  %v3903_v27 = vld [vmem:[#allocation2 + $0x128] sm:$0xff] }
 0x2f9   : > { %v9943_v45 = vadd.f32 %v2525_v61, %v9788_v52 }
 0x2fa   : > { %v8046_v37 = vpop.f32.mrf.mxu1 }
 0x2fb   : > { %v9946_v21 = vadd.f32 %v8046_v37, %v9791_v11  ;;  %v9958_v11 = vpop.f32.mrf.mxu0 }
 0x2fc   : > { %v2528_v32 = vpop.f32.mrf.mxu1  ;;  %11217 = vst [vmem:[#allocation24_spill] sm:$0xff] %v9958_v11 }
 0x2fd   : > { %v9951_v0 = vadd.f32 %v2528_v32, %v9796_v29  ;;  %v9966_v32 = vpop.f32.mrf.mxu0 }
 0x2fe   : > { %v8049_v43 = vpop.f32.mrf.mxu1  ;;  %8228 = vmatmul.mubr.msk.bf16.gmra.mxu1 %vm1711_vm3, %v3926_v54  ;;  %11218 = vst [vmem:[#allocation4_spill] sm:$0xff] %v9966_v32  ;;  %v3910_v32 = vld [vmem:[#allocation2 + $0x190] sm:$0xff] }
 0x2ff   : > { %v9955_v52 = vadd.f32 %v8049_v43, %v9801_v22  ;;  %8231 = vmatprep.mubr.msk.bf16.mxu1 %vm1711_vm3, %v3927_v25  ;;  %v3928_v43 = vpack.c.bf16 %v3904_v3, %v3903_v27  ;;  %v3905_v22 = vld [vmem:[#allocation2 + $0x148] sm:$0xff]  ;;  %v3908_v3 = vld [vmem:[#allocation2 + $0x170] sm:$0xff] }
 0x300   : > { %v2541_v61 = vpop.f32.mrf.mxu1  ;;  %v3929_v25 = vpack.c.bf16 %v3906_v12, %v3905_v22  ;;  %v3907_v12 = vld [vmem:[#allocation2 + $0x168] sm:$0xff] }
 0x301   : > { %v9961_v37 = vadd.f32 %v2541_v61, %v9808_v13 }
 0x302   : > { %v8050_v19 = vpop.f32.mrf.mxu1 }
 0x303   : > { %v9964_v29 = vadd.f32 %v8050_v19, %v9811_v20  ;;  %v9976_v20 = vpop.f32.mrf.mxu0 }
 0x304   : > { %v2544_v54 = vpop.f32.mrf.mxu1  ;;  %11219 = vst [vmem:[#allocation25_spill] sm:$0xff] %v9976_v20 }
 0x305   : > { %v9969_v38 = vadd.f32 %v2544_v54, %v9816_v51  ;;  %v9984_v54 = vpop.f32.mrf.mxu0 }
 0x306   : > { %v8053_v8 = vpop.f32.mrf.mxu1  ;;  %8232 = vmatmul.mubr.msk.bf16.gmra.mxu1 %vm1711_vm3, %v3928_v43  ;;  %11220 = vst [vmem:[#allocation9_spill] sm:$0xff] %v9984_v54  ;;  %v3914_v54 = vld [vmem:[#allocation2 + $0x1d0] sm:$0xff] }
 0x307   : > { %v9973_v13 = vadd.f32 %v8053_v8, %v9821_v4  ;;  %8235 = vmatprep.mubr.msk.bf16.mxu1 %vm1711_vm3, %v3929_v25  ;;  %v3930_v4 = vpack.c.bf16 %v3908_v3, %v3907_v12  ;;  %v3909_v8 = vld [vmem:[#allocation2 + $0x188] sm:$0xff]  ;;  %v3912_v3 = vld [vmem:[#allocation2 + $0x1b0] sm:$0xff] }
 0x308   : > { %v2557_v61 = vpop.f32.mrf.mxu1  ;;  %v3931_v25 = vpack.c.bf16 %v3910_v32, %v3909_v8  ;;  %v3911_v32 = vld [vmem:[#allocation2 + $0x1a8] sm:$0xff] }
 0x309   : > { %v9979_v19 = vadd.f32 %v2557_v61, %v9828_v58 }
 0x30a   : > { %v8054_v27 = vpop.f32.mrf.mxu1 }
 0x30b   : > { %v9982_v51 = vadd.f32 %v8054_v27, %v9831_v7  ;;  %v9994_v7 = vpop.f32.mrf.mxu0 }
 0x30c   : > { %v2560_v43 = vpop.f32.mrf.mxu1  ;;  %11221 = vst [vmem:[#allocation26_spill] sm:$0xff] %v9994_v7 }
 0x30d   : > { %v9987_v22 = vadd.f32 %v2560_v43, %v9836_v39  ;;  %v10002_v43 = vpop.f32.mrf.mxu0 }
 0x30e   : > { %v8057_v20 = vpop.f32.mrf.mxu1  ;;  %8236 = vmatmul.mubr.msk.bf16.gmra.mxu1 %vm1711_vm3, %v3930_v4  ;;  %11222 = vst [vmem:[#allocation11_spill] sm:$0xff] %v10002_v43  ;;  %v3916_v43 = vld [vmem:[#allocation2 + $0x1f0] sm:$0xff] }
 0x30f   : > { %v9991_v58 = vadd.f32 %v8057_v20, %v9841_v46  ;;  %8239 = vmatprep.mubr.msk.bf16.mxu1 %vm1711_vm3, %v3931_v25  ;;  %v3932_v46 = vpack.c.bf16 %v3912_v3, %v3911_v32  ;;  %v3913_v20 = vld [vmem:[#allocation2 + $0x1c8] sm:$0xff] }
 0x310   : > { %v2573_v61 = vpop.f32.mrf.mxu1  ;;  %v3933_v8 = vpack.c.bf16 %v3914_v54, %v3913_v20  ;;  %v3915_v54 = vld [vmem:[#allocation2 + $0x1e8] sm:$0xff] }
 0x311   : > { %v9997_v27 = vadd.f32 %v2573_v61, %v9848_v10  ;;  %v10011_v61 = vpop.f32.mrf.mxu0  ;;  %v3917_v20 = vld [vmem:[#allocation2 + $0x208] sm:$0xff] }
 0x312   : > { %v8058_v12 = vpop.f32.mrf.mxu1  ;;  %11223 = vst [vmem:[#allocation14_spill] sm:$0xff] %v10011_v61  ;;  %v3920_v61 = vld [vmem:[#allocation2 + $0x230] sm:$0xff] }
 0x313   : > { %v10000_v39 = vadd.f32 %v8058_v12, %v9851_v59  ;;  %v10019_v32 = vpop.f32.mrf.mxu0 }
 0x314   : > { %v10004_v4 = vpop.f32.mrf.mxu1  ;;  %11224 = vst [vmem:[#allocation27_spill] sm:$0xff] %v10019_v32 }
 0x316   : > { %v8061_v25 = vpop.f32.mrf.mxu1  ;;  %8240 = vmatmul.mubr.msk.bf16.gmra.mxu1 %vm1711_vm3, %v3932_v46 }
 0x317   : > { %v10008_v10 = vadd.f32 %v8061_v25, %v9861_v50  ;;  %8243 = vmatprep.mubr.msk.bf16.mxu1 %vm1711_vm3, %v3933_v8  ;;  %v3934_v50 = vpack.c.bf16 %v3916_v43, %v3915_v54  ;;  %v3935_v8 = vpack.c.bf16 %v3918_v60, %v3917_v20 }
 0x318   : > { %v2589_v59 = vpop.f32.mrf.mxu1 }
 0x319   : > { %v10014_v12 = vadd.f32 %v2589_v59, %v9868_v14  ;;  %v3919_v59 = vld [vmem:[#allocation2 + $0x228] sm:$0xff] }
 0x31a   : > { %v8062_v7 = vpop.f32.mrf.mxu1  ;;  %v3936_v43 = vpack.c.bf16 %v3920_v61, %v3919_v59 }
 0x31b   : > { %v10017_v3 = vadd.f32 %v8062_v7, %v9871_v31  ;;  %v10028_v31 = vpop.f32.mrf.mxu0 }
 0x31c   : > { %v10021_v46 = vpop.f32.mrf.mxu1  ;;  %11225 = vst [vmem:[#allocation12_spill] sm:$0xff] %v10028_v31 }
 0x31d   : > { %v10036_v54 = vpop.f32.mrf.mxu0 }
 0x31e   : > { %v8065_v25 = vpop.f32.mrf.mxu1  ;;  %8244 = vmatmul.mubr.msk.bf16.gmra.mxu1 %vm1711_vm3, %v3934_v50  ;;  %11226 = vst [vmem:[#allocation28_spill] sm:$0xff] %v10036_v54  ;;  %v11236_v54 = vmov 0.0  }
 0x31f   : > { %v10025_v14 = vadd.f32 %v8065_v25, %v9881_v34  ;;  %8247 = vmatprep.mubr.msk.bf16.mxu1 %vm1711_vm3, %v3935_v8  ;;  %v10044_v8 = vpop.f32.mrf.mxu0  ;;  %5420 = vst.msk [vmem:[#allocation3] sm:$0xff] %vm4570_vm4, %v11236_v54  ;;  %5421 = vst.msk [vmem:[#allocation3 + $0x8] sm:$0xff] %vm4570_vm4, %v11236_v54 }
 0x320   : > { %v2605_v7 = vpop.f32.mrf.mxu1  ;;  %11227 = vst [vmem:[#allocation29_spill] sm:$0xff] %v10044_v8  ;;  %5422 = vst.msk [vmem:[#allocation3 + $0x10] sm:$0xff] %vm4570_vm4, %v11236_v54 }
 0x321   : > { %v10031_v32 = vadd.f32 %v2605_v7, %v9888_v42  ;;  %5423 = vst.msk [vmem:[#allocation3 + $0x18] sm:$0xff] %vm4570_vm4, %v11236_v54  ;;  %5424 = vst.msk [vmem:[#allocation3 + $0x20] sm:$0xff] %vm4570_vm4, %v11236_v54 }
 0x322   : > { %v8066_v11 = vpop.f32.mrf.mxu1  ;;  %5425 = vst.msk [vmem:[#allocation3 + $0x28] sm:$0xff] %vm4570_vm4, %v11236_v54  ;;  %5426 = vst.msk [vmem:[#allocation3 + $0x30] sm:$0xff] %vm4570_vm4, %v11236_v54 }
 0x323   : > { %v10034_v60 = vadd.f32 %v8066_v11, %v9891_v48  ;;  %v10052_v11 = vpop.f32.mrf.mxu0  ;;  %5427 = vst.msk [vmem:[#allocation3 + $0x38] sm:$0xff] %vm4570_vm4, %v11236_v54  ;;  %5428 = vst.msk [vmem:[#allocation3 + $0x40] sm:$0xff] %vm4570_vm4, %v11236_v54 }
 0x324   : > { %v10038_v50 = vpop.f32.mrf.mxu1  ;;  %11228 = vst [vmem:[#allocation13_spill] sm:$0xff] %v10052_v11  ;;  %5429 = vst.msk [vmem:[#allocation3 + $0x48] sm:$0xff] %vm4570_vm4, %v11236_v54 }
 0x325   : > { %5430 = vst.msk [vmem:[#allocation3 + $0x50] sm:$0xff] %vm4570_vm4, %v11236_v54  ;;  %5431 = vst.msk [vmem:[#allocation3 + $0x58] sm:$0xff] %vm4570_vm4, %v11236_v54 }
 0x326   : > { %v8069_v34 = vpop.f32.mrf.mxu1  ;;  %8248 = vmatmul.mubr.msk.bf16.gmra.mxu1 %vm1711_vm3, %v3936_v43  ;;  %5432 = vst.msk [vmem:[#allocation3 + $0x60] sm:$0xff] %vm4570_vm4, %v11236_v54  ;;  %5433 = vst.msk [vmem:[#allocation3 + $0x68] sm:$0xff] %vm4570_vm4, %v11236_v54 }
 0x327   : > { %v10042_v20 = vadd.f32 %v8069_v34, %v9901_v30  ;;  %v10059_v30 = vpop.f32.mrf.mxu0  ;;  %5434 = vst.msk [vmem:[#allocation3 + $0x70] sm:$0xff] %vm4570_vm4, %v11236_v54  ;;  %5435 = vst.msk [vmem:[#allocation3 + $0x78] sm:$0xff] %vm4570_vm4, %v11236_v54 }
 0x328   : > { %v2621_v25 = vpop.f32.mrf.mxu1  ;;  %11231 = vst [vmem:[#allocation18_spill] sm:$0xff] %v10059_v30  ;;  %5436 = vst.msk [vmem:[#allocation3 + $0x80] sm:$0xff] %vm4570_vm4, %v11236_v54 }
 0x329   : > { %v10047_v42 = vadd.f32 %v2621_v25, %v9907_v55  ;;  %5437 = vst.msk [vmem:[#allocation3 + $0x88] sm:$0xff] %vm4570_vm4, %v11236_v54  ;;  %5438 = vst.msk [vmem:[#allocation3 + $0x90] sm:$0xff] %vm4570_vm4, %v11236_v54 }
 0x32a   : > { %v8070_v61 = vpop.f32.mrf.mxu1  ;;  %5439 = vst.msk [vmem:[#allocation3 + $0x98] sm:$0xff] %vm4570_vm4, %v11236_v54  ;;  %5440 = vst.msk [vmem:[#allocation3 + $0xa0] sm:$0xff] %vm4570_vm4, %v11236_v54 }
 0x32b   : > { %v10050_v48 = vadd.f32 %v8070_v61, %v9910_v17  ;;  %v10067_v17 = vpop.f32.mrf.mxu0  ;;  %5441 = vst.msk [vmem:[#allocation3 + $0xa8] sm:$0xff] %vm4570_vm4, %v11236_v54  ;;  %5442 = vst.msk [vmem:[#allocation3 + $0xb0] sm:$0xff] %vm4570_vm4, %v11236_v54 }
 0x32c   : > { %v10054_v59 = vpop.f32.mrf.mxu1  ;;  %11234 = vst [vmem:[#allocation5_spill] sm:$0xff] %v10067_v17  ;;  %5443 = vst.msk [vmem:[#allocation3 + $0xb8] sm:$0xff] %vm4570_vm4, %v11236_v54 }
 0x32d   : > { %11229 = vst [vmem:[#allocation30_spill] sm:$0xff] %v10054_v59  ;;  %5444 = vst.msk [vmem:[#allocation3 + $0xc0] sm:$0xff] %vm4570_vm4, %v11236_v54 }
 0x32e   : > { %v8077_v7 = vpop.f32.mrf.mxu1  ;;  %5445 = vst.msk [vmem:[#allocation3 + $0xc8] sm:$0xff] %vm4570_vm4, %v11236_v54  ;;  %5446 = vst.msk [vmem:[#allocation3 + $0xd0] sm:$0xff] %vm4570_vm4, %v11236_v54 }
 0x32f   : > { %v10057_v43 = vadd.f32 %v8077_v7, %v9919_v49  ;;  %5447 = vst.msk [vmem:[#allocation3 + $0xd8] sm:$0xff] %vm4570_vm4, %v11236_v54  ;;  %5448 = vst.msk [vmem:[#allocation3 + $0xe0] sm:$0xff] %vm4570_vm4, %v11236_v54 }
 0x330   : > { %v2814_v34 = vpop.f32.mrf.mxu1  ;;  %5449 = vst.msk [vmem:[#allocation3 + $0xe8] sm:$0xff] %vm4570_vm4, %v11236_v54 }
 0x331   : > { %11230 = vst [vmem:[#allocation15_spill] sm:$0xff] %v10057_v43  ;;  %v10062_v8 = vadd.f32 %v2814_v34, %v9925_v23  ;;  %v10134_v23 = vpop.f32.mrf.mxu0 }
 0x332   : > { %v8078_v55 = vpop.f32.mrf.mxu1  ;;  %11237 = vst [vmem:[#allocation17_spill] sm:$0xff] %v10134_v23 }
 0x333   : > { %11232 = vst [vmem:[#allocation31_spill] sm:$0xff] %v10062_v8  ;;  %v10065_v25 = vadd.f32 %v8078_v55, %v9928_v6  ;;  %v10142_v17 = vpop.f32.mrf.mxu0 }
 0x334   : > { %v10069_v61 = vpop.f32.mrf.mxu1  ;;  %11238 = vst [vmem:[#allocation19_spill] sm:$0xff] %v10142_v17 }
 0x335   : > { %11233 = vst [vmem:[#allocation16_spill] sm:$0xff] %v10065_v25  ;;  %11235 = vst [vmem:[#allocation32_spill] sm:$0xff] %v10069_v61 }
 0x336   : > { %v8081_v11 = vpop.f32.mrf.mxu1 }
 0x337   : > { %v10132_v49 = vadd.f32 %v8081_v11, %v9937_v26  ;;  %v10149_v26 = vpop.f32.mrf.mxu0 }
 0x338   : > { %v2830_v6 = vpop.f32.mrf.mxu1  ;;  %11239 = vst [vmem:[#allocation20_spill] sm:$0xff] %v10149_v26 }
 0x339   : > { %v10137_v7 = vadd.f32 %v2830_v6, %v9943_v45 }
 0x33a   : > { %v8082_v34 = vpop.f32.mrf.mxu1 }
 0x33b   : > { %v10140_v55 = vadd.f32 %v8082_v34, %v9946_v21  ;;  %v10157_v21 = vpop.f32.mrf.mxu0 }
 0x33c   : > { %v10144_v30 = vpop.f32.mrf.mxu1  ;;  %11240 = vst [vmem:[#allocation33_spill] sm:$0xff] %v10157_v21 }
 0x33e   : > { %v8085_v31 = vpop.f32.mrf.mxu1 }
 0x33f   : > { %v10147_v54 = vadd.f32 %v8085_v31, %v9955_v52  ;;  %v10164_v52 = vpop.f32.mrf.mxu0 }
 0x340   : > { %v2846_v11 = vpop.f32.mrf.mxu1  ;;  %11241 = vst [vmem:[#allocation34_spill] sm:$0xff] %v10164_v52 }
 0x341   : > { %v10152_v23 = vadd.f32 %v2846_v11, %v9961_v37 }
 0x342   : > { %v8086_v45 = vpop.f32.mrf.mxu1 }
 0x343   : > { %v10155_v6 = vadd.f32 %v8086_v45, %v9964_v29  ;;  %v10172_v29 = vpop.f32.mrf.mxu0 }
 0x344   : > { %v10159_v34 = vpop.f32.mrf.mxu1  ;;  %11242 = vst [vmem:[#allocation35_spill] sm:$0xff] %v10172_v29 }
 0x346   : > { %v8089_v17 = vpop.f32.mrf.mxu1 }
 0x347   : > { %v10162_v25 = vadd.f32 %v8089_v17, %v9973_v13  ;;  %v10179_v13 = vpop.f32.mrf.mxu0 }
 0x348   : > { %v2862_v31 = vpop.f32.mrf.mxu1  ;;  %11243 = vst [vmem:[#allocation36_spill] sm:$0xff] %v10179_v13 }
 0x349   : > { %v10167_v26 = vadd.f32 %v2862_v31, %v9979_v19 }
 0x34a   : > { %v8090_v37 = vpop.f32.mrf.mxu1 }
 0x34b   : > { %v10170_v11 = vadd.f32 %v8090_v37, %v9982_v51  ;;  %v10187_v51 = vpop.f32.mrf.mxu0 }
 0x34c   : > { %v10174_v45 = vpop.f32.mrf.mxu1  ;;  %11244 = vst [vmem:[#allocation37_spill] sm:$0xff] %v10187_v51 }
 0x34e   : > { %v8093_v21 = vpop.f32.mrf.mxu1 }
 0x34f   : > { %v10177_v8 = vadd.f32 %v8093_v21, %v9991_v58  ;;  %v10194_v58 = vpop.f32.mrf.mxu0 }
 0x350   : > { %v2878_v17 = vpop.f32.mrf.mxu1  ;;  %11245 = vst [vmem:[#allocation38_spill] sm:$0xff] %v10194_v58 }
 0x351   : > { %v10182_v52 = vadd.f32 %v2878_v17, %v9997_v27 }
 0x352   : > { %v8094_v19 = vpop.f32.mrf.mxu1 }
 0x353   : > { %v10185_v31 = vadd.f32 %v8094_v19, %v10000_v39  ;;  %v10202_v39 = vpop.f32.mrf.mxu0 }
 0x354   : > { %v10189_v37 = vpop.f32.mrf.mxu1  ;;  %11246 = vst [vmem:[#allocation39_spill] sm:$0xff] %v10202_v39 }
 0x356   : > { %v8097_v29 = vpop.f32.mrf.mxu1 }
 0x357   : > { %v10192_v43 = vadd.f32 %v8097_v29, %v10008_v10  ;;  %v10209_v10 = vpop.f32.mrf.mxu0 }
 0x358   : > { %v2894_v21 = vpop.f32.mrf.mxu1  ;;  %11247 = vst [vmem:[#allocation40_spill] sm:$0xff] %v10209_v10 }
 0x359   : > { %v10197_v13 = vadd.f32 %v2894_v21, %v10014_v12 }
 0x35a   : > { %v8098_v27 = vpop.f32.mrf.mxu1 }
 0x35b   : > { %v10200_v17 = vadd.f32 %v8098_v27, %v10017_v3  ;;  %v10217_v3 = vpop.f32.mrf.mxu0 }
 0x35c   : > { %v10204_v19 = vpop.f32.mrf.mxu1  ;;  %11249 = vst [vmem:[#allocation42_spill] sm:$0xff] %v10217_v3 }
 0x35e   : > { %v8101_v51 = vpop.f32.mrf.mxu1 }
 0x35f   : > { %v10207_v59 = vadd.f32 %v8101_v51, %v10025_v14  ;;  %v10224_v14 = vpop.f32.mrf.mxu0 }
 0x360   : > { %v2910_v29 = vpop.f32.mrf.mxu1  ;;  %11250 = vst [vmem:[#allocation43_spill] sm:$0xff] %v10224_v14 }
 0x361   : > { %v10212_v58 = vadd.f32 %v2910_v29, %v10031_v32 }
 0x362   : > { %v8102_v12 = vpop.f32.mrf.mxu1 }
 0x363   : > { %v10215_v21 = vadd.f32 %v8102_v12, %v10034_v60  ;;  %v10232_v60 = vpop.f32.mrf.mxu0 }
 0x364   : > { %v10219_v27 = vpop.f32.mrf.mxu1  ;;  %11252 = vst [vmem:[#allocation45_spill] sm:$0xff] %v10232_v60 }
 0x365   : > { %11248 = vst [vmem:[#allocation41_spill] sm:$0xff] %v10215_v21  ;;  %v10238_v21 = vpop.f32.mrf.mxu0 }
 0x366   : > { %v8105_v39 = vpop.f32.mrf.mxu1  ;;  %11254 = vst [vmem:[#allocation47_spill] sm:$0xff] %v10238_v21  ;;  %v3250_v21 = vadd.f32 %v9785_v44, %v10137_v7  ;;  %v3256_v44 = vadd.f32 %v9813_v41, %v10147_v54  ;;  %v3257_v41 = vadd.f32 %v9833_v40, %v10155_v6  ;;  %v3258_v6 = vadd.f32 %v9865_v18, %v10167_v26 }
 0x367   : > { %v10222_v61 = vadd.f32 %v8105_v39, %v10042_v20  ;;  %v10244_v14 = vpop.f32.mrf.mxu0  ;;  %v3264_v26 = vadd.f32 %v9893_v53, %v10177_v8 }
 0x368   : > { %v2926_v51 = vpop.f32.mrf.mxu1  ;;  %11257 = vst [vmem:[#allocation50_spill] sm:$0xff] %v10244_v14  ;;  %v3253_v14 = vadd.f32 %v9793_v15, %v10140_v55  ;;  %v3254_v15 = vadd.f32 %v9825_v47, %v10152_v23 }
 0x369   : > { %v10227_v10 = vadd.f32 %v2926_v51, %v10047_v42 }
 0x36a   : > { %v8106_v32 = vpop.f32.mrf.mxu1 }
 0x36b   : > { %v10230_v29 = vadd.f32 %v8106_v32, %v10050_v48  ;;  %v3252_v48 = vadd.f32 %v9773_v35, %v10132_v49  ;;  %v2946_v32 = vadd.f32 %v10144_v30, %v9951_v0 }
 0x36c   : > { %v10234_v12 = vpop.f32.mrf.mxu1 }
 0x36d   : > { %11251 = vst [vmem:[#allocation44_spill] sm:$0xff] %v10230_v29  ;;  %v10256_v29 = vpop.f32.mrf.mxu0  ;;  %v3251_v35 = vadd.f32 %v9805_v9, %v2946_v32 }
 0x36e   : > { %v10236_v3 = vpop.f32.mrf.mxu1 }
 0x36f   : > { %11253 = vst [vmem:[#allocation46_spill] sm:$0xff] %v10236_v3  ;;  %v10265_v49 = vpop.f32.mrf.mxu0 }
 0x370   : > { %v10240_v20 = vpop.f32.mrf.mxu1 }
 0x371   : > { %11255 = vst [vmem:[#allocation48_spill] sm:$0xff] %v10240_v20  ;;  %v10277_v55 = vpop.f32.mrf.mxu0 }
 0x372   : > { %v10242_v39 = vpop.f32.mrf.mxu1 }
 0x373   : > { %11256 = vst [vmem:[#allocation49_spill] sm:$0xff] %v10242_v39  ;;  %v10289_v47 = vpop.f32.mrf.mxu0 }
 0x374   : > { %v10246_v42 = vpop.f32.mrf.mxu1 }
 0x375   : > { %11258 = vst [vmem:[#allocation51_spill] sm:$0xff] %v10246_v42 }
 0x376   : > { %v8153_v51 = vpop.f32.mrf.mxu1 }
 0x377   : > { %v10252_v60 = vadd.f32 %v8153_v51, %v3252_v48  ;;  %v3260_v51 = vadd.f32 %v9853_v33, %v10162_v25 }
 0x378   : > { %v3440_v20 = vpop.f32.mrf.mxu1 }
 0x379   : > { %v10258_v39 = vadd.f32 %v3440_v20, %v3250_v21  ;;  %v2950_v21 = vadd.f32 %v10159_v34, %v9969_v38 }
 0x37a   : > { %v8154_v42 = vpop.f32.mrf.mxu1 }
 0x37b   : > { %v10262_v3 = vadd.f32 %v8154_v42, %v3253_v14  ;;  %v8527_v14 = vld [vmem:[%s11147_s5 + $0x38] sm:$0xff]   ;;  %v3255_v34 = vadd.f32 %v9845_v62, %v2950_v21 }
 0x37c   : > { %v3443_v0 = vpop.f32.mrf.mxu1  ;;  %8287 = vmatprep.subr.bf16.mxu1 %v8527_v14 }
 0x37d   : > { %v10267_v30 = vadd.f32 %v3443_v0, %v3251_v35  ;;  %8288 = vmatpush3.bf16.msra.mxu1 %v8527_v14  ;;  %v2954_v35 = vadd.f32 %v10174_v45, %v9987_v22  ;;  %v10301_v0 = vpop.f32.mrf.mxu0  ;;  %v2653_v45 = vadd.f32 %v10004_v4, %v9856_v28  ;;  %v3265_v28 = vadd.f32 %v9912_v16, %v10185_v31 }
 0x37e   : > { %v8157_v7 = vpop.f32.mrf.mxu1  ;;  %v3266_v31 = vadd.f32 %v9940_v36, %v10197_v13  ;;  %v11262_v13 = vld [vmem:[#allocation4_spill] sm:$0xff] }
 0x37f   : > { %v10273_v20 = vadd.f32 %v8157_v7, %v3256_v44  ;;  %v3261_v7 = vadd.f32 %v9873_v2, %v10170_v11  ;;  %v3259_v33 = vadd.f32 %v9885_v24, %v2954_v35  ;;  %v10310_v25 = vpop.f32.mrf.mxu0  ;;  %v2958_v14 = vadd.f32 %v10189_v37, %v2653_v45 }
 0x380   : > { %v3456_v9 = vpop.f32.mrf.mxu1  ;;  %v3262_v11 = vadd.f32 %v9904_v57, %v10182_v52  ;;  %v3268_v52 = vadd.f32 %v9930_v63, %v10192_v43  ;;  %v11259_v63 = vld [vmem:[#allocation24_spill] sm:$0xff] }
 0x381   : > { %v10282_v42 = vadd.f32 %v3456_v9, %v3254_v15  ;;  %v10323_v24 = vpop.f32.mrf.mxu0  ;;  %v3263_v53 = vadd.f32 %v9922_v56, %v2958_v14 }
 0x382   : > { %v8158_v54 = vpop.f32.mrf.mxu1 }
 0x383   : > { %v10286_v38 = vadd.f32 %v8158_v54, %v3257_v41  ;;  %v10332_v8 = vpop.f32.mrf.mxu0 }
 0x384   : > { %v3459_v23 = vpop.f32.mrf.mxu1 }
 0x385   : > { %v10291_v48 = vadd.f32 %v3459_v23, %v3255_v34  ;;  %v2657_v23 = vadd.f32 %v10021_v46, %v9876_v5  ;;  %v10345_v56 = vpop.f32.mrf.mxu0  ;;  %v3269_v5 = vadd.f32 %v9948_v1, %v10200_v17  ;;  %v11263_v17 = vld [vmem:[#allocation25_spill] sm:$0xff] }
 0x386   : > { %v8161_v32 = vpop.f32.mrf.mxu1 }
 0x387   : > { %v10297_v40 = vadd.f32 %v8161_v32, %v3260_v51  ;;  %v2962_v32 = vadd.f32 %v10204_v19, %v2657_v23 }
 0x388   : > { %v3472_v62 = vpop.f32.mrf.mxu1 }
 0x389   : > { %v10303_v44 = vadd.f32 %v3472_v62, %v3258_v6  ;;  %v3267_v43 = vadd.f32 %v11259_v63, %v2962_v32 }
 0x38a   : > { %v8162_v21 = vpop.f32.mrf.mxu1 }
 0x38b   : > { %v10307_v15 = vadd.f32 %v8162_v21, %v3261_v7  ;;  %v10354_v7 = vpop.f32.mrf.mxu0  ;;  %v11261_v21 = vld [vmem:[#allocation10_spill] sm:$0xff] }
 0x38c   : > { %v3475_v22 = vpop.f32.mrf.mxu1  ;;  %11260 = vst [vmem:[#allocation24_spill] sm:$0xff] %v10354_v7 }
 0x38d   : > { %v10314_v18 = vadd.f32 %v3475_v22, %v3259_v33  ;;  %v2661_v33 = vadd.f32 %v10038_v50, %v11261_v21  ;;  %v3272_v22 = vadd.f32 %v11262_v13, %v10207_v59  ;;  %v10367_v14 = vpop.f32.mrf.mxu0  ;;  %v11266_v50 = vld [vmem:[#allocation9_spill] sm:$0xff]  ;;  %v8528_v59 = vld [vmem:[%s11147_s5 + $0x30] sm:$0xff]   ;;  %v8575_v21 = vmov 1983009808  }
 0x38e   : > { %v8165_v9 = vpop.f32.mrf.mxu1  ;;  %11264 = vst [vmem:[#allocation10_spill] sm:$0xff] %v10367_v14  ;;  %8289 = vmatprep.subr.bf16.mxu1 %v8528_v59  ;;  %v11286_v14 = vld [vmem:[#allocation51_spill] sm:$0xff] }
 0x38f   : > { %v10319_v2 = vadd.f32 %v8165_v9, %v3264_v26  ;;  %v2966_v26 = vadd.f32 %v10219_v27, %v2661_v33  ;;  %v3270_v9 = vadd.f32 %v11263_v17, %v10212_v58  ;;  %v11267_v27 = vld [vmem:[#allocation26_spill] sm:$0xff]  ;;  %v11269_v58 = vld [vmem:[#allocation32_spill] sm:$0xff]  ;;  %v4637_v33 = vunpack.c.l.s4 %v8575_v21  ;;  %8290 = vmatpush3.bf16.msra.mxu1 %v8528_v59  ;;  %v11274_v17 = vld [vmem:[#allocation21_spill] sm:$0xff] }
 0x390   : > { %v3488_v41 = vpop.f32.mrf.mxu1  ;;  %v11280_v59 = vld [vmem:[#allocation7_spill] sm:$0xff] }
 0x391   : > { %v10325_v54 = vadd.f32 %v3488_v41, %v3262_v11  ;;  %v3271_v23 = vadd.f32 %v11267_v27, %v2966_v26  ;;  %v11273_v26 = vld [vmem:[#allocation15_spill] sm:$0xff]  ;;  %v11277_v27 = vld [vmem:[#allocation6_spill] sm:$0xff] }
 0x392   : > { %v8166_v4 = vpop.f32.mrf.mxu1 }
 0x393   : > { %v10329_v34 = vadd.f32 %v8166_v4, %v3265_v28  ;;  %v11265_v28 = vld [vmem:[#allocation41_spill] sm:$0xff] }
 0x394   : > { %v3491_v37 = vpop.f32.mrf.mxu1  ;;  %v3273_v4 = vadd.f32 %v11266_v50, %v11265_v28  ;;  %v11275_v28 = vld [vmem:[#allocation14_spill] sm:$0xff] }
 0x395   : > { %v10336_v57 = vadd.f32 %v3491_v37, %v3263_v53  ;;  %v3274_v50 = vadd.f32 %v11275_v28, %v10227_v10 }
 0x396   : > { %v8169_v51 = vpop.f32.mrf.mxu1 }
 0x397   : > { %v10341_v16 = vadd.f32 %v8169_v51, %v3268_v52  ;;  %v8257_v52 = vpop.f32.mrf.mxu0  ;;  %v11268_v51 = vld [vmem:[#allocation8_spill] sm:$0xff] }
 0x398   : > { %v3504_v35 = vpop.f32.mrf.mxu1  ;;  %v2942_v32 = vadd.f32 %v11269_v58, %v11268_v51  ;;  %v11279_v51 = vld [vmem:[#allocation22_spill] sm:$0xff] }
 0x399   : > { %v10347_v6 = vadd.f32 %v3504_v35, %v3266_v31  ;;  %v11270_v35 = vld [vmem:[#allocation23_spill] sm:$0xff] }
 0x39a   : > { %v8170_v46 = vpop.f32.mrf.mxu1 }
 0x39b   : > { %v10351_v62 = vadd.f32 %v8170_v46, %v3269_v5  ;;  %v11271_v5 = vld [vmem:[#allocation30_spill] sm:$0xff] }
 0x39c   : > { %v3507_v19 = vpop.f32.mrf.mxu1  ;;  %v2665_v46 = vadd.f32 %v11271_v5, %v11270_v35  ;;  %v11281_v5 = vld [vmem:[#allocation46_spill] sm:$0xff] }
 0x39d   : > { %v10358_v36 = vadd.f32 %v3507_v19, %v3267_v43  ;;  %v11272_v43 = vld [vmem:[#allocation11_spill] sm:$0xff] }
 0x39e   : > { %v8173_v45 = vpop.f32.mrf.mxu1  ;;  %v3276_v19 = vadd.f32 %v11272_v43, %v10222_v61  ;;  %v11278_v61 = vld [vmem:[#allocation16_spill] sm:$0xff] }
 0x39f   : > { %v10363_v1 = vadd.f32 %v8173_v45, %v3272_v22  ;;  %v4639_v22 = vlaneseq  ;;  %v2970_v45 = vadd.f32 %v10234_v12, %v2665_v46  ;;  %v3249_v58 = vadd.f32 %v11279_v51, %v11278_v61  ;;  %v11282_v43 = vld [vmem:[#allocation44_spill] sm:$0xff] }
 0x3a0   : > { %v3520_v11 = vpop.f32.mrf.mxu1 }
 0x3a1   : > { %v10369_v41 = vadd.f32 %v3520_v11, %v3270_v9  ;;  %v3248_v9 = vadd.f32 %v11274_v17, %v11273_v26  ;;  %v11284_v26 = vld [vmem:[#allocation48_spill] sm:$0xff]  ;;  %v11285_v17 = vld [vmem:[#allocation49_spill] sm:$0xff]  ;;  %v4640_v7 = vshrl.u32 %v4639_v22, 7 }
 0x3a2   : > { %v8174_v53 = vpop.f32.mrf.mxu1  ;;  %v3554_v28 = vadd.f32 %v11285_v17, %v3249_v58  ;;  %v11290_v58 = vld [vmem:[#allocation13_spill] sm:$0xff] }
 0x3a3   : > { %v10376_v37 = vadd.f32 %v8174_v53, %v3273_v4  ;;  %v4340_v4 = vpop.f32.mrf.mxu0  ;;  %v11276_v53 = vld [vmem:[#allocation31_spill] sm:$0xff]  ;;  %v3553_v12 = vadd.f32 %v11281_v5, %v3248_v9 }
 0x3a4   : > { %v3523_v31 = vpop.f32.mrf.mxu1 }
 0x3a5   : > { %v10383_v63 = vadd.f32 %v3523_v31, %v3271_v23  ;;  %v3246_v23 = vadd.f32 %v11277_v27, %v11276_v53  ;;  %v3247_v31 = vadd.f32 %v11280_v59, %v2942_v32  ;;  %v11287_v32 = vld [vmem:[#allocation12_spill] sm:$0xff]  ;;  %v8258_v59 = vpop.f32.mrf.mxu0 }
 0x3a6   : > { %v8177_v13 = vpop.f32.mrf.mxu1  ;;  %v3275_v51 = vadd.f32 %v11287_v32, %v2970_v45  ;;  %v11293_v45 = vld [vmem:[#allocation17_spill] sm:$0xff]  ;;  %v11294_v32 = vld [vmem:[#allocation19_spill] sm:$0xff] }
 0x3a7   : > { %v10390_v11 = vadd.f32 %v8177_v13, %v3276_v19  ;;  %v11283_v19 = vld [vmem:[#allocation27_spill] sm:$0xff]  ;;  %v4638_v13 = vunpack.c.0.s8 %v4637_v33  ;;  %v3551_v10 = vadd.f32 %v11284_v26, %v3246_v23  ;;  %v3552_v53 = vadd.f32 %v11286_v14, %v3247_v31  ;;  %v11289_v33 = vld [vmem:[#allocation29_spill] sm:$0xff]  ;;  %v11291_v14 = vld [vmem:[#allocation18_spill] sm:$0xff] }
 0x3a8   : > { %v3536_v35 = vpop.f32.mrf.mxu1  ;;  %v3277_v21 = vadd.f32 %v11283_v19, %v11282_v43  ;;  %v3860_v26 = vadd.f32 %v11290_v58, %v3554_v28 }
 0x3a9   : > { %v10400_v46 = vadd.f32 %v3536_v35, %v3274_v50  ;;  %v11288_v35 = vld [vmem:[#allocation28_spill] sm:$0xff]  ;;  %v3857_v19 = vadd.f32 %v11289_v33, %v3551_v10  ;;  %v10414_v23 = vsub.s32 %v4638_v13, %v4640_v7  ;;  %v3858_v31 = vadd.f32 %v11291_v14, %v3552_v53  ;;  %v10427_v7 = vld [vmem:[%s11146_s4] ss:$0 sm:$0xff]  ;;  %v11296_v53 = vld [vmem:[#allocation33_spill] sm:$0xff] }
 0x3aa   : > { %v8178_v27 = vpop.f32.mrf.mxu1  ;;  %v3859_v5 = vadd.f32 %v11288_v35, %v3553_v12  ;;  %v4343_v12 = vpop.f32.mrf.mxu0  ;;  %v11295_v10 = vld [vmem:[#allocation20_spill] sm:$0xff] }
 0x3ab   : > { %v10407_v61 = vadd.f32 %v8178_v27, %v3277_v21  ;;  %v11292_v21 = vld [vmem:[#allocation5_spill] sm:$0xff]  ;;  %v3861_v27 = vadd.f32 %v11293_v45, %v10258_v39  ;;  %v10431_v28 = vadd.f32 %v11295_v10, %v10267_v30  ;;  %v11297_v39 = vld [vmem:[#allocation34_spill] sm:$0xff]  ;;  %v11299_v33 = vld [vmem:[#allocation36_spill] sm:$0xff] }
 0x3ac   : > { %v3539_v9 = vpop.f32.mrf.mxu1  ;;  %v3863_v17 = vadd.f32 %v11292_v21, %v10252_v60  ;;  %v10435_v60 = vadd.f32 %v11296_v53, %v10273_v20  ;;  %v10447_v58 = vadd.f32 %v11299_v33, %v10291_v48  ;;  %v11300_v30 = vld [vmem:[#allocation37_spill] sm:$0xff]  ;;  %v11301_v21 = vld [vmem:[#allocation38_spill] sm:$0xff]  ;;  %v8261_v53 = vpop.f32.mrf.mxu0 }
 0x3ad   : > { %v10410_v50 = vadd.f32 %v3539_v9, %v3275_v51  ;;  %v3864_v51 = vadd.f32 %v11294_v32, %v10262_v3  ;;  %v10439_v9 = vadd.f32 %v11297_v39, %v10282_v42  ;;  %v11298_v3 = vld [vmem:[#allocation35_spill] sm:$0xff]  ;;  %v10451_v14 = vadd.f32 %v11300_v30, %v10297_v40  ;;  %v11304_v48 = vld [vmem:[#allocation42_spill] sm:$0xff]  ;;  %v11306_v39 = vld [vmem:[#allocation45_spill] sm:$0xff] }
 0x3ae   : > { %v8221_v43 = vpop.f32.mrf.mxu1  ;;  %v10443_v35 = vadd.f32 %v11298_v3, %v10286_v38  ;;  %v10455_v45 = vadd.f32 %v11301_v21, %v10303_v44  ;;  %v11302_v42 = vld [vmem:[#allocation39_spill] sm:$0xff]  ;;  %v11303_v38 = vld [vmem:[#allocation40_spill] sm:$0xff]  ;;  %v10476_v3 = vadd.f32 %v11306_v39, %v10329_v34  ;;  %v10493_v34 = vadd.f32 %v10265_v49, %v10351_v62  ;;  %v4356_v62 = vpop.f32.mrf.mxu0 }
 0x3af   : > { %v4164_v22 = vadd.f32 %v8221_v43, %v3859_v5  ;;  %v10459_v32 = vadd.f32 %v11302_v42, %v10307_v15  ;;  %v11305_v44 = vld [vmem:[#allocation43_spill] sm:$0xff]  ;;  %v10510_v49 = vadd.f32 %v10310_v25, %v10376_v37 }
 0x3b0   : > { %v4035_v13 = vpop.f32.mrf.mxu1  ;;  %v10472_v10 = vadd.f32 %v11305_v44, %v10325_v54 }
 0x3b1   : > { %v4469_v5 = vadd.f32 %v8257_v52, %v4164_v22  ;;  %v4162_v43 = vadd.f32 %v4035_v13, %v3857_v19  ;;  %v10463_v52 = vadd.f32 %v11303_v38, %v10314_v18  ;;  %v10467_v19 = vadd.f32 %v11304_v48, %v10319_v2  ;;  %v11307_v18 = vld [vmem:[#allocation47_spill] sm:$0xff]  ;;  %v11308_v2 = vld [vmem:[#allocation50_spill] sm:$0xff] }
 0x3b2   : > { %v8222_v20 = vpop.f32.mrf.mxu1  ;;  %v10480_v33 = vadd.f32 %v11307_v18, %v10336_v57  ;;  %v10497_v57 = vadd.f32 %v10277_v55, %v10358_v36 }
 0x3b3   : > { %v4508_v40 = vadd.f32 %v10427_v7, %v4469_v5  ;;  %v4467_v22 = vadd.f32 %v4340_v4, %v4162_v43  ;;  %v4165_v13 = vadd.f32 %v8222_v20, %v3860_v26  ;;  %v10484_v5 = vadd.f32 %v11308_v2, %v10341_v16 }
 0x3b4   : > { %v4038_v15 = vpop.f32.mrf.mxu1  ;;  %v10488_v4 = vadd.f32 %v10256_v29, %v10347_v6  ;;  %v10501_v16 = vadd.f32 %v10289_v47, %v10363_v1  ;;  %v10505_v29 = vadd.f32 %v10301_v0, %v10369_v41  ;;  %v10515_v47 = vadd.f32 %v10323_v24, %v10383_v63  ;;  %v11309_v24 = vld [vmem:[#allocation24_spill] sm:$0xff] }
 0x3b5   : > { %v4540_v54 = vmax.f32 %v4508_v40, 0.0  ;;  %v4506_v26 = vadd.f32 %v10427_v7, %v4467_v22  ;;  %v4470_v43 = vadd.f32 %v8258_v59, %v4165_v13  ;;  %v4163_v30 = vadd.f32 %v4038_v15, %v3858_v31  ;;  %v11310_v40 = vld [vmem:[#allocation10_spill] sm:$0xff]  ;;  %v8262_v13 = vpop.f32.mrf.mxu0 }
 0x3b6   : > { %v8225_v20 = vpop.f32.mrf.mxu1  ;;  %v10519_v0 = vadd.f32 %v10332_v8, %v10390_v11  ;;  %v10529_v63 = vadd.f32 %v11309_v24, %v10407_v61  ;;  %v10533_v22 = vadd.f32 %v11310_v40, %v10410_v50 }
 0x3b7   : > { %v4538_v6 = vmax.f32 %v4506_v26, 0.0  ;;  %v4509_v59 = vadd.f32 %v10427_v7, %v4470_v43  ;;  %v4468_v31 = vadd.f32 %v4343_v12, %v4163_v30  ;;  %v4572_v55 = vsel %vm4570_vm4, %v4540_v54, -inf }
 0x3b8   : > { %v4168_v36 = vadd.f32 %v8225_v20, %v3863_v17  ;;  %v4051_v21 = vpop.f32.mrf.mxu1  ;;  %v10525_v17 = vadd.f32 %v10345_v56, %v10400_v46 }
 0x3b9   : > { %v4571_v1 = vsel %vm4570_vm4, %v4538_v6, -inf  ;;  %v4541_v41 = vmax.f32 %v4509_v59, 0.0  ;;  %v4507_v12 = vadd.f32 %v10427_v7, %v4468_v31  ;;  %v4166_v25 = vadd.f32 %v4051_v21, %v3861_v27 }
 0x3ba   : > { %v4573_v37 = vmax.f32 %v4571_v1, %v4572_v55  ;;  %v4473_v42 = vadd.f32 %v8261_v53, %v4168_v36  ;;  %v8226_v38 = vpop.f32.mrf.mxu1 }
 0x3bb   : > { %v4539_v48 = vmax.f32 %v4507_v12, 0.0  ;;  %v4471_v8 = vadd.f32 %v4356_v62, %v4166_v25  ;;  %v4169_v11 = vadd.f32 %v8226_v38, %v3864_v51  ;;  %v4575_v53 = vsel %vm4570_vm4, %v4541_v41, -inf }
 0x3bc   : > { %v4635_v27 = vcombine.high %v4573_v37, %v4573_v37  ;;  %v4642_v44 = vrot.slane %v4573_v37, %v10414_v23  ;;  %v4512_v56 = vadd.f32 %v10427_v7, %v4473_v42  ;;  %v4054_v46 = vpop.f32.mrf.mxu1 }
 0x3bd   : > { %v4574_v15 = vsel %vm4570_vm4, %v4539_v48, -inf  ;;  %v4510_v61 = vadd.f32 %v10427_v7, %v4471_v8  ;;  %v4474_v39 = vadd.f32 %v8262_v13, %v4169_v11  ;;  %v10541_v51 = vadd.f32 %v4054_v46, %v10431_v28 }
 0x3be   : > { %v4649_v50 = vrot.slane %v4635_v27, %v10414_v23  ;;  %v4650_v18 = vcombine.high %v4642_v44, %v4642_v44  ;;  %v4972_v2 = vsel %vm4971_vm5, %v4642_v44, -inf  ;;  %v4576_v54 = vmax.f32 %v4574_v15, %v4575_v53 }
 0x3bf   : > { %v4973_v26 = vrot.slane %v4972_v2, 4  ;;  %v4544_v43 = vmax.f32 %v4512_v56, 0.0  ;;  %v4542_v30 = vmax.f32 %v4510_v61, 0.0  ;;  %v10546_v20 = vadd.f32 %v10427_v7, %v4474_v39 }
 0x3c0   : > { %v4651_v6 = vcombine.high %v4649_v50, %v4649_v50  ;;  %v4979_v59 = vsel %vm4971_vm5, %v4650_v18, -inf  ;;  %v4986_v31 = vsel %vm4971_vm5, %v4649_v50, -inf  ;;  %v4652_v62 = vcombine.high %v4576_v54, %v4576_v54 }
 0x3c1   : > { %v4974_v28 = vmax.f32 %v4972_v2, %v4973_v26  ;;  %v4980_v55 = vrot.slane %v4979_v59, 4  ;;  %v4987_v36 = vrot.slane %v4986_v31, 4  ;;  %v4659_v21 = vrot.slane %v4576_v54, %v10414_v23  ;;  %v8529_v54 = vld [vmem:[%s11147_s5 + $0x28] sm:$0xff]   ;;  %v8530_v26 = vld [vmem:[%s11147_s5 + $0x98] sm:$0xff]  }
 0x3c2   : > { %v4993_v1 = vsel %vm4971_vm5, %v4651_v6, -inf  ;;  %v4666_v41 = vrot.slane %v4652_v62, %v10414_v23  ;;  %v4578_v12 = vsel %vm4570_vm4, %v4544_v43, -inf  ;;  %v4577_v25 = vsel %vm4570_vm4, %v4542_v30, -inf  ;;  %8291 = vmatprep.subr.bf16.mxu1 %v8529_v54  ;;  %8351 = vmatprep.subr.bf16.mxu0 %v8530_v26 }
 0x3c3   : > { %v4975_v37 = vrot.slane %v4974_v28, 2  ;;  %v4981_v42 = vmax.f32 %v4979_v59, %v4980_v55  ;;  %v4988_v38 = vmax.f32 %v4986_v31, %v4987_v36  ;;  %v4994_v24 = vrot.slane %v4993_v1, 4  ;;  %8292 = vmatpush3.bf16.msra.mxu1 %v8529_v54  ;;  %8352 = vmatpush3.bf16.msra.mxu0 %v8530_v26 }
 0x3c4   : > { %v4667_v48 = vcombine.high %v4659_v21, %v4659_v21  ;;  %v4668_v8 = vcombine.high %v4666_v41, %v4666_v41  ;;  %v5000_v11 = vsel %vm4971_vm5, %v4659_v21, -inf  ;;  %v5014_v40 = vsel %vm4971_vm5, %v4666_v41, -inf }
 0x3c5   : > { %v4976_v13 = vmax.f32 %v4974_v28, %v4975_v37  ;;  %v4982_v27 = vrot.slane %v4981_v42, 2  ;;  %v4989_v44 = vrot.slane %v4988_v38, 2  ;;  %v4995_v53 = vmax.f32 %v4993_v1, %v4994_v24 }
 0x3c6   : > { %v5001_v56 = vrot.slane %v5000_v11, 4  ;;  %v5007_v46 = vsel %vm4971_vm5, %v4667_v48, -inf  ;;  %v5015_v15 = vrot.slane %v5014_v40, 4  ;;  %v5021_v61 = vsel %vm4971_vm5, %v4668_v8, -inf }
 0x3c7   : > { %v4977_v39 = vrot.slane %v4976_v13, 1  ;;  %v4983_v50 = vmax.f32 %v4981_v42, %v4982_v27  ;;  %v4990_v18 = vmax.f32 %v4988_v38, %v4989_v44  ;;  %v4996_v2 = vrot.slane %v4995_v53, 2 }
 0x3c8   : > { %v5002_v43 = vmax.f32 %v5000_v11, %v5001_v56  ;;  %v5008_v30 = vrot.slane %v5007_v46, 4  ;;  %v5016_v6 = vmax.f32 %v5014_v40, %v5015_v15  ;;  %v5022_v59 = vrot.slane %v5021_v61, 4 }
 0x3c9   : > { %v4978_v31 = vmax.f32 %v4976_v13, %v4977_v39  ;;  %v4984_v62 = vrot.slane %v4983_v50, 1  ;;  %v4991_v28 = vrot.slane %v4990_v18, 1  ;;  %v4997_v55 = vmax.f32 %v4995_v53, %v4996_v2  ;;  %v4359_v13 = vpop.f32.mrf.mxu0 }
 0x3ca   : > { %v5003_v36 = vrot.slane %v5002_v43, 2  ;;  %v5009_v21 = vmax.f32 %v5007_v46, %v5008_v30  ;;  %v5017_v1 = vrot.slane %v5016_v6, 2  ;;  %v5023_v41 = vmax.f32 %v5021_v61, %v5022_v59  ;;  %v8229_v46 = vpop.f32.mrf.mxu1 }
 0x3cb   : > { %v4985_v37 = vmax.f32 %v4983_v50, %v4984_v62  ;;  %v4992_v42 = vmax.f32 %v4990_v18, %v4991_v28  ;;  %v4998_v38 = vrot.slane %v4997_v55, 1  ;;  %v4579_v24 = vmax.f32 %v4577_v25, %v4578_v12 }
 0x3cc   : > { %v5004_v48 = vmax.f32 %v5002_v43, %v5003_v36  ;;  %v5010_v8 = vrot.slane %v5009_v21, 2  ;;  %v5018_v11 = vmax.f32 %v5016_v6, %v5017_v1  ;;  %v5024_v40 = vrot.slane %v5023_v41, 2  ;;  %v8265_v6 = vpop.f32.mrf.mxu0 }
 0x3cd   : > { %v4999_v27 = vmax.f32 %v4997_v55, %v4998_v38  ;;  %v5515_v44 = vsel %vm5514_vm6, %v4985_v37, %v4978_v31  ;;  %v4669_v53 = vcombine.high %v4579_v24, %v4579_v24  ;;  %v4676_v56 = vrot.slane %v4579_v24, %v10414_v23  ;;  %v4067_v55 = vpop.f32.mrf.mxu1 }
 0x3ce   : > { %v5517_v15 = vsel %vm5516_vm7, %v4992_v42, %v5515_v44  ;;  %v5005_v61 = vrot.slane %v5004_v48, 1  ;;  %v5011_v39 = vmax.f32 %v5009_v21, %v5010_v8  ;;  %v5019_v50 = vrot.slane %v5018_v11, 1  ;;  %v8532_v44 = vld [vmem:[%s11147_s5 + $0x90] sm:$0xff]  }
 0x3cf   : > { %v5025_v18 = vmax.f32 %v5023_v41, %v5024_v40  ;;  %v5519_v12 = vsel %vm5518_vm8, %v4999_v27, %v5517_v15  ;;  %v4683_v25 = vrot.slane %v4669_v53, %v10414_v23  ;;  %v4684_v2 = vcombine.high %v4676_v56, %v4676_v56  ;;  %v8531_v27 = vld [vmem:[%s11147_s5 + $0x20] sm:$0xff]   ;;  %v4372_v53 = vpop.f32.mrf.mxu0  ;;  %8353 = vmatprep.subr.bf16.mxu0 %v8532_v44 }
 0x3d0   : > { %v5006_v54 = vmax.f32 %v5004_v48, %v5005_v61  ;;  %v5012_v26 = vrot.slane %v5011_v39, 1  ;;  %v5020_v43 = vmax.f32 %v5018_v11, %v5019_v50  ;;  %v5028_v30 = vsel %vm4971_vm5, %v4676_v56, -inf  ;;  %v8230_v50 = vpop.f32.mrf.mxu1  ;;  %8293 = vmatprep.subr.bf16.mxu1 %v8531_v27  ;;  %8354 = vmatpush3.bf16.msra.mxu0 %v8532_v44 }
 0x3d1   : > { %v5026_v59 = vrot.slane %v5025_v18, 1  ;;  %v4685_v31 = vcombine.high %v4683_v25, %v4683_v25  ;;  %v5029_v62 = vrot.slane %v5028_v30, 4  ;;  %v5035_v28 = vsel %vm4971_vm5, %v4684_v2, -inf  ;;  %8294 = vmatpush3.bf16.msra.mxu1 %v8531_v27 }
 0x3d2   : > { %v5013_v36 = vmax.f32 %v5011_v39, %v5012_v26  ;;  %v5521_v21 = vsel %vm5520_vm9, %v5006_v54, %v5519_v12  ;;  %v5036_v1 = vrot.slane %v5035_v28, 4  ;;  %v5042_v41 = vsel %vm4971_vm5, %v4683_v25, -inf }
 0x3d3   : > { %v5027_v37 = vmax.f32 %v5025_v18, %v5026_v59  ;;  %v5030_v42 = vmax.f32 %v5028_v30, %v5029_v62  ;;  %v5043_v38 = vrot.slane %v5042_v41, 4  ;;  %v5049_v24 = vsel %vm4971_vm5, %v4685_v31, -inf  ;;  %v8266_v31 = vpop.f32.mrf.mxu0 }
 0x3d4   : > { %v5523_v48 = vsel %vm5522_vm10, %v5013_v36, %v5521_v21  ;;  %v5037_v8 = vmax.f32 %v5035_v28, %v5036_v1  ;;  %v5050_v11 = vrot.slane %v5049_v24, 4  ;;  %v4545_v40 = vmax.f32 %v10546_v20, 0.0 }
 0x3d5   : > { %v5525_v56 = vsel %vm5524_vm11, %v5020_v43, %v5523_v48  ;;  %v5031_v15 = vrot.slane %v5030_v42, 2  ;;  %v5044_v61 = vmax.f32 %v5042_v41, %v5043_v38  ;;  %v4472_v39 = vadd.f32 %v4359_v13, %v10541_v51  ;;  %v4070_v38 = vpop.f32.mrf.mxu1 }
 0x3d6   : > { %v5527_v18 = vsel %vm5526_vm12, %v5027_v37, %v5525_v56  ;;  %v5038_v12 = vrot.slane %v5037_v8, 2  ;;  %v5051_v20 = vmax.f32 %v5049_v24, %v5050_v11  ;;  %v4581_v25 = vsel %vm4570_vm4, %v4545_v40, -inf }
 0x3d7   : > { %5586 = vst.msk [vmem:[#allocation3 + $0x20] sm:$0xff] %vm4570_vm4, %v5527_v18  ;;  %v5032_v2 = vmax.f32 %v5030_v42, %v5031_v15  ;;  %v5045_v54 = vrot.slane %v5044_v61, 2  ;;  %v4511_v26 = vadd.f32 %v10427_v7, %v4472_v39  ;;  %v4172_v43 = vadd.f32 %v8229_v46, %v10435_v60 }
 0x3d8   : > { %v5039_v51 = vmax.f32 %v5037_v8, %v5038_v12  ;;  %v5052_v13 = vrot.slane %v5051_v20, 2  ;;  %v4170_v30 = vadd.f32 %v4067_v55, %v10439_v9  ;;  %v4173_v59 = vadd.f32 %v8230_v50, %v10443_v35 }
 0x3d9   : > { %v5033_v62 = vrot.slane %v5032_v2, 1  ;;  %v5046_v28 = vmax.f32 %v5044_v61, %v5045_v54  ;;  %v4543_v36 = vmax.f32 %v4511_v26, 0.0  ;;  %v4477_v21 = vadd.f32 %v8265_v6, %v4172_v43  ;;  %v8533_v6 = vld [vmem:[%s11147_s5 + $0x88] sm:$0xff]   ;;  %v8534_v26 = vld [vmem:[%s11147_s5 + $0x80] sm:$0xff]  }
 0x3da   : > { %v5040_v1 = vrot.slane %v5039_v51, 1  ;;  %v5053_v41 = vmax.f32 %v5051_v20, %v5052_v13  ;;  %v4475_v37 = vadd.f32 %v4372_v53, %v4170_v30  ;;  %v4478_v42 = vadd.f32 %v8266_v31, %v4173_v59  ;;  %8355 = vmatprep.subr.bf16.mxu0 %v8533_v6  ;;  %v4375_v20 = vpop.f32.mrf.mxu0  ;;  %v8233_v59 = vpop.f32.mrf.mxu1 }
 0x3db   : > { %v5034_v24 = vmax.f32 %v5032_v2, %v5033_v62  ;;  %v5047_v60 = vrot.slane %v5046_v28, 1  ;;  %v4580_v46 = vsel %vm4570_vm4, %v4543_v36, -inf  ;;  %v4516_v48 = vadd.f32 %v10427_v7, %v4477_v21  ;;  %8356 = vmatpush3.bf16.msra.mxu0 %v8533_v6 }
 0x3dc   : > { %v5041_v8 = vmax.f32 %v5039_v51, %v5040_v1  ;;  %v5054_v9 = vrot.slane %v5053_v41, 1  ;;  %v4582_v55 = vmax.f32 %v4580_v46, %v4581_v25  ;;  %v4514_v35 = vadd.f32 %v10427_v7, %v4475_v37  ;;  %8357 = vmatprep.subr.bf16.mxu0 %v8534_v26 }
 0x3dd   : > { %v5048_v11 = vmax.f32 %v5046_v28, %v5047_v60  ;;  %v4548_v40 = vmax.f32 %v4516_v48, 0.0  ;;  %v4517_v27 = vadd.f32 %v10427_v7, %v4478_v42  ;;  %v4171_v44 = vadd.f32 %v4070_v38, %v10447_v58 }
 0x3de   : > { %v5055_v53 = vmax.f32 %v5053_v41, %v5054_v9  ;;  %v5528_v56 = vsel %vm5514_vm6, %v5041_v8, %v5034_v24  ;;  %v4686_v15 = vcombine.high %v4582_v55, %v4582_v55  ;;  %v4693_v61 = vrot.slane %v4582_v55, %v10414_v23 }
 0x3df   : > { %v5529_v39 = vsel %vm5516_vm7, %v5048_v11, %v5528_v56  ;;  %v4584_v50 = vsel %vm4570_vm4, %v4548_v40, -inf  ;;  %v4546_v18 = vmax.f32 %v4514_v35, 0.0  ;;  %v4549_v12 = vmax.f32 %v4517_v27, 0.0  ;;  %8358 = vmatpush3.bf16.msra.mxu0 %v8534_v26 }
 0x3e0   : > { %v4700_v25 = vrot.slane %v4686_v15, %v10414_v23  ;;  %v4701_v2 = vcombine.high %v4693_v61, %v4693_v61  ;;  %v5056_v58 = vsel %vm4971_vm5, %v4693_v61, -inf  ;;  %v5530_v54 = vsel %vm5518_vm8, %v5055_v53, %v5529_v39 }
 0x3e1   : > { %v5057_v43 = vrot.slane %v5056_v58, 4  ;;  %v4583_v51 = vsel %vm4570_vm4, %v4546_v18, -inf  ;;  %v10612_v13 = vsel %vm4570_vm4, %v4549_v12, -inf  ;;  %v4476_v30 = vadd.f32 %v4375_v20, %v4171_v44 }
 0x3e2   : > { %v4702_v31 = vcombine.high %v4700_v25, %v4700_v25  ;;  %v5063_v62 = vsel %vm4971_vm5, %v4701_v2, -inf  ;;  %v5070_v28 = vsel %vm4971_vm5, %v4700_v25, -inf  ;;  %v4585_v36 = vmax.f32 %v4583_v51, %v4584_v50 }
 0x3e3   : > { %v5058_v21 = vmax.f32 %v5056_v58, %v5057_v43  ;;  %v5064_v1 = vrot.slane %v5063_v62, 4  ;;  %v5071_v41 = vrot.slane %v5070_v28, 4  ;;  %v4515_v37 = vadd.f32 %v10427_v7, %v4476_v30 }
 0x3e4   : > { %v5077_v42 = vsel %vm4971_vm5, %v4702_v31, -inf  ;;  %v4703_v38 = vcombine.high %v4585_v36, %v4585_v36  ;;  %v4710_v24 = vrot.slane %v4585_v36, %v10414_v23  ;;  %v4176_v60 = vadd.f32 %v8233_v59, %v10451_v14 }
 0x3e5   : > { %v5059_v46 = vrot.slane %v5058_v21, 2  ;;  %v5065_v48 = vmax.f32 %v5063_v62, %v5064_v1  ;;  %v5072_v8 = vmax.f32 %v5070_v28, %v5071_v41  ;;  %v5078_v9 = vrot.slane %v5077_v42, 4 }
 0x3e6   : > { %v4717_v55 = vrot.slane %v4703_v38, %v10414_v23  ;;  %v4718_v35 = vcombine.high %v4710_v24, %v4710_v24  ;;  %v5084_v6 = vsel %vm4971_vm5, %v4710_v24, -inf  ;;  %v4547_v11 = vmax.f32 %v4515_v37, 0.0  ;;  %v4083_v37 = vpop.f32.mrf.mxu1 }
 0x3e7   : > { %v5060_v40 = vmax.f32 %v5058_v21, %v5059_v46  ;;  %v5066_v27 = vrot.slane %v5065_v48, 2  ;;  %v5073_v44 = vrot.slane %v5072_v8, 2  ;;  %v5079_v53 = vmax.f32 %v5077_v42, %v5078_v9  ;;  %v8269_v42 = vpop.f32.mrf.mxu0 }
 0x3e8   : > { %v4719_v56 = vcombine.high %v4717_v55, %v4717_v55  ;;  %v5085_v15 = vrot.slane %v5084_v6, 4  ;;  %v5091_v61 = vsel %vm4971_vm5, %v4718_v35, -inf  ;;  %v5098_v14 = vsel %vm4971_vm5, %v4717_v55, -inf }
 0x3e9   : > { %v5061_v39 = vrot.slane %v5060_v40, 1  ;;  %v5067_v50 = vmax.f32 %v5065_v48, %v5066_v27  ;;  %v5074_v18 = vmax.f32 %v5072_v8, %v5073_v44  ;;  %v5080_v12 = vrot.slane %v5079_v53, 2 }
 0x3ea   : > { %v5086_v20 = vmax.f32 %v5084_v6, %v5085_v15  ;;  %v5092_v25 = vrot.slane %v5091_v61, 4  ;;  %v5099_v2 = vrot.slane %v5098_v14, 4  ;;  %v5105_v58 = vsel %vm4971_vm5, %v4719_v56, -inf }
 0x3eb   : > { %v5062_v26 = vmax.f32 %v5060_v40, %v5061_v39  ;;  %v5068_v43 = vrot.slane %v5067_v50, 1  ;;  %v5075_v51 = vrot.slane %v5074_v18, 1  ;;  %v5081_v30 = vmax.f32 %v5079_v53, %v5080_v12 }
 0x3ec   : > { %v5087_v59 = vrot.slane %v5086_v20, 2  ;;  %v5093_v31 = vmax.f32 %v5091_v61, %v5092_v25  ;;  %v5100_v62 = vmax.f32 %v5098_v14, %v5099_v2  ;;  %v5106_v28 = vrot.slane %v5105_v58, 4  ;;  %v8234_v61 = vpop.f32.mrf.mxu1 }
 0x3ed   : > { %v5069_v36 = vmax.f32 %v5067_v50, %v5068_v43  ;;  %v5076_v21 = vmax.f32 %v5074_v18, %v5075_v51  ;;  %v5082_v1 = vrot.slane %v5081_v30, 1  ;;  %v5531_v41 = vsel %vm5520_vm9, %v5062_v26, %v5530_v54  ;;  %v10639_v43 = vld [vmem:[%s11147_s5 + $0x18] sm:$0xff]  }
 0x3ee   : > { %v5088_v38 = vmax.f32 %v5086_v20, %v5087_v59  ;;  %v5094_v24 = vrot.slane %v5093_v31, 2  ;;  %v5101_v46 = vrot.slane %v5100_v62, 2  ;;  %v5107_v48 = vmax.f32 %v5105_v58, %v5106_v28  ;;  %8303 = vmatprep.subr.bf16.mxu1 %v10639_v43 }
 0x3ef   : > { %v5083_v8 = vmax.f32 %v5081_v30, %v5082_v1  ;;  %v5532_v9 = vsel %vm5522_vm10, %v5069_v36, %v5531_v41  ;;  %v4586_v55 = vsel %vm4570_vm4, %v4547_v11, -inf  ;;  %v4481_v35 = vadd.f32 %v8269_v42, %v4176_v60  ;;  %v4388_v11 = vpop.f32.mrf.mxu0 }
 0x3f0   : > { %v5533_v6 = vsel %vm5524_vm11, %v5076_v21, %v5532_v9  ;;  %v5089_v40 = vrot.slane %v5088_v38, 1  ;;  %v5095_v27 = vmax.f32 %v5093_v31, %v5094_v24  ;;  %v5102_v44 = vmax.f32 %v5100_v62, %v5101_v46  ;;  %v4086_v31 = vpop.f32.mrf.mxu1 }
 0x3f1   : > { %v5534_v53 = vsel %vm5526_vm12, %v5083_v8, %v5533_v6  ;;  %v5108_v54 = vrot.slane %v5107_v48, 2  ;;  %v4588_v56 = vmax.f32 %v4586_v55, %v10612_v13  ;;  %v4520_v15 = vadd.f32 %v10427_v7, %v4481_v35  ;;  %v8270_v42 = vpop.f32.mrf.mxu0 }
 0x3f2   : > { %5587 = vst.msk [vmem:[#allocation3 + $0x38] sm:$0xff] %vm4570_vm4, %v5534_v53  ;;  %v5090_v14 = vmax.f32 %v5088_v38, %v5089_v40  ;;  %v5096_v39 = vrot.slane %v5095_v27, 1  ;;  %v5103_v50 = vrot.slane %v5102_v44, 1  ;;  %v4174_v60 = vadd.f32 %v4083_v37, %v10455_v45  ;;  %v8237_v6 = vpop.f32.mrf.mxu1 }
 0x3f3   : > { %v5109_v18 = vmax.f32 %v5107_v48, %v5108_v54  ;;  %v4720_v12 = vcombine.high %v4588_v56, %v4588_v56  ;;  %v4727_v20 = vrot.slane %v4588_v56, %v10414_v23  ;;  %v4552_v25 = vmax.f32 %v4520_v15, 0.0 }
 0x3f4   : > { %v5097_v2 = vmax.f32 %v5095_v27, %v5096_v39  ;;  %v5104_v58 = vmax.f32 %v5102_v44, %v5103_v50  ;;  %v4479_v26 = vadd.f32 %v4388_v11, %v4174_v60  ;;  %v4177_v13 = vadd.f32 %v8234_v61, %v10459_v32  ;;  %v10659_v11 = vld [vmem:[%s11147_s5 + $0xd8] sm:$0xff]  }
 0x3f5   : > { %v5110_v51 = vrot.slane %v5109_v18, 1  ;;  %v4734_v30 = vrot.slane %v4720_v12, %v10414_v23  ;;  %v4735_v45 = vcombine.high %v4727_v20, %v4727_v20  ;;  %v5112_v59 = vsel %vm4971_vm5, %v4727_v20, -inf  ;;  %8383 = vmatprep.subr.bf16.mxu0 %v10659_v11 }
 0x3f6   : > { %v5535_v62 = vsel %vm5514_vm6, %v5097_v2, %v5090_v14  ;;  %v5113_v28 = vrot.slane %v5112_v59, 4  ;;  %v4590_v36 = vsel %vm4570_vm4, %v4552_v25, -inf  ;;  %v4518_v21 = vadd.f32 %v10427_v7, %v4479_v26 }
 0x3f7   : > { %v5111_v32 = vmax.f32 %v5109_v18, %v5110_v51  ;;  %v5536_v1 = vsel %vm5516_vm7, %v5104_v58, %v5535_v62  ;;  %v4736_v41 = vcombine.high %v4734_v30, %v4734_v30  ;;  %v5119_v37 = vsel %vm4971_vm5, %v4735_v45, -inf  ;;  %v4391_v18 = vpop.f32.mrf.mxu0 }
 0x3f8   : > { %v5114_v38 = vmax.f32 %v5112_v59, %v5113_v28  ;;  %v5120_v24 = vrot.slane %v5119_v37, 4  ;;  %v5126_v46 = vsel %vm4971_vm5, %v4734_v30, -inf  ;;  %v4550_v48 = vmax.f32 %v4518_v21, 0.0 }
 0x3f9   : > { %v5127_v8 = vrot.slane %v5126_v46, 4  ;;  %v5133_v9 = vsel %vm4971_vm5, %v4736_v41, -inf  ;;  %v5537_v55 = vsel %vm5518_vm8, %v5111_v32, %v5536_v1  ;;  %v4482_v35 = vadd.f32 %v8270_v42, %v4177_v13  ;;  %v8273_v21 = vpop.f32.mrf.mxu0 }
 0x3fa   : > { %v5115_v40 = vrot.slane %v5114_v38, 2  ;;  %v5121_v27 = vmax.f32 %v5119_v37, %v5120_v24  ;;  %v5134_v44 = vrot.slane %v5133_v9, 4  ;;  %v4589_v53 = vsel %vm4570_vm4, %v4550_v48, -inf }
 0x3fb   : > { %v5128_v54 = vmax.f32 %v5126_v46, %v5127_v8  ;;  %v4591_v56 = vmax.f32 %v4589_v53, %v4590_v36  ;;  %v4521_v15 = vadd.f32 %v10427_v7, %v4482_v35  ;;  %v4175_v61 = vadd.f32 %v4086_v31, %v10463_v52  ;;  %v4099_v36 = vpop.f32.mrf.mxu1 }
 0x3fc   : > { %v5116_v14 = vmax.f32 %v5114_v38, %v5115_v40  ;;  %v5122_v39 = vrot.slane %v5121_v27, 2  ;;  %v5135_v50 = vmax.f32 %v5133_v9, %v5134_v44  ;;  %v4180_v60 = vadd.f32 %v8237_v6, %v10467_v19 }
 0x3fd   : > { %v5129_v12 = vrot.slane %v5128_v54, 2  ;;  %v4737_v20 = vcombine.high %v4591_v56, %v4591_v56  ;;  %v4744_v25 = vrot.slane %v4591_v56, %v10414_v23  ;;  %v4553_v2 = vmax.f32 %v4521_v15, 0.0  ;;  %v8238_v53 = vpop.f32.mrf.mxu1 }
 0x3fe   : > { %v5117_v58 = vrot.slane %v5116_v14, 1  ;;  %v5123_v26 = vmax.f32 %v5121_v27, %v5122_v39  ;;  %v5136_v13 = vrot.slane %v5135_v50, 2  ;;  %v4480_v52 = vadd.f32 %v4391_v18, %v4175_v61 }
 0x3ff   : > { %v5130_v51 = vmax.f32 %v5128_v54, %v5129_v12  ;;  %v4751_v19 = vrot.slane %v4737_v20, %v10414_v23  ;;  %v4752_v30 = vcombine.high %v4744_v25, %v4744_v25  ;;  %v5140_v45 = vsel %vm4971_vm5, %v4744_v25, -inf  ;;  %v4404_v54 = vpop.f32.mrf.mxu0 }
 0x400   : > { %v5118_v59 = vmax.f32 %v5116_v14, %v5117_v58  ;;  %v5124_v31 = vrot.slane %v5123_v26, 1  ;;  %v5137_v62 = vmax.f32 %v5135_v50, %v5136_v13  ;;  %v5141_v28 = vrot.slane %v5140_v45, 4 }
 0x401   : > { %v5131_v32 = vrot.slane %v5130_v51, 1  ;;  %v4753_v1 = vcombine.high %v4751_v19, %v4751_v19  ;;  %v5147_v41 = vsel %vm4971_vm5, %v4752_v30, -inf  ;;  %v5154_v37 = vsel %vm4971_vm5, %v4751_v19, -inf  ;;  %v4102_v30 = vpop.f32.mrf.mxu1 }
 0x402   : > { %v5125_v42 = vmax.f32 %v5123_v26, %v5124_v31  ;;  %v5138_v38 = vrot.slane %v5137_v62, 1  ;;  %v5538_v24 = vsel %vm5520_vm9, %v5118_v59, %v5537_v55  ;;  %v5142_v46 = vmax.f32 %v5140_v45, %v5141_v28 }
 0x403   : > { %v5132_v48 = vmax.f32 %v5130_v51, %v5131_v32  ;;  %v5148_v8 = vrot.slane %v5147_v41, 4  ;;  %v5155_v9 = vrot.slane %v5154_v37, 4  ;;  %v5161_v35 = vsel %vm4971_vm5, %v4753_v1, -inf }
 0x404   : > { %v5139_v6 = vmax.f32 %v5137_v62, %v5138_v38  ;;  %v5539_v40 = vsel %vm5522_vm10, %v5125_v42, %v5538_v24  ;;  %v5143_v27 = vrot.slane %v5142_v46, 2  ;;  %v5162_v44 = vrot.slane %v5161_v35, 4  ;;  %v8241_v38 = vpop.f32.mrf.mxu1 }
 0x405   : > { %v5540_v56 = vsel %vm5524_vm11, %v5132_v48, %v5539_v40  ;;  %v5149_v15 = vmax.f32 %v5147_v41, %v5148_v8  ;;  %v5156_v61 = vmax.f32 %v5154_v37, %v5155_v9  ;;  %v4593_v14 = vsel %vm4570_vm4, %v4553_v2, -inf  ;;  %v8274_v2 = vpop.f32.mrf.mxu0 }
 0x406   : > { %v5541_v55 = vsel %vm5526_vm12, %v5139_v6, %v5540_v56  ;;  %v5144_v39 = vmax.f32 %v5142_v46, %v5143_v27  ;;  %v5163_v50 = vmax.f32 %v5161_v35, %v5162_v44  ;;  %v4519_v18 = vadd.f32 %v10427_v7, %v4480_v52 }
 0x407   : > { %5588 = vst.msk [vmem:[#allocation3 + $0x50] sm:$0xff] %vm4570_vm4, %v5541_v55  ;;  %v5150_v12 = vrot.slane %v5149_v15, 2  ;;  %v5157_v20 = vrot.slane %v5156_v61, 2  ;;  %v4485_v25 = vadd.f32 %v8273_v21, %v4180_v60  ;;  %v4178_v58 = vadd.f32 %v4099_v36, %v10472_v10  ;;  %v4407_v56 = vpop.f32.mrf.mxu0  ;;  %v4115_v55 = vpop.f32.mrf.mxu1 }
 0x408   : > { %v5145_v26 = vrot.slane %v5144_v39, 1  ;;  %v5164_v13 = vrot.slane %v5163_v50, 2  ;;  %v4551_v51 = vmax.f32 %v4519_v18, 0.0  ;;  %v4181_v19 = vadd.f32 %v8238_v53, %v10476_v3 }
 0x409   : > { %v5151_v45 = vmax.f32 %v5149_v15, %v5150_v12  ;;  %v5158_v59 = vmax.f32 %v5156_v61, %v5157_v20  ;;  %v4524_v31 = vadd.f32 %v10427_v7, %v4485_v25  ;;  %v4483_v62 = vadd.f32 %v4404_v54, %v4178_v58 }
 0x40a   : > { %v5146_v52 = vmax.f32 %v5144_v39, %v5145_v26  ;;  %v5165_v28 = vmax.f32 %v5163_v50, %v5164_v13  ;;  %v4592_v32 = vsel %vm4570_vm4, %v4551_v51, -inf  ;;  %v4486_v1 = vadd.f32 %v8274_v2, %v4181_v19  ;;  %v8277_v2 = vpop.f32.mrf.mxu0 }
 0x40b   : > { %v5152_v60 = vrot.slane %v5151_v45, 1  ;;  %v5159_v21 = vrot.slane %v5158_v59, 1  ;;  %v4594_v10 = vmax.f32 %v4592_v32, %v4593_v14  ;;  %v4556_v36 = vmax.f32 %v4524_v31, 0.0 }
 0x40c   : > { %v5166_v41 = vrot.slane %v5165_v28, 1  ;;  %v4522_v37 = vadd.f32 %v10427_v7, %v4483_v62  ;;  %v4525_v3 = vadd.f32 %v10427_v7, %v4486_v1  ;;  %v4179_v42 = vadd.f32 %v4102_v30, %v10480_v33 }
 0x40d   : > { %v5153_v24 = vmax.f32 %v5151_v45, %v5152_v60  ;;  %v5160_v46 = vmax.f32 %v5158_v59, %v5159_v21  ;;  %v4754_v48 = vcombine.high %v4594_v10, %v4594_v10  ;;  %v4761_v8 = vrot.slane %v4594_v10, %v10414_v23 }
 0x40e   : > { %v5167_v9 = vmax.f32 %v5165_v28, %v5166_v41  ;;  %v4596_v35 = vsel %vm4570_vm4, %v4556_v36, -inf  ;;  %v4554_v6 = vmax.f32 %v4522_v37, 0.0  ;;  %v4557_v40 = vmax.f32 %v4525_v3, 0.0 }
 0x40f   : > { %v5542_v27 = vsel %vm5514_vm6, %v5153_v24, %v5146_v52  ;;  %v4768_v44 = vrot.slane %v4754_v48, %v10414_v23  ;;  %v4769_v53 = vcombine.high %v4761_v8, %v4761_v8  ;;  %v5168_v54 = vsel %vm4971_vm5, %v4761_v8, -inf }
 0x410   : > { %v5543_v33 = vsel %vm5516_vm7, %v5160_v46, %v5542_v27  ;;  %v5169_v15 = vrot.slane %v5168_v54, 4  ;;  %v4595_v61 = vsel %vm4570_vm4, %v4554_v6, -inf  ;;  %v10690_v14 = vsel %vm4570_vm4, %v4557_v40, -inf }
 0x411   : > { %v4770_v39 = vcombine.high %v4768_v44, %v4768_v44  ;;  %v5175_v50 = vsel %vm4971_vm5, %v4769_v53, -inf  ;;  %v5182_v18 = vsel %vm4971_vm5, %v4768_v44, -inf  ;;  %v5544_v12 = vsel %vm5518_vm8, %v5167_v9, %v5543_v33 }
 0x412   : > { %v5170_v20 = vmax.f32 %v5168_v54, %v5169_v15  ;;  %v5176_v25 = vrot.slane %v5175_v50, 4  ;;  %v5183_v58 = vrot.slane %v5182_v18, 4  ;;  %v4597_v26 = vmax.f32 %v4595_v61, %v4596_v35 }
 0x413   : > { %v5189_v13 = vsel %vm4971_vm5, %v4770_v39, -inf  ;;  %v4484_v51 = vadd.f32 %v4407_v56, %v4179_v42  ;;  %v4184_v19 = vadd.f32 %v8241_v38, %v10484_v5  ;;  %v4182_v30 = vadd.f32 %v4115_v55, %v10488_v4 }
 0x414   : > { %v5171_v45 = vrot.slane %v5170_v20, 2  ;;  %v5177_v59 = vmax.f32 %v5175_v50, %v5176_v25  ;;  %v5184_v31 = vmax.f32 %v5182_v18, %v5183_v58  ;;  %v5190_v62 = vrot.slane %v5189_v13, 4 }
 0x415   : > { %v4771_v52 = vcombine.high %v4597_v26, %v4597_v26  ;;  %v4778_v28 = vrot.slane %v4597_v26, %v10414_v23  ;;  %v4523_v32 = vadd.f32 %v10427_v7, %v4484_v51  ;;  %v4489_v1 = vadd.f32 %v8277_v2, %v4184_v19  ;;  %v10711_v26 = vld [vmem:[%s11146_s4] ss:$0 sm:$0xff] }
 0x416   : > { %v5172_v60 = vmax.f32 %v5170_v20, %v5171_v45  ;;  %v5178_v21 = vrot.slane %v5177_v59, 2  ;;  %v5185_v10 = vrot.slane %v5184_v31, 2  ;;  %v5191_v36 = vmax.f32 %v5189_v13, %v5190_v62  ;;  %v4420_v45 = vpop.f32.mrf.mxu0 }
 0x417   : > { %v4785_v41 = vrot.slane %v4771_v52, %v10414_v23  ;;  %v4786_v5 = vcombine.high %v4778_v28, %v4778_v28  ;;  %v5196_v4 = vsel %vm4971_vm5, %v4778_v28, -inf  ;;  %v4555_v37 = vmax.f32 %v4523_v32, 0.0 }
 0x418   : > { %v5173_v3 = vrot.slane %v5172_v60, 1  ;;  %v5179_v42 = vmax.f32 %v5177_v59, %v5178_v21  ;;  %v5186_v38 = vmax.f32 %v5184_v31, %v5185_v10  ;;  %v5192_v24 = vrot.slane %v5191_v36, 2 }
 0x419   : > { %v4787_v46 = vcombine.high %v4785_v41, %v4785_v41  ;;  %v5197_v48 = vrot.slane %v5196_v4, 4  ;;  %v5203_v8 = vsel %vm4971_vm5, %v4786_v5, -inf  ;;  %v5210_v7 = vsel %vm4971_vm5, %v4785_v41, -inf }
 0x41a   : > { %v5174_v9 = vmax.f32 %v5172_v60, %v5173_v3  ;;  %v5180_v35 = vrot.slane %v5179_v42, 1  ;;  %v5187_v6 = vrot.slane %v5186_v38, 1  ;;  %v5193_v40 = vmax.f32 %v5191_v36, %v5192_v24 }
 0x41b   : > { %v5198_v27 = vmax.f32 %v5196_v4, %v5197_v48  ;;  %v5204_v44 = vrot.slane %v5203_v8, 4  ;;  %v5211_v53 = vrot.slane %v5210_v7, 4  ;;  %v5217_v54 = vsel %vm4971_vm5, %v4787_v46, -inf }
 0x41c   : > { %v5181_v56 = vmax.f32 %v5179_v42, %v5180_v35  ;;  %v5188_v33 = vmax.f32 %v5186_v38, %v5187_v6  ;;  %v5194_v15 = vrot.slane %v5193_v40, 1  ;;  %v5545_v61 = vsel %vm5520_vm9, %v5174_v9, %v5544_v12  ;;  %v8242_v42 = vpop.f32.mrf.mxu1 }
 0x41d   : > { %v5199_v55 = vrot.slane %v5198_v27, 2  ;;  %v5205_v39 = vmax.f32 %v5203_v8, %v5204_v44  ;;  %v5212_v50 = vmax.f32 %v5210_v7, %v5211_v53  ;;  %v5218_v18 = vrot.slane %v5217_v54, 4 }
 0x41e   : > { %v5195_v20 = vmax.f32 %v5193_v40, %v5194_v15  ;;  %v5546_v25 = vsel %vm5522_vm10, %v5181_v56, %v5545_v61  ;;  %v4598_v58 = vsel %vm4570_vm4, %v4555_v37, -inf  ;;  %v4528_v13 = vadd.f32 %v10711_v26, %v4489_v1 }
 0x41f   : > { %v5547_v51 = vsel %vm5524_vm11, %v5188_v33, %v5546_v25  ;;  %v5200_v19 = vmax.f32 %v5198_v27, %v5199_v55  ;;  %v5206_v12 = vrot.slane %v5205_v39, 2  ;;  %v5213_v2 = vrot.slane %v5212_v50, 2  ;;  %v8278_v27 = vpop.f32.mrf.mxu0  ;;  %v4118_v33 = vpop.f32.mrf.mxu1 }
 0x420   : > { %v5548_v59 = vsel %vm5526_vm12, %v5195_v20, %v5547_v51  ;;  %v5219_v31 = vmax.f32 %v5217_v54, %v5218_v18  ;;  %v4600_v62 = vmax.f32 %v4598_v58, %v10690_v14  ;;  %v4560_v52 = vmax.f32 %v4528_v13, 0.0 }
 0x421   : > { %5589 = vst.msk [vmem:[#allocation3 + $0x68] sm:$0xff] %vm4570_vm4, %v5548_v59  ;;  %v5201_v28 = vrot.slane %v5200_v19, 1  ;;  %v5207_v32 = vmax.f32 %v5205_v39, %v5206_v12  ;;  %v5214_v60 = vmax.f32 %v5212_v50, %v5213_v2  ;;  %v4487_v21 = vadd.f32 %v4420_v45, %v4182_v30  ;;  %v4423_v12 = vpop.f32.mrf.mxu0 }
 0x422   : > { %v5220_v10 = vrot.slane %v5219_v31, 2  ;;  %v4788_v1 = vcombine.high %v4600_v62, %v4600_v62  ;;  %v4795_v36 = vrot.slane %v4600_v62, %v10414_v23  ;;  %v4602_v41 = vsel %vm4570_vm4, %v4560_v52, -inf }
 0x423   : > { %v5202_v5 = vmax.f32 %v5200_v19, %v5201_v28  ;;  %v5208_v4 = vrot.slane %v5207_v32, 1  ;;  %v5215_v37 = vrot.slane %v5214_v60, 1  ;;  %v4526_v3 = vadd.f32 %v10711_v26, %v4487_v21 }
 0x424   : > { %v5221_v14 = vmax.f32 %v5219_v31, %v5220_v10  ;;  %v4802_v38 = vrot.slane %v4788_v1, %v10414_v23  ;;  %v4803_v24 = vcombine.high %v4795_v36, %v4795_v36  ;;  %v5224_v46 = vsel %vm4971_vm5, %v4795_v36, -inf }
 0x425   : > { %v5209_v48 = vmax.f32 %v5207_v32, %v5208_v4  ;;  %v5216_v30 = vmax.f32 %v5214_v60, %v5215_v37  ;;  %v5225_v8 = vrot.slane %v5224_v46, 4  ;;  %v4558_v7 = vmax.f32 %v4526_v3, 0.0 }
 0x426   : > { %v5222_v9 = vrot.slane %v5221_v14, 1  ;;  %v4804_v35 = vcombine.high %v4802_v38, %v4802_v38  ;;  %v5231_v6 = vsel %vm4971_vm5, %v4803_v24, -inf  ;;  %v5238_v40 = vsel %vm4971_vm5, %v4802_v38, -inf }
 0x427   : > { %v5549_v44 = vsel %vm5514_vm6, %v5209_v48, %v5202_v5  ;;  %v5226_v53 = vmax.f32 %v5224_v46, %v5225_v8  ;;  %v5232_v54 = vrot.slane %v5231_v6, 4  ;;  %v5239_v56 = vrot.slane %v5238_v40, 4  ;;  %v8245_v5 = vpop.f32.mrf.mxu1 }
 0x428   : > { %v5223_v15 = vmax.f32 %v5221_v14, %v5222_v9  ;;  %v5550_v61 = vsel %vm5516_vm7, %v5216_v30, %v5549_v44  ;;  %v5245_v55 = vsel %vm4971_vm5, %v4804_v35, -inf  ;;  %v4601_v39 = vsel %vm4570_vm4, %v4558_v7, -inf  ;;  %v8281_v9 = vpop.f32.mrf.mxu0 }
 0x429   : > { %v5227_v50 = vrot.slane %v5226_v53, 2  ;;  %v5233_v18 = vmax.f32 %v5231_v6, %v5232_v54  ;;  %v5240_v20 = vmax.f32 %v5238_v40, %v5239_v56  ;;  %v5246_v25 = vrot.slane %v5245_v55, 4  ;;  %v4131_v44 = vpop.f32.mrf.mxu1 }
 0x42a   : > { %v5551_v58 = vsel %vm5518_vm8, %v5223_v15, %v5550_v61  ;;  %v4603_v13 = vmax.f32 %v4601_v39, %v4602_v41  ;;  %v4185_v51 = vadd.f32 %v8242_v42, %v10493_v34  ;;  %v4183_v19 = vadd.f32 %v4118_v33, %v10497_v57 }
 0x42b   : > { %v5228_v2 = vmax.f32 %v5226_v53, %v5227_v50  ;;  %v5234_v45 = vrot.slane %v5233_v18, 2  ;;  %v5241_v59 = vrot.slane %v5240_v20, 2  ;;  %v5247_v31 = vmax.f32 %v5245_v55, %v5246_v25  ;;  %v5614_v50 = vld [vmem:[#allocation3 + $0x8] sm:$0xff] }
 0x42c   : > { %v4805_v62 = vcombine.high %v4603_v13, %v4603_v13  ;;  %v4812_v52 = vrot.slane %v4603_v13, %v10414_v23  ;;  %v4490_v28 = vadd.f32 %v8278_v27, %v4185_v51  ;;  %v4488_v32 = vadd.f32 %v4423_v12, %v4183_v19  ;;  %v4436_v51 = vpop.f32.mrf.mxu0 }
 0x42d   : > { %v5229_v60 = vrot.slane %v5228_v2, 1  ;;  %v5235_v21 = vmax.f32 %v5233_v18, %v5234_v45  ;;  %v5242_v10 = vmax.f32 %v5240_v20, %v5241_v59  ;;  %v5248_v1 = vrot.slane %v5247_v31, 2  ;;  %v10742_v18 = vld [vmem:[#allocation3 + $0x20] sm:$0xff]  ;;  %v8246_v59 = vpop.f32.mrf.mxu1 }
 0x42e   : > { %v4819_v36 = vrot.slane %v4805_v62, %v10414_v23  ;;  %v4820_v41 = vcombine.high %v4812_v52, %v4812_v52  ;;  %v5252_v34 = vsel %vm4971_vm5, %v4812_v52, -inf  ;;  %v4529_v57 = vadd.f32 %v10711_v26, %v4490_v28 }
 0x42f   : > { %v5230_v4 = vmax.f32 %v5228_v2, %v5229_v60  ;;  %v5236_v37 = vrot.slane %v5235_v21, 1  ;;  %v5243_v3 = vrot.slane %v5242_v10, 1  ;;  %v5249_v42 = vmax.f32 %v5247_v31, %v5248_v1 }
 0x430   : > { %v4821_v14 = vcombine.high %v4819_v36, %v4819_v36  ;;  %v5253_v38 = vrot.slane %v5252_v34, 4  ;;  %v5259_v24 = vsel %vm4971_vm5, %v4820_v41, -inf  ;;  %v5266_v46 = vsel %vm4971_vm5, %v4819_v36, -inf }
 0x431   : > { %v5237_v48 = vmax.f32 %v5235_v21, %v5236_v37  ;;  %v5244_v30 = vmax.f32 %v5242_v10, %v5243_v3  ;;  %v5250_v8 = vrot.slane %v5249_v42, 1  ;;  %v5552_v7 = vsel %vm5520_vm9, %v5230_v4, %v5551_v58 }
 0x432   : > { %v5254_v35 = vmax.f32 %v5252_v34, %v5253_v38  ;;  %v5260_v6 = vrot.slane %v5259_v24, 4  ;;  %v5267_v40 = vrot.slane %v5266_v46, 4  ;;  %v5273_v27 = vsel %vm4971_vm5, %v4821_v14, -inf  ;;  %v4134_v38 = vpop.f32.mrf.mxu1 }
 0x433   : > { %v5251_v53 = vmax.f32 %v5249_v42, %v5250_v8  ;;  %v5553_v54 = vsel %vm5522_vm10, %v5237_v48, %v5552_v7  ;;  %v5274_v56 = vrot.slane %v5273_v27, 4  ;;  %v4561_v33 = vmax.f32 %v4529_v57, 0.0 }
 0x434   : > { %v5554_v15 = vsel %vm5524_vm11, %v5244_v30, %v5553_v54  ;;  %v5255_v61 = vrot.slane %v5254_v35, 2  ;;  %v5261_v55 = vmax.f32 %v5259_v24, %v5260_v6  ;;  %v5268_v39 = vmax.f32 %v5266_v46, %v5267_v40 }
 0x435   : > { %v5555_v20 = vsel %vm5526_vm12, %v5251_v53, %v5554_v15  ;;  %v5275_v25 = vmax.f32 %v5273_v27, %v5274_v56  ;;  %v4605_v58 = vsel %vm4570_vm4, %v4561_v33, -inf  ;;  %v4527_v13 = vadd.f32 %v10711_v26, %v4488_v32  ;;  %v8249_v33 = vpop.f32.mrf.mxu1 }
 0x436   : > { %5590 = vst.msk [vmem:[#allocation3 + $0x80] sm:$0xff] %vm4570_vm4, %v5555_v20  ;;  %v5256_v19 = vmax.f32 %v5254_v35, %v5255_v61  ;;  %v5262_v12 = vrot.slane %v5261_v55, 2  ;;  %v5269_v2 = vrot.slane %v5268_v39, 2  ;;  %v4188_v45 = vadd.f32 %v8245_v5, %v10501_v16  ;;  %v8282_v16 = vpop.f32.mrf.mxu0 }
 0x437   : > { %v5276_v31 = vrot.slane %v5275_v25, 2  ;;  %v4559_v62 = vmax.f32 %v4527_v13, 0.0  ;;  %v5622_v52 = vpack.c.bf16 %v10742_v18, %v5614_v50  ;;  %v4186_v28 = vadd.f32 %v4131_v44, %v10505_v29 }
 0x438   : > { %v5257_v60 = vrot.slane %v5256_v19, 1  ;;  %v5263_v21 = vmax.f32 %v5261_v55, %v5262_v12  ;;  %v5270_v10 = vmax.f32 %v5268_v39, %v5269_v2  ;;  %v4493_v1 = vadd.f32 %v8281_v9, %v4188_v45  ;;  %v4439_v2 = vpop.f32.mrf.mxu0 }
 0x439   : > { %v5277_v32 = vmax.f32 %v5275_v25, %v5276_v31  ;;  %v4604_v36 = vsel %vm4570_vm4, %v4559_v62, -inf  ;;  %8295 = vmatprep.mubr.msk.bf16.mxu1 %vm4570_vm4, %v5622_v52  ;;  %v4491_v41 = vadd.f32 %v4436_v51, %v4186_v28  ;;  %v4189_v34 = vadd.f32 %v8246_v59, %v10510_v49 }
 0x43a   : > { %v5258_v57 = vmax.f32 %v5256_v19, %v5257_v60  ;;  %v5264_v5 = vrot.slane %v5263_v21, 1  ;;  %v5271_v4 = vrot.slane %v5270_v10, 1  ;;  %v4606_v37 = vmax.f32 %v4604_v36, %v4605_v58 }
 0x43b   : > { %v5278_v3 = vrot.slane %v5277_v32, 1  ;;  %v4532_v29 = vadd.f32 %v10711_v26, %v4493_v1  ;;  %v4530_v42 = vadd.f32 %v10711_v26, %v4491_v41  ;;  %v4494_v14 = vadd.f32 %v8282_v16, %v4189_v34 }
 0x43c   : > { %v5265_v24 = vmax.f32 %v5263_v21, %v5264_v5  ;;  %v5272_v46 = vmax.f32 %v5270_v10, %v5271_v4  ;;  %v4822_v48 = vcombine.high %v4606_v37, %v4606_v37  ;;  %v4829_v30 = vrot.slane %v4606_v37, %v10414_v23 }
 0x43d   : > { %v5279_v8 = vmax.f32 %v5277_v32, %v5278_v3  ;;  %v4564_v7 = vmax.f32 %v4532_v29, 0.0  ;;  %v4562_v49 = vmax.f32 %v4530_v42, 0.0  ;;  %v4533_v9 = vadd.f32 %v10711_v26, %v4494_v14 }
 0x43e   : > { %v5556_v35 = vsel %vm5514_vm6, %v5265_v24, %v5258_v57  ;;  %v4836_v6 = vrot.slane %v4822_v48, %v10414_v23  ;;  %v4837_v40 = vcombine.high %v4829_v30, %v4829_v30  ;;  %v5280_v27 = vsel %vm4971_vm5, %v4829_v30, -inf  ;;  %v4147_v48 = vpop.f32.mrf.mxu1 }
 0x43f   : > { %v5557_v44 = vsel %vm5516_vm7, %v5272_v46, %v5556_v35  ;;  %v5281_v53 = vrot.slane %v5280_v27, 4  ;;  %v4608_v54 = vsel %vm4570_vm4, %v4564_v7, -inf  ;;  %v4607_v56 = vsel %vm4570_vm4, %v4562_v49, -inf  ;;  %v8285_v35 = vpop.f32.mrf.mxu0 }
 0x440   : > { %v4838_v15 = vcombine.high %v4836_v6, %v4836_v6  ;;  %v5287_v61 = vsel %vm4971_vm5, %v4837_v40, -inf  ;;  %v5294_v55 = vsel %vm4971_vm5, %v4836_v6, -inf  ;;  %v5558_v39 = vsel %vm5518_vm8, %v5279_v8, %v5557_v44 }
 0x441   : > { %v5282_v50 = vmax.f32 %v5280_v27, %v5281_v53  ;;  %v5288_v20 = vrot.slane %v5287_v61, 4  ;;  %v5295_v25 = vrot.slane %v5294_v55, 4  ;;  %v4609_v58 = vmax.f32 %v4607_v56, %v4608_v54 }
 0x442   : > { %v5301_v13 = vsel %vm4971_vm5, %v4838_v15, -inf  ;;  %v4565_v51 = vmax.f32 %v4533_v9, 0.0  ;;  %v4187_v19 = vadd.f32 %v4134_v38, %v10515_v47  ;;  %v10770_v12 = vadd.f32 %v8249_v33, %v10519_v0  ;;  %v10780_v9 = vld [vmem:[#allocation3 + $0x38] sm:$0xff] }
 0x443   : > { %v5283_v45 = vrot.slane %v5282_v50, 2  ;;  %v5289_v59 = vmax.f32 %v5287_v61, %v5288_v20  ;;  %v5296_v31 = vmax.f32 %v5294_v55, %v5295_v25  ;;  %v5302_v62 = vrot.slane %v5301_v13, 4  ;;  %v8250_v20 = vpop.f32.mrf.mxu1 }
 0x444   : > { %v4839_v52 = vcombine.high %v4609_v58, %v4609_v58  ;;  %v4846_v28 = vrot.slane %v4609_v58, %v10414_v23  ;;  %v4611_v60 = vsel %vm4570_vm4, %v4565_v51, -inf  ;;  %v4492_v21 = vadd.f32 %v4439_v2, %v4187_v19  ;;  %v4452_v19 = vpop.f32.mrf.mxu0 }
 0x445   : > { %v5284_v10 = vmax.f32 %v5282_v50, %v5283_v45  ;;  %v5290_v1 = vrot.slane %v5289_v59, 2  ;;  %v5297_v32 = vrot.slane %v5296_v31, 2  ;;  %v5303_v36 = vmax.f32 %v5301_v13, %v5302_v62 }
 0x446   : > { %v4853_v47 = vrot.slane %v4839_v52, %v10414_v23  ;;  %v4854_v41 = vcombine.high %v4846_v28, %v4846_v28  ;;  %v5308_v0 = vsel %vm4971_vm5, %v4846_v28, -inf  ;;  %v4531_v34 = vadd.f32 %v10711_v26, %v4492_v21 }
 0x447   : > { %v5285_v16 = vrot.slane %v5284_v10, 1  ;;  %v5291_v57 = vmax.f32 %v5289_v59, %v5290_v1  ;;  %v5298_v5 = vmax.f32 %v5296_v31, %v5297_v32  ;;  %v5304_v4 = vrot.slane %v5303_v36, 2  ;;  %v4150_v32 = vpop.f32.mrf.mxu1 }
 0x448   : > { %v4855_v37 = vcombine.high %v4853_v47, %v4853_v47  ;;  %v5309_v3 = vrot.slane %v5308_v0, 4  ;;  %v5315_v29 = vsel %vm4971_vm5, %v4854_v41, -inf  ;;  %v5322_v42 = vsel %vm4971_vm5, %v4853_v47, -inf }
 0x449   : > { %v5286_v14 = vmax.f32 %v5284_v10, %v5285_v16  ;;  %v5292_v38 = vrot.slane %v5291_v57, 1  ;;  %v5299_v24 = vrot.slane %v5298_v5, 1  ;;  %v5305_v46 = vmax.f32 %v5303_v36, %v5304_v4 }
 0x44a   : > { %v5310_v30 = vmax.f32 %v5308_v0, %v5309_v3  ;;  %v5316_v8 = vrot.slane %v5315_v29, 4  ;;  %v5323_v7 = vrot.slane %v5322_v42, 4  ;;  %v5329_v49 = vsel %vm4971_vm5, %v4855_v37, -inf }
 0x44b   : > { %v5293_v6 = vmax.f32 %v5291_v57, %v5292_v38  ;;  %v5300_v40 = vmax.f32 %v5298_v5, %v5299_v24  ;;  %v5306_v27 = vrot.slane %v5305_v46, 1  ;;  %v5559_v44 = vsel %vm5520_vm9, %v5286_v14, %v5558_v39  ;;  %v8286_v5 = vpop.f32.mrf.mxu0 }
 0x44c   : > { %v5311_v53 = vrot.slane %v5310_v30, 2  ;;  %v5317_v54 = vmax.f32 %v5315_v29, %v5316_v8  ;;  %v5324_v56 = vmax.f32 %v5322_v42, %v5323_v7  ;;  %v5330_v33 = vrot.slane %v5329_v49, 4 }
 0x44d   : > { %v5307_v15 = vmax.f32 %v5305_v46, %v5306_v27  ;;  %v5560_v61 = vsel %vm5522_vm10, %v5293_v6, %v5559_v44  ;;  %v4563_v55 = vmax.f32 %v4531_v34, 0.0  ;;  %v6102_v50 = vpack.c.bf16 %v10780_v9, %v10742_v18  ;;  %v5617_v27 = vld [vmem:[#allocation3 + $0x50] sm:$0xff] }
 0x44e   : > { %v5561_v25 = vsel %vm5524_vm11, %v5300_v40, %v5560_v61  ;;  %v5312_v58 = vmax.f32 %v5310_v30, %v5311_v53  ;;  %v5318_v13 = vrot.slane %v5317_v54, 2  ;;  %v5325_v51 = vrot.slane %v5324_v56, 2 }
 0x44f   : > { %v5562_v39 = vsel %vm5526_vm12, %v5307_v15, %v5561_v25  ;;  %v5331_v2 = vmax.f32 %v5329_v49, %v5330_v33  ;;  %v4610_v45 = vsel %vm4570_vm4, %v4563_v55, -inf  ;;  %8359 = vmatprep.mubr.msk.bf16.mxu0 %vm4570_vm4, %v6102_v50  ;;  %v4190_v59 = vadd.f32 %v4147_v48, %v10525_v17  ;;  %v4455_v49 = vpop.f32.mrf.mxu0  ;;  %v6097_v50 = vld [vmem:[#allocation3 + $0x68] sm:$0xff] }
 0x450   : > { %5591 = vst.msk [vmem:[#allocation3 + $0x98] sm:$0xff] %vm4570_vm4, %v5562_v39  ;;  %v5313_v31 = vrot.slane %v5312_v58, 1  ;;  %v5319_v18 = vmax.f32 %v5317_v54, %v5318_v13  ;;  %v5326_v62 = vmax.f32 %v5324_v56, %v5325_v51  ;;  %v4612_v52 = vmax.f32 %v4610_v45, %v4611_v60  ;;  %v8536_v51 = vld [vmem:[%s11147_s5 + $0x10] sm:$0xff]  }
 0x451   : > { %v5332_v28 = vrot.slane %v5331_v2, 2  ;;  %v4497_v21 = vadd.f32 %v8285_v35, %v10770_v12  ;;  %v4193_v10 = vadd.f32 %v8250_v20, %v10529_v63  ;;  %v4495_v1 = vadd.f32 %v4452_v19, %v4190_v59 }
 0x452   : > { %v5314_v36 = vmax.f32 %v5312_v58, %v5313_v31  ;;  %v5320_v47 = vrot.slane %v5319_v18, 1  ;;  %v5327_v41 = vrot.slane %v5326_v62, 1  ;;  %v4856_v0 = vcombine.high %v4612_v52, %v4612_v52 }
 0x453   : > { %v5333_v34 = vmax.f32 %v5331_v2, %v5332_v28  ;;  %v4863_v17 = vrot.slane %v4612_v52, %v10414_v23  ;;  %v4536_v16 = vadd.f32 %v10711_v26, %v4497_v21  ;;  %v4534_v57 = vadd.f32 %v10711_v26, %v4495_v1 }
 0x454   : > { %v5321_v60 = vmax.f32 %v5319_v18, %v5320_v47  ;;  %v5328_v4 = vmax.f32 %v5326_v62, %v5327_v41  ;;  %v4870_v12 = vrot.slane %v4856_v0, %v10414_v23  ;;  %v4191_v63 = vadd.f32 %v4150_v32, %v10533_v22 }
 0x455   : > { %v5334_v37 = vrot.slane %v5333_v34, 1  ;;  %v4871_v3 = vcombine.high %v4863_v17, %v4863_v17  ;;  %v5336_v29 = vsel %vm4971_vm5, %v4863_v17, -inf  ;;  %v4568_v42 = vmax.f32 %v4536_v16, 0.0 }
 0x456   : > { %v5563_v14 = vsel %vm5514_vm6, %v5321_v60, %v5314_v36  ;;  %v4872_v38 = vcombine.high %v4870_v12, %v4870_v12  ;;  %v5337_v24 = vrot.slane %v5336_v29, 4  ;;  %v5350_v46 = vsel %vm4971_vm5, %v4870_v12, -inf  ;;  %v8542_v60 = vld [vmem:[%s11147_s5 + $0xc8] sm:$0xff]  }
 0x457   : > { %v5335_v48 = vmax.f32 %v5333_v34, %v5334_v37  ;;  %v5564_v30 = vsel %vm5516_vm7, %v5328_v4, %v5563_v14  ;;  %v5343_v8 = vsel %vm4971_vm5, %v4871_v3, -inf  ;;  %v5351_v7 = vrot.slane %v5350_v46, 4  ;;  %v5619_v3 = vld [vmem:[#allocation3 + $0x80] sm:$0xff] }
 0x458   : > { %v5338_v35 = vmax.f32 %v5336_v29, %v5337_v24  ;;  %v5344_v22 = vrot.slane %v5343_v8, 4  ;;  %v5357_v6 = vsel %vm4971_vm5, %v4872_v38, -inf  ;;  %v4614_v40 = vsel %vm4570_vm4, %v4568_v42, -inf  ;;  %v8539_v38 = vld [vmem:[%s11147_s5] sm:$0xff]  }
 0x459   : > { %v5352_v44 = vmax.f32 %v5350_v46, %v5351_v7  ;;  %v5358_v53 = vrot.slane %v5357_v6, 4  ;;  %v5565_v54 = vsel %vm5518_vm8, %v5335_v48, %v5564_v30  ;;  %v4566_v56 = vmax.f32 %v4534_v57, 0.0 }
 0x45a   : > { %v5339_v33 = vrot.slane %v5338_v35, 2  ;;  %v5345_v15 = vmax.f32 %v5343_v8, %v5344_v22  ;;  %v4498_v61 = vadd.f32 %v8286_v5, %v4193_v10  ;;  %v4496_v55 = vadd.f32 %v4455_v49, %v4191_v63  ;;  %v6099_v8 = vld [vmem:[#allocation3 + $0x98] sm:$0xff] }
 0x45b   : > { %v5353_v20 = vrot.slane %v5352_v44, 2  ;;  %v5359_v25 = vmax.f32 %v5357_v6, %v5358_v53  ;;  %v4613_v58 = vsel %vm4570_vm4, %v4566_v56, -inf  ;;  %v10809_v13 = vpack.c.bf16 %v5617_v27, %v10780_v9  ;;  %v8540_v9 = vld [vmem:[%s11147_s5 + $0xd0] sm:$0xff]   ;;  %v8544_v6 = vld [vmem:[%s11147_s5 + $0xc0] sm:$0xff]  }
 0x45c   : > { %v5340_v19 = vmax.f32 %v5338_v35, %v5339_v33  ;;  %v5346_v39 = vrot.slane %v5345_v15, 2  ;;  %v4615_v2 = vmax.f32 %v4613_v58, %v4614_v40  ;;  %v4537_v45 = vadd.f32 %v10711_v26, %v4498_v61  ;;  %v10857_v61 = vld [vmem:[%s11147_s5 + $0x58] sm:$0xff]  }
 0x45d   : > { %v5354_v59 = vmax.f32 %v5352_v44, %v5353_v20  ;;  %v5360_v31 = vrot.slane %v5359_v25, 2  ;;  %v4535_v18 = vadd.f32 %v10711_v26, %v4496_v55  ;;  %8296 = vmatmul.mubr.msk.bf16.vlgmr.msra.gmra.mxu1 %vm4570_vm4, %v10809_v13  ;;  %v6103_v62 = vpack.c.bf16 %v6097_v50, %v5617_v27  ;;  %v8537_v26 = vld [vmem:[%s11147_s5 + $0x8] sm:$0xff]  }
 0x45e   : > { %v5341_v52 = vrot.slane %v5340_v19, 1  ;;  %v5347_v28 = vmax.f32 %v5345_v15, %v5346_v39  ;;  %v4873_v21 = vcombine.high %v4615_v2, %v4615_v2  ;;  %v4880_v10 = vrot.slane %v4615_v2, %v10414_v23  ;;  %8304 = vmatpush3.bf16.msra.mxu1 %v10639_v43  ;;  %v10865_v39 = vld [vmem:[%s11147_s5 + $0x118] sm:$0xff]  }
 0x45f   : > { %v5355_v1 = vrot.slane %v5354_v59, 1  ;;  %v5361_v32 = vmax.f32 %v5359_v25, %v5360_v31  ;;  %v4569_v36 = vmax.f32 %v4537_v45, 0.0  ;;  %v4567_v47 = vmax.f32 %v4535_v18, 0.0  ;;  %8360 = vmatmul.mubr.msk.bf16.vlgmr.msra.gmra.mxu0 %vm4570_vm4, %v6103_v62  ;;  %8305 = vmatprep.subr.bf16.mxu1 %v8536_v51 }
 0x460   : > { %v5342_v41 = vmax.f32 %v5340_v19, %v5341_v52  ;;  %v5348_v0 = vrot.slane %v5347_v28, 1  ;;  %v4887_v34 = vrot.slane %v4873_v21, %v10414_v23  ;;  %v4888_v17 = vcombine.high %v4880_v10, %v4880_v10  ;;  %8384 = vmatpush3.bf16.msra.mxu0 %v10659_v11 }
 0x461   : > { %v5356_v16 = vmax.f32 %v5354_v59, %v5355_v1  ;;  %v5362_v43 = vrot.slane %v5361_v32, 1  ;;  %v5364_v57 = vsel %vm4971_vm5, %v4880_v10, -inf  ;;  %v4617_v5 = vsel %vm4570_vm4, %v4569_v36, -inf  ;;  %8385 = vmatprep.subr.bf16.mxu0 %v8540_v9 }
 0x462   : > { %v5349_v4 = vmax.f32 %v5347_v28, %v5348_v0  ;;  %v5566_v12 = vsel %vm5520_vm9, %v5342_v41, %v5565_v54  ;;  %v4889_v63 = vcombine.high %v4887_v34, %v4887_v34  ;;  %v5365_v37 = vrot.slane %v5364_v57, 4  ;;  %8306 = vmatpush3.bf16.msra.mxu1 %v8536_v51  ;;  %v5594_v41 = vld [vmem:[#allocation3 + $0x7] sm:$0xff]  ;;  %v10871_v0 = vld [vmem:[#allocation3 + $0x1f] sm:$0xff] }
 0x463   : > { %v5363_v29 = vmax.f32 %v5361_v32, %v5362_v43  ;;  %v5371_v11 = vsel %vm4971_vm5, %v4888_v17, -inf  ;;  %v5378_v42 = vsel %vm4971_vm5, %v4887_v34, -inf  ;;  %v4616_v14 = vsel %vm4570_vm4, %v4567_v47, -inf  ;;  %8307 = vmatprep.subr.bf16.mxu1 %v8537_v26 }
 0x464   : > { %v5567_v24 = vsel %vm5522_vm10, %v5349_v4, %v5566_v12  ;;  %v5366_v46 = vmax.f32 %v5364_v57, %v5365_v37  ;;  %v5372_v48 = vrot.slane %v5371_v11, 4  ;;  %v5379_v30 = vrot.slane %v5378_v42, 4  ;;  %8386 = vmatpush3.bf16.msra.mxu0 %v8540_v9 }
 0x465   : > { %v5568_v7 = vsel %vm5524_vm11, %v5356_v16, %v5567_v24  ;;  %v5385_v49 = vsel %vm4971_vm5, %v4889_v63, -inf  ;;  %v4618_v35 = vmax.f32 %v4616_v14, %v4617_v5  ;;  %v10844_v22 = vpack.c.bf16 %v5619_v3, %v6097_v50  ;;  %8387 = vmatprep.subr.bf16.mxu0 %v8542_v60 }
 0x466   : > { %v5569_v40 = vsel %vm5526_vm12, %v5363_v29, %v5568_v7  ;;  %v5367_v27 = vrot.slane %v5366_v46, 2  ;;  %v5373_v44 = vmax.f32 %v5371_v11, %v5372_v48  ;;  %v5380_v53 = vmax.f32 %v5378_v42, %v5379_v30  ;;  %8308 = vmatpush3.bf16.msra.mxu1 %v8537_v26 }
 0x467   : > { %5592 = vst.msk [vmem:[#allocation3 + $0xb0] sm:$0xff] %vm4570_vm4, %v5569_v40  ;;  %v5386_v54 = vrot.slane %v5385_v49, 4  ;;  %v4890_v56 = vcombine.high %v4618_v35, %v4618_v35  ;;  %v4897_v33 = vrot.slane %v4618_v35, %v10414_v23  ;;  %8299 = vmatprep.mubr.msk.bf16.mxu1 %vm4570_vm4, %v10844_v22  ;;  %v6104_v15 = vpack.c.bf16 %v6099_v8, %v5619_v3  ;;  %v10886_v35 = vld [vmem:[#allocation3 + $0x4f] sm:$0xff] }
 0x468   : > { %8309 = vmatprep.subr.bf16.mxu1 %v8539_v38  ;;  %v5368_v55 = vmax.f32 %v5366_v46, %v5367_v27  ;;  %v5374_v50 = vrot.slane %v5373_v44, 2  ;;  %v5381_v20 = vrot.slane %v5380_v53, 2  ;;  %8388 = vmatpush3.bf16.msra.mxu0 %v8542_v60  ;;  %v5602_v29 = vpack.c.bf16 %v10871_v0, %v5594_v41  ;;  %v10888_v27 = vld [vmem:[#allocation3 + $0x7f] sm:$0xff] }
 0x469   : > { %v5387_v25 = vmax.f32 %v5385_v49, %v5386_v54  ;;  %v4904_v58 = vrot.slane %v4890_v56, %v10414_v23  ;;  %v4905_v51 = vcombine.high %v4897_v33, %v4897_v33  ;;  %v5392_v19 = vsel %vm4971_vm5, %v4897_v33, -inf  ;;  %8363 = vmatprep.mubr.msk.bf16.mxu0 %vm4570_vm4, %v6104_v15  ;;  %8389 = vmatprep.subr.bf16.mxu0 %v8544_v6  ;;  %v10891_v54 = vld [vmem:[#allocation3 + $0x37] sm:$0xff] }
 0x46a   : > { %v5369_v2 = vrot.slane %v5368_v55, 1  ;;  %v5375_v45 = vmax.f32 %v5373_v44, %v5374_v50  ;;  %v5382_v59 = vmax.f32 %v5380_v53, %v5381_v20  ;;  %v5393_v31 = vrot.slane %v5392_v19, 4  ;;  %8310 = vmatpush3.bf16.msra.mxu1 %v8539_v38  ;;  %v8543_v50 = vld [vmem:[%s11147_s5 + $0x50] sm:$0xff]  }
 0x46b   : > { %v5388_v18 = vrot.slane %v5387_v25, 2  ;;  %v4906_v62 = vcombine.high %v4904_v58, %v4904_v58  ;;  %v5399_v9 = vsel %vm4971_vm5, %v4905_v51, -inf  ;;  %v5406_v52 = vsel %vm4971_vm5, %v4904_v58, -inf  ;;  %8319 = vmatprep.subr.bf16.mxu1 %v10857_v61 }
 0x46c   : > { %v5370_v28 = vmax.f32 %v5368_v55, %v5369_v2  ;;  %v5376_v21 = vrot.slane %v5375_v45, 1  ;;  %v5383_v10 = vrot.slane %v5382_v59, 1  ;;  %v5394_v1 = vmax.f32 %v5392_v19, %v5393_v31  ;;  %8390 = vmatpush3.bf16.msra.mxu0 %v8544_v6  ;;  %v10895_v55 = vld [vmem:[#allocation3 + $0x67] sm:$0xff] }
 0x46d   : > { %v5389_v32 = vmax.f32 %v5387_v25, %v5388_v18  ;;  %v5400_v36 = vrot.slane %v5399_v9, 4  ;;  %v5407_v47 = vrot.slane %v5406_v52, 4  ;;  %v5413_v26 = vsel %vm4971_vm5, %v4906_v62, -inf  ;;  %8415 = vmatprep.subr.bf16.mxu0 %v10865_v39  ;;  %v8545_v2 = vld [vmem:[%s11147_s5 + $0x48] sm:$0xff]   ;;  %v10916_v18 = vld [vmem:[#allocation3 + $0x97] sm:$0xff]  ;;  %v8547_v62 = vld [vmem:[%s11147_s5 + $0x40] sm:$0xff]  }
 0x46e   : > { %v5377_v34 = vmax.f32 %v5375_v45, %v5376_v21  ;;  %v5384_v17 = vmax.f32 %v5382_v59, %v5383_v10  ;;  %v5395_v16 = vrot.slane %v5394_v1, 2  ;;  %v5414_v43 = vrot.slane %v5413_v26, 4  ;;  %v10874_v57 = vld [vmem:[#allocation3 + $0xb0] sm:$0xff]  ;;  %v10914_v31 = vld [vmem:[#allocation3 + $0x21] sm:$0xff] }
 0x46f   : > { %v5390_v5 = vrot.slane %v5389_v32, 1  ;;  %v5401_v60 = vmax.f32 %v5399_v9, %v5400_v36  ;;  %v5408_v4 = vmax.f32 %v5406_v52, %v5407_v47  ;;  %v10877_v12 = vpack.c.bf16 %v10874_v57, %v6099_v8  ;;  %v10912_v45 = vld [vmem:[#allocation3 + $0xaf] sm:$0xff] }
 0x470   : > { %v5570_v63 = vsel %vm5514_vm6, %v5377_v34, %v5370_v28  ;;  %v5396_v37 = vmax.f32 %v5394_v1, %v5395_v16  ;;  %v5415_v3 = vmax.f32 %v5413_v26, %v5414_v43  ;;  %v5603_v15 = vpack.c.bf16 %v10886_v35, %v10891_v54  ;;  %v5836_v59 = vld [vmem:[#allocation3 + $0x9] sm:$0xff]  ;;  %v8549_v28 = vld [vmem:[%s11147_s5 + $0x78] sm:$0xff]   ;;  %v10935_v1 = vld [vmem:[#allocation3 + $0x81] sm:$0xff] }
 0x471   : > { %v5391_v11 = vmax.f32 %v5389_v32, %v5390_v5  ;;  %v5571_v42 = vsel %vm5516_vm7, %v5384_v17, %v5570_v63  ;;  %v5402_v14 = vrot.slane %v5401_v60, 2  ;;  %v5409_v38 = vrot.slane %v5408_v4, 2  ;;  %8300 = vmatmul.mubr.msk.bf16.gmra.mxu1 %vm4570_vm4, %v10877_v12  ;;  %v10933_v10 = vld [vmem:[#allocation3 + $0x51] sm:$0xff]  ;;  %v10938_v32 = vld [vmem:[#allocation3 + $0x39] sm:$0xff]  ;;  %v10943_v47 = vld [vmem:[#allocation3 + $0x69] sm:$0xff] }
 0x472   : > { %v5397_v24 = vrot.slane %v5396_v37, 1  ;;  %v5416_v46 = vrot.slane %v5415_v3, 2  ;;  %8311 = vmatprep.mubr.msk.bf16.mxu1 %vm4570_vm4, %v5602_v29  ;;  %v5604_v25 = vpack.c.bf16 %v10888_v27, %v10895_v55  ;;  %v5844_v9 = vpack.c.bf16 %v10914_v31, %v5836_v59  ;;  %v8551_v26 = vld [vmem:[%s11147_s5 + $0x70] sm:$0xff]   ;;  %v8553_v17 = vld [vmem:[%s11147_s5 + $0x68] sm:$0xff]   ;;  %v5842_v43 = vld [vmem:[#allocation3 + $0x99] sm:$0xff] }
 0x473   : > { %v5403_v48 = vmax.f32 %v5401_v60, %v5402_v14  ;;  %v5410_v30 = vmax.f32 %v5408_v4, %v5409_v38  ;;  %v5572_v8 = vsel %vm5518_vm8, %v5391_v11, %v5571_v42  ;;  %v5845_v36 = vpack.c.bf16 %v10933_v10, %v10938_v32  ;;  %v8548_v34 = vld [vmem:[%s11147_s5 + $0x110] sm:$0xff]   ;;  %v8554_v5 = vld [vmem:[%s11147_s5 + $0x60] sm:$0xff]   ;;  %v8550_v60 = vld [vmem:[%s11147_s5 + $0x108] sm:$0xff]  }
 0x474   : > { %v5398_v7 = vmax.f32 %v5396_v37, %v5397_v24  ;;  %v5417_v49 = vmax.f32 %v5415_v3, %v5416_v46  ;;  %v5846_v41 = vpack.c.bf16 %v10935_v1, %v10943_v47  ;;  %v10958_v16 = vld [vmem:[#allocation3 + $0xb1] sm:$0xff]  ;;  %v5973_v4 = vpack.c.bf16 %v10891_v54, %v10871_v0  ;;  %v6360_v37 = vld [vmem:[#allocation3 + $0xdf] sm:$0xff]  ;;  %v8557_v14 = vld [vmem:[%s11147_s5 + $0xa8] sm:$0xff]  }
 0x475   : > { %v5404_v6 = vrot.slane %v5403_v48, 1  ;;  %v5411_v40 = vrot.slane %v5410_v30, 1  ;;  %v8552_v3 = vld [vmem:[%s11147_s5 + $0x100] sm:$0xff]   ;;  %v8555_v29 = vld [vmem:[%s11147_s5 + $0xb8] sm:$0xff]   ;;  %v5974_v0 = vpack.c.bf16 %v10895_v55, %v10886_v35  ;;  %v8556_v11 = vld [vmem:[%s11147_s5 + $0xb0] sm:$0xff]   ;;  %v5975_v42 = vpack.c.bf16 %v10916_v18, %v10888_v27 }
 0x476   : > { %v5418_v44 = vrot.slane %v5417_v49, 1  ;;  %v5573_v53 = vsel %vm5520_vm9, %v5398_v7, %v5572_v8  ;;  %v8558_v24 = vld [vmem:[%s11147_s5 + $0xa0] sm:$0xff]   ;;  %v6231_v46 = vpack.c.bf16 %v10938_v32, %v10914_v31  ;;  %v8559_v8 = vld [vmem:[%s11147_s5 + $0xf8] sm:$0xff]   ;;  %v8560_v35 = vld [vmem:[%s11147_s5 + $0xf0] sm:$0xff]  }
 0x477   : > { %v5405_v56 = vmax.f32 %v5403_v48, %v5404_v6  ;;  %v5412_v33 = vmax.f32 %v5410_v30, %v5411_v40  ;;  %v6618_v30 = vld [vmem:[#allocation3 + $0xe1] sm:$0xff]  ;;  %v6233_v6 = vpack.c.bf16 %v5842_v43, %v10935_v1 }
 0x478   : > { %v5419_v20 = vmax.f32 %v5417_v49, %v5418_v44  ;;  %v6232_v49 = vpack.c.bf16 %v10943_v47, %v10933_v10  ;;  %v8561_v40 = vld [vmem:[%s11147_s5 + $0xe8] sm:$0xff]   ;;  %v8562_v44 = vld [vmem:[%s11147_s5 + $0xe0] sm:$0xff]  }
 0x479   : > { %v5574_v58 = vsel %vm5522_vm10, %v5405_v56, %v5573_v53  ;;  %8312 = vmatmul.mubr.msk.bf16.vlgmr.msra.gmra.mxu1 %vm4570_vm4, %v5603_v15  ;;  %v6489_v53 = vld [vmem:[#allocation3 + $0xe0] sm:$0xff] }
 0x47a   : > { %v5575_v51 = vsel %vm5524_vm11, %v5412_v33, %v5574_v58  ;;  %8320 = vmatpush3.bf16.msra.mxu1 %v10857_v61  ;;  %8315 = vmatprep.mubr.msk.bf16.mxu1 %vm4570_vm4, %v5604_v25  ;;  %v5605_v61 = vpack.c.bf16 %v10912_v45, %v10916_v18 }
 0x47b   : > { %v5576_v19 = vsel %vm5526_vm12, %v5419_v20, %v5575_v51  ;;  %8321 = vmatprep.subr.bf16.mxu1 %v8543_v50 }
 0x47c   : > { %5593 = vst.msk [vmem:[#allocation3 + $0xc8] sm:$0xff] %vm4570_vm4, %v5576_v19 }
 0x47e   : > { %8322 = vmatpush3.bf16.msra.mxu1 %v8543_v50 }
 0x47f   : > { %8323 = vmatprep.subr.bf16.mxu1 %v8545_v2 }
 0x481   : > { %8316 = vmatmul.mubr.msk.bf16.gmra.mxu1 %vm4570_vm4, %v5605_v61 }
 0x482   : > { %8324 = vmatpush3.bf16.msra.mxu1 %v8545_v2  ;;  %8327 = vmatprep.mubr.msk.bf16.mxu1 %vm4570_vm4, %v5844_v9 }
 0x483   : > { %v10926_v52 = vld [vmem:[#allocation3 + $0xc8] sm:$0xff]  ;;  %8325 = vmatprep.subr.bf16.mxu1 %v8547_v62 }
 0x484   : > { %v6105_v21 = vpack.c.bf16 %v10926_v52, %v10874_v57  ;;  %v5847_v57 = vpack.c.bf16 %v10958_v16, %v5842_v43  ;;  %v6359_v63 = vld [vmem:[#allocation3 + $0xc7] sm:$0xff]  ;;  %v6493_v54 = vpack.c.bf16 %v6489_v53, %v10926_v52 }
 0x485   : > { %v5976_v38 = vpack.c.bf16 %v6359_v63, %v10912_v45  ;;  %v6617_v48 = vld [vmem:[#allocation3 + $0xc9] sm:$0xff] }
 0x486   : > { %8364 = vmatmul.mubr.msk.bf16.gmra.mxu0 %vm4570_vm4, %v6105_v21  ;;  %8326 = vmatpush3.bf16.msra.mxu1 %v8547_v62  ;;  %v6622_v7 = vpack.c.bf16 %v6618_v30, %v6617_v48  ;;  %v6234_v27 = vpack.c.bf16 %v6617_v48, %v10958_v16 }
 0x487   : > { %8391 = vmatprep.mubr.msk.bf16.mxu0 %vm4570_vm4, %v5603_v15  ;;  %8335 = vmatprep.subr.bf16.mxu1 %v8549_v28 }
 0x489   : > { %8328 = vmatmul.mubr.msk.bf16.vlgmr.msra.gmra.mxu1 %vm4570_vm4, %v5845_v36 }
 0x48a   : > { %8336 = vmatpush3.bf16.msra.mxu1 %v8549_v28  ;;  %8331 = vmatprep.mubr.msk.bf16.mxu1 %vm4570_vm4, %v5846_v41 }
 0x48b   : > { %8337 = vmatprep.subr.bf16.mxu1 %v8551_v26 }
 0x48e   : > { %8392 = vmatmul.mubr.msk.bf16.vlgmr.msra.gmra.mxu0 %vm4570_vm4, %v5604_v25  ;;  %8338 = vmatpush3.bf16.msra.mxu1 %v8551_v26 }
 0x48f   : > { %8395 = vmatprep.mubr.msk.bf16.mxu0 %vm4570_vm4, %v5605_v61  ;;  %8416 = vmatpush3.bf16.msra.mxu0 %v10865_v39  ;;  %v6364_v39 = vpack.c.bf16 %v6360_v37, %v6359_v63 }
 0x490   : > { %8417 = vmatprep.subr.bf16.mxu0 %v8548_v34  ;;  %8339 = vmatprep.subr.bf16.mxu1 %v8553_v17 }
 0x491   : > { %8332 = vmatmul.mubr.msk.bf16.gmra.mxu1 %vm4570_vm4, %v5847_v57 }
 0x492   : > { %8340 = vmatpush3.bf16.msra.mxu1 %v8553_v17  ;;  %8343 = vmatprep.mubr.msk.bf16.mxu1 %vm4570_vm4, %v5973_v4 }
 0x493   : > { %8418 = vmatpush3.bf16.msra.mxu0 %v8548_v34  ;;  %8341 = vmatprep.subr.bf16.mxu1 %v8554_v5 }
 0x494   : > { %8419 = vmatprep.subr.bf16.mxu0 %v8550_v60 }
 0x496   : > { %8396 = vmatmul.mubr.msk.bf16.gmra.mxu0 %vm4570_vm4, %v6364_v39  ;;  %8342 = vmatpush3.bf16.msra.mxu1 %v8554_v5 }
 0x497   : > { %8420 = vmatpush3.bf16.msra.mxu0 %v8550_v60  ;;  %8423 = vmatprep.mubr.msk.bf16.mxu0 %vm4570_vm4, %v5845_v36 }
 0x498   : > { %8421 = vmatprep.subr.bf16.mxu0 %v8552_v3  ;;  %8367 = vmatprep.subr.bf16.mxu1 %v8555_v29 }
 0x499   : > { %8344 = vmatmul.mubr.msk.bf16.vlgmr.msra.gmra.mxu1 %vm4570_vm4, %v5974_v0 }
 0x49a   : > { %8368 = vmatpush3.bf16.msra.mxu1 %v8555_v29  ;;  %8347 = vmatprep.mubr.msk.bf16.mxu1 %vm4570_vm4, %v5975_v42 }
 0x49b   : > { %8422 = vmatpush3.bf16.msra.mxu0 %v8552_v3  ;;  %8369 = vmatprep.subr.bf16.mxu1 %v8556_v11 }
 0x49e   : > { %8424 = vmatmul.mubr.msk.bf16.vlgmr.msra.gmra.mxu0 %vm4570_vm4, %v5846_v41  ;;  %8370 = vmatpush3.bf16.msra.mxu1 %v8556_v11 }
 0x49f   : > { %8427 = vmatprep.mubr.msk.bf16.mxu0 %vm4570_vm4, %v5847_v57  ;;  %8371 = vmatprep.subr.bf16.mxu1 %v8557_v14 }
 0x4a1   : > { %8348 = vmatmul.mubr.msk.bf16.gmra.mxu1 %vm4570_vm4, %v5976_v38 }
 0x4a2   : > { %8372 = vmatpush3.bf16.msra.mxu1 %v8557_v14  ;;  %8375 = vmatprep.mubr.msk.bf16.mxu1 %vm4570_vm4, %v6231_v46 }
 0x4a3   : > { %8373 = vmatprep.subr.bf16.mxu1 %v8558_v24 }
 0x4a6   : > { %8428 = vmatmul.mubr.msk.bf16.gmra.mxu0 %vm4570_vm4, %v6622_v7  ;;  %8374 = vmatpush3.bf16.msra.mxu1 %v8558_v24 }
 0x4a7   : > { %8399 = vmatprep.subr.bf16.mxu1 %v8559_v8 }
 0x4a9   : > { %8376 = vmatmul.mubr.msk.bf16.vlgmr.msra.gmra.mxu1 %vm4570_vm4, %v6232_v49 }
 0x4aa   : > { %8400 = vmatpush3.bf16.msra.mxu1 %v8559_v8  ;;  %8379 = vmatprep.mubr.msk.bf16.mxu1 %vm4570_vm4, %v6233_v6 }
 0x4ab   : > { %8401 = vmatprep.subr.bf16.mxu1 %v8560_v35 }
 0x4ae   : > { %8402 = vmatpush3.bf16.msra.mxu1 %v8560_v35 }
 0x4af   : > { %8403 = vmatprep.subr.bf16.mxu1 %v8561_v40 }
 0x4b1   : > { %8380 = vmatmul.mubr.msk.bf16.gmra.mxu1 %vm4570_vm4, %v6234_v27 }
 0x4b2   : > { %8404 = vmatpush3.bf16.msra.mxu1 %v8561_v40  ;;  %8407 = vmatprep.mubr.msk.bf16.mxu1 %vm4570_vm4, %v10809_v13 }
 0x4b3   : > { %8405 = vmatprep.subr.bf16.mxu1 %v8562_v44 }
 0x4b6   : > { %8406 = vmatpush3.bf16.msra.mxu1 %v8562_v44 }
 0x4b9   : > { %8408 = vmatmul.mubr.msk.bf16.vlgmr.msra.gmra.mxu1 %vm4570_vm4, %v10844_v22 }
 0x4ba   : > { %8411 = vmatprep.mubr.msk.bf16.mxu1 %vm4570_vm4, %v10877_v12 }
 0x4c1   : > { %8412 = vmatmul.mubr.msk.bf16.gmra.mxu1 %vm4570_vm4, %v6493_v54 }
 0x51d   : > { %v8297_v56 = vpop.f32.mrf.mxu1 }
 0x51f   : > { %v5704_v33 = vpop.f32.mrf.mxu1  ;;  %v8361_v58 = vpop.f32.mrf.mxu0 }
 0x521   : > { %v8298_v15 = vpop.f32.mrf.mxu1  ;;  %v11032_v22 = vpop.f32.mrf.mxu0 }
 0x523   : > { %v5707_v55 = vpop.f32.mrf.mxu1  ;;  %v11034_v45 = vpop.f32.mrf.mxu0 }
 0x525   : > { %v11036_v61 = vpop.f32.mrf.mxu0 }
 0x531   : > { %v8301_v50 = vpop.f32.mrf.mxu1 }
 0x533   : > { %v5720_v20 = vpop.f32.mrf.mxu1 }
 0x535   : > { %v8302_v13 = vpop.f32.mrf.mxu1 }
 0x537   : > { %v5723_v25 = vpop.f32.mrf.mxu1 }
 0x539   : > { %v8313_v51 = vpop.f32.mrf.mxu1 }
 0x53a   : > { %v5814_v8 = vadd.f32 %v8313_v51, %v8297_v56 }
 0x53b   : > { %v5805_v19 = vpop.f32.mrf.mxu1 }
 0x53c   : > { %v5806_v49 = vadd.f32 %v5805_v19, %v5704_v33 }
 0x53d   : > { %v8314_v2 = vpop.f32.mrf.mxu1 }
 0x53e   : > { %v5817_v27 = vadd.f32 %v8314_v2, %v8298_v15 }
 0x53f   : > { %v5808_v12 = vpop.f32.mrf.mxu1 }
 0x541   : > { %v8317_v59 = vpop.f32.mrf.mxu1 }
 0x542   : > { %v5830_v31 = vadd.f32 %v8317_v59, %v8301_v50  ;;  %v5809_v50 = vadd.f32 %v5808_v12, %v5707_v55 }
 0x543   : > { %v5821_v18 = vpop.f32.mrf.mxu1 }
 0x544   : > { %v11038_v62 = vadd.f32 %v5821_v18, %v5720_v20 }
 0x545   : > { %v8318_v9 = vpop.f32.mrf.mxu1 }
 0x546   : > { %v11040_v52 = vpop.f32.mrf.mxu0  ;;  %v5833_v28 = vadd.f32 %v8318_v9, %v8302_v13 }
 0x547   : > { %v5824_v21 = vpop.f32.mrf.mxu1 }
 0x548   : > { %v11042_v10 = vadd.f32 %v5824_v21, %v5723_v25  ;;  %v11044_v1 = vpop.f32.mrf.mxu0 }
 0x549   : > { %v8329_v32 = vpop.f32.mrf.mxu1 }
 0x54a   : > { %v11046_v47 = vpop.f32.mrf.mxu0  ;;  %v5959_v35 = vadd.f32 %v8329_v32, %v5814_v8 }
 0x54b   : > { %v5926_v36 = vpop.f32.mrf.mxu1 }
 0x54c   : > { %v11048_v34 = vpop.f32.mrf.mxu0  ;;  %v5957_v44 = vadd.f32 %v5926_v36, %v5806_v49 }
 0x54d   : > { %v8330_v26 = vpop.f32.mrf.mxu1 }
 0x54e   : > { %v8393_v57 = vpop.f32.mrf.mxu0  ;;  %v5960_v20 = vadd.f32 %v8330_v26, %v5817_v27 }
 0x54f   : > { %v5929_v41 = vpop.f32.mrf.mxu1 }
 0x550   : > { %v6443_v63 = vpop.f32.mrf.mxu0 }
 0x551   : > { %v8333_v17 = vpop.f32.mrf.mxu1 }
 0x552   : > { %v5963_v16 = vadd.f32 %v8333_v17, %v5830_v31  ;;  %v8394_v3 = vpop.f32.mrf.mxu0  ;;  %v5958_v31 = vadd.f32 %v5929_v41, %v5809_v50 }
 0x553   : > { %v5942_v43 = vpop.f32.mrf.mxu1 }
 0x554   : > { %v6446_v11 = vpop.f32.mrf.mxu0  ;;  %v5961_v26 = vadd.f32 %v5942_v43, %v11038_v62 }
 0x555   : > { %v8334_v5 = vpop.f32.mrf.mxu1 }
 0x556   : > { %v11050_v60 = vadd.f32 %v8334_v5, %v5833_v28  ;;  %v11054_v38 = vpop.f32.mrf.mxu0 }
 0x557   : > { %v11052_v4 = vpop.f32.mrf.mxu1 }
 0x558   : > { %v11058_v48 = vpop.f32.mrf.mxu0 }
 0x559   : > { %v8345_v37 = vpop.f32.mrf.mxu1 }
 0x55a   : > { %v11060_v6 = vpop.f32.mrf.mxu0  ;;  %v6088_v53 = vadd.f32 %v8345_v37, %v5959_v35 }
 0x55b   : > { %v6055_v39 = vpop.f32.mrf.mxu1 }
 0x55c   : > { %v6086_v13 = vadd.f32 %v6055_v39, %v5957_v44  ;;  %v11062_v25 = vpop.f32.mrf.mxu0  ;;  %v6217_v9 = vadd.f32 %v8361_v58, %v6088_v53 }
 0x55d   : > { %v8346_v29 = vpop.f32.mrf.mxu1 }
 0x55e   : > { %v6089_v18 = vadd.f32 %v8346_v29, %v5960_v20  ;;  %v6215_v19 = vadd.f32 %v11032_v22, %v6086_v13  ;;  %v8425_v28 = vpop.f32.mrf.mxu0 }
 0x55f   : > { %v6058_v0 = vpop.f32.mrf.mxu1 }
 0x560   : > { %v6087_v51 = vadd.f32 %v6058_v0, %v5958_v31  ;;  %v6218_v2 = vadd.f32 %v11034_v45, %v6089_v18  ;;  %v6701_v41 = vpop.f32.mrf.mxu0 }
 0x561   : > { %v8349_v42 = vpop.f32.mrf.mxu1 }
 0x562   : > { %v6216_v12 = vadd.f32 %v11036_v61, %v6087_v51  ;;  %v6092_v17 = vadd.f32 %v8349_v42, %v5963_v16  ;;  %v11072_v61 = vld [vmem:[%s11148_s6] ss:$0 sm:$0xff] }
 0x563   : > { %v6071_v14 = vpop.f32.mrf.mxu1 }
 0x564   : > { %v6090_v29 = vadd.f32 %v6071_v14, %v5961_v26  ;;  %v6221_v45 = vadd.f32 %v11040_v52, %v6092_v17  ;;  %v5962_v52 = vadd.f32 %v11052_v4, %v11042_v10 }
 0x565   : > { %v8350_v24 = vpop.f32.mrf.mxu1 }
 0x566   : > { %v6093_v42 = vadd.f32 %v8350_v24, %v11050_v60  ;;  %v6219_v14 = vadd.f32 %v11044_v1, %v6090_v29 }
 0x567   : > { %v11056_v46 = vpop.f32.mrf.mxu1 }
 0x568   : > { %v6091_v60 = vadd.f32 %v11056_v46, %v5962_v52  ;;  %v6222_v1 = vadd.f32 %v11046_v47, %v6093_v42 }
 0x569   : > { %v8377_v30 = vpop.f32.mrf.mxu1 }
 0x56a   : > { %v6346_v33 = vadd.f32 %v8377_v30, %v6217_v9 }
 0x56b   : > { %v6313_v7 = vpop.f32.mrf.mxu1 }
 0x56c   : > { %v6344_v15 = vadd.f32 %v6313_v7, %v6215_v19  ;;  %v6476_v36 = vadd.f32 %v8393_v57, %v6346_v33  ;;  %v8426_v7 = vpop.f32.mrf.mxu0  ;;  %v6220_v19 = vadd.f32 %v11048_v34, %v6091_v60 }
 0x56d   : > { %v8378_v40 = vpop.f32.mrf.mxu1 }
 0x56e   : > { %v6347_v55 = vadd.f32 %v8378_v40, %v6218_v2  ;;  %v6474_v39 = vadd.f32 %v6443_v63, %v6344_v15  ;;  %v6704_v27 = vpop.f32.mrf.mxu0 }
 0x56f   : > { %v6316_v54 = vpop.f32.mrf.mxu1 }
 0x570   : > { %v6345_v5 = vadd.f32 %v6316_v54, %v6216_v12  ;;  %v6477_v8 = vadd.f32 %v8394_v3, %v6347_v55  ;;  %v8429_v9 = vpop.f32.mrf.mxu0 }
 0x571   : > { %v8381_v59 = vpop.f32.mrf.mxu1 }
 0x572   : > { %v6475_v57 = vadd.f32 %v6446_v11, %v6345_v5  ;;  %v6350_v63 = vadd.f32 %v8381_v59, %v6221_v45  ;;  %v6717_v12 = vpop.f32.mrf.mxu0 }
 0x573   : > { %v6329_v56 = vpop.f32.mrf.mxu1 }
 0x574   : > { %v6348_v44 = vadd.f32 %v6329_v56, %v6219_v14  ;;  %v6480_v24 = vadd.f32 %v11054_v38, %v6350_v63 }
 0x575   : > { %v8382_v21 = vpop.f32.mrf.mxu1 }
 0x576   : > { %v6351_v10 = vadd.f32 %v8382_v21, %v6222_v1  ;;  %v6478_v18 = vadd.f32 %v11058_v48, %v6348_v44  ;;  %v8430_v44 = vpop.f32.mrf.mxu0 }
 0x577   : > { %v6332_v32 = vpop.f32.mrf.mxu1 }
 0x578   : > { %v6349_v2 = vadd.f32 %v6332_v32, %v6220_v19  ;;  %v6481_v21 = vadd.f32 %v11060_v6, %v6351_v10 }
 0x579   : > { %v8409_v58 = vpop.f32.mrf.mxu1 }
 0x57a   : > { %v6605_v37 = vadd.f32 %v8409_v58, %v6476_v36 }
 0x57b   : > { %v6572_v22 = vpop.f32.mrf.mxu1 }
 0x57c   : > { %v6734_v0 = vadd.f32 %v8425_v28, %v6605_v37  ;;  %v6603_v30 = vadd.f32 %v6572_v22, %v6474_v39 }
 0x57d   : > { %v8410_v62 = vpop.f32.mrf.mxu1 }
 0x57e   : > { %v6732_v43 = vadd.f32 %v6701_v41, %v6603_v30  ;;  %v6606_v16 = vadd.f32 %v8410_v62, %v6477_v8  ;;  %v6749_v3 = vadd.f32 %v11072_v61, %v6734_v0 }
 0x57f   : > { %v6575_v49 = vpop.f32.mrf.mxu1 }
 0x580   : > { %v6735_v35 = vadd.f32 %v8426_v7, %v6606_v16  ;;  %v6604_v40 = vadd.f32 %v6575_v49, %v6475_v57  ;;  %v6747_v54 = vadd.f32 %v11072_v61, %v6732_v43  ;;  %v6757_v20 = vmax.f32 %v6749_v3, 0.0 }
 0x581   : > { %v8413_v53 = vpop.f32.mrf.mxu1 }
 0x582   : > { %v6750_v11 = vadd.f32 %v11072_v61, %v6735_v35  ;;  %v6733_v50 = vadd.f32 %v6704_v27, %v6604_v40  ;;  %v6609_v4 = vadd.f32 %v8413_v53, %v6480_v24  ;;  %v6755_v56 = vmax.f32 %v6747_v54, 0.0 }
 0x583   : > { %v6588_v31 = vpop.f32.mrf.mxu1 }
 0x584   : > { %v6758_v13 = vmax.f32 %v6750_v11, 0.0  ;;  %v6748_v59 = vadd.f32 %v11072_v61, %v6733_v50  ;;  %v6607_v46 = vadd.f32 %v6588_v31, %v6478_v18  ;;  %v6738_v55 = vadd.f32 %v8429_v9, %v6609_v4 }
 0x585   : > { %v8414_v15 = vpop.f32.mrf.mxu1 }
 0x586   : > { %v6764_v51 = vmax.f32 %v6757_v20, %v6758_v13  ;;  %v6756_v33 = vmax.f32 %v6748_v59, 0.0  ;;  %v6736_v58 = vadd.f32 %v6717_v12, %v6607_v46  ;;  %v6610_v5 = vadd.f32 %v8414_v15, %v6481_v21 }
 0x588   : > { %v6788_v47 = vcombine.high %v6764_v51, %v6764_v51  ;;  %v6795_v38 = vrot.slane %v6764_v51, %v10414_v23  ;;  %v6763_v28 = vmax.f32 %v6755_v56, %v6756_v33  ;;  %v6739_v20 = vadd.f32 %v8430_v44, %v6610_v5 }
 0x589   : > { %v6479_v56 = vadd.f32 %v11062_v25, %v6349_v2  ;;  %v6751_v15 = vadd.f32 %v11072_v61, %v6736_v58 }
 0x58a   : > { %v6802_v48 = vrot.slane %v6788_v47, %v10414_v23  ;;  %v6803_v36 = vcombine.high %v6795_v38, %v6795_v38  ;;  %v6884_v26 = vsel %vm6855_vm13, %v6795_v38, -inf  ;;  %v6771_v41 = vcombine.high %v6763_v28, %v6763_v28  ;;  %v6591_v47 = vpop.f32.mrf.mxu1 }
 0x58b   : > { %v6885_v17 = vrot.slane %v6884_v26, 4  ;;  %v6778_v34 = vrot.slane %v6763_v28, %v10414_v23  ;;  %v6753_v28 = vadd.f32 %v11072_v61, %v6738_v55  ;;  %v6754_v21 = vadd.f32 %v11072_v61, %v6739_v20  ;;  %v6720_v55 = vpop.f32.mrf.mxu0 }
 0x58c   : > { %v6804_v37 = vcombine.high %v6802_v48, %v6802_v48  ;;  %v6891_v39 = vsel %vm6855_vm13, %v6803_v36, -inf  ;;  %v6898_v32 = vsel %vm6855_vm13, %v6802_v48, -inf  ;;  %v6785_v29 = vrot.slane %v6771_v41, %v10414_v23 }
 0x58d   : > { %v6886_v6 = vmax.f32 %v6884_v26, %v6885_v17  ;;  %v6892_v22 = vrot.slane %v6891_v39, 4  ;;  %v6899_v0 = vrot.slane %v6898_v32, 4  ;;  %v6786_v30 = vcombine.high %v6778_v34, %v6778_v34 }
 0x58e   : > { %v6905_v8 = vsel %vm6855_vm13, %v6804_v37, -inf  ;;  %v6787_v7 = vcombine.high %v6785_v29, %v6785_v29  ;;  %v6856_v45 = vsel %vm6855_vm13, %v6778_v34, -inf  ;;  %v6870_v62 = vsel %vm6855_vm13, %v6785_v29, -inf }
 0x58f   : > { %v6887_v43 = vrot.slane %v6886_v6, 2  ;;  %v6893_v16 = vmax.f32 %v6891_v39, %v6892_v22  ;;  %v6900_v57 = vmax.f32 %v6898_v32, %v6899_v0  ;;  %v6906_v42 = vrot.slane %v6905_v8, 4 }
 0x590   : > { %v6857_v63 = vrot.slane %v6856_v45, 4  ;;  %v6863_v14 = vsel %vm6855_vm13, %v6786_v30, -inf  ;;  %v6871_v49 = vrot.slane %v6870_v62, 4  ;;  %v6877_v3 = vsel %vm6855_vm13, %v6787_v7, -inf }
 0x591   : > { %v6888_v35 = vmax.f32 %v6886_v6, %v6887_v43  ;;  %v6894_v40 = vrot.slane %v6893_v16, 2  ;;  %v6901_v52 = vrot.slane %v6900_v57, 2  ;;  %v6907_v27 = vmax.f32 %v6905_v8, %v6906_v42 }
 0x592   : > { %v6858_v53 = vmax.f32 %v6856_v45, %v6857_v63  ;;  %v6864_v54 = vrot.slane %v6863_v14, 4  ;;  %v6872_v11 = vmax.f32 %v6870_v62, %v6871_v49  ;;  %v6878_v50 = vrot.slane %v6877_v3, 4 }
 0x593   : > { %v6895_v60 = vmax.f32 %v6893_v16, %v6894_v40  ;;  %v6902_v1 = vmax.f32 %v6900_v57, %v6901_v52  ;;  %v6908_v24 = vrot.slane %v6907_v27, 2  ;;  %v6889_v4 = vrot.slane %v6888_v35, 1 }
 0x594   : > { %v6859_v13 = vrot.slane %v6858_v53, 2  ;;  %v6865_v59 = vmax.f32 %v6863_v14, %v6864_v54  ;;  %v6873_v31 = vrot.slane %v6872_v11, 2  ;;  %v6879_v10 = vmax.f32 %v6877_v3, %v6878_v50 }
 0x595   : > { %v6896_v18 = vrot.slane %v6895_v60, 1  ;;  %v6909_v9 = vmax.f32 %v6907_v27, %v6908_v24  ;;  %v6903_v38 = vrot.slane %v6902_v1, 1  ;;  %v6890_v41 = vmax.f32 %v6888_v35, %v6889_v4 }
 0x596   : > { %v6860_v51 = vmax.f32 %v6858_v53, %v6859_v13  ;;  %v6866_v33 = vrot.slane %v6865_v59, 2  ;;  %v6874_v19 = vmax.f32 %v6872_v11, %v6873_v31  ;;  %v6880_v46 = vrot.slane %v6879_v10, 2 }
 0x597   : > { %v6897_v17 = vmax.f32 %v6895_v60, %v6896_v18  ;;  %v6910_v34 = vrot.slane %v6909_v9, 1  ;;  %v6608_v25 = vadd.f32 %v6591_v47, %v6479_v56  ;;  %v6904_v32 = vmax.f32 %v6902_v1, %v6903_v38 }
 0x598   : > { %v6861_v12 = vrot.slane %v6860_v51, 1  ;;  %v6867_v48 = vmax.f32 %v6865_v59, %v6866_v33  ;;  %v6875_v36 = vrot.slane %v6874_v19, 1  ;;  %v6881_v26 = vmax.f32 %v6879_v10, %v6880_v46 }
 0x599   : > { %v6761_v29 = vmax.f32 %v6753_v28, 0.0  ;;  %v6762_v6 = vmax.f32 %v6754_v21, 0.0  ;;  %v7522_v8 = vpack.c.bf16 %v6890_v41, %v6890_v41  ;;  %v6759_v7 = vmax.f32 %v6751_v15, 0.0 }
 0x59a   : > { %v6862_v2 = vmax.f32 %v6860_v51, %v6861_v12  ;;  %v6868_v5 = vrot.slane %v6867_v48, 1  ;;  %v6876_v37 = vmax.f32 %v6874_v19, %v6875_v36  ;;  %v6882_v39 = vrot.slane %v6881_v26, 1 }
 0x59b   : > { %v6766_v45 = vmax.f32 %v6761_v29, %v6762_v6  ;;  %v6737_v62 = vadd.f32 %v6720_v55, %v6608_v25  ;;  %v6911_v43 = vmax.f32 %v6909_v9, %v6910_v34  ;;  %v7523_v16 = vpack.c.bf16 %v6897_v17, %v6897_v17 }
 0x59c   : > { %v6869_v22 = vmax.f32 %v6867_v48, %v6868_v5  ;;  %v6883_v58 = vmax.f32 %v6881_v26, %v6882_v39  ;;  %v7518_v0 = vpack.c.bf16 %v6862_v2, %v6862_v2  ;;  %v7520_v30 = vpack.c.bf16 %v6876_v37, %v6876_v37 }
 0x59d   : > { %v6822_v14 = vcombine.high %v6766_v45, %v6766_v45  ;;  %v6829_v49 = vrot.slane %v6766_v45, %v10414_v23  ;;  %v6752_v3 = vadd.f32 %v11072_v61, %v6737_v62  ;;  %v7524_v35 = vpack.c.bf16 %v6904_v32, %v6904_v32 }
 0x59e   : > { %v7519_v57 = vpack.c.bf16 %v6869_v22, %v6869_v22  ;;  %v7521_v42 = vpack.c.bf16 %v6883_v58, %v6883_v58  ;;  %v7034_v63 = vunpack.c.l.b16 %v7520_v30  ;;  %v7032_v40 = vunpack.c.l.b16 %v7518_v0 }
 0x59f   : > { %v6836_v44 = vrot.slane %v6822_v14, %v10414_v23  ;;  %v6837_v53 = vcombine.high %v6829_v49, %v6829_v49  ;;  %v6940_v54 = vsel %vm6855_vm13, %v6829_v49, -inf  ;;  %v6760_v11 = vmax.f32 %v6752_v3, 0.0 }
 0x5a0   : > { %v7033_v52 = vunpack.c.l.b16 %v7519_v57  ;;  %v7035_v27 = vunpack.c.l.b16 %v7521_v42  ;;  %v7525_v50 = vpack.c.bf16 %v6911_v43, %v6911_v43  ;;  %v7036_v60 = vunpack.c.l.b16 %v7522_v8 }
 0x5a1   : > { %v6941_v24 = vrot.slane %v6940_v54, 4  ;;  %v6838_v13 = vcombine.high %v6836_v44, %v6836_v44  ;;  %v6947_v61 = vsel %vm6855_vm13, %v6837_v53, -inf  ;;  %v6954_v59 = vsel %vm6855_vm13, %v6836_v44, -inf }
 0x5a2   : > { %v7048_v1 = vsel %vm5514_vm6, %v7033_v52, %v7032_v40  ;;  %v7037_v31 = vunpack.c.l.b16 %v7523_v16  ;;  %v7038_v10 = vunpack.c.l.b16 %v7524_v35  ;;  %v6948_v18 = vrot.slane %v6947_v61, 4 }
 0x5a3   : > { %v7049_v20 = vsel %vm5516_vm7, %v7034_v63, %v7048_v1  ;;  %v6955_v56 = vrot.slane %v6954_v59, 4  ;;  %v6961_v51 = vsel %vm6855_vm13, %v6838_v13, -inf  ;;  %v6765_v33 = vmax.f32 %v6759_v7, %v6760_v11 }
 0x5a4   : > { %v7050_v4 = vsel %vm5518_vm8, %v7035_v27, %v7049_v20  ;;  %v7039_v19 = vunpack.c.l.b16 %v7525_v50  ;;  %v6942_v47 = vmax.f32 %v6940_v54, %v6941_v24  ;;  %v6962_v28 = vrot.slane %v6961_v51, 4 }
 0x5a5   : > { %v7051_v9 = vsel %vm5520_vm9, %v7036_v60, %v7050_v4  ;;  %v6805_v15 = vcombine.high %v6765_v33, %v6765_v33  ;;  %v6812_v21 = vrot.slane %v6765_v33, %v10414_v23  ;;  %v6949_v48 = vmax.f32 %v6947_v61, %v6948_v18 }
 0x5a6   : > { %v7052_v46 = vsel %vm5522_vm10, %v7037_v31, %v7051_v9  ;;  %v6956_v26 = vmax.f32 %v6954_v59, %v6955_v56  ;;  %v6963_v34 = vmax.f32 %v6961_v51, %v6962_v28  ;;  %v6943_v2 = vrot.slane %v6942_v47, 2 }
 0x5a7   : > { %v7053_v38 = vsel %vm5524_vm11, %v7038_v10, %v7052_v46  ;;  %v6819_v41 = vrot.slane %v6805_v15, %v10414_v23  ;;  %v6820_v17 = vcombine.high %v6812_v21, %v6812_v21  ;;  %v6912_v25 = vsel %vm6855_vm13, %v6812_v21, -inf }
 0x5a8   : > { %v7054_v12 = vsel %vm5526_vm12, %v7039_v19, %v7053_v38  ;;  %v6913_v37 = vrot.slane %v6912_v25, 4  ;;  %v6950_v32 = vrot.slane %v6949_v48, 2  ;;  %v6957_v6 = vrot.slane %v6956_v26, 2 }
 0x5a9   : > { %v7062_v36 = vpack.c.b16 %v7054_v12, %v7054_v12  ;;  %v6821_v5 = vcombine.high %v6819_v41, %v6819_v41  ;;  %v6919_v39 = vsel %vm6855_vm13, %v6820_v17, -inf  ;;  %v6926_v22 = vsel %vm6855_vm13, %v6819_v41, -inf }
 0x5aa   : > { %v6920_v29 = vrot.slane %v6919_v39, 4  ;;  %v6914_v55 = vmax.f32 %v6912_v25, %v6913_v37  ;;  %v6964_v0 = vrot.slane %v6963_v34, 2  ;;  %v6944_v30 = vmax.f32 %v6942_v47, %v6943_v2 }
 0x5ab   : > { %7066 = vst [vmem:[%s11122_s25] sm:$0xf] %v7062_v36  ;;  %v6933_v58 = vsel %vm6855_vm13, %v6821_v5, -inf  ;;  %v6927_v7 = vrot.slane %v6926_v22, 4  ;;  %v6951_v62 = vmax.f32 %v6949_v48, %v6950_v32  ;;  %v6958_v16 = vmax.f32 %v6956_v26, %v6957_v6 }
 0x5ac   : > { %v6921_v23 = vmax.f32 %v6919_v39, %v6920_v29  ;;  %v6915_v8 = vrot.slane %v6914_v55, 2  ;;  %v6934_v45 = vrot.slane %v6933_v58, 4  ;;  %v6965_v14 = vmax.f32 %v6963_v34, %v6964_v0 }
 0x5ad   : > { %v6928_v42 = vmax.f32 %v6926_v22, %v6927_v7  ;;  %v6945_v3 = vrot.slane %v6944_v30, 1  ;;  %v6952_v27 = vrot.slane %v6951_v62, 1  ;;  %v6959_v53 = vrot.slane %v6958_v16, 1 }
 0x5ae   : > { %v6922_v43 = vrot.slane %v6921_v23, 2  ;;  %v6916_v57 = vmax.f32 %v6914_v55, %v6915_v8  ;;  %v6935_v63 = vmax.f32 %v6933_v58, %v6934_v45  ;;  %v6966_v60 = vrot.slane %v6965_v14, 1 }
 0x5af   : > { %v6929_v40 = vrot.slane %v6928_v42, 2  ;;  %v6946_v24 = vmax.f32 %v6944_v30, %v6945_v3  ;;  %v6953_v59 = vmax.f32 %v6951_v62, %v6952_v27  ;;  %v6960_v10 = vmax.f32 %v6958_v16, %v6959_v53 }
 0x5b0   : > { %v6923_v49 = vmax.f32 %v6921_v23, %v6922_v43  ;;  %v6917_v35 = vrot.slane %v6916_v57, 1  ;;  %v6936_v52 = vrot.slane %v6935_v63, 2  ;;  %v6967_v9 = vmax.f32 %v6965_v14, %v6966_v60 }
 0x5b1   : > { %v6930_v11 = vmax.f32 %v6928_v42, %v6929_v40  ;;  %v7530_v33 = vpack.c.bf16 %v6946_v24, %v6946_v24  ;;  %v7531_v47 = vpack.c.bf16 %v6953_v59, %v6953_v59  ;;  %v7532_v28 = vpack.c.bf16 %v6960_v10, %v6960_v10 }
 0x5b2   : > { %v6924_v44 = vrot.slane %v6923_v49, 1  ;;  %v6918_v54 = vmax.f32 %v6916_v57, %v6917_v35  ;;  %v6937_v50 = vmax.f32 %v6935_v63, %v6936_v52  ;;  %v7533_v12 = vpack.c.bf16 %v6967_v9, %v6967_v9 }
 0x5b3   : > { %v6931_v20 = vrot.slane %v6930_v11, 1  ;;  %v7044_v48 = vunpack.c.l.b16 %v7530_v33  ;;  %v7045_v26 = vunpack.c.l.b16 %v7531_v47  ;;  %v7046_v17 = vunpack.c.l.b16 %v7532_v28 }
 0x5b4   : > { %v6925_v1 = vmax.f32 %v6923_v49, %v6924_v44  ;;  %v6938_v13 = vrot.slane %v6937_v50, 1  ;;  %v7526_v61 = vpack.c.bf16 %v6918_v54, %v6918_v54  ;;  %v7047_v25 = vunpack.c.l.b16 %v7533_v12 }
 0x5b5   : > { %v6932_v4 = vmax.f32 %v6930_v11, %v6931_v20 }
 0x5b6   : > { %v7527_v31 = vpack.c.bf16 %v6925_v1, %v6925_v1  ;;  %v6939_v18 = vmax.f32 %v6937_v50, %v6938_v13  ;;  %v7040_v56 = vunpack.c.l.b16 %v7526_v61 }
 0x5b7   : > { %v7528_v19 = vpack.c.bf16 %v6932_v4, %v6932_v4 }
 0x5b8   : > { %v7041_v51 = vunpack.c.l.b16 %v7527_v31  ;;  %v7529_v46 = vpack.c.bf16 %v6939_v18, %v6939_v18 }
 0x5b9   : > { %v7042_v15 = vunpack.c.l.b16 %v7528_v19 }
 0x5ba   : > { %v7055_v38 = vsel %vm5514_vm6, %v7041_v51, %v7040_v56  ;;  %v7043_v21 = vunpack.c.l.b16 %v7529_v46 }
 0x5bb   : > { %v7056_v36 = vsel %vm5516_vm7, %v7042_v15, %v7055_v38 }
 0x5bc   : > { %v7057_v41 = vsel %vm5518_vm8, %v7043_v21, %v7056_v36 }
 0x5bd   : > { %v7058_v34 = vsel %vm5520_vm9, %v7044_v48, %v7057_v41 }
 0x5be   : > { %v7059_v2 = vsel %vm5522_vm10, %v7045_v26, %v7058_v34 }
 0x5bf   : > { %v7060_v5 = vsel %vm5524_vm11, %v7046_v17, %v7059_v2 }
 0x5c0   : > { %v7061_v37 = vsel %vm5526_vm12, %v7047_v25, %v7060_v5 }
 0x5c1   : > { %v7063_v39 = vpack.c.b16 %v7061_v37, %v7061_v37 }
 0x5c3   : > { %7067 = vst [vmem:[%s11122_s25 + $0x4] sm:$0xf] %v7063_v39 }
 0x5c4 PF: > { %s17_s24 = sadd.s32 1, %s8571_s24  }
 0x5c5   : > { %p14_p4 = scmp.ge.s32.totalorder %s17_s24, 4  }
 0x5c7   :  { %16 = sbr.rel (!%p14_p4) target bundleno = 1 (0x1), region = 82 }

</bundles_post_ra>
